<compile_context>
chip_gen: v5e
topology: v5e:2x2
jax: 0.10.0
libtpu: 0.0.40
codegen_flags: <defaults>
</compile_context>

<pallas_src>
import functools
import math

import jax
import jax.numpy as jnp
from jax import lax
from jax.experimental import pallas as pl
from jax.experimental.pallas import tpu as pltpu

# ----------------------------------------------------------------------------
# Synthetic-but-structurally-faithful wav2vec2 config (the backbone is not in
# the reference source; char_proj / dropout / log_softmax are explicit).
# ----------------------------------------------------------------------------
D_MODEL = 32
N_HEADS = 4
D_HEAD = D_MODEL // N_HEADS
FFN_DIM = 64
N_LAYERS = 2
NUM_CHARS = 26
N_CLASSES = NUM_CHARS + 1          # char_proj -> num_chars + 1
C_PAD = 128                        # lane-padded class dim for a dense final store
LN_EPS = 1e-5
NEG_BIG = -1e9                     # finite "-inf" (safe in f32 and bf16)

# Feature encoder: Conv1d(k=4,s=4) + GELU -> Conv1d(k=2,s=2) + GELU.
CONV1_COUT, CONV1_K = 16, 4
CONV2_COUT, CONV2_K = D_MODEL, 2
SAMPLES_PER_FRAME = CONV1_K * CONV2_K      # 8 raw samples -> 1 output frame
CONV1_IN = 2 * CONV1_K                     # paired conv1 windows (c_in = 1) -> 8
CONV1_OUT = 2 * CONV1_COUT                 # 32
CONV2_IN = CONV2_K * CONV1_COUT            # 32


# ----------------------------------------------------------------------------
# Packed-parameter layout (one bf16 matrix slab + one f32 vector slab).
# ----------------------------------------------------------------------------
def _build_layout(entries):
    table, off = {}, 0
    for name, rows, cols in entries:
        table[name] = (off, rows, cols)
        off += rows
    return table, off


_MAT_ENTRIES = (
    [("conv1_w", CONV1_IN, CONV1_OUT),
     ("conv2_w", CONV2_IN, CONV2_COUT),
     ("feat_w", D_MODEL, D_MODEL)]
    + sum([[(f"wqkv{l}", D_MODEL, 3 * D_MODEL),
            (f"wo{l}", D_MODEL, D_MODEL),
            (f"w1{l}", D_MODEL, FFN_DIM),
            (f"w2{l}", FFN_DIM, D_MODEL)] for l in range(N_LAYERS)], [])
    + [("char_w", D_MODEL, C_PAD)]
)
MAT_LAYOUT, _mat_rows = _build_layout(_MAT_ENTRIES)
MAT_ROWS = ((_mat_rows + 7) // 8) * 8

_VEC_ENTRIES = (
    [("conv1_b", 1, CONV1_OUT), ("conv2_b", 1, CONV2_COUT),
     ("feat_ln_g", 1, D_MODEL), ("feat_ln_b", 1, D_MODEL), ("feat_b", 1, D_MODEL)]
    + sum([[(f"ln1_g{l}", 1, D_MODEL), (f"ln1_b{l}", 1, D_MODEL),
            (f"bqkv{l}", 1, 3 * D_MODEL), (f"bo{l}", 1, D_MODEL),
            (f"ln2_g{l}", 1, D_MODEL), (f"ln2_b{l}", 1, D_MODEL),
            (f"b1{l}", 1, FFN_DIM), (f"b2{l}", 1, D_MODEL)] for l in range(N_LAYERS)], [])
    + [("final_ln_g", 1, D_MODEL), ("final_ln_b", 1, D_MODEL), ("char_b", 1, C_PAD)]
)
VEC_LAYOUT, _vec_rows = _build_layout(_VEC_ENTRIES)
VEC_ROWS = ((_vec_rows + 7) // 8) * 8


# ----------------------------------------------------------------------------
# The single fused kernel.
# ----------------------------------------------------------------------------
def _wav2vec2_ctc_kernel(x_ref, mats_ref, vecs_ref, o_ref, *,
                         batch, seq, n_layers, n_heads, d_head):
    d_model = n_heads * d_head
    bs = batch * seq

    def W(name):                              # bf16 weight view (static slice)
        r, n, c = MAT_LAYOUT[name]
        return mats_ref[r:r + n, :c]

    def V(name):                              # f32 (1, c) bias / LN vector
        r, _, c = VEC_LAYOUT[name]
        return vecs_ref[r:r + 1, :c]

    def mm(x, name):                          # bf16 MXU operands, f32 accumulate
        return jnp.dot(x.astype(jnp.bfloat16), W(name),
                       preferred_element_type=jnp.float32)

    def layernorm(x, gname, bname):
        mu = jnp.mean(x, axis=-1, keepdims=True)
        var = jnp.mean(jnp.square(x - mu), axis=-1, keepdims=True)
        return (x - mu) * lax.rsqrt(var + LN_EPS) * V(gname) + V(bname)

    def gelu(x):
        # TODO(synk): PyTorch nn.GELU defaults to exact erf; tanh approximation used here.
        return jax.nn.gelu(x)

    # ---- feature encoder: both Conv1d+GELU stages as pure matmuls ----
    # x rows are already conv2 im2col patches of raw samples (paired conv1 windows).
    h = gelu(mm(x_ref[...], "conv1_w") + V("conv1_b"))        # (BS, 32)
    h = gelu(mm(h, "conv2_w") + V("conv2_b"))                 # (BS, D)

    # ---- feature projection: LayerNorm + Linear ----
    z = mm(layernorm(h, "feat_ln_g", "feat_ln_b"), "feat_w") + V("feat_b")

    # Constant masks (built once from 2-D iota; no extra inputs, no relayouts).
    lane = lax.broadcasted_iota(jnp.int32, (1, d_model), 1)
    head_masks = [((lane >= hh * d_head) & (lane < (hh + 1) * d_head)).astype(jnp.float32)
                  for hh in range(n_heads)]
    rb = lax.broadcasted_iota(jnp.int32, (bs, bs), 0)
    cb = lax.broadcasted_iota(jnp.int32, (bs, bs), 1)
    same_batch = jnp.zeros((bs, bs), jnp.bool_)
    for b in range(batch):
        in_row = (rb >= b * seq) & (rb < (b + 1) * seq)
        in_col = (cb >= b * seq) & (cb < (b + 1) * seq)
        same_batch = same_batch | (in_row & in_col)
    block_mask = jnp.where(same_batch, 0.0, NEG_BIG)          # blocks cross-batch attn

    for l in range(n_layers):
        # ---- self-attention (pre-LN); 1/sqrt(Dh) pre-folded into Wq/bq ----
        a = layernorm(z, f"ln1_g{l}", f"ln1_b{l}")
        qkv = mm(a, f"wqkv{l}") + V(f"bqkv{l}")               # (BS, 3D)
        q = qkv[:, :d_model]
        k = qkv[:, d_model:2 * d_model]
        v = qkv[:, 2 * d_model:]
        qb = q.astype(jnp.bfloat16)
        ctx = jnp.zeros((bs, d_model), jnp.float32)
        for m_h in head_masks:
            # Per-head contraction via lane-masked K / V: no 8-lane slices, and the
            # masked p@v accumulates straight into the head's lane group -> no concat.
            s = lax.dot_general(qb, (k * m_h).astype(jnp.bfloat16),
                                (((1,), (1,)), ((), ())),
                                preferred_element_type=jnp.float32) + block_mask
            s_max = jnp.max(s, axis=-1, keepdims=True)
            p = jnp.exp(s - s_max)
            p = p * pl.reciprocal(jnp.sum(p, axis=-1, keepdims=True), approx=True)
            ctx = ctx + jnp.dot(p.astype(jnp.bfloat16),
                                (v * m_h).astype(jnp.bfloat16),
                                preferred_element_type=jnp.float32)
        z = z + mm(ctx, f"wo{l}") + V(f"bo{l}")               # fused residual

        # ---- FFN (pre-LN), residual fused ----
        f = layernorm(z, f"ln2_g{l}", f"ln2_b{l}")
        f = gelu(mm(f, f"w1{l}") + V(f"b1{l}"))
        z = z + mm(f, f"w2{l}") + V(f"b2{l}")

    # ---- final LN + dropout(identity at eval) + char_proj + log_softmax ----
    z = layernorm(z, "final_ln_g", "final_ln_b")
    logits = mm(z, "char_w") + V("char_b")     # f32; padded lanes carry bias = NEG_BIG
    m = jnp.max(logits, axis=-1, keepdims=True)
    lse = jnp.log(jnp.sum(jnp.exp(logits - m), axis=-1, keepdims=True)) + m
    o_ref[...] = logits - lse                  # dense (BS, 128) f32 store


# ----------------------------------------------------------------------------
# Wrapper: one pallas_call for the whole forward.
# ----------------------------------------------------------------------------
def wav2vec2_for_ctc_forward(mats, vecs, x):
    B, T = x.shape
    S = T // SAMPLES_PER_FRAME
    # Pure reshape outside the kernel: each row holds the 8 raw samples of one
    # output frame (= two consecutive conv1 windows = one conv2 im2col patch).
    xr = x[:, :S * SAMPLES_PER_FRAME].reshape(B * S, SAMPLES_PER_FRAME)

    bs, D, F, L, H = B * S, D_MODEL, FFN_DIM, N_LAYERS, N_HEADS
    mm_flops = 2 * bs * (CONV1_IN * CONV1_OUT + CONV2_IN * CONV2_COUT + D * D
                         + D * C_PAD + L * (D * 3 * D + D * D + 2 * D * F))
    attn_flops = L * H * 2 * (2 * bs * bs * D)
    transcendentals = L * H * bs * bs + bs * C_PAD + bs * (CONV1_OUT + CONV2_COUT + L * F)
    bytes_accessed = bs * SAMPLES_PER_FRAME * 4 + MAT_ROWS * 128 * 2 \
        + VEC_ROWS * 128 * 4 + bs * C_PAD * 4

    kernel = functools.partial(_wav2vec2_ctc_kernel, batch=B, seq=S,
                               n_layers=N_LAYERS, n_heads=N_HEADS, d_head=D_HEAD)
    log_probs = pl.pallas_call(
        kernel,
        grid=(1,),
        in_specs=[pl.BlockSpec((B * S, SAMPLES_PER_FRAME), lambda i: (0, 0)),
                  pl.BlockSpec((MAT_ROWS, 128), lambda i: (0, 0)),
                  pl.BlockSpec((VEC_ROWS, 128), lambda i: (0, 0))],
        out_specs=pl.BlockSpec((B * S, C_PAD), lambda i: (0, 0)),
        out_shape=jax.ShapeDtypeStruct((B * S, C_PAD), jnp.float32),
        compiler_params=pltpu.CompilerParams(dimension_semantics=("arbitrary",)),
        cost_estimate=pl.CostEstimate(flops=mm_flops + attn_flops,
                                      transcendentals=transcendentals,
                                      bytes_accessed=bytes_accessed),
    )(xr, mats, vecs)
    return log_probs.reshape(B, S, C_PAD)[:, :, :N_CLASSES]


# ----------------------------------------------------------------------------
# Parameter init (N(0, 0.02) weights / zero biases, as in the reference) and
# packing into the two lane-aligned slabs (bf16 matrices, f32 vectors).
# ----------------------------------------------------------------------------
def _pack_params(raw):
    mats = jnp.zeros((MAT_ROWS, 128), jnp.float32)
    for name, (r, n, c) in MAT_LAYOUT.items():
        mats = mats.at[r:r + n, :c].set(raw[name])
    vecs = jnp.zeros((VEC_ROWS, 128), jnp.float32)
    for name, (r, _, c) in VEC_LAYOUT.items():
        vecs = vecs.at[r:r + 1, :c].set(raw[name].reshape(1, c))
    return mats.astype(jnp.bfloat16), vecs


def init_params(key):
    keys = iter(jax.random.split(key, 64))

    def w_init(shape):
        return 0.02 * jax.random.normal(next(keys), shape, jnp.float32)

    raw = {}

    # conv1: PyTorch weight (C_out, C_in=1, K) -> matmul (K*C_in, C_out), then a
    # block-diagonal 2x layout so paired windows run in one matmul.
    w1 = jnp.transpose(w_init((CONV1_COUT, 1, CONV1_K)), (2, 1, 0)).reshape(CONV1_K, CONV1_COUT)
    zero = jnp.zeros_like(w1)
    raw["conv1_w"] = jnp.block([[w1, zero], [zero, w1]])                     # (8, 32)
    b1 = jnp.zeros((CONV1_COUT,), jnp.float32)
    raw["conv1_b"] = jnp.concatenate([b1, b1])                               # (32,)
    # conv2: (C_out, C_in, K) -> (K*C_in, C_out) kernel-major
    w2 = w_init((CONV2_COUT, CONV1_COUT, CONV2_K))
    raw["conv2_w"] = jnp.transpose(w2, (2, 1, 0)).reshape(CONV2_IN, CONV2_COUT)
    raw["conv2_b"] = jnp.zeros((CONV2_COUT,), jnp.float32)

    D, F = D_MODEL, FFN_DIM
    raw["feat_ln_g"] = jnp.ones((D,), jnp.float32)
    raw["feat_ln_b"] = jnp.zeros((D,), jnp.float32)
    raw["feat_w"] = w_init((D, D))
    raw["feat_b"] = jnp.zeros((D,), jnp.float32)

    scale = 1.0 / math.sqrt(D_HEAD)
    for l in range(N_LAYERS):
        wq, wk, wv = w_init((D, D)), w_init((D, D)), w_init((D, D))
        bq = bk = bv = jnp.zeros((D,), jnp.float32)
        # Fold 1/sqrt(Dh) into the Q projection (and its bias) at pack time.
        raw[f"wqkv{l}"] = jnp.concatenate([wq * scale, wk, wv], axis=1)
        raw[f"bqkv{l}"] = jnp.concatenate([bq * scale, bk, bv])
        raw[f"wo{l}"] = w_init((D, D))
        raw[f"bo{l}"] = jnp.zeros((D,), jnp.float32)
        raw[f"ln1_g{l}"] = jnp.ones((D,), jnp.float32)
        raw[f"ln1_b{l}"] = jnp.zeros((D,), jnp.float32)
        raw[f"ln2_g{l}"] = jnp.ones((D,), jnp.float32)
        raw[f"ln2_b{l}"] = jnp.zeros((D,), jnp.float32)
        raw[f"w1{l}"] = w_init((D, F))
        raw[f"b1{l}"] = jnp.zeros((F,), jnp.float32)
        raw[f"w2{l}"] = w_init((F, D))
        raw[f"b2{l}"] = jnp.zeros((D,), jnp.float32)

    raw["final_ln_g"] = jnp.ones((D,), jnp.float32)
    raw["final_ln_b"] = jnp.zeros((D,), jnp.float32)
    # nn.Linear(D, C): x @ W.T + b, W (C, D) ~ N(0, 0.02), b zero.  Pad classes
    # to 128 lanes; padded bias = NEG_BIG so those lanes never win log_softmax.
    cw = w_init((N_CLASSES, D)).T
    raw["char_w"] = jnp.zeros((D, C_PAD), jnp.float32).at[:, :N_CLASSES].set(cw)
    raw["char_b"] = jnp.full((C_PAD,), NEG_BIG, jnp.float32).at[:N_CLASSES].set(0.0)

    return _pack_params(raw)


# TODO(synk): maskBool=True SpecAugment time-masking and the quantizer /
# auxiliary wav2vec2 outputs (returned as `_, _` and unused) are omitted;
# nn.Dropout is identity at inference.

if __name__ == "__main__":
    key = jax.random.PRNGKey(0)
    pkey, xkey = jax.random.split(key)
    mats, vecs = init_params(pkey)

    B, T = 2, 256                    # T=256 -> conv stack -> S=32 frames
    x = jax.random.normal(xkey, (B, T), jnp.float32)

    fwd = jax.jit(wav2vec2_for_ctc_forward)
    out = fwd(mats, vecs, x)
    jax.block_until_ready(out)

    assert out.shape == (B, T // SAMPLES_PER_FRAME, N_CLASSES), out.shape
    # sanity: log_softmax rows sum to 1 in probability space
    assert jnp.allclose(jnp.sum(jnp.exp(out), axis=-1), 1.0, atol=1e-3)
    print("KERNEL_OK")
</pallas_src>

<mosaic_0001>
module attributes {stable_mosaic.version = 11 : i64} {
  func.func @_wav2vec2_ctc_kernel(%arg0: i32, %arg1: memref<64x8xf32, #tpu.memory_space<vmem>>, %arg2: memref<424x128xbf16, #tpu.memory_space<vmem>>, %arg3: memref<24x128xf32, #tpu.memory_space<vmem>>, %arg4: memref<64x128xf32, #tpu.memory_space<vmem>>) attributes {dimension_semantics = [#tpu.dimension_semantics<arbitrary>], iteration_bounds = array<i64: 1>, scalar_prefetch = 0 : i64, scratch_operands = 0 : i64, tpu.core_type = #tpu.core_type<tc>, window_params = [{pipeline_mode = #tpu.pipeline_mode<synchronous>, transform_indices = @transform_0, window_bounds = array<i64: 64, 8>}, {pipeline_mode = #tpu.pipeline_mode<synchronous>, transform_indices = @transform_1, window_bounds = array<i64: 424, 128>}, {pipeline_mode = #tpu.pipeline_mode<synchronous>, transform_indices = @transform_2, window_bounds = array<i64: 24, 128>}, {pipeline_mode = #tpu.pipeline_mode<synchronous>, transform_indices = @transform_3, window_bounds = array<i64: 64, 128>}]} {
    %c0 = arith.constant 0 : index
    %c0_0 = arith.constant 0 : index
    %0 = vector.load %arg1[%c0, %c0_0] : memref<64x8xf32, #tpu.memory_space<vmem>>, vector<64x8xf32>
    %1 = arith.truncf %0 : vector<64x8xf32> to vector<64x8xbf16>
    %c0_1 = arith.constant 0 : index
    %c0_2 = arith.constant 0 : index
    %2 = vector.load %arg2[%c0_1, %c0_2] : memref<424x128xbf16, #tpu.memory_space<vmem>>, vector<8x32xbf16>
    %cst = arith.constant dense<0.000000e+00> : vector<64x32xf32>
    %3 = tpu.matmul %1, %2, %cst {dimension_numbers = #tpu.dot_dimension_numbers<[1], [0], [0], [1], [0, 0, 1, 1], [], []>} : vector<64x8xbf16>, vector<8x32xbf16>, vector<64x32xf32> -> vector<64x32xf32>
    %c0_3 = arith.constant 0 : index
    %c0_4 = arith.constant 0 : index
    %4 = vector.load %arg3[%c0_3, %c0_4] : memref<24x128xf32, #tpu.memory_space<vmem>>, vector<1x32xf32>
    %5 = vector.broadcast %4 : vector<1x32xf32> to vector<64x32xf32>
    %6 = arith.addf %3, %5 : vector<64x32xf32>
    %7 = arith.mulf %6, %6 : vector<64x32xf32>
    %8 = arith.mulf %6, %7 : vector<64x32xf32>
    %cst_5 = arith.constant 4.471500e-02 : f32
    %9 = vector.broadcast %cst_5 : f32 to vector<64x32xf32>
    %10 = arith.mulf %9, %8 : vector<64x32xf32>
    %11 = arith.addf %6, %10 : vector<64x32xf32>
    %cst_6 = arith.constant 0.797884583 : f32
    %12 = vector.broadcast %cst_6 : f32 to vector<64x32xf32>
    %13 = arith.mulf %12, %11 : vector<64x32xf32>
    %14 = math.tanh %13 : vector<64x32xf32>
    %cst_7 = arith.constant 1.000000e+00 : f32
    %15 = vector.broadcast %cst_7 : f32 to vector<64x32xf32>
    %16 = arith.addf %15, %14 : vector<64x32xf32>
    %cst_8 = arith.constant 5.000000e-01 : f32
    %17 = vector.broadcast %cst_8 : f32 to vector<64x32xf32>
    %18 = arith.mulf %17, %16 : vector<64x32xf32>
    %19 = arith.mulf %6, %18 : vector<64x32xf32>
    %20 = arith.truncf %19 : vector<64x32xf32> to vector<64x32xbf16>
    %c8 = arith.constant 8 : index
    %c0_9 = arith.constant 0 : index
    %21 = vector.load %arg2[%c8, %c0_9] : memref<424x128xbf16, #tpu.memory_space<vmem>>, vector<32x32xbf16>
    %cst_10 = arith.constant dense<0.000000e+00> : vector<64x32xf32>
    %22 = tpu.matmul %20, %21, %cst_10 {dimension_numbers = #tpu.dot_dimension_numbers<[1], [0], [0], [1], [0, 0, 1, 1], [], []>} : vector<64x32xbf16>, vector<32x32xbf16>, vector<64x32xf32> -> vector<64x32xf32>
    %c1 = arith.constant 1 : index
    %c0_11 = arith.constant 0 : index
    %23 = vector.load %arg3[%c1, %c0_11] : memref<24x128xf32, #tpu.memory_space<vmem>>, vector<1x32xf32>
    %24 = vector.broadcast %23 : vector<1x32xf32> to vector<64x32xf32>
    %25 = arith.addf %22, %24 : vector<64x32xf32>
    %26 = arith.mulf %25, %25 : vector<64x32xf32>
    %27 = arith.mulf %25, %26 : vector<64x32xf32>
    %cst_12 = arith.constant 4.471500e-02 : f32
    %28 = vector.broadcast %cst_12 : f32 to vector<64x32xf32>
    %29 = arith.mulf %28, %27 : vector<64x32xf32>
    %30 = arith.addf %25, %29 : vector<64x32xf32>
    %cst_13 = arith.constant 0.797884583 : f32
    %31 = vector.broadcast %cst_13 : f32 to vector<64x32xf32>
    %32 = arith.mulf %31, %30 : vector<64x32xf32>
    %33 = math.tanh %32 : vector<64x32xf32>
    %cst_14 = arith.constant 1.000000e+00 : f32
    %34 = vector.broadcast %cst_14 : f32 to vector<64x32xf32>
    %35 = arith.addf %34, %33 : vector<64x32xf32>
    %cst_15 = arith.constant 5.000000e-01 : f32
    %36 = vector.broadcast %cst_15 : f32 to vector<64x32xf32>
    %37 = arith.mulf %36, %35 : vector<64x32xf32>
    %38 = arith.mulf %25, %37 : vector<64x32xf32>
    %cst_16 = arith.constant dense<0.000000e+00> : vector<64xf32>
    %39 = vector.multi_reduction <add>, %38, %cst_16 [1] : vector<64x32xf32> to vector<64xf32>
    %40 = vector.shape_cast %39 : vector<64xf32> to vector<64x1xf32>
    %cst_17 = arith.constant 3.200000e+01 : f32
    %41 = vector.broadcast %cst_17 : f32 to vector<64x1xf32>
    %42 = arith.divf %40, %41 : vector<64x1xf32>
    %43 = vector.broadcast %42 : vector<64x1xf32> to vector<64x32xf32>
    %44 = arith.subf %38, %43 : vector<64x32xf32>
    %45 = arith.mulf %44, %44 : vector<64x32xf32>
    %cst_18 = arith.constant dense<0.000000e+00> : vector<64xf32>
    %46 = vector.multi_reduction <add>, %45, %cst_18 [1] : vector<64x32xf32> to vector<64xf32>
    %47 = vector.shape_cast %46 : vector<64xf32> to vector<64x1xf32>
    %cst_19 = arith.constant 3.200000e+01 : f32
    %48 = vector.broadcast %cst_19 : f32 to vector<64x1xf32>
    %49 = arith.divf %47, %48 : vector<64x1xf32>
    %50 = vector.broadcast %42 : vector<64x1xf32> to vector<64x32xf32>
    %51 = arith.subf %38, %50 : vector<64x32xf32>
    %cst_20 = arith.constant 9.99999974E-6 : f32
    %52 = vector.broadcast %cst_20 : f32 to vector<64x1xf32>
    %53 = arith.addf %49, %52 : vector<64x1xf32>
    %54 = math.rsqrt %53 : vector<64x1xf32>
    %55 = vector.broadcast %54 : vector<64x1xf32> to vector<64x32xf32>
    %56 = arith.mulf %51, %55 : vector<64x32xf32>
    %c2 = arith.constant 2 : index
    %c0_21 = arith.constant 0 : index
    %57 = vector.load %arg3[%c2, %c0_21] : memref<24x128xf32, #tpu.memory_space<vmem>>, vector<1x32xf32>
    %58 = vector.broadcast %57 : vector<1x32xf32> to vector<64x32xf32>
    %59 = arith.mulf %56, %58 : vector<64x32xf32>
    %c3 = arith.constant 3 : index
    %c0_22 = arith.constant 0 : index
    %60 = vector.load %arg3[%c3, %c0_22] : memref<24x128xf32, #tpu.memory_space<vmem>>, vector<1x32xf32>
    %61 = vector.broadcast %60 : vector<1x32xf32> to vector<64x32xf32>
    %62 = arith.addf %59, %61 : vector<64x32xf32>
    %63 = arith.truncf %62 : vector<64x32xf32> to vector<64x32xbf16>
    %c40 = arith.constant 40 : index
    %c0_23 = arith.constant 0 : index
    %64 = vector.load %arg2[%c40, %c0_23] : memref<424x128xbf16, #tpu.memory_space<vmem>>, vector<32x32xbf16>
    %cst_24 = arith.constant dense<0.000000e+00> : vector<64x32xf32>
    %65 = tpu.matmul %63, %64, %cst_24 {dimension_numbers = #tpu.dot_dimension_numbers<[1], [0], [0], [1], [0, 0, 1, 1], [], []>} : vector<64x32xbf16>, vector<32x32xbf16>, vector<64x32xf32> -> vector<64x32xf32>
    %c4 = arith.constant 4 : index
    %c0_25 = arith.constant 0 : index
    %66 = vector.load %arg3[%c4, %c0_25] : memref<24x128xf32, #tpu.memory_space<vmem>>, vector<1x32xf32>
    %67 = vector.broadcast %66 : vector<1x32xf32> to vector<64x32xf32>
    %68 = arith.addf %65, %67 : vector<64x32xf32>
    %69 = tpu.iota {dimensions = array<i32: 1>} : vector<1x32xi32>
    %c0_i32 = arith.constant 0 : i32
    %70 = vector.broadcast %c0_i32 : i32 to vector<1x32xi32>
    %71 = arith.cmpi sge, %69, %70 : vector<1x32xi32>
    %c8_i32 = arith.constant 8 : i32
    %72 = vector.broadcast %c8_i32 : i32 to vector<1x32xi32>
    %73 = arith.cmpi slt, %69, %72 : vector<1x32xi32>
    %74 = arith.andi %71, %73 : vector<1x32xi1>
    %75 = arith.extui %74 : vector<1x32xi1> to vector<1x32xi32>
    %76 = arith.sitofp %75 : vector<1x32xi32> to vector<1x32xf32>
    %c8_i32_26 = arith.constant 8 : i32
    %77 = vector.broadcast %c8_i32_26 : i32 to vector<1x32xi32>
    %78 = arith.cmpi sge, %69, %77 : vector<1x32xi32>
    %c16_i32 = arith.constant 16 : i32
    %79 = vector.broadcast %c16_i32 : i32 to vector<1x32xi32>
    %80 = arith.cmpi slt, %69, %79 : vector<1x32xi32>
    %81 = arith.andi %78, %80 : vector<1x32xi1>
    %82 = arith.extui %81 : vector<1x32xi1> to vector<1x32xi32>
    %83 = arith.sitofp %82 : vector<1x32xi32> to vector<1x32xf32>
    %c16_i32_27 = arith.constant 16 : i32
    %84 = vector.broadcast %c16_i32_27 : i32 to vector<1x32xi32>
    %85 = arith.cmpi sge, %69, %84 : vector<1x32xi32>
    %c24_i32 = arith.constant 24 : i32
    %86 = vector.broadcast %c24_i32 : i32 to vector<1x32xi32>
    %87 = arith.cmpi slt, %69, %86 : vector<1x32xi32>
    %88 = arith.andi %85, %87 : vector<1x32xi1>
    %89 = arith.extui %88 : vector<1x32xi1> to vector<1x32xi32>
    %90 = arith.sitofp %89 : vector<1x32xi32> to vector<1x32xf32>
    %c24_i32_28 = arith.constant 24 : i32
    %91 = vector.broadcast %c24_i32_28 : i32 to vector<1x32xi32>
    %92 = arith.cmpi sge, %69, %91 : vector<1x32xi32>
    %c32_i32 = arith.constant 32 : i32
    %93 = vector.broadcast %c32_i32 : i32 to vector<1x32xi32>
    %94 = arith.cmpi slt, %69, %93 : vector<1x32xi32>
    %95 = arith.andi %92, %94 : vector<1x32xi1>
    %96 = arith.extui %95 : vector<1x32xi1> to vector<1x32xi32>
    %97 = arith.sitofp %96 : vector<1x32xi32> to vector<1x32xf32>
    %98 = tpu.iota {dimensions = array<i32: 0>} : vector<64x64xi32>
    %99 = tpu.iota {dimensions = array<i32: 1>} : vector<64x64xi32>
    %false = arith.constant false
    %100 = vector.broadcast %false : i1 to vector<64x64xi1>
    %c0_i32_29 = arith.constant 0 : i32
    %101 = vector.broadcast %c0_i32_29 : i32 to vector<64x64xi32>
    %102 = arith.cmpi sge, %98, %101 : vector<64x64xi32>
    %c32_i32_30 = arith.constant 32 : i32
    %103 = vector.broadcast %c32_i32_30 : i32 to vector<64x64xi32>
    %104 = arith.cmpi slt, %98, %103 : vector<64x64xi32>
    %105 = arith.andi %102, %104 : vector<64x64xi1>
    %c0_i32_31 = arith.constant 0 : i32
    %106 = vector.broadcast %c0_i32_31 : i32 to vector<64x64xi32>
    %107 = arith.cmpi sge, %99, %106 : vector<64x64xi32>
    %c32_i32_32 = arith.constant 32 : i32
    %108 = vector.broadcast %c32_i32_32 : i32 to vector<64x64xi32>
    %109 = arith.cmpi slt, %99, %108 : vector<64x64xi32>
    %110 = arith.andi %107, %109 : vector<64x64xi1>
    %111 = arith.andi %105, %110 : vector<64x64xi1>
    %112 = arith.ori %100, %111 : vector<64x64xi1>
    %c32_i32_33 = arith.constant 32 : i32
    %113 = vector.broadcast %c32_i32_33 : i32 to vector<64x64xi32>
    %114 = arith.cmpi sge, %98, %113 : vector<64x64xi32>
    %c64_i32 = arith.constant 64 : i32
    %115 = vector.broadcast %c64_i32 : i32 to vector<64x64xi32>
    %116 = arith.cmpi slt, %98, %115 : vector<64x64xi32>
    %117 = arith.andi %114, %116 : vector<64x64xi1>
    %c32_i32_34 = arith.constant 32 : i32
    %118 = vector.broadcast %c32_i32_34 : i32 to vector<64x64xi32>
    %119 = arith.cmpi sge, %99, %118 : vector<64x64xi32>
    %c64_i32_35 = arith.constant 64 : i32
    %120 = vector.broadcast %c64_i32_35 : i32 to vector<64x64xi32>
    %121 = arith.cmpi slt, %99, %120 : vector<64x64xi32>
    %122 = arith.andi %119, %121 : vector<64x64xi1>
    %123 = arith.andi %117, %122 : vector<64x64xi1>
    %124 = arith.ori %112, %123 : vector<64x64xi1>
    %cst_36 = arith.constant 0.000000e+00 : f32
    %cst_37 = arith.constant -1.000000e+09 : f32
    %125 = vector.broadcast %cst_36 : f32 to vector<64x64xf32>
    %126 = vector.broadcast %cst_37 : f32 to vector<64x64xf32>
    %127 = arith.select %124, %125, %126 : vector<64x64xi1>, vector<64x64xf32>
    %cst_38 = arith.constant dense<0.000000e+00> : vector<64xf32>
    %128 = vector.multi_reduction <add>, %68, %cst_38 [1] : vector<64x32xf32> to vector<64xf32>
    %129 = vector.shape_cast %128 : vector<64xf32> to vector<64x1xf32>
    %cst_39 = arith.constant 3.200000e+01 : f32
    %130 = vector.broadcast %cst_39 : f32 to vector<64x1xf32>
    %131 = arith.divf %129, %130 : vector<64x1xf32>
    %132 = vector.broadcast %131 : vector<64x1xf32> to vector<64x32xf32>
    %133 = arith.subf %68, %132 : vector<64x32xf32>
    %134 = arith.mulf %133, %133 : vector<64x32xf32>
    %cst_40 = arith.constant dense<0.000000e+00> : vector<64xf32>
    %135 = vector.multi_reduction <add>, %134, %cst_40 [1] : vector<64x32xf32> to vector<64xf32>
    %136 = vector.shape_cast %135 : vector<64xf32> to vector<64x1xf32>
    %cst_41 = arith.constant 3.200000e+01 : f32
    %137 = vector.broadcast %cst_41 : f32 to vector<64x1xf32>
    %138 = arith.divf %136, %137 : vector<64x1xf32>
    %139 = vector.broadcast %131 : vector<64x1xf32> to vector<64x32xf32>
    %140 = arith.subf %68, %139 : vector<64x32xf32>
    %cst_42 = arith.constant 9.99999974E-6 : f32
    %141 = vector.broadcast %cst_42 : f32 to vector<64x1xf32>
    %142 = arith.addf %138, %141 : vector<64x1xf32>
    %143 = math.rsqrt %142 : vector<64x1xf32>
    %144 = vector.broadcast %143 : vector<64x1xf32> to vector<64x32xf32>
    %145 = arith.mulf %140, %144 : vector<64x32xf32>
    %c5 = arith.constant 5 : index
    %c0_43 = arith.constant 0 : index
    %146 = vector.load %arg3[%c5, %c0_43] : memref<24x128xf32, #tpu.memory_space<vmem>>, vector<1x32xf32>
    %147 = vector.broadcast %146 : vector<1x32xf32> to vector<64x32xf32>
    %148 = arith.mulf %145, %147 : vector<64x32xf32>
    %c6 = arith.constant 6 : index
    %c0_44 = arith.constant 0 : index
    %149 = vector.load %arg3[%c6, %c0_44] : memref<24x128xf32, #tpu.memory_space<vmem>>, vector<1x32xf32>
    %150 = vector.broadcast %149 : vector<1x32xf32> to vector<64x32xf32>
    %151 = arith.addf %148, %150 : vector<64x32xf32>
    %152 = arith.truncf %151 : vector<64x32xf32> to vector<64x32xbf16>
    %c72 = arith.constant 72 : index
    %c0_45 = arith.constant 0 : index
    %153 = vector.load %arg2[%c72, %c0_45] : memref<424x128xbf16, #tpu.memory_space<vmem>>, vector<32x96xbf16>
    %cst_46 = arith.constant dense<0.000000e+00> : vector<64x96xf32>
    %154 = tpu.matmul %152, %153, %cst_46 {dimension_numbers = #tpu.dot_dimension_numbers<[1], [0], [0], [1], [0, 0, 1, 1], [], []>} : vector<64x32xbf16>, vector<32x96xbf16>, vector<64x96xf32> -> vector<64x96xf32>
    %c7 = arith.constant 7 : index
    %c0_47 = arith.constant 0 : index
    %155 = vector.load %arg3[%c7, %c0_47] : memref<24x128xf32, #tpu.memory_space<vmem>>, vector<1x96xf32>
    %156 = vector.broadcast %155 : vector<1x96xf32> to vector<64x96xf32>
    %157 = arith.addf %154, %156 : vector<64x96xf32>
    %158 = vector.extract_strided_slice %157 {offsets = [0, 0], sizes = [64, 32], strides = [1, 1]} : vector<64x96xf32> to vector<64x32xf32>
    %159 = vector.extract_strided_slice %157 {offsets = [0, 32], sizes = [64, 32], strides = [1, 1]} : vector<64x96xf32> to vector<64x32xf32>
    %160 = vector.extract_strided_slice %157 {offsets = [0, 64], sizes = [64, 32], strides = [1, 1]} : vector<64x96xf32> to vector<64x32xf32>
    %161 = arith.truncf %158 : vector<64x32xf32> to vector<64x32xbf16>
    %cst_48 = arith.constant 0.000000e+00 : f32
    %162 = vector.broadcast %cst_48 : f32 to vector<64x32xf32>
    %163 = vector.broadcast %76 : vector<1x32xf32> to vector<64x32xf32>
    %164 = arith.mulf %159, %163 : vector<64x32xf32>
    %165 = arith.truncf %164 : vector<64x32xf32> to vector<64x32xbf16>
    %cst_49 = arith.constant dense<0.000000e+00> : vector<64x64xf32>
    %166 = tpu.matmul %161, %165, %cst_49 {dimension_numbers = #tpu.dot_dimension_numbers<[1], [1], [0], [0], [0, 0, 1, 0], [], []>} : vector<64x32xbf16>, vector<64x32xbf16>, vector<64x64xf32> -> vector<64x64xf32>
    %167 = arith.addf %166, %127 : vector<64x64xf32>
    %cst_50 = arith.constant dense<0xFF800000> : vector<64xf32>
    %168 = vector.multi_reduction <maximumf>, %167, %cst_50 [1] : vector<64x64xf32> to vector<64xf32>
    %169 = vector.shape_cast %168 : vector<64xf32> to vector<64x1xf32>
    %170 = vector.broadcast %169 : vector<64x1xf32> to vector<64x64xf32>
    %171 = arith.subf %167, %170 : vector<64x64xf32>
    %172 = math.exp %171 : vector<64x64xf32>
    %cst_51 = arith.constant dense<0.000000e+00> : vector<64xf32>
    %173 = vector.multi_reduction <add>, %172, %cst_51 [1] : vector<64x64xf32> to vector<64xf32>
    %174 = vector.shape_cast %173 : vector<64xf32> to vector<64x1xf32>
    %175 = tpu.reciprocal %174 {approx = true} : vector<64x1xf32> -> vector<64x1xf32>
    %176 = vector.broadcast %175 : vector<64x1xf32> to vector<64x64xf32>
    %177 = arith.mulf %172, %176 : vector<64x64xf32>
    %178 = arith.truncf %177 : vector<64x64xf32> to vector<64x64xbf16>
    %179 = vector.broadcast %76 : vector<1x32xf32> to vector<64x32xf32>
    %180 = arith.mulf %160, %179 : vector<64x32xf32>
    %181 = arith.truncf %180 : vector<64x32xf32> to vector<64x32xbf16>
    %cst_52 = arith.constant dense<0.000000e+00> : vector<64x32xf32>
    %182 = tpu.matmul %178, %181, %cst_52 {dimension_numbers = #tpu.dot_dimension_numbers<[1], [0], [0], [1], [0, 0, 1, 1], [], []>} : vector<64x64xbf16>, vector<64x32xbf16>, vector<64x32xf32> -> vector<64x32xf32>
    %183 = arith.addf %162, %182 : vector<64x32xf32>
    %184 = vector.broadcast %83 : vector<1x32xf32> to vector<64x32xf32>
    %185 = arith.mulf %159, %184 : vector<64x32xf32>
    %186 = arith.truncf %185 : vector<64x32xf32> to vector<64x32xbf16>
    %cst_53 = arith.constant dense<0.000000e+00> : vector<64x64xf32>
    %187 = tpu.matmul %161, %186, %cst_53 {dimension_numbers = #tpu.dot_dimension_numbers<[1], [1], [0], [0], [0, 0, 1, 0], [], []>} : vector<64x32xbf16>, vector<64x32xbf16>, vector<64x64xf32> -> vector<64x64xf32>
    %188 = arith.addf %187, %127 : vector<64x64xf32>
    %cst_54 = arith.constant dense<0xFF800000> : vector<64xf32>
    %189 = vector.multi_reduction <maximumf>, %188, %cst_54 [1] : vector<64x64xf32> to vector<64xf32>
    %190 = vector.shape_cast %189 : vector<64xf32> to vector<64x1xf32>
    %191 = vector.broadcast %190 : vector<64x1xf32> to vector<64x64xf32>
    %192 = arith.subf %188, %191 : vector<64x64xf32>
    %193 = math.exp %192 : vector<64x64xf32>
    %cst_55 = arith.constant dense<0.000000e+00> : vector<64xf32>
    %194 = vector.multi_reduction <add>, %193, %cst_55 [1] : vector<64x64xf32> to vector<64xf32>
    %195 = vector.shape_cast %194 : vector<64xf32> to vector<64x1xf32>
    %196 = tpu.reciprocal %195 {approx = true} : vector<64x1xf32> -> vector<64x1xf32>
    %197 = vector.broadcast %196 : vector<64x1xf32> to vector<64x64xf32>
    %198 = arith.mulf %193, %197 : vector<64x64xf32>
    %199 = arith.truncf %198 : vector<64x64xf32> to vector<64x64xbf16>
    %200 = vector.broadcast %83 : vector<1x32xf32> to vector<64x32xf32>
    %201 = arith.mulf %160, %200 : vector<64x32xf32>
    %202 = arith.truncf %201 : vector<64x32xf32> to vector<64x32xbf16>
    %cst_56 = arith.constant dense<0.000000e+00> : vector<64x32xf32>
    %203 = tpu.matmul %199, %202, %cst_56 {dimension_numbers = #tpu.dot_dimension_numbers<[1], [0], [0], [1], [0, 0, 1, 1], [], []>} : vector<64x64xbf16>, vector<64x32xbf16>, vector<64x32xf32> -> vector<64x32xf32>
    %204 = arith.addf %183, %203 : vector<64x32xf32>
    %205 = vector.broadcast %90 : vector<1x32xf32> to vector<64x32xf32>
    %206 = arith.mulf %159, %205 : vector<64x32xf32>
    %207 = arith.truncf %206 : vector<64x32xf32> to vector<64x32xbf16>
    %cst_57 = arith.constant dense<0.000000e+00> : vector<64x64xf32>
    %208 = tpu.matmul %161, %207, %cst_57 {dimension_numbers = #tpu.dot_dimension_numbers<[1], [1], [0], [0], [0, 0, 1, 0], [], []>} : vector<64x32xbf16>, vector<64x32xbf16>, vector<64x64xf32> -> vector<64x64xf32>
    %209 = arith.addf %208, %127 : vector<64x64xf32>
    %cst_58 = arith.constant dense<0xFF800000> : vector<64xf32>
    %210 = vector.multi_reduction <maximumf>, %209, %cst_58 [1] : vector<64x64xf32> to vector<64xf32>
    %211 = vector.shape_cast %210 : vector<64xf32> to vector<64x1xf32>
    %212 = vector.broadcast %211 : vector<64x1xf32> to vector<64x64xf32>
    %213 = arith.subf %209, %212 : vector<64x64xf32>
    %214 = math.exp %213 : vector<64x64xf32>
    %cst_59 = arith.constant dense<0.000000e+00> : vector<64xf32>
    %215 = vector.multi_reduction <add>, %214, %cst_59 [1] : vector<64x64xf32> to vector<64xf32>
    %216 = vector.shape_cast %215 : vector<64xf32> to vector<64x1xf32>
    %217 = tpu.reciprocal %216 {approx = true} : vector<64x1xf32> -> vector<64x1xf32>
    %218 = vector.broadcast %217 : vector<64x1xf32> to vector<64x64xf32>
    %219 = arith.mulf %214, %218 : vector<64x64xf32>
    %220 = arith.truncf %219 : vector<64x64xf32> to vector<64x64xbf16>
    %221 = vector.broadcast %90 : vector<1x32xf32> to vector<64x32xf32>
    %222 = arith.mulf %160, %221 : vector<64x32xf32>
    %223 = arith.truncf %222 : vector<64x32xf32> to vector<64x32xbf16>
    %cst_60 = arith.constant dense<0.000000e+00> : vector<64x32xf32>
    %224 = tpu.matmul %220, %223, %cst_60 {dimension_numbers = #tpu.dot_dimension_numbers<[1], [0], [0], [1], [0, 0, 1, 1], [], []>} : vector<64x64xbf16>, vector<64x32xbf16>, vector<64x32xf32> -> vector<64x32xf32>
    %225 = arith.addf %204, %224 : vector<64x32xf32>
    %226 = vector.broadcast %97 : vector<1x32xf32> to vector<64x32xf32>
    %227 = arith.mulf %159, %226 : vector<64x32xf32>
    %228 = arith.truncf %227 : vector<64x32xf32> to vector<64x32xbf16>
    %cst_61 = arith.constant dense<0.000000e+00> : vector<64x64xf32>
    %229 = tpu.matmul %161, %228, %cst_61 {dimension_numbers = #tpu.dot_dimension_numbers<[1], [1], [0], [0], [0, 0, 1, 0], [], []>} : vector<64x32xbf16>, vector<64x32xbf16>, vector<64x64xf32> -> vector<64x64xf32>
    %230 = arith.addf %229, %127 : vector<64x64xf32>
    %cst_62 = arith.constant dense<0xFF800000> : vector<64xf32>
    %231 = vector.multi_reduction <maximumf>, %230, %cst_62 [1] : vector<64x64xf32> to vector<64xf32>
    %232 = vector.shape_cast %231 : vector<64xf32> to vector<64x1xf32>
    %233 = vector.broadcast %232 : vector<64x1xf32> to vector<64x64xf32>
    %234 = arith.subf %230, %233 : vector<64x64xf32>
    %235 = math.exp %234 : vector<64x64xf32>
    %cst_63 = arith.constant dense<0.000000e+00> : vector<64xf32>
    %236 = vector.multi_reduction <add>, %235, %cst_63 [1] : vector<64x64xf32> to vector<64xf32>
    %237 = vector.shape_cast %236 : vector<64xf32> to vector<64x1xf32>
    %238 = tpu.reciprocal %237 {approx = true} : vector<64x1xf32> -> vector<64x1xf32>
    %239 = vector.broadcast %238 : vector<64x1xf32> to vector<64x64xf32>
    %240 = arith.mulf %235, %239 : vector<64x64xf32>
    %241 = arith.truncf %240 : vector<64x64xf32> to vector<64x64xbf16>
    %242 = vector.broadcast %97 : vector<1x32xf32> to vector<64x32xf32>
    %243 = arith.mulf %160, %242 : vector<64x32xf32>
    %244 = arith.truncf %243 : vector<64x32xf32> to vector<64x32xbf16>
    %cst_64 = arith.constant dense<0.000000e+00> : vector<64x32xf32>
    %245 = tpu.matmul %241, %244, %cst_64 {dimension_numbers = #tpu.dot_dimension_numbers<[1], [0], [0], [1], [0, 0, 1, 1], [], []>} : vector<64x64xbf16>, vector<64x32xbf16>, vector<64x32xf32> -> vector<64x32xf32>
    %246 = arith.addf %225, %245 : vector<64x32xf32>
    %247 = arith.truncf %246 : vector<64x32xf32> to vector<64x32xbf16>
    %c104 = arith.constant 104 : index
    %c0_65 = arith.constant 0 : index
    %248 = vector.load %arg2[%c104, %c0_65] : memref<424x128xbf16, #tpu.memory_space<vmem>>, vector<32x32xbf16>
    %cst_66 = arith.constant dense<0.000000e+00> : vector<64x32xf32>
    %249 = tpu.matmul %247, %248, %cst_66 {dimension_numbers = #tpu.dot_dimension_numbers<[1], [0], [0], [1], [0, 0, 1, 1], [], []>} : vector<64x32xbf16>, vector<32x32xbf16>, vector<64x32xf32> -> vector<64x32xf32>
    %250 = arith.addf %68, %249 : vector<64x32xf32>
    %c8_67 = arith.constant 8 : index
    %c0_68 = arith.constant 0 : index
    %251 = vector.load %arg3[%c8_67, %c0_68] : memref<24x128xf32, #tpu.memory_space<vmem>>, vector<1x32xf32>
    %252 = vector.broadcast %251 : vector<1x32xf32> to vector<64x32xf32>
    %253 = arith.addf %250, %252 : vector<64x32xf32>
    %cst_69 = arith.constant dense<0.000000e+00> : vector<64xf32>
    %254 = vector.multi_reduction <add>, %253, %cst_69 [1] : vector<64x32xf32> to vector<64xf32>
    %255 = vector.shape_cast %254 : vector<64xf32> to vector<64x1xf32>
    %cst_70 = arith.constant 3.200000e+01 : f32
    %256 = vector.broadcast %cst_70 : f32 to vector<64x1xf32>
    %257 = arith.divf %255, %256 : vector<64x1xf32>
    %258 = vector.broadcast %257 : vector<64x1xf32> to vector<64x32xf32>
    %259 = arith.subf %253, %258 : vector<64x32xf32>
    %260 = arith.mulf %259, %259 : vector<64x32xf32>
    %cst_71 = arith.constant dense<0.000000e+00> : vector<64xf32>
    %261 = vector.multi_reduction <add>, %260, %cst_71 [1] : vector<64x32xf32> to vector<64xf32>
    %262 = vector.shape_cast %261 : vector<64xf32> to vector<64x1xf32>
    %cst_72 = arith.constant 3.200000e+01 : f32
    %263 = vector.broadcast %cst_72 : f32 to vector<64x1xf32>
    %264 = arith.divf %262, %263 : vector<64x1xf32>
    %265 = vector.broadcast %257 : vector<64x1xf32> to vector<64x32xf32>
    %266 = arith.subf %253, %265 : vector<64x32xf32>
    %cst_73 = arith.constant 9.99999974E-6 : f32
    %267 = vector.broadcast %cst_73 : f32 to vector<64x1xf32>
    %268 = arith.addf %264, %267 : vector<64x1xf32>
    %269 = math.rsqrt %268 : vector<64x1xf32>
    %270 = vector.broadcast %269 : vector<64x1xf32> to vector<64x32xf32>
    %271 = arith.mulf %266, %270 : vector<64x32xf32>
    %c9 = arith.constant 9 : index
    %c0_74 = arith.constant 0 : index
    %272 = vector.load %arg3[%c9, %c0_74] : memref<24x128xf32, #tpu.memory_space<vmem>>, vector<1x32xf32>
    %273 = vector.broadcast %272 : vector<1x32xf32> to vector<64x32xf32>
    %274 = arith.mulf %271, %273 : vector<64x32xf32>
    %c10 = arith.constant 10 : index
    %c0_75 = arith.constant 0 : index
    %275 = vector.load %arg3[%c10, %c0_75] : memref<24x128xf32, #tpu.memory_space<vmem>>, vector<1x32xf32>
    %276 = vector.broadcast %275 : vector<1x32xf32> to vector<64x32xf32>
    %277 = arith.addf %274, %276 : vector<64x32xf32>
    %278 = arith.truncf %277 : vector<64x32xf32> to vector<64x32xbf16>
    %c136 = arith.constant 136 : index
    %c0_76 = arith.constant 0 : index
    %279 = vector.load %arg2[%c136, %c0_76] : memref<424x128xbf16, #tpu.memory_space<vmem>>, vector<32x64xbf16>
    %cst_77 = arith.constant dense<0.000000e+00> : vector<64x64xf32>
    %280 = tpu.matmul %278, %279, %cst_77 {dimension_numbers = #tpu.dot_dimension_numbers<[1], [0], [0], [1], [0, 0, 1, 1], [], []>} : vector<64x32xbf16>, vector<32x64xbf16>, vector<64x64xf32> -> vector<64x64xf32>
    %c11 = arith.constant 11 : index
    %c0_78 = arith.constant 0 : index
    %281 = vector.load %arg3[%c11, %c0_78] : memref<24x128xf32, #tpu.memory_space<vmem>>, vector<1x64xf32>
    %282 = vector.broadcast %281 : vector<1x64xf32> to vector<64x64xf32>
    %283 = arith.addf %280, %282 : vector<64x64xf32>
    %284 = arith.mulf %283, %283 : vector<64x64xf32>
    %285 = arith.mulf %283, %284 : vector<64x64xf32>
    %cst_79 = arith.constant 4.471500e-02 : f32
    %286 = vector.broadcast %cst_79 : f32 to vector<64x64xf32>
    %287 = arith.mulf %286, %285 : vector<64x64xf32>
    %288 = arith.addf %283, %287 : vector<64x64xf32>
    %cst_80 = arith.constant 0.797884583 : f32
    %289 = vector.broadcast %cst_80 : f32 to vector<64x64xf32>
    %290 = arith.mulf %289, %288 : vector<64x64xf32>
    %291 = math.tanh %290 : vector<64x64xf32>
    %cst_81 = arith.constant 1.000000e+00 : f32
    %292 = vector.broadcast %cst_81 : f32 to vector<64x64xf32>
    %293 = arith.addf %292, %291 : vector<64x64xf32>
    %cst_82 = arith.constant 5.000000e-01 : f32
    %294 = vector.broadcast %cst_82 : f32 to vector<64x64xf32>
    %295 = arith.mulf %294, %293 : vector<64x64xf32>
    %296 = arith.mulf %283, %295 : vector<64x64xf32>
    %297 = arith.truncf %296 : vector<64x64xf32> to vector<64x64xbf16>
    %c168 = arith.constant 168 : index
    %c0_83 = arith.constant 0 : index
    %298 = vector.load %arg2[%c168, %c0_83] : memref<424x128xbf16, #tpu.memory_space<vmem>>, vector<64x32xbf16>
    %cst_84 = arith.constant dense<0.000000e+00> : vector<64x32xf32>
    %299 = tpu.matmul %297, %298, %cst_84 {dimension_numbers = #tpu.dot_dimension_numbers<[1], [0], [0], [1], [0, 0, 1, 1], [], []>} : vector<64x64xbf16>, vector<64x32xbf16>, vector<64x32xf32> -> vector<64x32xf32>
    %300 = arith.addf %253, %299 : vector<64x32xf32>
    %c12 = arith.constant 12 : index
    %c0_85 = arith.constant 0 : index
    %301 = vector.load %arg3[%c12, %c0_85] : memref<24x128xf32, #tpu.memory_space<vmem>>, vector<1x32xf32>
    %302 = vector.broadcast %301 : vector<1x32xf32> to vector<64x32xf32>
    %303 = arith.addf %300, %302 : vector<64x32xf32>
    %cst_86 = arith.constant dense<0.000000e+00> : vector<64xf32>
    %304 = vector.multi_reduction <add>, %303, %cst_86 [1] : vector<64x32xf32> to vector<64xf32>
    %305 = vector.shape_cast %304 : vector<64xf32> to vector<64x1xf32>
    %cst_87 = arith.constant 3.200000e+01 : f32
    %306 = vector.broadcast %cst_87 : f32 to vector<64x1xf32>
    %307 = arith.divf %305, %306 : vector<64x1xf32>
    %308 = vector.broadcast %307 : vector<64x1xf32> to vector<64x32xf32>
    %309 = arith.subf %303, %308 : vector<64x32xf32>
    %310 = arith.mulf %309, %309 : vector<64x32xf32>
    %cst_88 = arith.constant dense<0.000000e+00> : vector<64xf32>
    %311 = vector.multi_reduction <add>, %310, %cst_88 [1] : vector<64x32xf32> to vector<64xf32>
    %312 = vector.shape_cast %311 : vector<64xf32> to vector<64x1xf32>
    %cst_89 = arith.constant 3.200000e+01 : f32
    %313 = vector.broadcast %cst_89 : f32 to vector<64x1xf32>
    %314 = arith.divf %312, %313 : vector<64x1xf32>
    %315 = vector.broadcast %307 : vector<64x1xf32> to vector<64x32xf32>
    %316 = arith.subf %303, %315 : vector<64x32xf32>
    %cst_90 = arith.constant 9.99999974E-6 : f32
    %317 = vector.broadcast %cst_90 : f32 to vector<64x1xf32>
    %318 = arith.addf %314, %317 : vector<64x1xf32>
    %319 = math.rsqrt %318 : vector<64x1xf32>
    %320 = vector.broadcast %319 : vector<64x1xf32> to vector<64x32xf32>
    %321 = arith.mulf %316, %320 : vector<64x32xf32>
    %c13 = arith.constant 13 : index
    %c0_91 = arith.constant 0 : index
    %322 = vector.load %arg3[%c13, %c0_91] : memref<24x128xf32, #tpu.memory_space<vmem>>, vector<1x32xf32>
    %323 = vector.broadcast %322 : vector<1x32xf32> to vector<64x32xf32>
    %324 = arith.mulf %321, %323 : vector<64x32xf32>
    %c14 = arith.constant 14 : index
    %c0_92 = arith.constant 0 : index
    %325 = vector.load %arg3[%c14, %c0_92] : memref<24x128xf32, #tpu.memory_space<vmem>>, vector<1x32xf32>
    %326 = vector.broadcast %325 : vector<1x32xf32> to vector<64x32xf32>
    %327 = arith.addf %324, %326 : vector<64x32xf32>
    %328 = arith.truncf %327 : vector<64x32xf32> to vector<64x32xbf16>
    %c232 = arith.constant 232 : index
    %c0_93 = arith.constant 0 : index
    %329 = vector.load %arg2[%c232, %c0_93] : memref<424x128xbf16, #tpu.memory_space<vmem>>, vector<32x96xbf16>
    %cst_94 = arith.constant dense<0.000000e+00> : vector<64x96xf32>
    %330 = tpu.matmul %328, %329, %cst_94 {dimension_numbers = #tpu.dot_dimension_numbers<[1], [0], [0], [1], [0, 0, 1, 1], [], []>} : vector<64x32xbf16>, vector<32x96xbf16>, vector<64x96xf32> -> vector<64x96xf32>
    %c15 = arith.constant 15 : index
    %c0_95 = arith.constant 0 : index
    %331 = vector.load %arg3[%c15, %c0_95] : memref<24x128xf32, #tpu.memory_space<vmem>>, vector<1x96xf32>
    %332 = vector.broadcast %331 : vector<1x96xf32> to vector<64x96xf32>
    %333 = arith.addf %330, %332 : vector<64x96xf32>
    %334 = vector.extract_strided_slice %333 {offsets = [0, 0], sizes = [64, 32], strides = [1, 1]} : vector<64x96xf32> to vector<64x32xf32>
    %335 = vector.extract_strided_slice %333 {offsets = [0, 32], sizes = [64, 32], strides = [1, 1]} : vector<64x96xf32> to vector<64x32xf32>
    %336 = vector.extract_strided_slice %333 {offsets = [0, 64], sizes = [64, 32], strides = [1, 1]} : vector<64x96xf32> to vector<64x32xf32>
    %337 = arith.truncf %334 : vector<64x32xf32> to vector<64x32xbf16>
    %cst_96 = arith.constant 0.000000e+00 : f32
    %338 = vector.broadcast %cst_96 : f32 to vector<64x32xf32>
    %339 = vector.broadcast %76 : vector<1x32xf32> to vector<64x32xf32>
    %340 = arith.mulf %335, %339 : vector<64x32xf32>
    %341 = arith.truncf %340 : vector<64x32xf32> to vector<64x32xbf16>
    %cst_97 = arith.constant dense<0.000000e+00> : vector<64x64xf32>
    %342 = tpu.matmul %337, %341, %cst_97 {dimension_numbers = #tpu.dot_dimension_numbers<[1], [1], [0], [0], [0, 0, 1, 0], [], []>} : vector<64x32xbf16>, vector<64x32xbf16>, vector<64x64xf32> -> vector<64x64xf32>
    %343 = arith.addf %342, %127 : vector<64x64xf32>
    %cst_98 = arith.constant dense<0xFF800000> : vector<64xf32>
    %344 = vector.multi_reduction <maximumf>, %343, %cst_98 [1] : vector<64x64xf32> to vector<64xf32>
    %345 = vector.shape_cast %344 : vector<64xf32> to vector<64x1xf32>
    %346 = vector.broadcast %345 : vector<64x1xf32> to vector<64x64xf32>
    %347 = arith.subf %343, %346 : vector<64x64xf32>
    %348 = math.exp %347 : vector<64x64xf32>
    %cst_99 = arith.constant dense<0.000000e+00> : vector<64xf32>
    %349 = vector.multi_reduction <add>, %348, %cst_99 [1] : vector<64x64xf32> to vector<64xf32>
    %350 = vector.shape_cast %349 : vector<64xf32> to vector<64x1xf32>
    %351 = tpu.reciprocal %350 {approx = true} : vector<64x1xf32> -> vector<64x1xf32>
    %352 = vector.broadcast %351 : vector<64x1xf32> to vector<64x64xf32>
    %353 = arith.mulf %348, %352 : vector<64x64xf32>
    %354 = arith.truncf %353 : vector<64x64xf32> to vector<64x64xbf16>
    %355 = vector.broadcast %76 : vector<1x32xf32> to vector<64x32xf32>
    %356 = arith.mulf %336, %355 : vector<64x32xf32>
    %357 = arith.truncf %356 : vector<64x32xf32> to vector<64x32xbf16>
    %cst_100 = arith.constant dense<0.000000e+00> : vector<64x32xf32>
    %358 = tpu.matmul %354, %357, %cst_100 {dimension_numbers = #tpu.dot_dimension_numbers<[1], [0], [0], [1], [0, 0, 1, 1], [], []>} : vector<64x64xbf16>, vector<64x32xbf16>, vector<64x32xf32> -> vector<64x32xf32>
    %359 = arith.addf %338, %358 : vector<64x32xf32>
    %360 = vector.broadcast %83 : vector<1x32xf32> to vector<64x32xf32>
    %361 = arith.mulf %335, %360 : vector<64x32xf32>
    %362 = arith.truncf %361 : vector<64x32xf32> to vector<64x32xbf16>
    %cst_101 = arith.constant dense<0.000000e+00> : vector<64x64xf32>
    %363 = tpu.matmul %337, %362, %cst_101 {dimension_numbers = #tpu.dot_dimension_numbers<[1], [1], [0], [0], [0, 0, 1, 0], [], []>} : vector<64x32xbf16>, vector<64x32xbf16>, vector<64x64xf32> -> vector<64x64xf32>
    %364 = arith.addf %363, %127 : vector<64x64xf32>
    %cst_102 = arith.constant dense<0xFF800000> : vector<64xf32>
    %365 = vector.multi_reduction <maximumf>, %364, %cst_102 [1] : vector<64x64xf32> to vector<64xf32>
    %366 = vector.shape_cast %365 : vector<64xf32> to vector<64x1xf32>
    %367 = vector.broadcast %366 : vector<64x1xf32> to vector<64x64xf32>
    %368 = arith.subf %364, %367 : vector<64x64xf32>
    %369 = math.exp %368 : vector<64x64xf32>
    %cst_103 = arith.constant dense<0.000000e+00> : vector<64xf32>
    %370 = vector.multi_reduction <add>, %369, %cst_103 [1] : vector<64x64xf32> to vector<64xf32>
    %371 = vector.shape_cast %370 : vector<64xf32> to vector<64x1xf32>
    %372 = tpu.reciprocal %371 {approx = true} : vector<64x1xf32> -> vector<64x1xf32>
    %373 = vector.broadcast %372 : vector<64x1xf32> to vector<64x64xf32>
    %374 = arith.mulf %369, %373 : vector<64x64xf32>
    %375 = arith.truncf %374 : vector<64x64xf32> to vector<64x64xbf16>
    %376 = vector.broadcast %83 : vector<1x32xf32> to vector<64x32xf32>
    %377 = arith.mulf %336, %376 : vector<64x32xf32>
    %378 = arith.truncf %377 : vector<64x32xf32> to vector<64x32xbf16>
    %cst_104 = arith.constant dense<0.000000e+00> : vector<64x32xf32>
    %379 = tpu.matmul %375, %378, %cst_104 {dimension_numbers = #tpu.dot_dimension_numbers<[1], [0], [0], [1], [0, 0, 1, 1], [], []>} : vector<64x64xbf16>, vector<64x32xbf16>, vector<64x32xf32> -> vector<64x32xf32>
    %380 = arith.addf %359, %379 : vector<64x32xf32>
    %381 = vector.broadcast %90 : vector<1x32xf32> to vector<64x32xf32>
    %382 = arith.mulf %335, %381 : vector<64x32xf32>
    %383 = arith.truncf %382 : vector<64x32xf32> to vector<64x32xbf16>
    %cst_105 = arith.constant dense<0.000000e+00> : vector<64x64xf32>
    %384 = tpu.matmul %337, %383, %cst_105 {dimension_numbers = #tpu.dot_dimension_numbers<[1], [1], [0], [0], [0, 0, 1, 0], [], []>} : vector<64x32xbf16>, vector<64x32xbf16>, vector<64x64xf32> -> vector<64x64xf32>
    %385 = arith.addf %384, %127 : vector<64x64xf32>
    %cst_106 = arith.constant dense<0xFF800000> : vector<64xf32>
    %386 = vector.multi_reduction <maximumf>, %385, %cst_106 [1] : vector<64x64xf32> to vector<64xf32>
    %387 = vector.shape_cast %386 : vector<64xf32> to vector<64x1xf32>
    %388 = vector.broadcast %387 : vector<64x1xf32> to vector<64x64xf32>
    %389 = arith.subf %385, %388 : vector<64x64xf32>
    %390 = math.exp %389 : vector<64x64xf32>
    %cst_107 = arith.constant dense<0.000000e+00> : vector<64xf32>
    %391 = vector.multi_reduction <add>, %390, %cst_107 [1] : vector<64x64xf32> to vector<64xf32>
    %392 = vector.shape_cast %391 : vector<64xf32> to vector<64x1xf32>
    %393 = tpu.reciprocal %392 {approx = true} : vector<64x1xf32> -> vector<64x1xf32>
    %394 = vector.broadcast %393 : vector<64x1xf32> to vector<64x64xf32>
    %395 = arith.mulf %390, %394 : vector<64x64xf32>
    %396 = arith.truncf %395 : vector<64x64xf32> to vector<64x64xbf16>
    %397 = vector.broadcast %90 : vector<1x32xf32> to vector<64x32xf32>
    %398 = arith.mulf %336, %397 : vector<64x32xf32>
    %399 = arith.truncf %398 : vector<64x32xf32> to vector<64x32xbf16>
    %cst_108 = arith.constant dense<0.000000e+00> : vector<64x32xf32>
    %400 = tpu.matmul %396, %399, %cst_108 {dimension_numbers = #tpu.dot_dimension_numbers<[1], [0], [0], [1], [0, 0, 1, 1], [], []>} : vector<64x64xbf16>, vector<64x32xbf16>, vector<64x32xf32> -> vector<64x32xf32>
    %401 = arith.addf %380, %400 : vector<64x32xf32>
    %402 = vector.broadcast %97 : vector<1x32xf32> to vector<64x32xf32>
    %403 = arith.mulf %335, %402 : vector<64x32xf32>
    %404 = arith.truncf %403 : vector<64x32xf32> to vector<64x32xbf16>
    %cst_109 = arith.constant dense<0.000000e+00> : vector<64x64xf32>
    %405 = tpu.matmul %337, %404, %cst_109 {dimension_numbers = #tpu.dot_dimension_numbers<[1], [1], [0], [0], [0, 0, 1, 0], [], []>} : vector<64x32xbf16>, vector<64x32xbf16>, vector<64x64xf32> -> vector<64x64xf32>
    %406 = arith.addf %405, %127 : vector<64x64xf32>
    %cst_110 = arith.constant dense<0xFF800000> : vector<64xf32>
    %407 = vector.multi_reduction <maximumf>, %406, %cst_110 [1] : vector<64x64xf32> to vector<64xf32>
    %408 = vector.shape_cast %407 : vector<64xf32> to vector<64x1xf32>
    %409 = vector.broadcast %408 : vector<64x1xf32> to vector<64x64xf32>
    %410 = arith.subf %406, %409 : vector<64x64xf32>
    %411 = math.exp %410 : vector<64x64xf32>
    %cst_111 = arith.constant dense<0.000000e+00> : vector<64xf32>
    %412 = vector.multi_reduction <add>, %411, %cst_111 [1] : vector<64x64xf32> to vector<64xf32>
    %413 = vector.shape_cast %412 : vector<64xf32> to vector<64x1xf32>
    %414 = tpu.reciprocal %413 {approx = true} : vector<64x1xf32> -> vector<64x1xf32>
    %415 = vector.broadcast %414 : vector<64x1xf32> to vector<64x64xf32>
    %416 = arith.mulf %411, %415 : vector<64x64xf32>
    %417 = arith.truncf %416 : vector<64x64xf32> to vector<64x64xbf16>
    %418 = vector.broadcast %97 : vector<1x32xf32> to vector<64x32xf32>
    %419 = arith.mulf %336, %418 : vector<64x32xf32>
    %420 = arith.truncf %419 : vector<64x32xf32> to vector<64x32xbf16>
    %cst_112 = arith.constant dense<0.000000e+00> : vector<64x32xf32>
    %421 = tpu.matmul %417, %420, %cst_112 {dimension_numbers = #tpu.dot_dimension_numbers<[1], [0], [0], [1], [0, 0, 1, 1], [], []>} : vector<64x64xbf16>, vector<64x32xbf16>, vector<64x32xf32> -> vector<64x32xf32>
    %422 = arith.addf %401, %421 : vector<64x32xf32>
    %423 = arith.truncf %422 : vector<64x32xf32> to vector<64x32xbf16>
    %c264 = arith.constant 264 : index
    %c0_113 = arith.constant 0 : index
    %424 = vector.load %arg2[%c264, %c0_113] : memref<424x128xbf16, #tpu.memory_space<vmem>>, vector<32x32xbf16>
    %cst_114 = arith.constant dense<0.000000e+00> : vector<64x32xf32>
    %425 = tpu.matmul %423, %424, %cst_114 {dimension_numbers = #tpu.dot_dimension_numbers<[1], [0], [0], [1], [0, 0, 1, 1], [], []>} : vector<64x32xbf16>, vector<32x32xbf16>, vector<64x32xf32> -> vector<64x32xf32>
    %426 = arith.addf %303, %425 : vector<64x32xf32>
    %c16 = arith.constant 16 : index
    %c0_115 = arith.constant 0 : index
    %427 = vector.load %arg3[%c16, %c0_115] : memref<24x128xf32, #tpu.memory_space<vmem>>, vector<1x32xf32>
    %428 = vector.broadcast %427 : vector<1x32xf32> to vector<64x32xf32>
    %429 = arith.addf %426, %428 : vector<64x32xf32>
    %cst_116 = arith.constant dense<0.000000e+00> : vector<64xf32>
    %430 = vector.multi_reduction <add>, %429, %cst_116 [1] : vector<64x32xf32> to vector<64xf32>
    %431 = vector.shape_cast %430 : vector<64xf32> to vector<64x1xf32>
    %cst_117 = arith.constant 3.200000e+01 : f32
    %432 = vector.broadcast %cst_117 : f32 to vector<64x1xf32>
    %433 = arith.divf %431, %432 : vector<64x1xf32>
    %434 = vector.broadcast %433 : vector<64x1xf32> to vector<64x32xf32>
    %435 = arith.subf %429, %434 : vector<64x32xf32>
    %436 = arith.mulf %435, %435 : vector<64x32xf32>
    %cst_118 = arith.constant dense<0.000000e+00> : vector<64xf32>
    %437 = vector.multi_reduction <add>, %436, %cst_118 [1] : vector<64x32xf32> to vector<64xf32>
    %438 = vector.shape_cast %437 : vector<64xf32> to vector<64x1xf32>
    %cst_119 = arith.constant 3.200000e+01 : f32
    %439 = vector.broadcast %cst_119 : f32 to vector<64x1xf32>
    %440 = arith.divf %438, %439 : vector<64x1xf32>
    %441 = vector.broadcast %433 : vector<64x1xf32> to vector<64x32xf32>
    %442 = arith.subf %429, %441 : vector<64x32xf32>
    %cst_120 = arith.constant 9.99999974E-6 : f32
    %443 = vector.broadcast %cst_120 : f32 to vector<64x1xf32>
    %444 = arith.addf %440, %443 : vector<64x1xf32>
    %445 = math.rsqrt %444 : vector<64x1xf32>
    %446 = vector.broadcast %445 : vector<64x1xf32> to vector<64x32xf32>
    %447 = arith.mulf %442, %446 : vector<64x32xf32>
    %c17 = arith.constant 17 : index
    %c0_121 = arith.constant 0 : index
    %448 = vector.load %arg3[%c17, %c0_121] : memref<24x128xf32, #tpu.memory_space<vmem>>, vector<1x32xf32>
    %449 = vector.broadcast %448 : vector<1x32xf32> to vector<64x32xf32>
    %450 = arith.mulf %447, %449 : vector<64x32xf32>
    %c18 = arith.constant 18 : index
    %c0_122 = arith.constant 0 : index
    %451 = vector.load %arg3[%c18, %c0_122] : memref<24x128xf32, #tpu.memory_space<vmem>>, vector<1x32xf32>
    %452 = vector.broadcast %451 : vector<1x32xf32> to vector<64x32xf32>
    %453 = arith.addf %450, %452 : vector<64x32xf32>
    %454 = arith.truncf %453 : vector<64x32xf32> to vector<64x32xbf16>
    %c296 = arith.constant 296 : index
    %c0_123 = arith.constant 0 : index
    %455 = vector.load %arg2[%c296, %c0_123] : memref<424x128xbf16, #tpu.memory_space<vmem>>, vector<32x64xbf16>
    %cst_124 = arith.constant dense<0.000000e+00> : vector<64x64xf32>
    %456 = tpu.matmul %454, %455, %cst_124 {dimension_numbers = #tpu.dot_dimension_numbers<[1], [0], [0], [1], [0, 0, 1, 1], [], []>} : vector<64x32xbf16>, vector<32x64xbf16>, vector<64x64xf32> -> vector<64x64xf32>
    %c19 = arith.constant 19 : index
    %c0_125 = arith.constant 0 : index
    %457 = vector.load %arg3[%c19, %c0_125] : memref<24x128xf32, #tpu.memory_space<vmem>>, vector<1x64xf32>
    %458 = vector.broadcast %457 : vector<1x64xf32> to vector<64x64xf32>
    %459 = arith.addf %456, %458 : vector<64x64xf32>
    %460 = arith.mulf %459, %459 : vector<64x64xf32>
    %461 = arith.mulf %459, %460 : vector<64x64xf32>
    %cst_126 = arith.constant 4.471500e-02 : f32
    %462 = vector.broadcast %cst_126 : f32 to vector<64x64xf32>
    %463 = arith.mulf %462, %461 : vector<64x64xf32>
    %464 = arith.addf %459, %463 : vector<64x64xf32>
    %cst_127 = arith.constant 0.797884583 : f32
    %465 = vector.broadcast %cst_127 : f32 to vector<64x64xf32>
    %466 = arith.mulf %465, %464 : vector<64x64xf32>
    %467 = math.tanh %466 : vector<64x64xf32>
    %cst_128 = arith.constant 1.000000e+00 : f32
    %468 = vector.broadcast %cst_128 : f32 to vector<64x64xf32>
    %469 = arith.addf %468, %467 : vector<64x64xf32>
    %cst_129 = arith.constant 5.000000e-01 : f32
    %470 = vector.broadcast %cst_129 : f32 to vector<64x64xf32>
    %471 = arith.mulf %470, %469 : vector<64x64xf32>
    %472 = arith.mulf %459, %471 : vector<64x64xf32>
    %473 = arith.truncf %472 : vector<64x64xf32> to vector<64x64xbf16>
    %c328 = arith.constant 328 : index
    %c0_130 = arith.constant 0 : index
    %474 = vector.load %arg2[%c328, %c0_130] : memref<424x128xbf16, #tpu.memory_space<vmem>>, vector<64x32xbf16>
    %cst_131 = arith.constant dense<0.000000e+00> : vector<64x32xf32>
    %475 = tpu.matmul %473, %474, %cst_131 {dimension_numbers = #tpu.dot_dimension_numbers<[1], [0], [0], [1], [0, 0, 1, 1], [], []>} : vector<64x64xbf16>, vector<64x32xbf16>, vector<64x32xf32> -> vector<64x32xf32>
    %476 = arith.addf %429, %475 : vector<64x32xf32>
    %c20 = arith.constant 20 : index
    %c0_132 = arith.constant 0 : index
    %477 = vector.load %arg3[%c20, %c0_132] : memref<24x128xf32, #tpu.memory_space<vmem>>, vector<1x32xf32>
    %478 = vector.broadcast %477 : vector<1x32xf32> to vector<64x32xf32>
    %479 = arith.addf %476, %478 : vector<64x32xf32>
    %cst_133 = arith.constant dense<0.000000e+00> : vector<64xf32>
    %480 = vector.multi_reduction <add>, %479, %cst_133 [1] : vector<64x32xf32> to vector<64xf32>
    %481 = vector.shape_cast %480 : vector<64xf32> to vector<64x1xf32>
    %cst_134 = arith.constant 3.200000e+01 : f32
    %482 = vector.broadcast %cst_134 : f32 to vector<64x1xf32>
    %483 = arith.divf %481, %482 : vector<64x1xf32>
    %484 = vector.broadcast %483 : vector<64x1xf32> to vector<64x32xf32>
    %485 = arith.subf %479, %484 : vector<64x32xf32>
    %486 = arith.mulf %485, %485 : vector<64x32xf32>
    %cst_135 = arith.constant dense<0.000000e+00> : vector<64xf32>
    %487 = vector.multi_reduction <add>, %486, %cst_135 [1] : vector<64x32xf32> to vector<64xf32>
    %488 = vector.shape_cast %487 : vector<64xf32> to vector<64x1xf32>
    %cst_136 = arith.constant 3.200000e+01 : f32
    %489 = vector.broadcast %cst_136 : f32 to vector<64x1xf32>
    %490 = arith.divf %488, %489 : vector<64x1xf32>
    %491 = vector.broadcast %483 : vector<64x1xf32> to vector<64x32xf32>
    %492 = arith.subf %479, %491 : vector<64x32xf32>
    %cst_137 = arith.constant 9.99999974E-6 : f32
    %493 = vector.broadcast %cst_137 : f32 to vector<64x1xf32>
    %494 = arith.addf %490, %493 : vector<64x1xf32>
    %495 = math.rsqrt %494 : vector<64x1xf32>
    %496 = vector.broadcast %495 : vector<64x1xf32> to vector<64x32xf32>
    %497 = arith.mulf %492, %496 : vector<64x32xf32>
    %c21 = arith.constant 21 : index
    %c0_138 = arith.constant 0 : index
    %498 = vector.load %arg3[%c21, %c0_138] : memref<24x128xf32, #tpu.memory_space<vmem>>, vector<1x32xf32>
    %499 = vector.broadcast %498 : vector<1x32xf32> to vector<64x32xf32>
    %500 = arith.mulf %497, %499 : vector<64x32xf32>
    %c22 = arith.constant 22 : index
    %c0_139 = arith.constant 0 : index
    %501 = vector.load %arg3[%c22, %c0_139] : memref<24x128xf32, #tpu.memory_space<vmem>>, vector<1x32xf32>
    %502 = vector.broadcast %501 : vector<1x32xf32> to vector<64x32xf32>
    %503 = arith.addf %500, %502 : vector<64x32xf32>
    %504 = arith.truncf %503 : vector<64x32xf32> to vector<64x32xbf16>
    %c392 = arith.constant 392 : index
    %c0_140 = arith.constant 0 : index
    %505 = vector.load %arg2[%c392, %c0_140] : memref<424x128xbf16, #tpu.memory_space<vmem>>, vector<32x128xbf16>
    %cst_141 = arith.constant dense<0.000000e+00> : vector<64x128xf32>
    %506 = tpu.matmul %504, %505, %cst_141 {dimension_numbers = #tpu.dot_dimension_numbers<[1], [0], [0], [1], [0, 0, 1, 1], [], []>} : vector<64x32xbf16>, vector<32x128xbf16>, vector<64x128xf32> -> vector<64x128xf32>
    %c23 = arith.constant 23 : index
    %c0_142 = arith.constant 0 : index
    %507 = vector.load %arg3[%c23, %c0_142] : memref<24x128xf32, #tpu.memory_space<vmem>>, vector<1x128xf32>
    %508 = vector.broadcast %507 : vector<1x128xf32> to vector<64x128xf32>
    %509 = arith.addf %506, %508 : vector<64x128xf32>
    %cst_143 = arith.constant dense<0xFF800000> : vector<64xf32>
    %510 = vector.multi_reduction <maximumf>, %509, %cst_143 [1] : vector<64x128xf32> to vector<64xf32>
    %511 = vector.shape_cast %510 : vector<64xf32> to vector<64x1xf32>
    %512 = vector.broadcast %511 : vector<64x1xf32> to vector<64x128xf32>
    %513 = arith.subf %509, %512 : vector<64x128xf32>
    %514 = math.exp %513 : vector<64x128xf32>
    %cst_144 = arith.constant dense<0.000000e+00> : vector<64xf32>
    %515 = vector.multi_reduction <add>, %514, %cst_144 [1] : vector<64x128xf32> to vector<64xf32>
    %516 = vector.shape_cast %515 : vector<64xf32> to vector<64x1xf32>
    %517 = math.log %516 : vector<64x1xf32>
    %518 = arith.addf %517, %511 : vector<64x1xf32>
    %519 = vector.broadcast %518 : vector<64x1xf32> to vector<64x128xf32>
    %520 = arith.subf %509, %519 : vector<64x128xf32>
    %c0_145 = arith.constant 0 : index
    %c0_146 = arith.constant 0 : index
    %521 = vector.load %arg4[%c0_145, %c0_146] : memref<64x128xf32, #tpu.memory_space<vmem>>, vector<64x128xf32>
    tpu.vector_store %arg4[%c0_145, %c0_146], %520 {strides = array<i32>} : memref<64x128xf32, #tpu.memory_space<vmem>>, vector<64x128xf32>,
    return
  }
  func.func @transform_0(%arg0: i32) -> (i32, i32) {
    %c0_i32 = arith.constant 0 : i32
    %c0_i32_0 = arith.constant 0 : i32
    %c0_i32_1 = arith.constant 0 : i32
    return %c0_i32, %c0_i32_0 : i32, i32
  }
  func.func @transform_1(%arg0: i32) -> (i32, i32) {
    %c0_i32 = arith.constant 0 : i32
    %c0_i32_0 = arith.constant 0 : i32
    %c0_i32_1 = arith.constant 0 : i32
    return %c0_i32, %c0_i32_0 : i32, i32
  }
  func.func @transform_2(%arg0: i32) -> (i32, i32) {
    %c0_i32 = arith.constant 0 : i32
    %c0_i32_0 = arith.constant 0 : i32
    %c0_i32_1 = arith.constant 0 : i32
    return %c0_i32, %c0_i32_0 : i32, i32
  }
  func.func @transform_3(%arg0: i32) -> (i32, i32) {
    %c0_i32 = arith.constant 0 : i32
    %c0_i32_0 = arith.constant 0 : i32
    %c0_i32_1 = arith.constant 0 : i32
    return %c0_i32, %c0_i32_0 : i32, i32
  }
}

</mosaic_0001>

<bundles_post_ra>
// kernel: wav2vec2_for_ctc_forward.1
= control target key start
LH: loop header
LB: loop body
LE: loop exit
PB: predicated region body
PF: predicated region fallthrough
CT: control target
= control target key end

     0   :  { %8 = vsyncpa [#allocation3], 0  ;;  %s5234_s15 = smov [#allocation2]   ;;  %s5235_s17 = smov 64   ;;  %s7724_s0 = inlined_call_operand.vmem [shape: f32[64,8], index: 0, kind: input, shape index: {}]   ;;  %s7725_s1 = inlined_call_operand.hbm [shape: bf16[424,128], index: 1, kind: input, shape index: {}]   ;;  %s7726_s2 = inlined_call_operand.vmem [shape: f32[24,128], index: 2, kind: input, shape index: {}]   ;;  %s7727_s3 = inlined_call_operand.vmem [shape: f32[64,128], index: 3, kind: output, shape index: {}]  }
   0x1   :  { %s15_s14 = sshll.u32 %s7725_s1, 4  ;;  %s17_s16 = sshll.u32 %s5234_s15, 4  ;;  %s16_s14 = int_to_ptr.hbm [resolvable:$true] %s15_s14  ;;  %s18_s16 = int_to_ptr.vmem [resolvable:$true] %s17_s16 }
   0x2   :  { %s5236_s18 = smov 4  }
   0x3   :  { %23 = dma.hbm_to_vmem [thread:$0]  %s16_s14, 3392, %s18_s16, [#allocation3], %s5235_s17, %s5235_s17, %s5236_s18  }
   0x4   :  { %5232 = dma.done.wait [#allocation3], 3392  }
   0x5   :  { %5233 = vsyncadd [#allocation3], 4294963904  ;;  %vm59_vm0 = vcmask 1043456   ;;  %v43_v0 = vld [vmem:[#allocation2] sm:$0xf]  ;;  %v32_v2 = vld [vmem:[%s7724_s0 + $0x8] sm:$0xff] }
   0x6   :  { %v31_v1 = vld [vmem:[%s7724_s0] sm:$0xff]  ;;  %v61_v3 = vsel %vm59_vm0, %v43_v0, 0  ;;  %vm46_vm1 = vcmask 64512   ;;  %v33_v5 = vld [vmem:[%s7724_s0 + $0x10] sm:$0xff]  ;;  %v34_v6 = vld [vmem:[%s7724_s0 + $0x18] sm:$0xff]  ;;  %vm186_vm2 = vcmask 261120  }
   0x7   :  { %v39_v4 = vpack.c.bf16 %v32_v2, %v31_v1  ;;  %70 = vmatpush.bf16.msra.mxu0 %v61_v3  ;;  %v40_v7 = vpack.c.bf16 %v34_v6, %v33_v5  ;;  %v35_v8 = vld [vmem:[%s7724_s0 + $0x20] sm:$0xff]  ;;  %v36_v9 = vld [vmem:[%s7724_s0 + $0x28] sm:$0xff]  ;;  %v37_v11 = vld [vmem:[%s7724_s0 + $0x30] sm:$0xff]  ;;  %s5239_s21 = smov 32   ;;  %s5240_s23 = smov 96  }
   0x8   :  { %v41_v10 = vpack.c.bf16 %v36_v9, %v35_v8  ;;  %v38_v12 = vld [vmem:[%s7724_s0 + $0x38] sm:$0xff]  ;;  %v4691_v14 = vld [vmem:[#allocation2 + $0xc] sm:$0xff]  ;;  %v5294_v15 = vld [vmem:[%s7726_s2] ss:$0 sm:$0xff] }
   0x9   :  { %v42_v13 = vpack.c.bf16 %v38_v12, %v37_v11  ;;  %205 = vmatpush.bf16.msra.mxu1 %v4691_v14  ;;  %v4690_v16 = vld [vmem:[#allocation2 + $0x4] sm:$0xff] }
   0xa   :  { %4470 = vmatmul.msk.bf16.vlgmr.msra.gmra.mxu0 %vm46_vm1, %v39_v4 }
   0xd   :  { %206 = vmatpush.bf16.msra.mxu1 %v4690_v16 }
  0x1a   :  { %4471 = vmatmul.msk.bf16.gmra.mxu0 %vm46_vm1, %v40_v7 }
  0x2a   :  { %4472 = vmatmul.msk.bf16.gmra.mxu0 %vm46_vm1, %v41_v10 }
  0x3a   :  { %4473 = vmatmul.msk.bf16.gmra.mxu0 %vm46_vm1, %v42_v13 }
  0x87   :  { %v72_v17 = vpop.f32.mrf.mxu0 }
  0x88   :  { %v73_v18 = vadd.f32 %v5294_v15, %v72_v17 }
  0x8a   :  { %v92_v19 = vmul.f32 %v73_v18, %v73_v18 }
  0x8c   :  { %v100_v20 = vmul.f32 %v92_v19, %v73_v18 }
  0x8e   :  { %v108_v21 = vmul.f32 0.044715, %v100_v20 }
  0x8f   :  { %v74_v22 = vpop.f32.mrf.mxu0 }
  0x90   :  { %v116_v23 = vadd.f32 %v108_v21, %v73_v18  ;;  %v75_v24 = vadd.f32 %v5294_v15, %v74_v22 }
  0x92   :  { %v124_v25 = vmul.f32 0.7978846, %v116_v23  ;;  %v93_v26 = vmul.f32 %v75_v24, %v75_v24 }
  0x94   :  { %v101_v27 = vmul.f32 %v93_v26, %v75_v24  ;;  %4758 = vtanh.f32 %v124_v25 }
  0x96   :  { %v109_v28 = vmul.f32 0.044715, %v101_v27 }
  0x97   :  { %v77_v29 = vpop.f32.mrf.mxu0 }
  0x98   :  { %v117_v30 = vadd.f32 %v109_v28, %v75_v24  ;;  %v78_v31 = vadd.f32 %v5294_v15, %v77_v29 }
  0x9a   :  { %v125_v32 = vmul.f32 0.7978846, %v117_v30  ;;  %v94_v33 = vmul.f32 %v78_v31, %v78_v31  ;;  %v4759_v34 = vpop.eup %4758 }
  0x9b   :  { %v140_v38 = vadd.f32 1.0, %v4759_v34 }
  0x9c   :  { %v102_v35 = vmul.f32 %v94_v33, %v78_v31  ;;  %4760 = vtanh.f32 %v125_v32 }
  0x9d   :  { %v148_v45 = vmul.f32 0.5, %v140_v38 }
  0x9e   :  { %v110_v36 = vmul.f32 0.044715, %v102_v35 }
  0x9f   :  { %v79_v37 = vpop.f32.mrf.mxu0  ;;  %v156_v50 = vmul.f32 %v148_v45, %v73_v18  ;;  %v5311_v45 = vld [vmem:[%s7726_s2 + $0x1] ss:$0 sm:$0xff] }
  0xa0   :  { %v118_v39 = vadd.f32 %v110_v36, %v78_v31  ;;  %v80_v40 = vadd.f32 %v5294_v15, %v79_v37 }
  0xa2   :  { %v4761_v41 = vpop.eup %4760  ;;  %v126_v42 = vmul.f32 0.7978846, %v118_v39  ;;  %v95_v43 = vmul.f32 %v80_v40, %v80_v40 }
  0xa3   :  { %v141_v44 = vadd.f32 1.0, %v4761_v41 }
  0xa4   :  { %v103_v46 = vmul.f32 %v95_v43, %v80_v40  ;;  %4762 = vtanh.f32 %v126_v42 }
  0xa5   :  { %v149_v47 = vmul.f32 0.5, %v141_v44 }
  0xa6   :  { %v111_v48 = vmul.f32 0.044715, %v103_v46 }
  0xa7   :  { %v82_v49 = vpop.f32.mrf.mxu0  ;;  %v157_v51 = vmul.f32 %v149_v47, %v75_v24 }
  0xa8   :  { %v119_v52 = vadd.f32 %v111_v48, %v80_v40  ;;  %v83_v53 = vadd.f32 %v5294_v15, %v82_v49 }
  0xa9   :  { %v164_v54 = vpack.c.bf16 %v157_v51, %v156_v50 }
  0xaa   :  { %v127_v55 = vmul.f32 0.7978846, %v119_v52  ;;  %v96_v56 = vmul.f32 %v83_v53, %v83_v53  ;;  %v4763_v57 = vpop.eup %4762 }
  0xab   :  { %4482 = vmatmul.msk.bf16.vlgmr.msra.gmra.mxu1 %vm186_vm2, %v164_v54  ;;  %v142_v61 = vadd.f32 1.0, %v4763_v57 }
  0xac   :  { %v104_v58 = vmul.f32 %v96_v56, %v83_v53  ;;  %4764 = vtanh.f32 %v127_v55 }
  0xad   :  { %v150_v4 = vmul.f32 0.5, %v142_v61 }
  0xae   :  { %v112_v59 = vmul.f32 0.044715, %v104_v58 }
  0xaf   :  { %v84_v60 = vpop.f32.mrf.mxu0  ;;  %v158_v9 = vmul.f32 %v150_v4, %v78_v31 }
  0xb0   :  { %v120_v62 = vadd.f32 %v112_v59, %v83_v53  ;;  %v85_v63 = vadd.f32 %v5294_v15, %v84_v60 }
  0xb2   :  { %v4765_v0 = vpop.eup %4764  ;;  %v128_v1 = vmul.f32 0.7978846, %v120_v62  ;;  %v97_v2 = vmul.f32 %v85_v63, %v85_v63 }
  0xb3   :  { %v143_v3 = vadd.f32 1.0, %v4765_v0 }
  0xb4   :  { %4766 = vtanh.f32 %v128_v1  ;;  %v105_v5 = vmul.f32 %v97_v2, %v85_v63 }
  0xb5   :  { %v151_v6 = vmul.f32 0.5, %v143_v3 }
  0xb6   :  { %v113_v7 = vmul.f32 0.044715, %v105_v5 }
  0xb7   :  { %v87_v8 = vpop.f32.mrf.mxu0  ;;  %v159_v10 = vmul.f32 %v151_v6, %v80_v40 }
  0xb8   :  { %v121_v11 = vadd.f32 %v113_v7, %v85_v63  ;;  %v88_v12 = vadd.f32 %v5294_v15, %v87_v8 }
  0xb9   :  { %v165_v13 = vpack.c.bf16 %v159_v10, %v158_v9 }
  0xba   :  { %v4767_v14 = vpop.eup %4766  ;;  %v129_v16 = vmul.f32 0.7978846, %v121_v11  ;;  %v98_v17 = vmul.f32 %v88_v12, %v88_v12 }
  0xbb   :  { %4483 = vmatmul.msk.bf16.gmra.mxu1 %vm186_vm2, %v165_v13  ;;  %v144_v19 = vadd.f32 1.0, %v4767_v14 }
  0xbc   :  { %v106_v18 = vmul.f32 %v98_v17, %v88_v12  ;;  %4768 = vtanh.f32 %v129_v16 }
  0xbd   :  { %v152_v24 = vmul.f32 0.5, %v144_v19 }
  0xbe   :  { %v114_v20 = vmul.f32 0.044715, %v106_v18 }
  0xbf   :  { %v89_v21 = vpop.f32.mrf.mxu0  ;;  %v160_v31 = vmul.f32 %v152_v24, %v83_v53 }
  0xc0   :  { %v122_v22 = vadd.f32 %v114_v20, %v88_v12  ;;  %v90_v23 = vadd.f32 %v5294_v15, %v89_v21 }
  0xc2   :  { %v4769_v25 = vpop.eup %4768  ;;  %v130_v26 = vmul.f32 0.7978846, %v122_v22  ;;  %v99_v27 = vmul.f32 %v90_v23, %v90_v23 }
  0xc3   :  { %v145_v28 = vadd.f32 1.0, %v4769_v25 }
  0xc4   :  { %4770 = vtanh.f32 %v130_v26  ;;  %v107_v29 = vmul.f32 %v99_v27, %v90_v23 }
  0xc5   :  { %v153_v30 = vmul.f32 0.5, %v145_v28 }
  0xc6   :  { %v115_v32 = vmul.f32 0.044715, %v107_v29 }
  0xc7   :  { %v161_v33 = vmul.f32 %v153_v30, %v85_v63 }
  0xc8   :  { %v123_v34 = vadd.f32 %v115_v32, %v90_v23 }
  0xc9   :  { %v166_v35 = vpack.c.bf16 %v161_v33, %v160_v31 }
  0xca   :  { %v4771_v36 = vpop.eup %4770  ;;  %v131_v37 = vmul.f32 0.7978846, %v123_v34 }
  0xcb   :  { %4484 = vmatmul.msk.bf16.gmra.mxu1 %vm186_vm2, %v166_v35  ;;  %v146_v38 = vadd.f32 1.0, %v4771_v36 }
  0xcc   :  { %4772 = vtanh.f32 %v131_v37 }
  0xcd   :  { %v154_v15 = vmul.f32 0.5, %v146_v38 }
  0xcf   :  { %v162_v42 = vmul.f32 %v154_v15, %v88_v12 }
  0xd2   :  { %v4773_v39 = vpop.eup %4772 }
  0xd3   :  { %v147_v40 = vadd.f32 1.0, %v4773_v39 }
  0xd5   :  { %v155_v41 = vmul.f32 0.5, %v147_v40 }
  0xd7   :  { %v163_v43 = vmul.f32 %v155_v41, %v90_v23 }
  0xd9   :  { %v167_v44 = vpack.c.bf16 %v163_v43, %v162_v42 }
  0xdb   :  { %4485 = vmatmul.msk.bf16.gmra.mxu1 %vm186_vm2, %v167_v44 }
 0x128   :  { %v208_v46 = vpop.f32.mrf.mxu1 }
 0x129   :  { %v209_v47 = vadd.f32 %v5311_v45, %v208_v46 }
 0x12b   :  { %v228_v48 = vmul.f32 %v209_v47, %v209_v47 }
 0x12d   :  { %v236_v49 = vmul.f32 %v228_v48, %v209_v47 }
 0x12f   :  { %v244_v50 = vmul.f32 0.044715, %v236_v49 }
 0x130   :  { %v210_v51 = vpop.f32.mrf.mxu1 }
 0x131   :  { %v211_v52 = vadd.f32 %v5311_v45, %v210_v51  ;;  %v252_v53 = vadd.f32 %v244_v50, %v209_v47 }
 0x133   :  { %v229_v54 = vmul.f32 %v211_v52, %v211_v52  ;;  %v260_v55 = vmul.f32 0.7978846, %v252_v53 }
 0x135   :  { %v237_v56 = vmul.f32 %v229_v54, %v211_v52  ;;  %4774 = vtanh.f32 %v260_v55 }
 0x137   :  { %v245_v57 = vmul.f32 0.044715, %v237_v56 }
 0x138   :  { %v213_v58 = vpop.f32.mrf.mxu1 }
 0x139   :  { %v214_v59 = vadd.f32 %v5311_v45, %v213_v58  ;;  %v253_v60 = vadd.f32 %v245_v57, %v211_v52 }
 0x13b   :  { %v4775_v61 = vpop.eup %4774  ;;  %v230_v62 = vmul.f32 %v214_v59, %v214_v59  ;;  %v261_v63 = vmul.f32 0.7978846, %v253_v60 }
 0x13c   :  { %v276_v0 = vadd.f32 1.0, %v4775_v61 }
 0x13d   :  { %v238_v1 = vmul.f32 %v230_v62, %v214_v59  ;;  %4776 = vtanh.f32 %v261_v63 }
 0x13e   :  { %v284_v2 = vmul.f32 0.5, %v276_v0 }
 0x13f   :  { %v246_v3 = vmul.f32 0.044715, %v238_v1 }
 0x140   :  { %v215_v4 = vpop.f32.mrf.mxu1  ;;  %v5316_v5 = vmul.f32 %v284_v2, %v209_v47 }
 0x141   :  { %v216_v6 = vadd.f32 %v5311_v45, %v215_v4  ;;  %v254_v7 = vadd.f32 %v246_v3, %v214_v59 }
 0x142   :  { %v300_v8 = vsel %vm186_vm2, %v5316_v5, 0.0 }
 0x143   :  { %v4777_v9 = vpop.eup %4776  ;;  %v231_v10 = vmul.f32 %v216_v6, %v216_v6  ;;  %301 = vadd.xlane.f32.xlu0 %v300_v8  ;;  %v262_v11 = vmul.f32 0.7978846, %v254_v7 }
 0x144   :  { %v277_v12 = vadd.f32 1.0, %v4777_v9 }
 0x145   :  { %v239_v13 = vmul.f32 %v231_v10, %v216_v6  ;;  %4778 = vtanh.f32 %v262_v11 }
 0x146   :  { %v285_v14 = vmul.f32 0.5, %v277_v12 }
 0x147   :  { %v247_v16 = vmul.f32 0.044715, %v239_v13 }
 0x148   :  { %v218_v17 = vpop.f32.mrf.mxu1  ;;  %v5321_v18 = vmul.f32 %v285_v14, %v211_v52 }
 0x149   :  { %v219_v19 = vadd.f32 %v5311_v45, %v218_v17  ;;  %v255_v20 = vadd.f32 %v247_v16, %v216_v6 }
 0x14a   :  { %v303_v21 = vsel %vm186_vm2, %v5321_v18, 0.0 }
 0x14b   :  { %v4779_v22 = vpop.eup %4778  ;;  %v232_v23 = vmul.f32 %v219_v19, %v219_v19  ;;  %304 = vadd.xlane.f32.xlu0 %v303_v21  ;;  %v263_v24 = vmul.f32 0.7978846, %v255_v20 }
 0x14c   :  { %v278_v25 = vadd.f32 1.0, %v4779_v22 }
 0x14d   :  { %v240_v26 = vmul.f32 %v232_v23, %v219_v19  ;;  %4780 = vtanh.f32 %v263_v24 }
 0x14e   :  { %v286_v27 = vmul.f32 0.5, %v278_v25 }
 0x14f   :  { %v248_v28 = vmul.f32 0.044715, %v240_v26 }
 0x150   :  { %v220_v29 = vpop.f32.mrf.mxu1  ;;  %v5326_v30 = vmul.f32 %v286_v27, %v214_v59 }
 0x151   :  { %v221_v31 = vadd.f32 %v5311_v45, %v220_v29  ;;  %v256_v32 = vadd.f32 %v248_v28, %v219_v19 }
 0x152   :  { %v306_v33 = vsel %vm186_vm2, %v5326_v30, 0.0 }
 0x153   :  { %v4781_v34 = vpop.eup %4780  ;;  %v233_v35 = vmul.f32 %v221_v31, %v221_v31  ;;  %307 = vadd.xlane.f32.xlu1 %v306_v33  ;;  %v264_v36 = vmul.f32 0.7978846, %v256_v32 }
 0x154   :  { %v279_v37 = vadd.f32 1.0, %v4781_v34 }
 0x155   :  { %v241_v38 = vmul.f32 %v233_v35, %v221_v31  ;;  %4782 = vtanh.f32 %v264_v36 }
 0x156   :  { %v287_v15 = vmul.f32 0.5, %v279_v37 }
 0x157   :  { %v249_v39 = vmul.f32 0.044715, %v241_v38 }
 0x158   :  { %v223_v40 = vpop.f32.mrf.mxu1  ;;  %v5331_v41 = vmul.f32 %v287_v15, %v216_v6  ;;  %v5237_v6 = vmov 32.0  }
 0x159   :  { %v224_v42 = vadd.f32 %v5311_v45, %v223_v40  ;;  %v257_v43 = vadd.f32 %v249_v39, %v221_v31 }
 0x15a   :  { %v309_v44 = vsel %vm186_vm2, %v5331_v41, 0.0 }
 0x15b   :  { %v4783_v46 = vpop.eup %4782  ;;  %v234_v47 = vmul.f32 %v224_v42, %v224_v42  ;;  %310 = vadd.xlane.f32.xlu1 %v309_v44  ;;  %v265_v48 = vmul.f32 0.7978846, %v257_v43 }
 0x15c   :  { %v280_v49 = vadd.f32 1.0, %v4783_v46 }
 0x15d   :  { %v242_v50 = vmul.f32 %v234_v47, %v224_v42  ;;  %4784 = vtanh.f32 %v265_v48 }
 0x15e   :  { %v288_v51 = vmul.f32 0.5, %v280_v49 }
 0x15f   :  { %v250_v52 = vmul.f32 0.044715, %v242_v50 }
 0x160   :  { %v5336_v53 = vmul.f32 %v288_v51, %v219_v19  ;;  %v225_v3 = vpop.f32.mrf.mxu1 }
 0x161   :  { %v258_v54 = vadd.f32 %v250_v52, %v224_v42  ;;  %v226_v4 = vadd.f32 %v5311_v45, %v225_v3 }
 0x162   :  { %v312_v55 = vsel %vm186_vm2, %v5336_v53, 0.0 }
 0x163   :  { %v4785_v56 = vpop.eup %4784  ;;  %313 = vadd.xlane.f32.xlu2 %v312_v55  ;;  %v266_v57 = vmul.f32 0.7978846, %v258_v54  ;;  %v235_v7 = vmul.f32 %v226_v4, %v226_v4 }
 0x164   :  { %v281_v58 = vadd.f32 1.0, %v4785_v56 }
 0x165   :  { %4786 = vtanh.f32 %v266_v57  ;;  %v243_v8 = vmul.f32 %v235_v7, %v226_v4  ;;  %v4693_v57 = vld [vmem:[#allocation2 + $0x1c] sm:$0xff] }
 0x166   :  { %v289_v59 = vmul.f32 0.5, %v281_v58  ;;  %4788 = vrcp.f32 %v5237_v6  ;;  %543 = vmatpush.bf16.msra.mxu2 %v4693_v57 }
 0x167   :  { %v251_v11 = vmul.f32 0.044715, %v243_v8 }
 0x168   :  { %v5340_v60 = vmul.f32 %v289_v59, %v221_v31 }
 0x169   :  { %v259_v13 = vadd.f32 %v251_v11, %v226_v4 }
 0x16a   :  { %v315_v61 = vsel %vm186_vm2, %v5340_v60, 0.0 }
 0x16b   :  { %v4787_v62 = vpop.eup %4786  ;;  %316 = vadd.xlane.f32.xlu2 %v315_v61  ;;  %v267_v16 = vmul.f32 0.7978846, %v259_v13 }
 0x16c   :  { %v282_v63 = vadd.f32 1.0, %v4787_v62  ;;  %v4789_v9 = vpop.eup %4788 }
 0x16d   :  { %v325_v10 = vmul.f32 32.0, %v4789_v9  ;;  %4790 = vtanh.f32 %v267_v16  ;;  %vm329_vm3 = vweird.f32 %v4789_v9 }
 0x16e   :  { %v290_v0 = vmul.f32 0.5, %v282_v63 }
 0x16f   :  { %v326_v12 = vsub.f32 1.0, %v325_v10 }
 0x170   :  { %v5344_v1 = vmul.f32 %v290_v0, %v224_v42 }
 0x171   :  { %v327_v14 = vmul.f32 %v4789_v9, %v326_v12 }
 0x172   :  { %v318_v2 = vsel %vm186_vm2, %v5344_v1, 0.0 }
 0x173   :  { %319 = vadd.xlane.f32.xlu2 %v318_v2  ;;  %v328_v17 = vadd.f32 %v4789_v9, %v327_v14  ;;  %v4791_v20 = vpop.eup %4790 }
 0x174   :  { %v283_v23 = vadd.f32 1.0, %v4791_v20 }
 0x175   :  { %v5349_v19 = vsel %vm329_vm3, %v4789_v9, %v328_v17 }
 0x176   :  { %7741 = vst [vmem:[#allocation5_spill] sm:$0xff] %v5349_v19  ;;  %v291_v26 = vmul.f32 0.5, %v283_v23 }
 0x178   :  { %v299_v31 = vmul.f32 %v291_v26, %v226_v4 }
 0x1b6   :  { %v302_v21 = vpop.xlane.xlu0 %301 }
 0x1b7   :  { %v331_v45 = vmul.f32 %v5349_v19, %v302_v21 }
 0x1b9   :  { %v5353_v22 = vsub.f32 %v5316_v5, %v331_v45  ;;  %v321_v5 = vsel %vm186_vm2, %v299_v31, 0.0 }
 0x1bb   :  { %v347_v24 = vmul.f32 %v5353_v22, %v5353_v22 }
 0x1bd   :  { %v355_v25 = vsel %vm186_vm2, %v347_v24, 0.0 }
 0x1be   :  { %356 = vadd.xlane.f32.xlu0 %v355_v25  ;;  %v305_v27 = vpop.xlane.xlu0 %304 }
 0x1bf   :  { %v332_v28 = vmul.f32 %v5349_v19, %v305_v27 }
 0x1c1   :  { %v5360_v29 = vsub.f32 %v5321_v18, %v332_v28 }
 0x1c3   :  { %v348_v32 = vmul.f32 %v5360_v29, %v5360_v29 }
 0x1c5   :  { %v358_v33 = vsel %vm186_vm2, %v348_v32, 0.0  ;;  %v5415_v32 = vld [vmem:[%s7726_s2 + $0x2] ss:$0 sm:$0xff] }
 0x1c6   :  { %v308_v34 = vpop.xlane.xlu1 %307  ;;  %322 = vadd.xlane.f32.xlu0 %v321_v5  ;;  %359 = vadd.xlane.f32.xlu1 %v358_v33 }
 0x1c7   :  { %v333_v35 = vmul.f32 %v5349_v19, %v308_v34 }
 0x1c9   :  { %v5368_v36 = vsub.f32 %v5326_v30, %v333_v35 }
 0x1cb   :  { %v349_v18 = vmul.f32 %v5368_v36, %v5368_v36 }
 0x1cd   :  { %v361_v37 = vsel %vm186_vm2, %v349_v18, 0.0 }
 0x1ce   :  { %v311_v38 = vpop.xlane.xlu1 %310  ;;  %362 = vadd.xlane.f32.xlu1 %v361_v37 }
 0x1cf   :  { %v334_v15 = vmul.f32 %v5349_v19, %v311_v38 }
 0x1d1   :  { %v5375_v39 = vsub.f32 %v5331_v41, %v334_v15 }
 0x1d3   :  { %v350_v40 = vmul.f32 %v5375_v39, %v5375_v39 }
 0x1d5   :  { %v364_v42 = vsel %vm186_vm2, %v350_v40, 0.0 }
 0x1d6   :  { %v314_v43 = vpop.xlane.xlu2 %313  ;;  %365 = vadd.xlane.f32.xlu2 %v364_v42 }
 0x1d7   :  { %v335_v30 = vmul.f32 %v5349_v19, %v314_v43 }
 0x1d9   :  { %v5382_v44 = vsub.f32 %v5336_v53, %v335_v30 }
 0x1db   :  { %v351_v46 = vmul.f32 %v5382_v44, %v5382_v44 }
 0x1dd   :  { %v367_v47 = vsel %vm186_vm2, %v351_v46, 0.0 }
 0x1de   :  { %v317_v48 = vpop.xlane.xlu2 %316  ;;  %368 = vadd.xlane.f32.xlu0 %v367_v47 }
 0x1df   :  { %v336_v41 = vmul.f32 %v5349_v19, %v317_v48 }
 0x1e1   :  { %v5389_v49 = vsub.f32 %v5340_v60, %v336_v41  ;;  %v4692_v60 = vld [vmem:[#allocation2 + $0x14] sm:$0xff] }
 0x1e2   :  { %544 = vmatpush.bf16.msra.mxu2 %v4692_v60 }
 0x1e3   :  { %v352_v50 = vmul.f32 %v5389_v49, %v5389_v49 }
 0x1e5   :  { %v370_v51 = vsel %vm186_vm2, %v352_v50, 0.0 }
 0x1e6   :  { %v320_v52 = vpop.xlane.xlu2 %319  ;;  %371 = vadd.xlane.f32.xlu1 %v370_v51 }
 0x1e7   :  { %v337_v53 = vmul.f32 %v5349_v19, %v320_v52 }
 0x1e9   :  { %v5396_v54 = vsub.f32 %v5344_v1, %v337_v53 }
 0x1eb   :  { %v353_v55 = vmul.f32 %v5396_v54, %v5396_v54 }
 0x1ed   :  { %v373_v56 = vsel %vm186_vm2, %v353_v55, 0.0 }
 0x1ee   :  { %374 = vadd.xlane.f32.xlu2 %v373_v56 }
 0x231   :  { %v357_v58 = vpop.xlane.xlu0 %356 }
 0x232   :  { %v379_v59 = vmul.f32 %v357_v58, %v5349_v19 }
 0x234   :  { %v387_v61 = vadd.f32 1e-05, %v379_v59 }
 0x236   :  { %4792 = vrsqrt.f32 %v387_v61  ;;  %vm401_vm5 = vweird.f32 %v387_v61 }
 0x239   :  { %v360_v62 = vpop.xlane.xlu1 %359  ;;  %v323_v63 = vpop.xlane.xlu0 %322 }
 0x23a   :  { %v380_v0 = vmul.f32 %v360_v62, %v5349_v19  ;;  %v338_v1 = vmul.f32 %v5349_v19, %v323_v63 }
 0x23c   :  { %v4793_v2 = vpop.eup %4792  ;;  %v388_v3 = vadd.f32 1e-05, %v380_v0  ;;  %v5404_v4 = vsub.f32 %v299_v31, %v338_v1 }
 0x23d   :  { %v396_v6 = vmul.f32 %v4793_v2, %v387_v61  ;;  %vm402_vm4 = vweird.f32 %v4793_v2 }
 0x23e   :  { %4794 = vrsqrt.f32 %v388_v3  ;;  %v354_v7 = vmul.f32 %v5404_v4, %v5404_v4  ;;  %vm403_vm6 = vmor %vm401_vm5, %vm402_vm4  ;;  %vm411_vm8 = vweird.f32 %v388_v3 }
 0x23f   :  { %v397_v8 = vmul.f32 %v4793_v2, %v396_v6 }
 0x240   :  { %v376_v9 = vsel %vm186_vm2, %v354_v7, 0.0 }
 0x241   :  { %v398_v10 = vmul.f32 0.5, %v397_v8  ;;  %v363_v11 = vpop.xlane.xlu1 %362  ;;  %377 = vadd.xlane.f32.xlu0 %v376_v9 }
 0x242   :  { %v381_v12 = vmul.f32 %v363_v11, %v5349_v19 }
 0x243   :  { %v399_v13 = vsub.f32 1.5, %v398_v10 }
 0x244   :  { %v4795_v14 = vpop.eup %4794  ;;  %v389_v16 = vadd.f32 1e-05, %v381_v12 }
 0x245   :  { %v400_v17 = vmul.f32 %v4793_v2, %v399_v13  ;;  %v406_v20 = vmul.f32 %v4795_v14, %v388_v3  ;;  %vm412_vm7 = vweird.f32 %v4795_v14 }
 0x246   :  { %4796 = vrsqrt.f32 %v389_v16  ;;  %vm413_vm9 = vmor %vm411_vm8, %vm412_vm7  ;;  %vm421_vm11 = vweird.f32 %v389_v16 }
 0x247   :  { %v407_v21 = vmul.f32 %v4795_v14, %v406_v20  ;;  %v404_v45 = vsel %vm403_vm6, %v4793_v2, %v400_v17 }
 0x248   :  { %v475_v31 = vmul.f32 %v404_v45, %v5353_v22  ;;  %v5422_v22 = vld [vmem:[%s7726_s2 + $0x3] ss:$0 sm:$0xff] }
 0x249   :  { %v408_v23 = vmul.f32 0.5, %v407_v21  ;;  %v366_v24 = vpop.xlane.xlu2 %365 }
 0x24a   :  { %v382_v25 = vmul.f32 %v366_v24, %v5349_v19  ;;  %v485_v37 = vmul.f32 %v5415_v32, %v475_v31 }
 0x24b   :  { %v409_v26 = vsub.f32 1.5, %v408_v23 }
 0x24c   :  { %v4797_v27 = vpop.eup %4796  ;;  %v390_v28 = vadd.f32 1e-05, %v382_v25  ;;  %v495_v47 = vadd.f32 %v5422_v22, %v485_v37 }
 0x24d   :  { %v410_v5 = vmul.f32 %v4795_v14, %v409_v26  ;;  %v416_v33 = vmul.f32 %v4797_v27, %v389_v16  ;;  %vm422_vm10 = vweird.f32 %v4797_v27 }
 0x24e   :  { %4798 = vrsqrt.f32 %v390_v28  ;;  %vm423_vm12 = vmor %vm421_vm11, %vm422_vm10  ;;  %vm431_vm14 = vweird.f32 %v390_v28 }
 0x24f   :  { %v414_v34 = vsel %vm413_vm9, %v4795_v14, %v410_v5  ;;  %v417_v35 = vmul.f32 %v4797_v27, %v416_v33 }
 0x250   :  { %v476_v18 = vmul.f32 %v414_v34, %v5360_v29 }
 0x251   :  { %v418_v38 = vmul.f32 0.5, %v417_v35  ;;  %v369_v15 = vpop.xlane.xlu0 %368 }
 0x252   :  { %v383_v40 = vmul.f32 %v369_v15, %v5349_v19  ;;  %v486_v42 = vmul.f32 %v5415_v32, %v476_v18 }
 0x253   :  { %v419_v43 = vsub.f32 1.5, %v418_v38 }
 0x254   :  { %v4799_v30 = vpop.eup %4798  ;;  %v391_v46 = vadd.f32 1e-05, %v383_v40  ;;  %v496_v29 = vadd.f32 %v5422_v22, %v486_v42 }
 0x255   :  { %v420_v48 = vmul.f32 %v4797_v27, %v419_v43  ;;  %v426_v41 = vmul.f32 %v4799_v30, %v390_v28  ;;  %vm432_vm13 = vweird.f32 %v4799_v30 }
 0x256   :  { %4800 = vrsqrt.f32 %v391_v46  ;;  %v503_v50 = vpack.c.bf16 %v496_v29, %v495_v47  ;;  %vm433_vm15 = vmor %vm431_vm14, %vm432_vm13  ;;  %vm441_vm1 = vweird.f32 %v391_v46 }
 0x257   :  { %v427_v51 = vmul.f32 %v4799_v30, %v426_v41  ;;  %v424_v52 = vsel %vm423_vm12, %v4797_v27, %v420_v48 }
 0x258   :  { %4494 = vmatmul.msk.bf16.vlgmr.msra.gmra.mxu2 %vm186_vm2, %v503_v50  ;;  %v477_v60 = vmul.f32 %v424_v52, %v5368_v36 }
 0x259   :  { %v428_v53 = vmul.f32 0.5, %v427_v51  ;;  %v372_v55 = vpop.xlane.xlu1 %371 }
 0x25a   :  { %v384_v56 = vmul.f32 %v372_v55, %v5349_v19  ;;  %v487_v2 = vmul.f32 %v5415_v32, %v477_v60 }
 0x25b   :  { %v429_v57 = vsub.f32 1.5, %v428_v53 }
 0x25c   :  { %v4801_v58 = vpop.eup %4800  ;;  %v392_v59 = vadd.f32 1e-05, %v384_v56  ;;  %v497_v9 = vadd.f32 %v5422_v22, %v487_v2 }
 0x25d   :  { %v430_v61 = vmul.f32 %v4799_v30, %v429_v57  ;;  %v436_v62 = vmul.f32 %v4801_v58, %v391_v46  ;;  %vm442_vm0 = vweird.f32 %v4801_v58 }
 0x25e   :  { %4802 = vrsqrt.f32 %v392_v59  ;;  %vm443_vm3 = vmor %vm441_vm1, %vm442_vm0  ;;  %vm451_vm5 = vweird.f32 %v392_v59 }
 0x25f   :  { %v434_v63 = vsel %vm433_vm15, %v4799_v30, %v430_v61  ;;  %v437_v0 = vmul.f32 %v4801_v58, %v436_v62 }
 0x260   :  { %v478_v1 = vmul.f32 %v434_v63, %v5375_v39 }
 0x261   :  { %v438_v3 = vmul.f32 0.5, %v437_v0  ;;  %v375_v28 = vpop.xlane.xlu2 %374 }
 0x262   :  { %v488_v6 = vmul.f32 %v5415_v32, %v478_v1 }
 0x263   :  { %v439_v7 = vsub.f32 1.5, %v438_v3 }
 0x264   :  { %v4803_v8 = vpop.eup %4802  ;;  %v498_v36 = vadd.f32 %v5422_v22, %v488_v6 }
 0x265   :  { %v440_v10 = vmul.f32 %v4801_v58, %v439_v7  ;;  %v446_v11 = vmul.f32 %v4803_v8, %v392_v59  ;;  %vm452_vm4 = vweird.f32 %v4803_v8 }
 0x266   :  { %v504_v12 = vpack.c.bf16 %v498_v36, %v497_v9  ;;  %vm453_vm6 = vmor %vm451_vm5, %vm452_vm4 }
 0x267   :  { %v447_v13 = vmul.f32 %v4803_v8, %v446_v11  ;;  %v444_v39 = vsel %vm443_vm3, %v4801_v58, %v440_v10 }
 0x268   :  { %4495 = vmatmul.msk.bf16.gmra.mxu2 %vm186_vm2, %v504_v12  ;;  %v479_v17 = vmul.f32 %v444_v39, %v5382_v44  ;;  %v385_v44 = vmul.f32 %v375_v28, %v5349_v19 }
 0x269   :  { %v448_v14 = vmul.f32 0.5, %v447_v13 }
 0x26a   :  { %v489_v23 = vmul.f32 %v5415_v32, %v479_v17  ;;  %v393_v31 = vadd.f32 1e-05, %v385_v44 }
 0x26b   :  { %v449_v16 = vsub.f32 1.5, %v448_v14 }
 0x26c   :  { %v499_v25 = vadd.f32 %v5422_v22, %v489_v23  ;;  %4804 = vrsqrt.f32 %v393_v31  ;;  %vm461_vm8 = vweird.f32 %v393_v31 }
 0x26d   :  { %v450_v20 = vmul.f32 %v4803_v8, %v449_v16 }
 0x26f   :  { %v454_v21 = vsel %vm453_vm6, %v4803_v8, %v450_v20 }
 0x270   :  { %v480_v45 = vmul.f32 %v454_v21, %v5389_v49 }
 0x272   :  { %v490_v24 = vmul.f32 %v5415_v32, %v480_v45  ;;  %v4805_v5 = vpop.eup %4804 }
 0x273   :  { %v456_v33 = vmul.f32 %v4805_v5, %v393_v31  ;;  %vm462_vm7 = vweird.f32 %v4805_v5 }
 0x274   :  { %v500_v26 = vadd.f32 %v5422_v22, %v490_v24  ;;  %vm463_vm9 = vmor %vm461_vm8, %vm462_vm7 }
 0x275   :  { %v457_v34 = vmul.f32 %v4805_v5, %v456_v33 }
 0x276   :  { %v505_v27 = vpack.c.bf16 %v500_v26, %v499_v25 }
 0x277   :  { %v458_v37 = vmul.f32 0.5, %v457_v34 }
 0x278   :  { %4496 = vmatmul.msk.bf16.gmra.mxu2 %vm186_vm2, %v505_v27 }
 0x279   :  { %v459_v38 = vsub.f32 1.5, %v458_v37 }
 0x27b   :  { %v460_v40 = vmul.f32 %v4805_v5, %v459_v38 }
 0x27d   :  { %v464_v30 = vsel %vm463_vm9, %v4805_v5, %v460_v40 }
 0x27e   :  { %v481_v29 = vmul.f32 %v464_v30, %v5396_v54  ;;  %v4738_v54 = vld [vmem:[%s7726_s2 + $0x4] ss:$0 sm:$0xff] }
 0x280   :  { %v491_v51 = vmul.f32 %v5415_v32, %v481_v29 }
 0x282   :  { %v501_v53 = vadd.f32 %v5422_v22, %v491_v51 }
 0x2b4   :  { %v378_v49 = vpop.xlane.xlu0 %377 }
 0x2b5   :  { %v386_v35 = vmul.f32 %v378_v49, %v5349_v19 }
 0x2b7   :  { %v394_v18 = vadd.f32 1e-05, %v386_v35 }
 0x2b9   :  { %4806 = vrsqrt.f32 %v394_v18  ;;  %vm471_vm11 = vweird.f32 %v394_v18 }
 0x2bf   :  { %v4807_v15 = vpop.eup %4806 }
 0x2c0   :  { %v466_v42 = vmul.f32 %v4807_v15, %v394_v18  ;;  %vm472_vm10 = vweird.f32 %v4807_v15 }
 0x2c1   :  { %vm473_vm12 = vmor %vm471_vm11, %vm472_vm10 }
 0x2c2   :  { %v467_v43 = vmul.f32 %v4807_v15, %v466_v42 }
 0x2c4   :  { %v468_v46 = vmul.f32 0.5, %v467_v43 }
 0x2c6   :  { %v469_v47 = vsub.f32 1.5, %v468_v46 }
 0x2c8   :  { %v470_v48 = vmul.f32 %v4807_v15, %v469_v47 }
 0x2ca   :  { %v474_v41 = vsel %vm473_vm12, %v4807_v15, %v470_v48  ;;  %v4695_v48 = vld [vmem:[#allocation2 + $0x2c] sm:$0xff] }
 0x2cb   :  { %v482_v50 = vmul.f32 %v474_v41, %v5404_v4  ;;  %917 = vmatpush.bf16.msra.mxu3 %v4695_v48 }
 0x2cd   :  { %v492_v52 = vmul.f32 %v5415_v32, %v482_v50 }
 0x2cf   :  { %v502_v55 = vadd.f32 %v5422_v22, %v492_v52 }
 0x2d1   :  { %v506_v56 = vpack.c.bf16 %v502_v55, %v501_v53  ;;  %v4694_v53 = vld [vmem:[#allocation2 + $0x24] sm:$0xff] }
 0x2d2   :  { %918 = vmatpush.bf16.msra.mxu3 %v4694_v53 }
 0x2d3   :  { %4497 = vmatmul.msk.bf16.gmra.mxu2 %vm186_vm2, %v506_v56 }
 0x2db   :  { %v546_v57 = vpop.f32.mrf.mxu2 }
 0x2dc   :  { %v5456_v58 = vadd.f32 %v4738_v54, %v546_v57 }
 0x2de   :  { %v681_v4 = vsel %vm186_vm2, %v5456_v58, 0.0 }
 0x2df   :  { %682 = vadd.xlane.f32.xlu1 %v681_v4 }
 0x2e3   :  { %v548_v59 = vpop.f32.mrf.mxu2 }
 0x2e4   :  { %v5460_v32 = vadd.f32 %v4738_v54, %v548_v59 }
 0x2e6   :  { %v684_v22 = vsel %vm186_vm2, %v5460_v32, 0.0 }
 0x2e7   :  { %685 = vadd.xlane.f32.xlu2 %v684_v22 }
 0x2eb   :  { %v551_v60 = vpop.f32.mrf.mxu2 }
 0x2ec   :  { %v5464_v61 = vadd.f32 %v4738_v54, %v551_v60 }
 0x2ee   :  { %v687_v62 = vsel %vm186_vm2, %v5464_v61, 0.0 }
 0x2ef   :  { %688 = vadd.xlane.f32.xlu0 %v687_v62 }
 0x2f3   :  { %v553_v63 = vpop.f32.mrf.mxu2 }
 0x2f4   :  { %v5468_v0 = vadd.f32 %v4738_v54, %v553_v63 }
 0x2f6   :  { %v690_v1 = vsel %vm186_vm2, %v5468_v0, 0.0 }
 0x2f7   :  { %691 = vadd.xlane.f32.xlu1 %v690_v1 }
 0x2fb   :  { %v556_v2 = vpop.f32.mrf.mxu2 }
 0x2fc   :  { %v5472_v3 = vadd.f32 %v4738_v54, %v556_v2 }
 0x2fe   :  { %v693_v6 = vsel %vm186_vm2, %v5472_v3, 0.0 }
 0x2ff   :  { %694 = vadd.xlane.f32.xlu2 %v693_v6 }
 0x303   :  { %v558_v7 = vpop.f32.mrf.mxu2 }
 0x304   :  { %v5476_v8 = vadd.f32 %v4738_v54, %v558_v7 }
 0x306   :  { %v696_v9 = vsel %vm186_vm2, %v5476_v8, 0.0 }
 0x307   :  { %697 = vadd.xlane.f32.xlu0 %v696_v9 }
 0x352   :  { %v683_v36 = vpop.xlane.xlu1 %682 }
 0x353   :  { %v705_v10 = vmul.f32 %v683_v36, %v5349_v19 }
 0x355   :  { %v5482_v11 = vsub.f32 %v5456_v58, %v705_v10 }
 0x356   :  { %v561_v12 = vpop.f32.mrf.mxu2 }
 0x357   :  { %v5484_v13 = vadd.f32 %v4738_v54, %v561_v12  ;;  %v721_v39 = vmul.f32 %v5482_v11, %v5482_v11 }
 0x359   :  { %v729_v14 = vsel %vm186_vm2, %v721_v39, 0.0  ;;  %v699_v16 = vsel %vm186_vm2, %v5484_v13, 0.0 }
 0x35a   :  { %v686_v17 = vpop.xlane.xlu2 %685  ;;  %730 = vadd.xlane.f32.xlu1 %v729_v14  ;;  %700 = vadd.xlane.f32.xlu0 %v699_v16 }
 0x35b   :  { %v706_v20 = vmul.f32 %v686_v17, %v5349_v19 }
 0x35d   :  { %v5493_v21 = vsub.f32 %v5460_v32, %v706_v20 }
 0x35e   :  { %v563_v45 = vpop.f32.mrf.mxu2 }
 0x35f   :  { %v5495_v23 = vadd.f32 %v4738_v54, %v563_v45  ;;  %v722_v24 = vmul.f32 %v5493_v21, %v5493_v21 }
 0x361   :  { %v732_v25 = vsel %vm186_vm2, %v722_v24, 0.0  ;;  %v702_v26 = vsel %vm186_vm2, %v5495_v23, 0.0 }
 0x362   :  { %733 = vadd.xlane.f32.xlu2 %v732_v25  ;;  %703 = vadd.xlane.f32.xlu1 %v702_v26  ;;  %v689_v27 = vpop.xlane.xlu0 %688 }
 0x363   :  { %v707_v28 = vmul.f32 %v689_v27, %v5349_v19 }
 0x365   :  { %v5504_v44 = vsub.f32 %v5464_v61, %v707_v28 }
 0x367   :  { %v723_v31 = vmul.f32 %v5504_v44, %v5504_v44 }
 0x369   :  { %v735_v5 = vsel %vm186_vm2, %v723_v31, 0.0 }
 0x36a   :  { %v692_v33 = vpop.xlane.xlu1 %691  ;;  %736 = vadd.xlane.f32.xlu2 %v735_v5 }
 0x36b   :  { %v708_v34 = vmul.f32 %v692_v33, %v5349_v19 }
 0x36d   :  { %v5511_v49 = vsub.f32 %v5468_v0, %v708_v34  ;;  %v5552_v34 = vld [vmem:[%s7726_s2 + $0x5] ss:$0 sm:$0xff] }
 0x36f   :  { %v724_v35 = vmul.f32 %v5511_v49, %v5511_v49 }
 0x371   :  { %v738_v18 = vsel %vm186_vm2, %v724_v35, 0.0 }
 0x372   :  { %v695_v37 = vpop.xlane.xlu2 %694  ;;  %739 = vadd.xlane.f32.xlu0 %v738_v18 }
 0x373   :  { %v709_v38 = vmul.f32 %v695_v37, %v5349_v19 }
 0x375   :  { %v5518_v15 = vsub.f32 %v5472_v3, %v709_v38 }
 0x377   :  { %v725_v40 = vmul.f32 %v5518_v15, %v5518_v15 }
 0x379   :  { %v741_v42 = vsel %vm186_vm2, %v725_v40, 0.0 }
 0x37a   :  { %742 = vadd.xlane.f32.xlu1 %v741_v42  ;;  %v698_v43 = vpop.xlane.xlu0 %697 }
 0x37b   :  { %v710_v30 = vmul.f32 %v698_v43, %v5349_v19 }
 0x37d   :  { %v5525_v46 = vsub.f32 %v5476_v8, %v710_v30 }
 0x37f   :  { %v726_v47 = vmul.f32 %v5525_v46, %v5525_v46 }
 0x381   :  { %v744_v29 = vsel %vm186_vm2, %v726_v47, 0.0 }
 0x382   :  { %745 = vadd.xlane.f32.xlu2 %v744_v29 }
 0x3cd   :  { %v731_v41 = vpop.xlane.xlu1 %730  ;;  %v701_v50 = vpop.xlane.xlu0 %700 }
 0x3ce   :  { %v753_v51 = vmul.f32 %v731_v41, %v5349_v19  ;;  %v711_v52 = vmul.f32 %v701_v50, %v5349_v19 }
 0x3d0   :  { %v761_v55 = vadd.f32 1e-05, %v753_v51  ;;  %v5533_v56 = vsub.f32 %v5484_v13, %v711_v52 }
 0x3d2   :  { %4808 = vrsqrt.f32 %v761_v55  ;;  %v727_v54 = vmul.f32 %v5533_v56, %v5533_v56  ;;  %vm775_vm14 = vweird.f32 %v761_v55 }
 0x3d4   :  { %v747_v57 = vsel %vm186_vm2, %v727_v54, 0.0 }
 0x3d5   :  { %v734_v4 = vpop.xlane.xlu2 %733  ;;  %v704_v59 = vpop.xlane.xlu1 %703  ;;  %748 = vadd.xlane.f32.xlu0 %v747_v57  ;;  %v566_v57 = vlaneseq }
 0x3d6   :  { %v754_v22 = vmul.f32 %v734_v4, %v5349_v19  ;;  %v712_v60 = vmul.f32 %v704_v59, %v5349_v19 }
 0x3d8   :  { %v4809_v62 = vpop.eup %4808  ;;  %v762_v63 = vadd.f32 1e-05, %v754_v22  ;;  %v5541_v1 = vsub.f32 %v5495_v23, %v712_v60 }
 0x3d9   :  { %v770_v2 = vmul.f32 %v4809_v62, %v761_v55  ;;  %vm776_vm13 = vweird.f32 %v4809_v62 }
 0x3da   :  { %4810 = vrsqrt.f32 %v762_v63  ;;  %v728_v6 = vmul.f32 %v5541_v1, %v5541_v1  ;;  %vm777_vm15 = vmor %vm775_vm14, %vm776_vm13  ;;  %vm785_vm1 = vweird.f32 %v762_v63 }
 0x3db   :  { %v771_v7 = vmul.f32 %v4809_v62, %v770_v2 }
 0x3dc   :  { %v750_v9 = vsel %vm186_vm2, %v728_v6, 0.0 }
 0x3dd   :  { %v772_v36 = vmul.f32 0.5, %v771_v7  ;;  %751 = vadd.xlane.f32.xlu1 %v750_v9  ;;  %v737_v10 = vpop.xlane.xlu2 %736 }
 0x3de   :  { %v755_v12 = vmul.f32 %v737_v10, %v5349_v19  ;;  %v5238_v10 = vmov 0.0  }
 0x3df   :  { %v773_v39 = vsub.f32 1.5, %v772_v36 }
 0x3e0   :  { %v4811_v14 = vpop.eup %4810  ;;  %v763_v16 = vadd.f32 1e-05, %v755_v12 }
 0x3e1   :  { %v774_v17 = vmul.f32 %v4809_v62, %v773_v39  ;;  %v780_v20 = vmul.f32 %v4811_v14, %v762_v63  ;;  %vm786_vm0 = vweird.f32 %v4811_v14 }
 0x3e2   :  { %4812 = vrsqrt.f32 %v763_v16  ;;  %vm787_vm3 = vmor %vm785_vm1, %vm786_vm0  ;;  %vm795_vm5 = vweird.f32 %v763_v16 }
 0x3e3   :  { %v781_v45 = vmul.f32 %v4811_v14, %v780_v20  ;;  %v778_v24 = vsel %vm777_vm15, %v4809_v62, %v774_v17  ;;  %v5567_v62 = vand.u32 127, %v566_v57 }
 0x3e4   :  { %v849_v33 = vmul.f32 %v778_v24, %v5482_v11  ;;  %v5559_v11 = vld [vmem:[%s7726_s2 + $0x6] ss:$0 sm:$0xff] }
 0x3e5   :  { %v782_v25 = vmul.f32 0.5, %v781_v45  ;;  %v740_v26 = vpop.xlane.xlu0 %739  ;;  %vm573_vm8 = vcmp.ge.s32.totalorder %v5567_v62, 8  ;;  %vm574_vm9 = vcmp.lt.s32.totalorder %v5567_v62, 16 }
 0x3e6   :  { %v756_v27 = vmul.f32 %v740_v26, %v5349_v19  ;;  %v859_v42 = vmul.f32 %v5552_v34, %v849_v33  ;;  %vm575_vm11 = vmand %vm573_vm8, %vm574_vm9 }
 0x3e7   :  { %v783_v28 = vsub.f32 1.5, %v782_v25  ;;  %v5573_v12 = vsel %vm575_vm11, 1.0, %v5238_v10  ;;  %vm578_vm11 = vcmp.ge.s32.totalorder %v5567_v62, 16 }
 0x3e8   :  { %v4813_v31 = vpop.eup %4812  ;;  %v764_v5 = vadd.f32 1e-05, %v756_v27  ;;  %v869_v51 = vadd.f32 %v5559_v11, %v859_v42  ;;  %1134 = vrot.lane.b32.xlu2 %v5573_v12, %s5239_s21 }
 0x3e9   :  { %v784_v35 = vmul.f32 %v4811_v14, %v783_v28  ;;  %v790_v18 = vmul.f32 %v4813_v31, %v763_v16  ;;  %vm796_vm4 = vweird.f32 %v4813_v31 }
 0x3ea   :  { %4814 = vrsqrt.f32 %v764_v5  ;;  %vm797_vm6 = vmor %vm795_vm5, %vm796_vm4  ;;  %vm805_vm10 = vweird.f32 %v764_v5 }
 0x3eb   :  { %v788_v37 = vsel %vm787_vm3, %v4811_v14, %v784_v35  ;;  %v791_v38 = vmul.f32 %v4813_v31, %v790_v18 }
 0x3ec   :  { %v850_v40 = vmul.f32 %v788_v37, %v5493_v21 }
 0x3ed   :  { %v792_v43 = vmul.f32 0.5, %v791_v38  ;;  %v743_v30 = vpop.xlane.xlu1 %742 }
 0x3ee   :  { %v757_v47 = vmul.f32 %v743_v30, %v5349_v19  ;;  %v860_v29 = vmul.f32 %v5552_v34, %v850_v40 }
 0x3ef   :  { %v793_v48 = vsub.f32 1.5, %v792_v43 }
 0x3f0   :  { %v4815_v41 = vpop.eup %4814  ;;  %v765_v50 = vadd.f32 1e-05, %v757_v47  ;;  %v870_v21 = vadd.f32 %v5559_v11, %v860_v29 }
 0x3f1   :  { %v794_v52 = vmul.f32 %v4813_v31, %v793_v48  ;;  %v800_v53 = vmul.f32 %v4815_v41, %v764_v5  ;;  %vm806_vm7 = vweird.f32 %v4815_v41 }
 0x3f2   :  { %4816 = vrsqrt.f32 %v765_v50  ;;  %v877_v55 = vpack.c.bf16 %v870_v21, %v869_v51  ;;  %vm807_vm12 = vmor %vm805_vm10, %vm806_vm7  ;;  %vm815_vm14 = vweird.f32 %v765_v50  ;;  %vm569_vm10 = vcmp.lt.s32.totalorder %v5567_v62, 8 }
 0x3f3   :  { %v801_v54 = vmul.f32 %v4815_v41, %v800_v53  ;;  %v798_v4 = vsel %vm797_vm6, %v4813_v31, %v794_v52 }
 0x3f4   :  { %4510 = vmatmul.msk.bf16.vlgmr.msra.gmra.mxu3 %vm186_vm2, %v877_v55  ;;  %v851_v7 = vmul.f32 %v798_v4, %v5504_v44 }
 0x3f5   :  { %v802_v59 = vmul.f32 0.5, %v801_v54  ;;  %v746_v22 = vpop.xlane.xlu2 %745 }
 0x3f6   :  { %v758_v60 = vmul.f32 %v746_v22, %v5349_v19  ;;  %v861_v16 = vmul.f32 %v5552_v34, %v851_v7 }
 0x3f7   :  { %v803_v63 = vsub.f32 1.5, %v802_v59 }
 0x3f8   :  { %v4817_v2 = vpop.eup %4816  ;;  %v766_v6 = vadd.f32 1e-05, %v758_v60  ;;  %v871_v25 = vadd.f32 %v5559_v11, %v861_v16 }
 0x3f9   :  { %v804_v9 = vmul.f32 %v4815_v41, %v803_v63  ;;  %v810_v36 = vmul.f32 %v4817_v2, %v765_v50  ;;  %vm816_vm13 = vweird.f32 %v4817_v2 }
 0x3fa   :  { %4818 = vrsqrt.f32 %v766_v6  ;;  %vm817_vm15 = vmor %vm815_vm14, %vm816_vm13  ;;  %vm825_vm1 = vweird.f32 %v766_v6  ;;  %vm583_vm13 = vcmp.ge.s32.totalorder %v5567_v62, 24  ;;  %vm584_vm14 = vcmp.lt.s32.totalorder %v5567_v62, 32 }
 0x3fb   :  { %v808_v39 = vsel %vm807_vm12, %v4815_v41, %v804_v9  ;;  %v811_v14 = vmul.f32 %v4817_v2, %v810_v36  ;;  %vm579_vm12 = vcmp.lt.s32.totalorder %v5567_v62, 24 }
 0x3fc   :  { %v852_v44 = vmul.f32 %v808_v39, %v5511_v49 }
 0x3fd   :  { %v812_v17 = vmul.f32 0.5, %v811_v14 }
 0x3fe   :  { %v862_v20 = vmul.f32 %v5552_v34, %v852_v44 }
 0x3ff   :  { %v813_v45 = vsub.f32 1.5, %v812_v17 }
 0x400   :  { %v4819_v24 = vpop.eup %4818  ;;  %v872_v26 = vadd.f32 %v5559_v11, %v862_v20 }
 0x401   :  { %v814_v27 = vmul.f32 %v4817_v2, %v813_v45  ;;  %v820_v28 = vmul.f32 %v4819_v24, %v766_v6  ;;  %vm826_vm0 = vweird.f32 %v4819_v24 }
 0x402   :  { %v878_v31 = vpack.c.bf16 %v872_v26, %v871_v25  ;;  %vm827_vm3 = vmor %vm825_vm1, %vm826_vm0  ;;  %vm1025_vm1 = vcmask 523264  }
 0x403   :  { %v821_v5 = vmul.f32 %v4819_v24, %v820_v28  ;;  %v818_v49 = vsel %vm817_vm15, %v4817_v2, %v814_v27  ;;  %vm580_vm15 = vmand %vm578_vm11, %vm579_vm12 }
 0x404   :  { %4511 = vmatmul.msk.bf16.gmra.mxu3 %vm186_vm2, %v878_v31  ;;  %v853_v18 = vmul.f32 %v818_v49, %v5518_v15  ;;  %vm585_vm0 = vmand %vm583_vm13, %vm584_vm14 }
 0x405   :  { %v822_v33 = vmul.f32 0.5, %v821_v5  ;;  %v5615_v5 = vsel %vm569_vm10, 1.0, %v5238_v10 }
 0x406   :  { %v863_v42 = vmul.f32 %v5552_v34, %v853_v18 }
 0x407   :  { %v823_v35 = vsub.f32 1.5, %v822_v33 }
 0x408   :  { %v873_v30 = vadd.f32 %v5559_v11, %v863_v42  ;;  %v5640_v42 = vsel %vm585_vm0, 1.0, %v5238_v10 }
 0x409   :  { %v824_v37 = vmul.f32 %v4819_v24, %v823_v35 }
 0x40b   :  { %v828_v38 = vsel %vm827_vm3, %v4819_v24, %v824_v37  ;;  %v4741_v24 = vld [vmem:[%s7726_s2 + $0x7] ss:$0 sm:$0xff]  ;;  %vm654_vm3 = vcmp.ge.s32.totalorder %v5567_v62, 32 }
 0x40c   :  { %v854_v40 = vmul.f32 %v828_v38, %v5525_v46 }
 0x40e   :  { %v864_v43 = vmul.f32 %v5552_v34, %v854_v40  ;;  %v5637_v40 = vsel %vm580_vm15, 1.0, %v5238_v10 }
 0x410   :  { %v874_v47 = vadd.f32 %v5559_v11, %v864_v43  ;;  %v4724_v43 = vpack.i.bf16 %v5637_v40, %v5640_v42 }
 0x412   :  { %v879_v29 = vpack.c.bf16 %v874_v47, %v873_v30 }
 0x414   :  { %4512 = vmatmul.msk.bf16.gmra.mxu3 %vm186_vm2, %v879_v29 }
 0x448   :  { %v749_v48 = vpop.xlane.xlu0 %748 }
 0x449   :  { %v759_v15 = vmul.f32 %v749_v48, %v5349_v19 }
 0x44b   :  { %v767_v41 = vadd.f32 1e-05, %v759_v15 }
 0x44d   :  { %4820 = vrsqrt.f32 %v767_v41  ;;  %vm835_vm5 = vweird.f32 %v767_v41 }
 0x450   :  { %v752_v50 = vpop.xlane.xlu1 %751 }
 0x451   :  { %v760_v51 = vmul.f32 %v752_v50, %v5349_v19 }
 0x453   :  { %v4821_v46 = vpop.eup %4820  ;;  %v768_v21 = vadd.f32 1e-05, %v760_v51 }
 0x454   :  { %v830_v52 = vmul.f32 %v4821_v46, %v767_v41  ;;  %vm836_vm4 = vweird.f32 %v4821_v46 }
 0x455   :  { %4822 = vrsqrt.f32 %v768_v21  ;;  %vm837_vm6 = vmor %vm835_vm5, %vm836_vm4  ;;  %vm845_vm8 = vweird.f32 %v768_v21  ;;  %vm655_vm4 = vcmp.lt.s32.totalorder %v5567_v62, 64 }
 0x456   :  { %v831_v53 = vmul.f32 %v4821_v46, %v830_v52  ;;  %vm656_vm5 = vmand %vm654_vm3, %vm655_vm4 }
 0x458   :  { %v832_v55 = vmul.f32 0.5, %v831_v53 }
 0x45a   :  { %v833_v54 = vsub.f32 1.5, %v832_v55 }
 0x45b   :  { %v4823_v57 = vpop.eup %4822 }
 0x45c   :  { %v834_v4 = vmul.f32 %v4821_v46, %v833_v54  ;;  %v840_v59 = vmul.f32 %v4823_v57, %v768_v21  ;;  %vm846_vm7 = vweird.f32 %v4823_v57 }
 0x45d   :  { %vm847_vm9 = vmor %vm845_vm8, %vm846_vm7 }
 0x45e   :  { %v841_v22 = vmul.f32 %v4823_v57, %v840_v59  ;;  %v838_v60 = vsel %vm837_vm6, %v4821_v46, %v834_v4 }
 0x45f   :  { %v855_v6 = vmul.f32 %v838_v60, %v5533_v56 }
 0x460   :  { %v842_v63 = vmul.f32 0.5, %v841_v22 }
 0x461   :  { %v865_v39 = vmul.f32 %v5552_v34, %v855_v6 }
 0x462   :  { %v843_v2 = vsub.f32 1.5, %v842_v63 }
 0x463   :  { %v875_v44 = vadd.f32 %v5559_v11, %v865_v39 }
 0x464   :  { %v844_v7 = vmul.f32 %v4823_v57, %v843_v2 }
 0x466   :  { %v848_v9 = vsel %vm847_vm9, %v4823_v57, %v844_v7 }
 0x467   :  { %v856_v36 = vmul.f32 %v848_v9, %v5541_v1 }
 0x469   :  { %v866_v14 = vmul.f32 %v5552_v34, %v856_v36  ;;  %v5606_v34 = vpop.permute.xlu2 %1134 }
 0x46b   :  { %v876_v16 = vadd.f32 %v5559_v11, %v866_v14 }
 0x46d   :  { %v880_v17 = vpack.c.bf16 %v876_v16, %v875_v44 }
 0x46f   :  { %4513 = vmatmul.msk.bf16.gmra.mxu3 %vm186_vm2, %v880_v17 }
 0x477   :  { %v920_v20 = vpop.f32.mrf.mxu3 }
 0x478   :  { %v5647_v29 = vadd.f32 %v4741_v24, %v920_v20 }
 0x47a   :  { %v1137_v59 = vmul.f32 %v5606_v34, %v5647_v29 }
 0x47f   :  { %v922_v45 = vpop.f32.mrf.mxu3 }
 0x480   :  { %v5649_v48 = vadd.f32 %v4741_v24, %v922_v45 }
 0x482   :  { %v1138_v4 = vmul.f32 %v5606_v34, %v5649_v48 }
 0x484   :  { %v1145_v22 = vpack.c.bf16 %v1138_v4, %v1137_v59 }
 0x487   :  { %v925_v56 = vpop.f32.mrf.mxu3 }
 0x488   :  { %v5602_v25 = vadd.f32 %v4741_v24, %v925_v56 }
 0x48a   :  { %v1139_v11 = vmul.f32 %v5606_v34, %v5602_v25 }
 0x48f   :  { %v927_v1 = vpop.f32.mrf.mxu3 }
 0x490   :  { %v5604_v26 = vadd.f32 %v4741_v24, %v927_v1 }
 0x492   :  { %v1140_v27 = vmul.f32 %v5606_v34, %v5604_v26 }
 0x494   :  { %v1146_v28 = vpack.c.bf16 %v1140_v27, %v1139_v11 }
 0x496   :  { %1155 = vrot.lane.b32.xlu2 %v1146_v28, %s5240_s23 }
 0x497   :  { %v930_v31 = vpop.f32.mrf.mxu3 }
 0x498   :  { %v5617_v49 = vadd.f32 %v4741_v24, %v930_v31 }
 0x49a   :  { %v1141_v18 = vmul.f32 %v5606_v34, %v5617_v49 }
 0x49e   :  { %945 = vrot.lane.b32.xlu2 %v5615_v5, %s5239_s21 }
 0x49f   :  { %v932_v33 = vpop.f32.mrf.mxu3 }
 0x4a0   :  { %v5621_v35 = vadd.f32 %v4741_v24, %v932_v33 }
 0x4a2   :  { %v1142_v37 = vmul.f32 %v5606_v34, %v5621_v35 }
 0x4a4   :  { %v1147_v38 = vpack.c.bf16 %v1142_v37, %v1141_v18 }
 0x4a6   :  { %1157 = vrot.lane.b32.xlu1 %v1147_v38, %s5240_s23  ;;  %1294 = vrot.lane.b32.xlu2 %v5573_v12, %s5235_s17 }
 0x4ae   :  { %4725 = vrot.lane.b32.xlu1 %v4724_v43, %s5239_s21 }
 0x4f0   :  { %v5645_v30 = vpop.permute.xlu2 %1155 }
 0x4f2   :  { %v935_v47 = vpop.f32.mrf.mxu3 }
 0x4f3   :  { %v5651_v15 = vadd.f32 %v4741_v24, %v935_v47 }
 0x4f5   :  { %v1143_v55 = vmul.f32 %v5606_v34, %v5651_v15 }
 0x4f8   :  { %v5653_v12 = vpop.permute.xlu2 %945 }
 0x4f9   :  { %v952_v10 = vmul.f32 %v5653_v12, %v5617_v49  ;;  %v953_v41 = vmul.f32 %v5653_v12, %v5621_v35  ;;  %v948_v50 = vmul.f32 %v5653_v12, %v5647_v29  ;;  %v949_v51 = vmul.f32 %v5653_v12, %v5649_v48 }
 0x4fa   :  { %v937_v46 = vpop.f32.mrf.mxu3  ;;  %v950_v7 = vmul.f32 %v5653_v12, %v5602_v25  ;;  %v951_v9 = vmul.f32 %v5653_v12, %v5604_v26 }
 0x4fb   :  { %v5663_v21 = vadd.f32 %v4741_v24, %v937_v46  ;;  %v958_v52 = vpack.c.bf16 %v953_v41, %v952_v10  ;;  %v956_v53 = vpack.c.bf16 %v949_v51, %v948_v50  ;;  %v954_v10 = vmul.f32 %v5653_v12, %v5651_v15 }
 0x4fc   :  { %v957_v36 = vpack.c.bf16 %v951_v9, %v950_v7 }
 0x4fd   :  { %968 = vrot.lane.b32.xlu2 %v958_v52, %s5240_s23  ;;  %964 = vrot.lane.b32.xlu1 %v956_v53, %s5240_s23  ;;  %v1144_v54 = vmul.f32 %v5606_v34, %v5663_v21  ;;  %v955_v43 = vmul.f32 %v5653_v12, %v5663_v21 }
 0x4ff   :  { %v1148_v57 = vpack.c.bf16 %v1144_v54, %v1143_v55  ;;  %v959_v41 = vpack.c.bf16 %v955_v43, %v954_v10 }
 0x500   :  { %v5676_v60 = vpop.permute.xlu2 %1294 }
 0x501   :  { %1159 = vrot.lane.b32.xlu0 %v1148_v57, %s5240_s23  ;;  %v1301_v63 = vmul.f32 %v5676_v60, %v5617_v49  ;;  %v1302_v2 = vmul.f32 %v5676_v60, %v5621_v35  ;;  %v1299_v14 = vmul.f32 %v5676_v60, %v5602_v25  ;;  %v1300_v44 = vmul.f32 %v5676_v60, %v5604_v26 }
 0x502   :  { %v1297_v45 = vmul.f32 %v5676_v60, %v5647_v29  ;;  %v1298_v56 = vmul.f32 %v5676_v60, %v5649_v48  ;;  %v1303_v46 = vmul.f32 %v5676_v60, %v5651_v15  ;;  %v1304_v52 = vmul.f32 %v5676_v60, %v5663_v21 }
 0x503   :  { %v1307_v6 = vpack.c.bf16 %v1302_v2, %v1301_v63  ;;  %v1306_v16 = vpack.c.bf16 %v1300_v44, %v1299_v14  ;;  %v1165_v14 = vsel %vm186_vm2, %v5645_v30, 0  ;;  %v5756_v30 = vpack.c.bf16 %v5604_v26, %v5602_v25 }
 0x504   :  { %v1305_v18 = vpack.c.bf16 %v1298_v56, %v1297_v45  ;;  %v1308_v55 = vpack.c.bf16 %v1304_v52, %v1303_v46  ;;  %v5750_v45 = vpack.c.bf16 %v5649_v48, %v5647_v29  ;;  %v5775_v52 = vpack.c.bf16 %v5663_v21, %v5651_v15 }
 0x509   :  { %1153 = vrot.lane.b32.xlu0 %v1145_v22, %s5240_s23 }
 0x511   :  { %1317 = vrot.lane.b32.xlu0 %v1307_v6, %s5235_s17 }
 0x518   :  { %v1158_v39 = vpop.permute.xlu1 %1157 }
 0x519   :  { %966 = vrot.lane.b32.xlu0 %v957_v36, %s5240_s23  ;;  %v1168_v9 = vsel %vm186_vm2, %v1158_v39, 0 }
 0x520   :  { %v4726_v17 = vpop.permute.xlu1 %4725 }
 0x521   :  { %v5693_v20 = vunpack.i.l.bf16 %v4726_v17  ;;  %1315 = vrot.lane.b32.xlu0 %v1306_v16, %s5235_s17  ;;  %v5708_v28 = vunpack.i.h.bf16 %v4726_v17 }
 0x523   :  { %v1672_v24 = vmul.f32 %v5693_v20, %v5617_v49  ;;  %v1673_v1 = vmul.f32 %v5693_v20, %v5621_v35  ;;  %v1670_v11 = vmul.f32 %v5693_v20, %v5602_v25  ;;  %v1671_v27 = vmul.f32 %v5693_v20, %v5604_v26 }
 0x524   :  { %v1431_v37 = vmul.f32 %v5708_v28, %v5617_v49  ;;  %v1432_v38 = vmul.f32 %v5708_v28, %v5621_v35  ;;  %v1668_v50 = vmul.f32 %v5693_v20, %v5647_v29  ;;  %v1669_v51 = vmul.f32 %v5693_v20, %v5649_v48 }
 0x525   :  { %v1678_v31 = vpack.c.bf16 %v1673_v1, %v1672_v24  ;;  %v1677_v33 = vpack.c.bf16 %v1671_v27, %v1670_v11  ;;  %v1674_v54 = vmul.f32 %v5693_v20, %v5651_v15  ;;  %v1675_v57 = vmul.f32 %v5693_v20, %v5663_v21 }
 0x526   :  { %v1437_v47 = vpack.c.bf16 %v1432_v38, %v1431_v37  ;;  %v1676_v53 = vpack.c.bf16 %v1669_v51, %v1668_v50  ;;  %v1433_v4 = vmul.f32 %v5708_v28, %v5651_v15  ;;  %v1434_v59 = vmul.f32 %v5708_v28, %v5663_v21 }
 0x527   :  { %1688 = vrot.lane.b32.xlu2 %v1678_v31, %s5240_s23  ;;  %1686 = vrot.lane.b32.xlu1 %v1677_v33, %s5240_s23  ;;  %v1679_v22 = vpack.c.bf16 %v1675_v57, %v1674_v54  ;;  %v5764_v37 = vpack.c.bf16 %v5621_v35, %v5617_v49  ;;  %v1427_v62 = vmul.f32 %v5708_v28, %v5647_v29 }
 0x528   :  { %v1438_v63 = vpack.c.bf16 %v1434_v59, %v1433_v4  ;;  %v5241_v4 = vmov -1e+09  }
 0x529   :  { %1313 = vrot.lane.b32.xlu0 %v1305_v18, %s5235_s17  ;;  %v5792_v59 = vsel %vm584_vm14, 0.0, %v5241_v4 }
 0x52f   :  { %1447 = vrot.lane.b32.xlu2 %v1437_v47, %s5240_s23 }
 0x531   :  { %970 = vrot.lane.b32.xlu0 %v959_v41, %s5240_s23 }
 0x537   :  { %1684 = vrot.lane.b32.xlu2 %v1676_v53, %s5240_s23 }
 0x539   :  { %1319 = vrot.lane.b32.xlu0 %v1308_v55, %s5235_s17 }
 0x53f   :  { %1690 = vrot.lane.b32.xlu2 %v1679_v22, %s5240_s23 }
 0x541   :  { %1449 = vrot.lane.b32.xlu0 %v1438_v63, %s5240_s23 }
 0x557   :  { %v969_v17 = vpop.permute.xlu2 %968 }
 0x558   :  { %v991_v18 = vsel %vm186_vm2, %v969_v17, 0 }
 0x56f   :  { %v965_v10 = vpop.permute.xlu1 %964 }
 0x570   :  { %v985_v50 = vsel %vm186_vm2, %v965_v10, 0 }
 0x573   :  { %v1160_v2 = vpop.permute.xlu0 %1159 }
 0x574   :  { %v1171_v6 = vsel %vm186_vm2, %v1160_v2, 0 }
 0x575   :  { %1177 = vmatpush.bf16.xpose.msrb.mxu1 %v1171_v6 }
 0x57b   :  { %v1154_v7 = vpop.permute.xlu0 %1153 }
 0x57c   :  { %v1162_v16 = vsel %vm186_vm2, %v1154_v7, 0 }
 0x57d   :  { %1178 = vmatpush.bf16.xpose.msrb.mxu1 %v1168_v9 }
 0x581   :  { %v1689_v39 = vpop.permute.xlu2 %1688 }
 0x582   :  { %v1699_v46 = vsel %vm186_vm2, %v1689_v39, 0  ;;  %v5804_v39 = vsel %vm656_vm5, 0.0, %v5241_v4 }
 0x583   :  { %v1318_v36 = vpop.permute.xlu0 %1317 }
 0x585   :  { %1179 = vmatpush.bf16.xpose.msrb.mxu1 %v1165_v14 }
 0x589   :  { %v1448_v1 = vpop.permute.xlu2 %1447 }
 0x58a   :  { %v1458_v55 = vsel %vm186_vm2, %v1448_v1, 0 }
 0x58b   :  { %v967_v44 = vpop.permute.xlu0 %966 }
 0x58c   :  { %v988_v38 = vsel %vm186_vm2, %v967_v44, 0 }
 0x58d   :  { %1180 = vmatpush.bf16.xpose.msrb.mxu1 %v1162_v16 }
 0x591   :  { %v1685_v31 = vpop.permute.xlu2 %1684 }
 0x592   :  { %v1693_v57 = vsel %vm186_vm2, %v1685_v31, 0 }
 0x593   :  { %v1316_v56 = vpop.permute.xlu0 %1315 }
 0x594   :  { %4518 = vmatmul.msk.bf16.vlgmr.msrb.gmra.mxu1 %vm186_vm2, %v5750_v45 }
 0x599   :  { %v1691_v43 = vpop.permute.xlu2 %1690  ;;  %v1687_v53 = vpop.permute.xlu1 %1686 }
 0x59a   :  { %v1702_v47 = vsel %vm186_vm2, %v1691_v43, 0  ;;  %v1696_v54 = vsel %vm186_vm2, %v1687_v53, 0  ;;  %v1429_v43 = vmul.f32 %v5708_v28, %v5602_v25 }
 0x59b   :  { %v1314_v24 = vpop.permute.xlu0 %1313 }
 0x5a3   :  { %v971_v11 = vpop.permute.xlu0 %970 }
 0x5a4   :  { %4519 = vmatmul.msk.bf16.gmra.mxu1 %vm186_vm2, %v5756_v30  ;;  %v994_v27 = vsel %vm186_vm2, %v971_v11, 0 }
 0x5a5   :  { %1000 = vmatpush.bf16.xpose.msrb.mxu0 %v994_v27  ;;  %v1428_v27 = vmul.f32 %v5708_v28, %v5649_v48 }
 0x5a7   :  { %v1435_v31 = vpack.c.bf16 %v1428_v27, %v1427_v62 }
 0x5ab   :  { %v1320_v33 = vpop.permute.xlu0 %1319 }
 0x5ac   :  { %1341 = vmatpush.bf16.msrb.mxu2 %v1320_v33 }
 0x5ad   :  { %1001 = vmatpush.bf16.xpose.msrb.mxu0 %v991_v18 }
 0x5b0   :  { %1342 = vmatpush.bf16.msrb.mxu2 %v1318_v36 }
 0x5b3   :  { %v1450_v41 = vpop.permute.xlu0 %1449 }
 0x5b4   :  { %4520 = vmatmul.msk.bf16.gmra.mxu1 %vm186_vm2, %v5764_v37  ;;  %1343 = vmatpush.bf16.msrb.mxu2 %v1316_v56  ;;  %v1461_v51 = vsel %vm186_vm2, %v1450_v41, 0 }
 0x5b5   :  { %1002 = vmatpush.bf16.xpose.msrb.mxu0 %v988_v38 }
 0x5b8   :  { %1344 = vmatpush.bf16.msrb.mxu2 %v1314_v24 }
 0x5bc   :  { %1708 = vmatpush.bf16.xpose.msra.mxu2 %v1702_v47  ;;  %v1430_v47 = vmul.f32 %v5708_v28, %v5604_v26 }
 0x5bd   :  { %1003 = vmatpush.bf16.xpose.msrb.mxu0 %v985_v50 }
 0x5be   :  { %v1436_v41 = vpack.c.bf16 %v1430_v47, %v1429_v43 }
 0x5c4   :  { %1709 = vmatpush.bf16.xpose.msra.mxu2 %v1699_v46  ;;  %4514 = vmatmul.msk.bf16.vlgmr.msrb.gmra.mxu0 %vm186_vm2, %v5750_v45 }
 0x5c5   :  { %1467 = vmatpush.bf16.xpose.msra.mxu0 %v1461_v51  ;;  %4521 = vmatmul.msk.bf16.gmra.mxu1 %vm186_vm2, %v5775_v52 }
 0x5cc   :  { %1710 = vmatpush.bf16.xpose.msra.mxu2 %v1696_v54 }
 0x5cd   :  { %1468 = vmatpush.bf16.xpose.msra.mxu0 %v1458_v55 }
 0x5d4   :  { %1711 = vmatpush.bf16.xpose.msra.mxu2 %v1693_v57  ;;  %4515 = vmatmul.msk.bf16.gmra.mxu0 %vm186_vm2, %v5756_v30 }
 0x5e4   :  { %4516 = vmatmul.msk.bf16.gmra.mxu0 %vm186_vm2, %v5764_v37 }
 0x5f4   :  { %4517 = vmatmul.msk.bf16.gmra.mxu0 %vm186_vm2, %v5775_v52 }
 0x611   :  { %v1182_v22 = vpop.f32.mrf.mxu1 }
 0x612   :  { %v1183_v63 = vadd.f32 %v1182_v22, %v5792_v59 }
 0x614   :  { %v1202_v2 = vsel %vm1025_vm1, %v1183_v63, -inf }
 0x615   :  { %1203 = vmax.xlane.f32.xlu1 %v1202_v2 }
 0x619   :  { %v1184_v6 = vpop.f32.mrf.mxu1 }
 0x61a   :  { %v1185_v7 = vadd.f32 %v1184_v6, %v5792_v59 }
 0x61c   :  { %v1205_v9 = vsel %vm1025_vm1, %v1185_v7, -inf }
 0x61d   :  { %1206 = vmax.xlane.f32.xlu0 %v1205_v9 }
 0x621   :  { %v1187_v36 = vpop.f32.mrf.mxu1 }
 0x622   :  { %v1188_v14 = vadd.f32 %v1187_v36, %v5792_v59 }
 0x624   :  { %v1208_v44 = vsel %vm1025_vm1, %v1188_v14, -inf }
 0x625   :  { %1209 = vmax.xlane.f32.xlu2 %v1208_v44 }
 0x629   :  { %v1189_v16 = vpop.f32.mrf.mxu1 }
 0x62a   :  { %v1190_v17 = vadd.f32 %v1189_v16, %v5792_v59 }
 0x62c   :  { %v1211_v56 = vsel %vm1025_vm1, %v1190_v17, -inf }
 0x62d   :  { %1212 = vmax.xlane.f32.xlu1 %v1211_v56 }
 0x631   :  { %v1192_v24 = vpop.f32.mrf.mxu1 }
 0x632   :  { %v5807_v1 = vadd.f32 %v1192_v24, %v5804_v39 }
 0x634   :  { %v1214_v11 = vsel %vm1025_vm1, %v5807_v1, -inf }
 0x635   :  { %1215 = vmax.xlane.f32.xlu0 %v1214_v11 }
 0x639   :  { %v1194_v33 = vpop.f32.mrf.mxu1 }
 0x63a   :  { %v5826_v50 = vadd.f32 %v1194_v33, %v5804_v39 }
 0x63c   :  { %v1217_v46 = vsel %vm1025_vm1, %v5826_v50, -inf }
 0x63d   :  { %1443 = vrot.lane.b32.xlu2 %v1435_v31, %s5240_s23 }
 0x641   :  { %v1005_v18 = vpop.f32.mrf.mxu0 }
 0x642   :  { %v5817_v38 = vadd.f32 %v1005_v18, %v5792_v59  ;;  %v1197_v51 = vpop.f32.mrf.mxu1 }
 0x643   :  { %v5832_v53 = vadd.f32 %v1197_v51, %v5804_v39 }
 0x644   :  { %v1026_v10 = vsel %vm1025_vm1, %v5817_v38, -inf }
 0x645   :  { %1027 = vmax.xlane.f32.xlu1 %v1026_v10  ;;  %v1220_v55 = vsel %vm1025_vm1, %v5832_v53, -inf }
 0x649   :  { %1445 = vrot.lane.b32.xlu0 %v1436_v41, %s5240_s23  ;;  %v1007_v22 = vpop.f32.mrf.mxu0 }
 0x64a   :  { %v1199_v54 = vpop.f32.mrf.mxu1  ;;  %v5842_v2 = vadd.f32 %v1007_v22, %v5792_v59 }
 0x64b   :  { %v5837_v57 = vadd.f32 %v1199_v54, %v5804_v39 }
 0x64c   :  { %v1029_v6 = vsel %vm1025_vm1, %v5842_v2, -inf }
 0x64d   :  { %1218 = vmax.xlane.f32.xlu1 %v1217_v46  ;;  %v1223_v4 = vsel %vm1025_vm1, %v5837_v57, -inf }
 0x651   :  { %v5846_v9 = vpop.f32.mrf.mxu0 }
 0x655   :  { %1221 = vmax.xlane.f32.xlu1 %v1220_v55 }
 0x659   :  { %v1012_v56 = vpop.f32.mrf.mxu0 }
 0x65d   :  { %1224 = vmax.xlane.f32.xlu1 %v1223_v4 }
 0x661   :  { %v1015_v43 = vpop.f32.mrf.mxu0 }
 0x669   :  { %v1017_v55 = vpop.f32.mrf.mxu0 }
 0x673   :  { %1030 = vmax.xlane.f32.xlu0 %v1029_v6 }
 0x688   :  { %v1204_v36 = vpop.xlane.xlu1 %1203 }
 0x689   :  { %v1226_v44 = vsub.f32 %v1183_v63, %v1204_v36 }
 0x68b   :  { %v1234_v16 = vmul.f32 1.442695, %v1226_v44 }
 0x68d   :  { %4824 = vpow2.f32 %v1234_v16  ;;  %v1020_v16 = vpop.f32.mrf.mxu0 }
 0x690   :  { %v1207_v24 = vpop.xlane.xlu0 %1206 }
 0x691   :  { %v1227_v11 = vsub.f32 %v1185_v7, %v1207_v24  ;;  %v5871_v24 = vadd.f32 %v1012_v56, %v5792_v59  ;;  %v5885_v56 = vadd.f32 %v1017_v55, %v5804_v39 }
 0x693   :  { %v5848_v62 = vpop.eup %4824  ;;  %v1236_v27 = vmul.f32 1.442695, %v1227_v11  ;;  %v5874_v11 = vadd.f32 %v1020_v16, %v5804_v39 }
 0x694   :  { %v1250_v31 = vsel %vm1025_vm1, %v5848_v62, 0.0 }
 0x695   :  { %4826 = vpow2.f32 %v1236_v27  ;;  %1251 = vadd.xlane.f32.xlu1 %v1250_v31  ;;  %v1035_v31 = vsel %vm1025_vm1, %v5871_v24, -inf }
 0x698   :  { %v1210_v33 = vpop.xlane.xlu2 %1209 }
 0x699   :  { %v1228_v18 = vsub.f32 %v1188_v14, %v1210_v33  ;;  %v5861_v14 = vadd.f32 %v1015_v43, %v5804_v39  ;;  %v1044_v33 = vsel %vm1025_vm1, %v5874_v11, -inf }
 0x69b   :  { %v5852_v47 = vpop.eup %4826  ;;  %v1238_v10 = vmul.f32 1.442695, %v1228_v18 }
 0x69c   :  { %v1253_v63 = vsel %vm1025_vm1, %v5852_v47, 0.0 }
 0x69d   :  { %4828 = vpow2.f32 %v1238_v10  ;;  %1254 = vadd.xlane.f32.xlu2 %v1253_v63 }
 0x6a0   :  { %v1213_v7 = vpop.xlane.xlu1 %1212 }
 0x6a1   :  { %v1229_v41 = vsub.f32 %v1190_v17, %v1213_v7  ;;  %v1038_v17 = vsel %vm1025_vm1, %v5861_v14, -inf }
 0x6a3   :  { %v5856_v51 = vpop.eup %4828  ;;  %v1240_v46 = vmul.f32 1.442695, %v1229_v41  ;;  %v1041_v41 = vsel %vm1025_vm1, %v5885_v56, -inf }
 0x6a4   :  { %v1256_v54 = vsel %vm1025_vm1, %v5856_v51, 0.0 }
 0x6a5   :  { %4830 = vpow2.f32 %v1240_v46  ;;  %1257 = vadd.xlane.f32.xlu0 %v1256_v54  ;;  %v1444_v54 = vpop.permute.xlu2 %1443 }
 0x6a8   :  { %v1216_v4 = vpop.xlane.xlu0 %1215 }
 0x6a9   :  { %v1230_v22 = vsub.f32 %v5807_v1, %v1216_v4 }
 0x6ab   :  { %v5864_v6 = vpop.eup %4830  ;;  %v1242_v36 = vmul.f32 1.442695, %v1230_v22 }
 0x6ac   :  { %v1259_v44 = vsel %vm1025_vm1, %v5864_v6, 0.0 }
 0x6ad   :  { %4832 = vpow2.f32 %v1242_v36  ;;  %1039 = vmax.xlane.f32.xlu0 %v1038_v17  ;;  %1260 = vadd.xlane.f32.xlu1 %v1259_v44  ;;  %v1452_v36 = vsel %vm186_vm2, %v1444_v54, 0 }
 0x6b3   :  { %v5876_v1 = vpop.eup %4832 }
 0x6b4   :  { %v1262_v27 = vsel %vm1025_vm1, %v5876_v1, 0.0 }
 0x6b5   :  { %1263 = vadd.xlane.f32.xlu2 %v1262_v27  ;;  %1036 = vmax.xlane.f32.xlu1 %v1035_v31 }
 0x6b6   :  { %1045 = vmax.xlane.f32.xlu0 %v1044_v33 }
 0x6b8   :  { %v1028_v18 = vpop.xlane.xlu1 %1027 }
 0x6b9   :  { %v1050_v43 = vsub.f32 %v5817_v38, %v1028_v18 }
 0x6bb   :  { %v1058_v10 = vmul.f32 1.442695, %v1050_v43  ;;  %v1446_v63 = vpop.permute.xlu0 %1445  ;;  %v5916_v43 = vadd.f32 %v5846_v9, %v5792_v59 }
 0x6bc   :  { %v1455_v7 = vsel %vm186_vm2, %v1446_v63, 0 }
 0x6bd   :  { %4834 = vpow2.f32 %v1058_v10  ;;  %1469 = vmatpush.bf16.xpose.msra.mxu0 %v1455_v7  ;;  %1042 = vmax.xlane.f32.xlu1 %v1041_v41 }
 0x6c0   :  { %v1219_v46 = vpop.xlane.xlu1 %1218 }
 0x6c1   :  { %v1231_v4 = vsub.f32 %v5826_v50, %v1219_v46 }
 0x6c3   :  { %v5892_v22 = vpop.eup %4834  ;;  %v1244_v55 = vmul.f32 1.442695, %v1231_v4 }
 0x6c4   :  { %v1074_v38 = vsel %vm1025_vm1, %v5892_v22, 0.0 }
 0x6c5   :  { %4836 = vpow2.f32 %v1244_v55  ;;  %1470 = vmatpush.bf16.xpose.msra.mxu0 %v1452_v36  ;;  %1075 = vadd.xlane.f32.xlu0 %v1074_v38 }
 0x6c8   :  { %v1222_v17 = vpop.xlane.xlu1 %1221 }
 0x6c9   :  { %v1232_v44 = vsub.f32 %v5832_v53, %v1222_v17  ;;  %v4729_v53 = vpack.i.bf16 %v5640_v42, %v5615_v5  ;;  %v1032_v5 = vsel %vm1025_vm1, %v5916_v43, -inf  ;;  %v1022_v42 = vpop.f32.mrf.mxu0 }
 0x6ca   :  { %v5922_v54 = vadd.f32 %v1022_v42, %v5804_v39 }
 0x6cb   :  { %v4837_v16 = vpop.eup %4836  ;;  %v1246_v27 = vmul.f32 1.442695, %v1232_v44 }
 0x6cc   :  { %4530 = vmatmul.msk.bf16.vlgmr.msra.gmra.mxu0 %vm186_vm2, %v5750_v45  ;;  %v1265_v50 = vsel %vm1025_vm1, %v4837_v16, 0.0  ;;  %v1047_v9 = vsel %vm1025_vm1, %v5922_v54, -inf }
 0x6cd   :  { %4838 = vpow2.f32 %v1246_v27  ;;  %1266 = vadd.xlane.f32.xlu2 %v1265_v50 }
 0x6d0   :  { %v1225_v18 = vpop.xlane.xlu1 %1224 }
 0x6d3   :  { %v5901_v31 = vpop.eup %4838 }
 0x6d4   :  { %v1268_v33 = vsel %vm1025_vm1, %v5901_v31, 0.0 }
 0x6d5   :  { %1269 = vadd.xlane.f32.xlu0 %v1268_v33 }
 0x6dc   :  { %4531 = vmatmul.msk.bf16.gmra.mxu0 %vm186_vm2, %v5756_v30 }
 0x6e5   :  { %4730 = vrot.lane.b32.xlu2 %v4729_v53, %s5235_s17 }
 0x6e6   :  { %v1031_v10 = vpop.xlane.xlu0 %1030 }
 0x6e7   :  { %v1051_v63 = vsub.f32 %v5842_v2, %v1031_v10 }
 0x6e9   :  { %v1060_v41 = vmul.f32 1.442695, %v1051_v63 }
 0x6ec   :  { %4532 = vmatmul.msk.bf16.gmra.mxu0 %vm186_vm2, %v5764_v37 }
 0x6fc   :  { %4533 = vmatmul.msk.bf16.gmra.mxu0 %vm186_vm2, %v5775_v52 }
 0x708   :  { %v1252_v7 = vpop.xlane.xlu1 %1251 }
 0x709   :  { %4840 = vrcp.f32 %v1252_v7 }
 0x70e   :  { %1033 = vmax.xlane.f32.xlu2 %v1032_v5 }
 0x70f   :  { %v4841_v4 = vpop.eup %4840 }
 0x710   :  { %v1255_v46 = vpop.xlane.xlu2 %1254  ;;  %v1282_v55 = vmul.f32 %v4841_v4, %v5848_v62 }
 0x711   :  { %4842 = vrcp.f32 %v1255_v46 }
 0x712   :  { %4844 = vpow2.f32 %v1060_v41 }
 0x716   :  { %1048 = vmax.xlane.f32.xlu2 %v1047_v9 }
 0x717   :  { %v4843_v2 = vpop.eup %4842 }
 0x718   :  { %v1283_v36 = vmul.f32 %v4843_v2, %v5852_v47  ;;  %v5928_v38 = vpop.eup %4844  ;;  %v1258_v44 = vpop.xlane.xlu0 %1257 }
 0x719   :  { %v1077_v27 = vsel %vm1025_vm1, %v5928_v38, 0.0  ;;  %4846 = vrcp.f32 %v1258_v44 }
 0x71a   :  { %v1290_v17 = vpack.c.bf16 %v1283_v36, %v1282_v55 }
 0x71c   :  { %4522 = vmatmul.msk.bf16.vlgmr.msrb.gmra.mxu2 %vm1025_vm1, %v1290_v17 }
 0x71e   :  { %1078 = vadd.xlane.f32.xlu2 %v1077_v27 }
 0x71f   :  { %v4847_v33 = vpop.eup %4846 }
 0x720   :  { %v1261_v50 = vpop.xlane.xlu1 %1260  ;;  %v1284_v10 = vmul.f32 %v4847_v33, %v5856_v51  ;;  %v1233_v33 = vsub.f32 %v5837_v57, %v1225_v18 }
 0x721   :  { %4848 = vrcp.f32 %v1261_v50 }
 0x727   :  { %v4849_v53 = vpop.eup %4848 }
 0x728   :  { %v1285_v62 = vmul.f32 %v4849_v53, %v5864_v6  ;;  %v1264_v63 = vpop.xlane.xlu2 %1263  ;;  %v1037_v50 = vpop.xlane.xlu1 %1036 }
 0x729   :  { %4850 = vrcp.f32 %v1264_v63  ;;  %v1053_v53 = vsub.f32 %v5871_v24, %v1037_v50 }
 0x72a   :  { %v1291_v47 = vpack.c.bf16 %v1285_v62, %v1284_v10  ;;  %v1248_v10 = vmul.f32 1.442695, %v1233_v33 }
 0x72b   :  { %v1064_v62 = vmul.f32 1.442695, %v1053_v53 }
 0x72c   :  { %4523 = vmatmul.msk.bf16.gmra.mxu2 %vm1025_vm1, %v1291_v47 }
 0x72f   :  { %v4851_v5 = vpop.eup %4850 }
 0x730   :  { %v1286_v46 = vmul.f32 %v4851_v5, %v5876_v1 }
 0x740   :  { %v1267_v7 = vpop.xlane.xlu2 %1266 }
 0x741   :  { %4852 = vrcp.f32 %v1267_v7 }
 0x742   :  { %4854 = vpow2.f32 %v1248_v10 }
 0x743   :  { %4856 = vpow2.f32 %v1064_v62 }
 0x747   :  { %v4853_v42 = vpop.eup %4852 }
 0x748   :  { %v5936_v41 = vpop.permute.xlu2 %4730  ;;  %v1287_v4 = vmul.f32 %v4853_v42, %v4837_v16  ;;  %v5960_v63 = vpop.eup %4854 }
 0x749   :  { %v5940_v9 = vunpack.i.l.bf16 %v5936_v41  ;;  %v1472_v47 = vpop.f32.mrf.mxu0  ;;  %v5962_v7 = vpop.eup %4856  ;;  %v1271_v5 = vsel %vm1025_vm1, %v5960_v63, 0.0 }
 0x74a   :  { %v1292_v51 = vpack.c.bf16 %v1287_v4, %v1286_v46  ;;  %v1083_v42 = vsel %vm1025_vm1, %v5962_v7, 0.0 }
 0x74b   :  { %v1127_v6 = vmul.f32 %v5940_v9, %v5651_v15  ;;  %v1128_v2 = vmul.f32 %v5940_v9, %v5663_v21  ;;  %v1123_v55 = vmul.f32 %v5940_v9, %v5602_v25  ;;  %v1124_v36 = vmul.f32 %v5940_v9, %v5604_v26 }
 0x74c   :  { %4524 = vmatmul.msk.bf16.gmra.mxu2 %vm1025_vm1, %v1292_v51  ;;  %v1125_v1 = vmul.f32 %v5940_v9, %v5617_v49  ;;  %v1126_v16 = vmul.f32 %v5940_v9, %v5621_v35  ;;  %v1040_v51 = vpop.xlane.xlu0 %1039 }
 0x74d   :  { %v1132_v17 = vpack.c.bf16 %v1128_v2, %v1127_v6  ;;  %v1130_v44 = vpack.c.bf16 %v1124_v36, %v1123_v55  ;;  %v1043_v6 = vpop.xlane.xlu1 %1042  ;;  %v1121_v36 = vmul.f32 %v5940_v9, %v5647_v29 }
 0x74e   :  { %v1131_v27 = vpack.c.bf16 %v1126_v16, %v1125_v1  ;;  %v1055_v55 = vsub.f32 %v5885_v56, %v1043_v6  ;;  %v1122_v1 = vmul.f32 %v5940_v9, %v5649_v48 }
 0x74f   :  { %1376 = vrot.lane.b32.xlu1 %v1132_v17, %s5235_s17  ;;  %1372 = vrot.lane.b32.xlu2 %v1130_v44, %s5235_s17 }
 0x750   :  { %1374 = vrot.lane.b32.xlu0 %v1131_v27, %s5235_s17  ;;  %v1129_v44 = vpack.c.bf16 %v1122_v1, %v1121_v36  ;;  %v6005_v1 = vadd.f32 %v1472_v47, %v5792_v59 }
 0x751   :  { %v1474_v57 = vpop.f32.mrf.mxu0 }
 0x752   :  { %v5981_v50 = vadd.f32 %v1474_v57, %v5792_v59 }
 0x754   :  { %v1046_v27 = vpop.xlane.xlu0 %1045  ;;  %v1495_v33 = vsel %vm1025_vm1, %v5981_v50, -inf }
 0x755   :  { %v1056_v56 = vsub.f32 %v5874_v11, %v1046_v27 }
 0x757   :  { %v1070_v53 = vmul.f32 1.442695, %v1056_v56 }
 0x759   :  { %v1477_v4 = vpop.f32.mrf.mxu0 }
 0x75a   :  { %v6002_v6 = vadd.f32 %v1477_v4, %v5792_v59  ;;  %v6017_v4 = vunpack.i.h.bf16 %v5936_v41 }
 0x761   :  { %v1479_v17 = vpop.f32.mrf.mxu0 }
 0x779   :  { %1272 = vadd.xlane.f32.xlu1 %v1271_v5 }
 0x77a   :  { %1084 = vadd.xlane.f32.xlu0 %v1083_v42 }
 0x781   :  { %v1034_v18 = vpop.xlane.xlu2 %1033 }
 0x782   :  { %v1052_v24 = vsub.f32 %v5916_v43, %v1034_v18  ;;  %v1068_v43 = vmul.f32 1.442695, %v1055_v55  ;;  %v1076_v55 = vpop.xlane.xlu0 %1075 }
 0x784   :  { %v1062_v46 = vmul.f32 1.442695, %v1052_v24 }
 0x786   :  { %4858 = vpow2.f32 %v1062_v46  ;;  %v1054_v46 = vsub.f32 %v5861_v14, %v1040_v51  ;;  %v1492_v14 = vsel %vm1025_vm1, %v6005_v1, -inf }
 0x787   :  { %4860 = vpow2.f32 %v1068_v43  ;;  %v1498_v43 = vsel %vm1025_vm1, %v6002_v6, -inf }
 0x788   :  { %4862 = vpow2.f32 %v1070_v53  ;;  %v1066_v36 = vmul.f32 1.442695, %v1054_v46  ;;  %v1835_v53 = vmul.f32 %v6017_v4, %v5663_v21  ;;  %v6031_v46 = vadd.f32 %v1479_v17, %v5792_v59 }
 0x78a   :  { %4864 = vpow2.f32 %v1066_v36  ;;  %v1270_v47 = vpop.xlane.xlu0 %1269 }
 0x78b   :  { %4866 = vrcp.f32 %v1270_v47 }
 0x78c   :  { %v5969_v2 = vpop.eup %4858 }
 0x78d   :  { %v1080_v16 = vsel %vm1025_vm1, %v5969_v2, 0.0  ;;  %v5987_v10 = vpop.eup %4860 }
 0x78e   :  { %1584 = vrot.lane.b32.xlu0 %v5637_v40, %s5235_s17  ;;  %1081 = vadd.xlane.f32.xlu2 %v1080_v16  ;;  %v1482_v40 = vpop.f32.mrf.mxu0  ;;  %v1089_v62 = vsel %vm1025_vm1, %v5987_v10, 0.0  ;;  %v5991_v5 = vpop.eup %4862 }
 0x78f   :  { %v1092_v11 = vsel %vm1025_vm1, %v5991_v5, 0.0  ;;  %v5996_v57 = vadd.f32 %v1482_v40, %v5804_v39  ;;  %v6007_v16 = vpop.xlane.xlu2 %1048 }
 0x790   :  { %v6021_v56 = vpop.eup %4864 }
 0x791   :  { %v1504_v18 = vsel %vm1025_vm1, %v5996_v57, -inf  ;;  %v1086_v41 = vsel %vm1025_vm1, %v6021_v56, 0.0 }
 0x792   :  { %1370 = vrot.lane.b32.xlu1 %v1129_v44, %s5235_s17 }
 0x796   :  { %1496 = vmax.xlane.f32.xlu2 %v1495_v33  ;;  %v1484_v42 = vpop.f32.mrf.mxu0  ;;  %v1834_v33 = vmul.f32 %v6017_v4, %v5651_v15 }
 0x797   :  { %v1079_v40 = vpop.xlane.xlu2 %1078 }
 0x79e   :  { %1090 = vadd.xlane.f32.xlu2 %v1089_v62  ;;  %v1487_v24 = vpop.f32.mrf.mxu0 }
 0x7a6   :  { %1093 = vadd.xlane.f32.xlu2 %v1092_v11  ;;  %v1489_v44 = vpop.f32.mrf.mxu0  ;;  %v1839_v11 = vpack.c.bf16 %v1835_v53, %v1834_v33  ;;  %v4867_v53 = vpop.eup %4866 }
 0x7a7   :  { %v6012_v27 = vadd.f32 %v1489_v44, %v5804_v39  ;;  %v6036_v44 = vadd.f32 %v1484_v42, %v5804_v39 }
 0x7a9   :  { %v1513_v51 = vsel %vm1025_vm1, %v6012_v27, -inf  ;;  %v1373_v36 = vpop.permute.xlu2 %1372 }
 0x7ae   :  { %1505 = vmax.xlane.f32.xlu2 %v1504_v18 }
 0x7b8   :  { %1499 = vmax.xlane.f32.xlu0 %v1498_v43  ;;  %v1501_v43 = vsel %vm1025_vm1, %v6031_v46, -inf }
 0x7bc   :  { %1493 = vmax.xlane.f32.xlu1 %v1492_v14  ;;  %v1507_v14 = vsel %vm1025_vm1, %v6036_v44, -inf }
 0x7c0   :  { %1514 = vmax.xlane.f32.xlu0 %v1513_v51  ;;  %v6041_v51 = vadd.f32 %v1487_v24, %v5804_v39 }
 0x7c1   :  { %v1377_v62 = vpop.permute.xlu1 %1376 }
 0x7c2   :  { %1398 = vmatpush.bf16.msrb.mxu3 %v1377_v62  ;;  %v1375_v18 = vpop.permute.xlu0 %1374  ;;  %v1510_v17 = vsel %vm1025_vm1, %v6041_v51, -inf }
 0x7c4   :  { %1087 = vadd.xlane.f32.xlu1 %v1086_v41  ;;  %v1288_v41 = vmul.f32 %v4867_v53, %v5901_v31 }
 0x7c6   :  { %1850 = vrot.lane.b32.xlu2 %v1839_v11, %s5235_s17  ;;  %1399 = vmatpush.bf16.msrb.mxu3 %v1375_v18 }
 0x7ca   :  { %1400 = vmatpush.bf16.msrb.mxu3 %v1373_v36 }
 0x7cc   :  { %1502 = vmax.xlane.f32.xlu1 %v1501_v43 }
 0x7d4   :  { %1508 = vmax.xlane.f32.xlu1 %v1507_v14 }
 0x7dc   :  { %1511 = vmax.xlane.f32.xlu1 %v1510_v17 }
 0x7ec   :  { %v1273_v33 = vpop.xlane.xlu1 %1272 }
 0x7ed   :  { %4868 = vrcp.f32 %v1273_v33  ;;  %v1085_v18 = vpop.xlane.xlu0 %1084 }
 0x7ee   :  { %4870 = vrcp.f32 %v1079_v40 }
 0x7ef   :  { %4872 = vrcp.f32 %v1076_v55 }
 0x7f3   :  { %v4869_v62 = vpop.eup %4868 }
 0x7f4   :  { %v1289_v42 = vmul.f32 %v4869_v62, %v5960_v63  ;;  %v4871_v24 = vpop.eup %4870 }
 0x7f5   :  { %v4873_v43 = vpop.eup %4872  ;;  %v1107_v31 = vmul.f32 %v4871_v24, %v5928_v38 }
 0x7f6   :  { %v1293_v11 = vpack.c.bf16 %v1289_v42, %v1288_v41  ;;  %v1106_v33 = vmul.f32 %v4873_v43, %v5892_v22 }
 0x7f8   :  { %4525 = vmatmul.msk.bf16.gmra.mxu2 %vm1025_vm1, %v1293_v11  ;;  %v1114_v55 = vpack.c.bf16 %v1107_v31, %v1106_v33 }
 0x800   :  { %v6048_v36 = vpop.permute.xlu0 %1584 }
 0x801   :  { %v1082_v14 = vpop.xlane.xlu2 %1081  ;;  %v1593_v47 = vmul.f32 %v6048_v36, %v5651_v15  ;;  %v1594_v17 = vmul.f32 %v6048_v36, %v5663_v21 }
 0x802   :  { %4874 = vrcp.f32 %v1082_v14 }
 0x803   :  { %v1598_v63 = vpack.c.bf16 %v1594_v17, %v1593_v47  ;;  %4876 = vrcp.f32 %v1085_v18  ;;  %v6078_v17 = vpop.f32.mrf.mxu2 }
 0x804   :  { %v1371_v53 = vpop.permute.xlu1 %1370 }
 0x805   :  { %1609 = vrot.lane.b32.xlu1 %v1598_v63, %s5235_s17  ;;  %1401 = vmatpush.bf16.msrb.mxu3 %v1371_v53 }
 0x808   :  { %4526 = vmatmul.msk.bf16.vlgmr.msrb.gmra.mxu3 %vm1025_vm1, %v1114_v55  ;;  %4538 = vmatmul.msk.bf16.vlgmr.msra.gmra.mxu2 %vm186_vm2, %v5750_v45  ;;  %v4875_v21 = vpop.eup %4874  ;;  %v1057_v45 = vsub.f32 %v5922_v54, %v6007_v16 }
 0x809   :  { %v6060_v15 = vpop.xlane.xlu2 %1496  ;;  %v4877_v40 = vpop.eup %4876  ;;  %v1108_v62 = vmul.f32 %v4875_v21, %v5969_v2 }
 0x80a   :  { %v1109_v22 = vmul.f32 %v4877_v40, %v5962_v7  ;;  %v1072_v11 = vmul.f32 1.442695, %v1057_v45 }
 0x80b   :  { %v6081_v31 = vpop.f32.mrf.mxu2 }
 0x80c   :  { %v1115_v41 = vpack.c.bf16 %v1109_v22, %v1108_v62  ;;  %4878 = vpow2.f32 %v1072_v11 }
 0x811   :  { %v1091_v38 = vpop.xlane.xlu2 %1090 }
 0x812   :  { %v4879_v7 = vpop.eup %4878  ;;  %4880 = vrcp.f32 %v1091_v38 }
 0x813   :  { %v1095_v18 = vsel %vm1025_vm1, %v4879_v7, 0.0  ;;  %v6083_v63 = vpop.f32.mrf.mxu2 }
 0x818   :  { %4527 = vmatmul.msk.bf16.gmra.mxu3 %vm1025_vm1, %v1115_v41  ;;  %4539 = vmatmul.msk.bf16.gmra.mxu2 %vm186_vm2, %v5756_v30  ;;  %v4881_v54 = vpop.eup %4880 }
 0x819   :  { %v1094_v42 = vpop.xlane.xlu2 %1093  ;;  %v1111_v47 = vmul.f32 %v4881_v54, %v5987_v10 }
 0x81b   :  { %v6087_v53 = vpop.f32.mrf.mxu2 }
 0x821   :  { %v6069_v24 = vpop.xlane.xlu2 %1505 }
 0x823   :  { %v6091_v55 = vpop.f32.mrf.mxu2 }
 0x828   :  { %4540 = vmatmul.msk.bf16.gmra.mxu2 %vm186_vm2, %v5764_v37 }
 0x829   :  { %v1851_v2 = vpop.permute.xlu2 %1850 }
 0x82a   :  { %1872 = vmatpush.bf16.msra.mxu3 %v1851_v2 }
 0x82b   :  { %v6095_v10 = vpop.f32.mrf.mxu2 }
 0x82f   :  { %1096 = vadd.xlane.f32.xlu1 %v1095_v18  ;;  %v1494_v43 = vpop.xlane.xlu1 %1493 }
 0x830   :  { %v1516_v62 = vsub.f32 %v6005_v1, %v1494_v43 }
 0x832   :  { %v1524_v22 = vmul.f32 1.442695, %v1516_v62  ;;  %v1591_v62 = vmul.f32 %v6048_v36, %v5617_v49 }
 0x837   :  { %v1088_v30 = vpop.xlane.xlu1 %1087 }
 0x838   :  { %4541 = vmatmul.msk.bf16.gmra.mxu2 %vm186_vm2, %v5775_v52  ;;  %4882 = vrcp.f32 %v1088_v30 }
 0x839   :  { %4884 = vpow2.f32 %v1524_v22  ;;  %v1592_v22 = vmul.f32 %v6048_v36, %v5621_v35 }
 0x83a   :  { %4886 = vrcp.f32 %v1094_v42 }
 0x83e   :  { %v4883_v16 = vpop.eup %4882 }
 0x83f   :  { %v1110_v14 = vmul.f32 %v4883_v16, %v6021_v56  ;;  %v6085_v33 = vpop.xlane.xlu1 %1502  ;;  %v6107_v2 = vpop.eup %4884 }
 0x840   :  { %v1540_v54 = vsel %vm1025_vm1, %v6107_v2, 0.0 }
 0x841   :  { %v1116_v37 = vpack.c.bf16 %v1111_v47, %v1110_v14 }
 0x843   :  { %4528 = vmatmul.msk.bf16.gmra.mxu3 %vm1025_vm1, %v1116_v37 }
 0x847   :  { %v6089_v52 = vpop.xlane.xlu1 %1508 }
 0x84f   :  { %v6093_v56 = vpop.xlane.xlu1 %1511 }
 0x877   :  { %v1610_v21 = vpop.permute.xlu1 %1609 }
 0x878   :  { %1631 = vmatpush.bf16.msra.mxu1 %v1610_v21 }
 0x87b   :  { %v6097_v40 = vpop.f32.mrf.mxu2 }
 0x883   :  { %v6099_v38 = vpop.f32.mrf.mxu2 }
 0x88b   :  { %v1713_v41 = vpop.f32.mrf.mxu2 }
 0x88c   :  { %v6103_v45 = vadd.f32 %v1713_v41, %v5792_v59 }
 0x88e   :  { %v1733_v11 = vsel %vm1025_vm1, %v6103_v45, -inf }
 0x88f   :  { %1734 = vmax.xlane.f32.xlu0 %v1733_v11  ;;  %v4887_v11 = vpop.eup %4886 }
 0x890   :  { %v1112_v42 = vmul.f32 %v4887_v11, %v5991_v5 }
 0x893   :  { %v1715_v18 = vpop.f32.mrf.mxu2 }
 0x894   :  { %v6110_v30 = vadd.f32 %v1715_v18, %v5792_v59 }
 0x896   :  { %v1736_v1 = vsel %vm1025_vm1, %v6110_v30, -inf }
 0x897   :  { %1541 = vadd.xlane.f32.xlu0 %v1540_v54  ;;  %1737 = vmax.xlane.f32.xlu1 %v1736_v1  ;;  %v1597_v54 = vpack.c.bf16 %v1592_v22, %v1591_v62  ;;  %v1831_v62 = vmul.f32 %v6017_v4, %v5604_v26  ;;  %v1833_v22 = vmul.f32 %v6017_v4, %v5621_v35 }
 0x89b   :  { %v1718_v43 = vpop.f32.mrf.mxu2 }
 0x89c   :  { %v6117_v16 = vadd.f32 %v1718_v43, %v5792_v59 }
 0x89e   :  { %v1739_v14 = vsel %vm1025_vm1, %v6117_v16, -inf }
 0x89f   :  { %1740 = vmax.xlane.f32.xlu1 %v1739_v14  ;;  %v1589_v14 = vmul.f32 %v6048_v36, %v5602_v25 }
 0x8a2   :  { %v1097_v47 = vpop.xlane.xlu1 %1096 }
 0x8a3   :  { %4888 = vrcp.f32 %v1097_v47  ;;  %v1720_v37 = vpop.f32.mrf.mxu2  ;;  %v1590_v47 = vmul.f32 %v6048_v36, %v5604_v26  ;;  %v1517_v26 = vsub.f32 %v5981_v50, %v6060_v15  ;;  %v1500_v15 = vpop.xlane.xlu0 %1499 }
 0x8a4   :  { %v6122_v21 = vadd.f32 %v1720_v37, %v5792_v59 }
 0x8a5   :  { %v1596_v37 = vpack.c.bf16 %v1590_v47, %v1589_v14 }
 0x8a6   :  { %v1742_v41 = vsel %vm1025_vm1, %v6122_v21, -inf }
 0x8a7   :  { %1743 = vmax.xlane.f32.xlu2 %v1742_v41  ;;  %v1830_v41 = vmul.f32 %v6017_v4, %v5602_v25 }
 0x8a9   :  { %v4889_v18 = vpop.eup %4888  ;;  %v1837_v5 = vpack.c.bf16 %v1831_v62, %v1830_v41  ;;  %v1518_v41 = vsub.f32 %v6002_v6, %v1500_v15 }
 0x8aa   :  { %v1113_v1 = vmul.f32 %v4889_v18, %v4879_v7  ;;  %v1832_v7 = vmul.f32 %v6017_v4, %v5617_v49 }
 0x8ab   :  { %1607 = vrot.lane.b32.xlu0 %v1597_v54, %s5235_s17  ;;  %v1723_v18 = vpop.f32.mrf.mxu2 }
 0x8ac   :  { %v1117_v43 = vpack.c.bf16 %v1113_v1, %v1112_v42  ;;  %v1838_v11 = vpack.c.bf16 %v1833_v22, %v1832_v7  ;;  %v6156_v35 = vadd.f32 %v1723_v18, %v5804_v39  ;;  %v1519_v22 = vsub.f32 %v6031_v46, %v6085_v33  ;;  %v6177_v18 = vpop.xlane.xlu0 %1514 }
 0x8ae   :  { %4529 = vmatmul.msk.bf16.gmra.mxu3 %vm1025_vm1, %v1117_v43  ;;  %v1526_v43 = vmul.f32 1.442695, %v1517_v26  ;;  %v1745_v47 = vsel %vm1025_vm1, %v6156_v35, -inf }
 0x8b0   :  { %4890 = vpow2.f32 %v1526_v43 }
 0x8b3   :  { %1605 = vrot.lane.b32.xlu0 %v1596_v37, %s5235_s17  ;;  %v1725_v54 = vpop.f32.mrf.mxu2 }
 0x8b4   :  { %v6149_v42 = vadd.f32 %v1725_v54, %v5804_v39  ;;  %v1530_v54 = vmul.f32 1.442695, %v1519_v22 }
 0x8b6   :  { %v1748_v1 = vsel %vm1025_vm1, %v6149_v42, -inf  ;;  %v6165_v37 = vpop.eup %4890 }
 0x8b7   :  { %v1543_v62 = vsel %vm1025_vm1, %v6165_v37, 0.0 }
 0x8b8   :  { %1846 = vrot.lane.b32.xlu1 %v1837_v5, %s5235_s17  ;;  %v1528_v5 = vmul.f32 1.442695, %v1518_v41 }
 0x8ba   :  { %4892 = vpow2.f32 %v1528_v5 }
 0x8bb   :  { %v1728_v25 = vpop.f32.mrf.mxu2  ;;  %4894 = vpow2.f32 %v1530_v54 }
 0x8bc   :  { %v6171_v7 = vadd.f32 %v1728_v25, %v5804_v39 }
 0x8bf   :  { %1848 = vrot.lane.b32.xlu2 %v1838_v11, %s5235_s17  ;;  %v1751_v11 = vsel %vm1025_vm1, %v6171_v7, -inf }
 0x8c0   :  { %v6179_v6 = vpop.eup %4892 }
 0x8c1   :  { %v1546_v26 = vsel %vm1025_vm1, %v6179_v6, 0.0  ;;  %v6184_v43 = vpop.eup %4894 }
 0x8c2   :  { %v1549_v33 = vsel %vm1025_vm1, %v6184_v43, 0.0 }
 0x8c3   :  { %v1730_v49 = vpop.f32.mrf.mxu2 }
 0x8c4   :  { %v6159_v14 = vadd.f32 %v1730_v49, %v5804_v39 }
 0x8c6   :  { %v1754_v50 = vsel %vm1025_vm1, %v6159_v14, -inf }
 0x8e2   :  { %1749 = vmax.xlane.f32.xlu1 %v1748_v1 }
 0x8e8   :  { %1746 = vmax.xlane.f32.xlu2 %v1745_v47 }
 0x8ea   :  { %1755 = vmax.xlane.f32.xlu1 %v1754_v50 }
 0x8f0   :  { %1544 = vadd.xlane.f32.xlu2 %v1543_v62 }
 0x8f8   :  { %1752 = vmax.xlane.f32.xlu2 %v1751_v11 }
 0x900   :  { %1547 = vadd.xlane.f32.xlu2 %v1546_v26  ;;  %v1828_v26 = vmul.f32 %v6017_v4, %v5647_v29 }
 0x902   :  { %v1735_v25 = vpop.xlane.xlu0 %1734 }
 0x903   :  { %v1757_v1 = vsub.f32 %v6103_v45, %v1735_v25  ;;  %v1829_v25 = vmul.f32 %v6017_v4, %v5649_v48 }
 0x905   :  { %v1765_v46 = vmul.f32 1.442695, %v1757_v1 }
 0x907   :  { %4896 = vpow2.f32 %v1765_v46  ;;  %v1587_v46 = vmul.f32 %v6048_v36, %v5647_v29  ;;  %v1521_v29 = vsub.f32 %v6036_v44, %v6089_v52 }
 0x908   :  { %1550 = vadd.xlane.f32.xlu2 %v1549_v33  ;;  %v1588_v33 = vmul.f32 %v6048_v36, %v5649_v48 }
 0x909   :  { %v1534_v48 = vmul.f32 1.442695, %v1521_v29 }
 0x90a   :  { %v1738_v49 = vpop.xlane.xlu1 %1737  ;;  %v6195_v62 = vpop.xlane.xlu0 %1541 }
 0x90b   :  { %v1758_v47 = vsub.f32 %v6110_v30, %v1738_v49  ;;  %v1836_v49 = vpack.c.bf16 %v1829_v25, %v1828_v26  ;;  %v1522_v25 = vsub.f32 %v6041_v51, %v6093_v56 }
 0x90d   :  { %v6189_v50 = vpop.eup %4896  ;;  %v1767_v15 = vmul.f32 1.442695, %v1758_v47  ;;  %v1595_v47 = vpack.c.bf16 %v1588_v33, %v1587_v46 }
 0x90e   :  { %v1781_v41 = vsel %vm1025_vm1, %v6189_v50, 0.0 }
 0x90f   :  { %4898 = vpow2.f32 %v1767_v15  ;;  %1782 = vadd.xlane.f32.xlu1 %v1781_v41 }
 0x912   :  { %v1741_v30 = vpop.xlane.xlu1 %1740 }
 0x913   :  { %v1759_v41 = vsub.f32 %v6117_v16, %v1741_v30 }
 0x915   :  { %v6193_v45 = vpop.eup %4898 }
 0x916   :  { %v1784_v5 = vsel %vm1025_vm1, %v6193_v45, 0.0 }
 0x917   :  { %1785 = vadd.xlane.f32.xlu0 %v1784_v5 }
 0x91a   :  { %v1744_v22 = vpop.xlane.xlu2 %1743 }
 0x91b   :  { %v1760_v5 = vsub.f32 %v6122_v21, %v1744_v22  ;;  %v1536_v21 = vmul.f32 1.442695, %v1522_v25 }
 0x91d   :  { %v1608_v11 = vpop.permute.xlu0 %1607 }
 0x91e   :  { %1632 = vmatpush.bf16.msra.mxu1 %v1608_v11  ;;  %v1769_v11 = vmul.f32 1.442695, %v1759_v41 }
 0x920   :  { %4900 = vpow2.f32 %v1769_v11  ;;  %v1520_v11 = vsub.f32 %v5996_v57, %v6069_v24 }
 0x922   :  { %v1849_v54 = vpop.permute.xlu2 %1848 }
 0x923   :  { %1873 = vmatpush.bf16.msra.mxu3 %v1849_v54  ;;  %v1771_v54 = vmul.f32 1.442695, %v1760_v5 }
 0x925   :  { %v1606_v1 = vpop.permute.xlu0 %1605  ;;  %4902 = vpow2.f32 %v1771_v54  ;;  %v1532_v54 = vmul.f32 1.442695, %v1520_v11 }
 0x926   :  { %1633 = vmatpush.bf16.msra.mxu1 %v1606_v1  ;;  %v6213_v26 = vpop.eup %4900  ;;  %4904 = vpow2.f32 %v1534_v48 }
 0x927   :  { %v1787_v16 = vsel %vm1025_vm1, %v6213_v26, 0.0  ;;  %4906 = vpow2.f32 %v1536_v21 }
 0x928   :  { %1844 = vrot.lane.b32.xlu1 %v1836_v49, %s5235_s17 }
 0x92a   :  { %v1847_v15 = vpop.permute.xlu1 %1846 }
 0x92b   :  { %1874 = vmatpush.bf16.msra.mxu3 %v1847_v15  ;;  %1603 = vrot.lane.b32.xlu0 %v1595_v47, %s5235_s17  ;;  %v6217_v1 = vpop.eup %4902 }
 0x92c   :  { %v1790_v22 = vsel %vm1025_vm1, %v6217_v1, 0.0  ;;  %v6223_v44 = vpop.eup %4904 }
 0x92d   :  { %v1555_v52 = vsel %vm1025_vm1, %v6223_v44, 0.0  ;;  %v6228_v46 = vpop.eup %4906 }
 0x92e   :  { %v1558_v47 = vsel %vm1025_vm1, %v6228_v46, 0.0 }
 0x952   :  { %1788 = vadd.xlane.f32.xlu1 %v1787_v16  ;;  %v1523_v16 = vsub.f32 %v6012_v27, %v6177_v18 }
 0x954   :  { %v1538_v24 = vmul.f32 1.442695, %v1523_v16 }
 0x955   :  { %1791 = vadd.xlane.f32.xlu0 %v1790_v22  ;;  %v1750_v30 = vpop.xlane.xlu1 %1749 }
 0x956   :  { %v1762_v33 = vsub.f32 %v6149_v42, %v1750_v30 }
 0x958   :  { %v1775_v15 = vmul.f32 1.442695, %v1762_v33 }
 0x95a   :  { %1556 = vadd.xlane.f32.xlu1 %v1555_v52 }
 0x95b   :  { %v1747_v51 = vpop.xlane.xlu2 %1746 }
 0x95c   :  { %v1761_v56 = vsub.f32 %v6156_v35, %v1747_v51 }
 0x95d   :  { %v1756_v42 = vpop.xlane.xlu1 %1755 }
 0x95e   :  { %v1773_v49 = vmul.f32 1.442695, %v1761_v56  ;;  %v1764_v21 = vsub.f32 %v6159_v14, %v1756_v42 }
 0x960   :  { %4908 = vpow2.f32 %v1773_v49  ;;  %v1779_v52 = vmul.f32 1.442695, %v1764_v21 }
 0x961   :  { %4910 = vpow2.f32 %v1775_v15 }
 0x962   :  { %1559 = vadd.xlane.f32.xlu1 %v1558_v47  ;;  %4912 = vpow2.f32 %v1532_v54 }
 0x963   :  { %v1545_v41 = vpop.xlane.xlu2 %1544 }
 0x966   :  { %v6233_v5 = vpop.eup %4908 }
 0x967   :  { %v1793_v35 = vsel %vm1025_vm1, %v6233_v5, 0.0  ;;  %v6239_v48 = vpop.eup %4910 }
 0x968   :  { %1794 = vadd.xlane.f32.xlu2 %v1793_v35  ;;  %v1796_v57 = vsel %vm1025_vm1, %v6239_v48, 0.0  ;;  %v6247_v30 = vpop.eup %4912 }
 0x969   :  { %v1552_v14 = vsel %vm1025_vm1, %v6247_v30, 0.0 }
 0x96b   :  { %v1753_v29 = vpop.xlane.xlu2 %1752 }
 0x96c   :  { %v1763_v25 = vsub.f32 %v6171_v7, %v1753_v29 }
 0x96e   :  { %v1777_v22 = vmul.f32 1.442695, %v1763_v25 }
 0x970   :  { %4914 = vpow2.f32 %v1777_v22  ;;  %1797 = vadd.xlane.f32.xlu2 %v1796_v57 }
 0x971   :  { %4916 = vpow2.f32 %v1538_v24 }
 0x972   :  { %4918 = vpow2.f32 %v1779_v52 }
 0x973   :  { %v1548_v11 = vpop.xlane.xlu2 %1547 }
 0x976   :  { %v6249_v51 = vpop.eup %4914 }
 0x977   :  { %v1799_v27 = vsel %vm1025_vm1, %v6249_v51, 0.0  ;;  %v6255_v7 = vpop.eup %4916 }
 0x978   :  { %1800 = vadd.xlane.f32.xlu0 %v1799_v27  ;;  %1553 = vadd.xlane.f32.xlu2 %v1552_v14  ;;  %v6257_v18 = vpop.eup %4918  ;;  %v1561_v33 = vsel %vm1025_vm1, %v6255_v7, 0.0 }
 0x979   :  { %v1802_v56 = vsel %vm1025_vm1, %v6257_v18, 0.0 }
 0x980   :  { %1803 = vadd.xlane.f32.xlu2 %v1802_v56  ;;  %1562 = vadd.xlane.f32.xlu0 %v1561_v33 }
 0x982   :  { %v1783_v47 = vpop.xlane.xlu1 %1782 }
 0x98a   :  { %v1786_v49 = vpop.xlane.xlu0 %1785 }
 0x98b   :  { %4920 = vrcp.f32 %v1786_v49 }
 0x98c   :  { %4922 = vrcp.f32 %v1783_v47 }
 0x98d   :  { %4924 = vrcp.f32 %v1545_v41  ;;  %v1551_v41 = vpop.xlane.xlu2 %1550 }
 0x98e   :  { %4926 = vrcp.f32 %v6195_v62 }
 0x98f   :  { %4928 = vrcp.f32 %v1551_v41 }
 0x990   :  { %4930 = vrcp.f32 %v1548_v11  ;;  %v1403_v11 = vpop.f32.mrf.mxu3 }
 0x991   :  { %v4921_v15 = vpop.eup %4920 }
 0x992   :  { %v4923_v35 = vpop.eup %4922  ;;  %v1814_v42 = vmul.f32 %v4921_v15, %v6193_v45 }
 0x993   :  { %v4925_v54 = vpop.eup %4924  ;;  %v1813_v25 = vmul.f32 %v4923_v35, %v6189_v50 }
 0x994   :  { %v4927_v29 = vpop.eup %4926  ;;  %v1573_v21 = vmul.f32 %v4925_v54, %v6165_v37 }
 0x995   :  { %v1821_v22 = vpack.c.bf16 %v1814_v42, %v1813_v25  ;;  %v1572_v57 = vmul.f32 %v4927_v29, %v6107_v2  ;;  %v4929_v45 = vpop.eup %4928  ;;  %v4697_v42 = vld [vmem:[#allocation2 + $0x3c] sm:$0xff] }
 0x996   :  { %v4931_v52 = vpop.eup %4930  ;;  %v1575_v50 = vmul.f32 %v4929_v45, %v6184_v43  ;;  %1943 = vmatpush.bf16.msrb.mxu0 %v4697_v42 }
 0x997   :  { %v1580_v62 = vpack.c.bf16 %v1573_v21, %v1572_v57  ;;  %v1574_v37 = vmul.f32 %v4931_v52, %v6179_v6 }
 0x998   :  { %v1405_v35 = vpop.f32.mrf.mxu3 }
 0x999   :  { %v1581_v27 = vpack.c.bf16 %v1575_v50, %v1574_v37 }
 0x99a   :  { %v1845_v16 = vpop.permute.xlu1 %1844 }
 0x99b   :  { %1875 = vmatpush.bf16.msra.mxu3 %v1845_v16 }
 0x99d   :  { %v1604_v24 = vpop.permute.xlu0 %1603 }
 0x99e   :  { %1634 = vmatpush.bf16.msra.mxu1 %v1604_v24  ;;  %4542 = vmatmul.msk.bf16.vlgmr.msra.gmra.mxu3 %vm1025_vm1, %v1821_v22 }
 0x9a0   :  { %v1408_v16 = vpop.f32.mrf.mxu3 }
 0x9a1   :  { %4534 = vmatmul.msk.bf16.vlgmr.msra.gmra.mxu1 %vm1025_vm1, %v1580_v62 }
 0x9a8   :  { %v1410_v50 = vpop.f32.mrf.mxu3 }
 0x9b1   :  { %4535 = vmatmul.msk.bf16.gmra.mxu1 %vm1025_vm1, %v1581_v27 }
 0x9c5   :  { %v1789_v2 = vpop.xlane.xlu1 %1788 }
 0x9c6   :  { %4932 = vrcp.f32 %v1789_v2 }
 0x9c8   :  { %v1792_v14 = vpop.xlane.xlu0 %1791 }
 0x9c9   :  { %4934 = vrcp.f32 %v1792_v14 }
 0x9cc   :  { %v4933_v56 = vpop.eup %4932 }
 0x9cd   :  { %v1815_v49 = vmul.f32 %v4933_v56, %v6213_v26  ;;  %v1557_v54 = vpop.xlane.xlu1 %1556 }
 0x9cf   :  { %v4935_v33 = vpop.eup %4934 }
 0x9d0   :  { %v1816_v47 = vmul.f32 %v4935_v33, %v6217_v1  ;;  %v1413_v33 = vpop.f32.mrf.mxu3 }
 0x9d2   :  { %v1822_v15 = vpack.c.bf16 %v1816_v47, %v1815_v49 }
 0x9d4   :  { %4543 = vmatmul.msk.bf16.gmra.mxu3 %vm1025_vm1, %v1822_v15 }
 0x9d5   :  { %v1560_v2 = vpop.xlane.xlu1 %1559 }
 0x9db   :  { %v1795_v43 = vpop.xlane.xlu2 %1794 }
 0x9dc   :  { %4936 = vrcp.f32 %v1795_v43 }
 0x9e2   :  { %v4937_v29 = vpop.eup %4936 }
 0x9e3   :  { %v1798_v6 = vpop.xlane.xlu2 %1797  ;;  %v1817_v1 = vmul.f32 %v4937_v29, %v6233_v5 }
 0x9e4   :  { %4938 = vrcp.f32 %v1798_v6  ;;  %v1415_v6 = vpop.f32.mrf.mxu3 }
 0x9e5   :  { %4940 = vrcp.f32 %v1557_v54  ;;  %v4696_v54 = vld [vmem:[#allocation2 + $0x34] sm:$0xff] }
 0x9e6   :  { %1944 = vmatpush.bf16.msrb.mxu0 %v4696_v54 }
 0x9ea   :  { %v4939_v25 = vpop.eup %4938 }
 0x9eb   :  { %v1554_v21 = vpop.xlane.xlu2 %1553  ;;  %v1801_v26 = vpop.xlane.xlu0 %1800  ;;  %v1818_v22 = vmul.f32 %v4939_v25, %v6239_v48  ;;  %v1404_v25 = vadd.f32 %v1403_v11, %v6078_v17 }
 0x9ec   :  { %4942 = vrcp.f32 %v1554_v21  ;;  %v4941_v24 = vpop.eup %4940  ;;  %v1418_v42 = vpop.f32.mrf.mxu3  ;;  %v1406_v21 = vadd.f32 %v1405_v35, %v6081_v31 }
 0x9ed   :  { %v1823_v57 = vpack.c.bf16 %v1818_v22, %v1817_v1  ;;  %4944 = vrcp.f32 %v1801_v26  ;;  %v1577_v52 = vmul.f32 %v4941_v24, %v6223_v44 }
 0x9ef   :  { %4544 = vmatmul.msk.bf16.gmra.mxu3 %vm1025_vm1, %v1823_v57 }
 0x9f2   :  { %v4943_v62 = vpop.eup %4942 }
 0x9f3   :  { %v1804_v41 = vpop.xlane.xlu2 %1803  ;;  %v1576_v45 = vmul.f32 %v4943_v62, %v6247_v30  ;;  %v1563_v37 = vpop.xlane.xlu0 %1562 }
 0x9f4   :  { %4946 = vrcp.f32 %v1804_v41  ;;  %v4945_v5 = vpop.eup %4944 }
 0x9f5   :  { %v1582_v27 = vpack.c.bf16 %v1577_v52, %v1576_v45  ;;  %4948 = vrcp.f32 %v1563_v37  ;;  %v1819_v14 = vmul.f32 %v4945_v5, %v6249_v51  ;;  %v1420_v51 = vpop.f32.mrf.mxu3  ;;  %v1409_v52 = vadd.f32 %v1408_v16, %v6083_v63 }
 0x9f6   :  { %4950 = vrcp.f32 %v1560_v2  ;;  %v1411_v37 = vadd.f32 %v1410_v50, %v6087_v53  ;;  %v1421_v54 = vadd.f32 %v1420_v51, %v6099_v38 }
 0x9f7   :  { %4536 = vmatmul.msk.bf16.gmra.mxu1 %vm1025_vm1, %v1582_v27 }
 0x9fa   :  { %v4947_v48 = vpop.eup %4946 }
 0x9fb   :  { %v1820_v56 = vmul.f32 %v4947_v48, %v6257_v18  ;;  %v4949_v30 = vpop.eup %4948 }
 0x9fc   :  { %v4951_v44 = vpop.eup %4950  ;;  %v1579_v47 = vmul.f32 %v4949_v30, %v6255_v7 }
 0x9fd   :  { %v1824_v49 = vpack.c.bf16 %v1820_v56, %v1819_v14  ;;  %v1578_v15 = vmul.f32 %v4951_v44, %v6228_v46  ;;  %v1414_v14 = vadd.f32 %v1413_v33, %v6091_v55 }
 0x9ff   :  { %4545 = vmatmul.msk.bf16.gmra.mxu3 %vm1025_vm1, %v1824_v49  ;;  %v1583_v43 = vpack.c.bf16 %v1579_v47, %v1578_v15  ;;  %v1416_v49 = vadd.f32 %v1415_v6, %v6095_v10 }
 0xa07   :  { %4537 = vmatmul.msk.bf16.gmra.mxu1 %vm1025_vm1, %v1583_v43  ;;  %v1419_v43 = vadd.f32 %v1418_v42, %v6097_v40 }
 0xa1e   :  { %v1636_v29 = vpop.f32.mrf.mxu1 }
 0xa1f   :  { %v1656_v26 = vadd.f32 %v1636_v29, %v1404_v25 }
 0xa21   :  { %v1877_v18 = vpop.f32.mrf.mxu3 }
 0xa22   :  { %v1897_v57 = vadd.f32 %v1877_v18, %v1656_v26 }
 0xa26   :  { %v1638_v1 = vpop.f32.mrf.mxu1 }
 0xa27   :  { %v1657_v22 = vadd.f32 %v1638_v1, %v1406_v21  ;;  %v4742_v21 = vld [vmem:[%s7726_s2 + $0x8] ss:$0 sm:$0xff] }
 0xa29   :  { %v1879_v7 = vpop.f32.mrf.mxu3 }
 0xa2a   :  { %v1898_v46 = vadd.f32 %v1879_v7, %v1657_v22 }
 0xa2c   :  { %v1905_v24 = vpack.c.bf16 %v1898_v46, %v1897_v57 }
 0xa2e   :  { %4554 = vmatmul.msk.bf16.vlgmr.msrb.gmra.mxu0 %vm186_vm2, %v1905_v24  ;;  %v1641_v62 = vpop.f32.mrf.mxu1 }
 0xa2f   :  { %v1658_v27 = vadd.f32 %v1641_v62, %v1409_v52 }
 0xa36   :  { %v1643_v45 = vpop.f32.mrf.mxu1 }
 0xa37   :  { %v1659_v17 = vadd.f32 %v1643_v45, %v1411_v37 }
 0xa57   :  { %v1882_v41 = vpop.f32.mrf.mxu3 }
 0xa58   :  { %v1899_v31 = vadd.f32 %v1882_v41, %v1658_v27 }
 0xa5f   :  { %v1884_v11 = vpop.f32.mrf.mxu3 }
 0xa60   :  { %v1900_v35 = vadd.f32 %v1884_v11, %v1659_v17 }
 0xa62   :  { %v1906_v2 = vpack.c.bf16 %v1900_v35, %v1899_v31 }
 0xa64   :  { %4555 = vmatmul.msk.bf16.gmra.mxu0 %vm186_vm2, %v1906_v2 }
 0xa72   :  { %v1887_v5 = vpop.f32.mrf.mxu3 }
 0xa74   :  { %v1646_v48 = vpop.f32.mrf.mxu1 }
 0xa75   :  { %v1660_v30 = vadd.f32 %v1646_v48, %v1414_v14 }
 0xa77   :  { %v1901_v16 = vadd.f32 %v1887_v5, %v1660_v30 }
 0xa7a   :  { %v1889_v56 = vpop.f32.mrf.mxu3 }
 0xa7c   :  { %v1648_v44 = vpop.f32.mrf.mxu1 }
 0xa7d   :  { %v1661_v63 = vadd.f32 %v1648_v44, %v1416_v49 }
 0xa7f   :  { %v1902_v53 = vadd.f32 %v1889_v56, %v1661_v63 }
 0xa81   :  { %v1907_v50 = vpack.c.bf16 %v1902_v53, %v1901_v16 }
 0xa82   :  { %v1892_v47 = vpop.f32.mrf.mxu3 }
 0xa83   :  { %4556 = vmatmul.msk.bf16.gmra.mxu0 %vm186_vm2, %v1907_v50 }
 0xa84   :  { %v1651_v15 = vpop.f32.mrf.mxu1 }
 0xa85   :  { %v1662_v29 = vadd.f32 %v1651_v15, %v1419_v43 }
 0xa87   :  { %v1903_v25 = vadd.f32 %v1892_v47, %v1662_v29 }
 0xa8a   :  { %v1894_v33 = vpop.f32.mrf.mxu3 }
 0xa8c   :  { %v1653_v18 = vpop.f32.mrf.mxu1 }
 0xa8d   :  { %v1663_v55 = vadd.f32 %v1653_v18, %v1421_v54 }
 0xa8f   :  { %v1904_v10 = vadd.f32 %v1894_v33, %v1663_v55 }
 0xa91   :  { %v1908_v6 = vpack.c.bf16 %v1904_v10, %v1903_v25 }
 0xa93   :  { %4557 = vmatmul.msk.bf16.gmra.mxu0 %vm186_vm2, %v1908_v6 }
 0xaab   :  { %v1946_v26 = vpop.f32.mrf.mxu0 }
 0xaac   :  { %v1966_v1 = vadd.f32 %v1946_v26, %v5456_v58 }
 0xaae   :  { %v6304_v22 = vadd.f32 %v4742_v21, %v1966_v1 }
 0xab0   :  { %v1984_v40 = vsel %vm186_vm2, %v6304_v22, 0.0 }
 0xab1   :  { %1985 = vadd.xlane.f32.xlu2 %v1984_v40 }
 0xab3   :  { %v1948_v38 = vpop.f32.mrf.mxu0 }
 0xab4   :  { %v1967_v42 = vadd.f32 %v1948_v38, %v5460_v32 }
 0xab6   :  { %v6309_v51 = vadd.f32 %v4742_v21, %v1967_v42 }
 0xab8   :  { %v1987_v7 = vsel %vm186_vm2, %v6309_v51, 0.0 }
 0xab9   :  { %1988 = vadd.xlane.f32.xlu1 %v1987_v7 }
 0xae1   :  { %v1951_v57 = vpop.f32.mrf.mxu0 }
 0xae2   :  { %v1968_v46 = vadd.f32 %v1951_v57, %v5464_v61 }
 0xae4   :  { %v6314_v24 = vadd.f32 %v4742_v21, %v1968_v46 }
 0xae6   :  { %v1990_v58 = vsel %vm186_vm2, %v6314_v24, 0.0 }
 0xae7   :  { %1991 = vadd.xlane.f32.xlu0 %v1990_v58 }
 0xae9   :  { %v1953_v62 = vpop.f32.mrf.mxu0 }
 0xaea   :  { %v1969_v41 = vadd.f32 %v1953_v62, %v5468_v0 }
 0xaec   :  { %v6319_v45 = vadd.f32 %v4742_v21, %v1969_v41 }
 0xaee   :  { %v1993_v32 = vsel %vm186_vm2, %v6319_v45, 0.0 }
 0xaef   :  { %1994 = vadd.xlane.f32.xlu2 %v1993_v32 }
 0xb00   :  { %v1956_v52 = vpop.f32.mrf.mxu0 }
 0xb01   :  { %v1970_v37 = vadd.f32 %v1956_v52, %v5472_v3 }
 0xb03   :  { %v6324_v27 = vadd.f32 %v4742_v21, %v1970_v37 }
 0xb05   :  { %v1996_v61 = vsel %vm186_vm2, %v6324_v27, 0.0 }
 0xb06   :  { %1997 = vadd.xlane.f32.xlu1 %v1996_v61  ;;  %v4699_v61 = vld [vmem:[#allocation2 + $0x4c] sm:$0xff] }
 0xb07   :  { %2220 = vmatpush.bf16.msrb.mxu1 %v4699_v61 }
 0xb08   :  { %v1958_v17 = vpop.f32.mrf.mxu0 }
 0xb09   :  { %v1971_v11 = vadd.f32 %v1958_v17, %v5476_v8 }
 0xb0b   :  { %v6329_v31 = vadd.f32 %v4742_v21, %v1971_v11 }
 0xb0d   :  { %v1999_v0 = vsel %vm186_vm2, %v6329_v31, 0.0 }
 0xb0e   :  { %2000 = vadd.xlane.f32.xlu0 %v1999_v0 }
 0xb10   :  { %v1961_v35 = vpop.f32.mrf.mxu0 }
 0xb11   :  { %v1972_v2 = vadd.f32 %v1961_v35, %v5484_v13  ;;  %v4698_v35 = vld [vmem:[#allocation2 + $0x44] sm:$0xff] }
 0xb12   :  { %2221 = vmatpush.bf16.msrb.mxu1 %v4698_v35 }
 0xb13   :  { %v6334_v5 = vadd.f32 %v4742_v21, %v1972_v2 }
 0xb15   :  { %v2002_v3 = vsel %vm186_vm2, %v6334_v5, 0.0 }
 0xb16   :  { %2003 = vadd.xlane.f32.xlu0 %v2002_v3 }
 0xb18   :  { %v1963_v56 = vpop.f32.mrf.mxu0 }
 0xb19   :  { %v1973_v30 = vadd.f32 %v1963_v56, %v5495_v23 }
 0xb1b   :  { %v6347_v16 = vadd.f32 %v4742_v21, %v1973_v30 }
 0xb1d   :  { %v2005_v15 = vsel %vm186_vm2, %v6347_v16, 0.0 }
 0xb24   :  { %v1986_v48 = vpop.xlane.xlu2 %1985 }
 0xb25   :  { %v2008_v14 = vmul.f32 %v1986_v48, %v5349_v19 }
 0xb27   :  { %v6340_v8 = vsub.f32 %v6304_v22, %v2008_v14 }
 0xb29   :  { %v2024_v49 = vmul.f32 %v6340_v8, %v6340_v8 }
 0xb2b   :  { %v2032_v13 = vsel %vm186_vm2, %v2024_v49, 0.0 }
 0xb2c   :  { %v1989_v44 = vpop.xlane.xlu1 %1988  ;;  %2033 = vadd.xlane.f32.xlu2 %v2032_v13 }
 0xb2d   :  { %v2009_v63 = vmul.f32 %v1989_v44, %v5349_v19 }
 0xb2f   :  { %v6350_v53 = vsub.f32 %v6309_v51, %v2009_v63 }
 0xb31   :  { %v2025_v50 = vmul.f32 %v6350_v53, %v6350_v53 }
 0xb33   :  { %v2035_v47 = vsel %vm186_vm2, %v2025_v50, 0.0 }
 0xb34   :  { %2036 = vadd.xlane.f32.xlu1 %v2035_v47  ;;  %2006 = vadd.xlane.f32.xlu2 %v2005_v15 }
 0xb5a   :  { %v1992_v23 = vpop.xlane.xlu0 %1991 }
 0xb5b   :  { %v2010_v43 = vmul.f32 %v1992_v23, %v5349_v19 }
 0xb5d   :  { %v6359_v54 = vsub.f32 %v6314_v24, %v2010_v43 }
 0xb5f   :  { %v2026_v29 = vmul.f32 %v6359_v54, %v6359_v54 }
 0xb61   :  { %v2038_v18 = vsel %vm186_vm2, %v2026_v29, 0.0 }
 0xb62   :  { %v1995_v55 = vpop.xlane.xlu2 %1994  ;;  %2039 = vadd.xlane.f32.xlu1 %v2038_v18 }
 0xb63   :  { %v2011_v33 = vmul.f32 %v1995_v55, %v5349_v19 }
 0xb65   :  { %v6366_v25 = vsub.f32 %v6319_v45, %v2011_v33 }
 0xb67   :  { %v2027_v10 = vmul.f32 %v6366_v25, %v6366_v25 }
 0xb69   :  { %v2041_v6 = vsel %vm186_vm2, %v2027_v10, 0.0 }
 0xb6a   :  { %2042 = vadd.xlane.f32.xlu0 %v2041_v6  ;;  %v6404_v6 = vld [vmem:[%s7726_s2 + $0x9] ss:$0 sm:$0xff] }
 0xb79   :  { %v1998_v21 = vpop.xlane.xlu1 %1997 }
 0xb7a   :  { %v2012_v26 = vmul.f32 %v1998_v21, %v5349_v19 }
 0xb7c   :  { %v6373_v1 = vsub.f32 %v6324_v27, %v2012_v26 }
 0xb7e   :  { %v2028_v40 = vmul.f32 %v6373_v1, %v6373_v1 }
 0xb80   :  { %v2044_v38 = vsel %vm186_vm2, %v2028_v40, 0.0 }
 0xb81   :  { %2045 = vadd.xlane.f32.xlu2 %v2044_v38  ;;  %v2001_v42 = vpop.xlane.xlu0 %2000  ;;  %v6410_v38 = vld [vmem:[%s7726_s2 + $0xa] ss:$0 sm:$0xff] }
 0xb82   :  { %v2013_v7 = vmul.f32 %v2001_v42, %v5349_v19 }
 0xb84   :  { %v6380_v57 = vsub.f32 %v6329_v31, %v2013_v7 }
 0xb86   :  { %v2029_v46 = vmul.f32 %v6380_v57, %v6380_v57 }
 0xb88   :  { %v2047_v58 = vsel %vm186_vm2, %v2029_v46, 0.0 }
 0xb89   :  { %2048 = vadd.xlane.f32.xlu1 %v2047_v58  ;;  %v2004_v62 = vpop.xlane.xlu0 %2003 }
 0xb8a   :  { %v2014_v41 = vmul.f32 %v2004_v62, %v5349_v19 }
 0xb8c   :  { %v6387_v32 = vsub.f32 %v6334_v5, %v2014_v41 }
 0xb8e   :  { %v2030_v52 = vmul.f32 %v6387_v32, %v6387_v32 }
 0xb90   :  { %v2050_v37 = vsel %vm186_vm2, %v2030_v52, 0.0 }
 0xb91   :  { %2051 = vadd.xlane.f32.xlu0 %v2050_v37 }
 0xb9f   :  { %v2034_v17 = vpop.xlane.xlu2 %2033 }
 0xba0   :  { %v2056_v11 = vmul.f32 %v2034_v17, %v5349_v19 }
 0xba2   :  { %v2064_v0 = vadd.f32 1e-05, %v2056_v11 }
 0xba4   :  { %4952 = vrsqrt.f32 %v2064_v0  ;;  %vm2078_vm7 = vweird.f32 %v2064_v0 }
 0xba7   :  { %v2037_v2 = vpop.xlane.xlu1 %2036  ;;  %v2007_v3 = vpop.xlane.xlu2 %2006 }
 0xba8   :  { %v2057_v48 = vmul.f32 %v2037_v2, %v5349_v19  ;;  %v2015_v14 = vmul.f32 %v2007_v3, %v5349_v19 }
 0xbaa   :  { %v4953_v56 = vpop.eup %4952  ;;  %v2065_v49 = vadd.f32 1e-05, %v2057_v48  ;;  %v6396_v30 = vsub.f32 %v6347_v16, %v2015_v14 }
 0xbab   :  { %v2073_v13 = vmul.f32 %v4953_v56, %v2064_v0  ;;  %vm2079_vm6 = vweird.f32 %v4953_v56 }
 0xbac   :  { %4954 = vrsqrt.f32 %v2065_v49  ;;  %v2031_v44 = vmul.f32 %v6396_v30, %v6396_v30  ;;  %vm2080_vm8 = vmor %vm2078_vm7, %vm2079_vm6  ;;  %vm2088_vm10 = vweird.f32 %v2065_v49 }
 0xbad   :  { %v2074_v63 = vmul.f32 %v4953_v56, %v2073_v13 }
 0xbae   :  { %v2053_v50 = vsel %vm186_vm2, %v2031_v44, 0.0 }
 0xbaf   :  { %v2075_v47 = vmul.f32 0.5, %v2074_v63  ;;  %2054 = vadd.xlane.f32.xlu2 %v2053_v50 }
 0xbb1   :  { %v2076_v15 = vsub.f32 1.5, %v2075_v47 }
 0xbb2   :  { %v4955_v23 = vpop.eup %4954 }
 0xbb3   :  { %v2077_v43 = vmul.f32 %v4953_v56, %v2076_v15  ;;  %v2083_v29 = vmul.f32 %v4955_v23, %v2065_v49  ;;  %vm2089_vm9 = vweird.f32 %v4955_v23 }
 0xbb4   :  { %vm2090_vm11 = vmor %vm2088_vm10, %vm2089_vm9 }
 0xbb5   :  { %v2084_v18 = vmul.f32 %v4955_v23, %v2083_v29  ;;  %v2081_v55 = vsel %vm2080_vm8, %v4953_v56, %v2077_v43 }
 0xbb6   :  { %v2152_v21 = vmul.f32 %v2081_v55, %v6340_v8 }
 0xbb7   :  { %v2085_v33 = vmul.f32 0.5, %v2084_v18 }
 0xbb8   :  { %v2162_v42 = vmul.f32 %v6404_v6, %v2152_v21 }
 0xbb9   :  { %v2086_v10 = vsub.f32 1.5, %v2085_v33 }
 0xbba   :  { %v2172_v58 = vadd.f32 %v6410_v38, %v2162_v42 }
 0xbbb   :  { %v2087_v26 = vmul.f32 %v4955_v23, %v2086_v10 }
 0xbbd   :  { %v2091_v40 = vsel %vm2090_vm11, %v4955_v23, %v2087_v26 }
 0xbbe   :  { %v2153_v7 = vmul.f32 %v2091_v40, %v6350_v53 }
 0xbc0   :  { %v2163_v46 = vmul.f32 %v6404_v6, %v2153_v7 }
 0xbc2   :  { %v2173_v62 = vadd.f32 %v6410_v38, %v2163_v46 }
 0xbc4   :  { %v2180_v8 = vpack.c.bf16 %v2173_v62, %v2172_v58 }
 0xbc6   :  { %4566 = vmatmul.msk.bf16.vlgmr.msrb.gmra.mxu1 %vm186_vm2, %v2180_v8 }
 0xbd5   :  { %v2040_v41 = vpop.xlane.xlu1 %2039 }
 0xbd6   :  { %v2058_v52 = vmul.f32 %v2040_v41, %v5349_v19 }
 0xbd8   :  { %v2066_v37 = vadd.f32 1e-05, %v2058_v52 }
 0xbda   :  { %4956 = vrsqrt.f32 %v2066_v37  ;;  %vm2098_vm13 = vweird.f32 %v2066_v37 }
 0xbdd   :  { %v2043_v61 = vpop.xlane.xlu0 %2042 }
 0xbde   :  { %v2059_v17 = vmul.f32 %v2043_v61, %v5349_v19 }
 0xbe0   :  { %v4957_v11 = vpop.eup %4956  ;;  %v2067_v0 = vadd.f32 1e-05, %v2059_v17 }
 0xbe1   :  { %v2093_v53 = vmul.f32 %v4957_v11, %v2066_v37  ;;  %vm2099_vm12 = vweird.f32 %v4957_v11 }
 0xbe2   :  { %4958 = vrsqrt.f32 %v2067_v0  ;;  %vm2100_vm14 = vmor %vm2098_vm13, %vm2099_vm12  ;;  %vm2108_vm0 = vweird.f32 %v2067_v0 }
 0xbe3   :  { %v2094_v35 = vmul.f32 %v4957_v11, %v2093_v53 }
 0xbe5   :  { %v2095_v2 = vmul.f32 0.5, %v2094_v35 }
 0xbe7   :  { %v2096_v3 = vsub.f32 1.5, %v2095_v2 }
 0xbe8   :  { %v4959_v48 = vpop.eup %4958 }
 0xbe9   :  { %v2097_v14 = vmul.f32 %v4957_v11, %v2096_v3  ;;  %v2103_v56 = vmul.f32 %v4959_v48, %v2067_v0  ;;  %vm2109_vm15 = vweird.f32 %v4959_v48 }
 0xbea   :  { %vm2110_vm3 = vmor %vm2108_vm0, %vm2109_vm15 }
 0xbeb   :  { %v2104_v49 = vmul.f32 %v4959_v48, %v2103_v56  ;;  %v2101_v13 = vsel %vm2100_vm14, %v4957_v11, %v2097_v14 }
 0xbec   :  { %v2154_v50 = vmul.f32 %v2101_v13, %v6359_v54 }
 0xbed   :  { %v2105_v44 = vmul.f32 0.5, %v2104_v49 }
 0xbee   :  { %v2164_v29 = vmul.f32 %v6404_v6, %v2154_v50 }
 0xbef   :  { %v2106_v63 = vsub.f32 1.5, %v2105_v44 }
 0xbf0   :  { %v2174_v10 = vadd.f32 %v6410_v38, %v2164_v29 }
 0xbf1   :  { %v2107_v47 = vmul.f32 %v4959_v48, %v2106_v63 }
 0xbf3   :  { %v2111_v15 = vsel %vm2110_vm3, %v4959_v48, %v2107_v47 }
 0xbf4   :  { %v2155_v23 = vmul.f32 %v2111_v15, %v6366_v25  ;;  %v2046_v43 = vpop.xlane.xlu2 %2045 }
 0xbf5   :  { %v2060_v18 = vmul.f32 %v2046_v43, %v5349_v19 }
 0xbf6   :  { %v2165_v55 = vmul.f32 %v6404_v6, %v2155_v23 }
 0xbf7   :  { %v2068_v33 = vadd.f32 1e-05, %v2060_v18 }
 0xbf8   :  { %v2175_v21 = vadd.f32 %v6410_v38, %v2165_v55 }
 0xbf9   :  { %4960 = vrsqrt.f32 %v2068_v33  ;;  %vm2118_vm5 = vweird.f32 %v2068_v33 }
 0xbfa   :  { %v2181_v54 = vpack.c.bf16 %v2175_v21, %v2174_v10 }
 0xbfc   :  { %v2049_v26 = vpop.xlane.xlu1 %2048  ;;  %4567 = vmatmul.msk.bf16.gmra.mxu1 %vm186_vm2, %v2181_v54 }
 0xbfd   :  { %v2061_v40 = vmul.f32 %v2049_v26, %v5349_v19 }
 0xbff   :  { %v4961_v25 = vpop.eup %4960  ;;  %v2069_v42 = vadd.f32 1e-05, %v2061_v40 }
 0xc00   :  { %v2113_v7 = vmul.f32 %v4961_v25, %v2068_v33  ;;  %vm2119_vm4 = vweird.f32 %v4961_v25 }
 0xc01   :  { %4962 = vrsqrt.f32 %v2069_v42  ;;  %vm2120_vm6 = vmor %vm2118_vm5, %vm2119_vm4  ;;  %vm2128_vm8 = vweird.f32 %v2069_v42 }
 0xc02   :  { %v2114_v46 = vmul.f32 %v4961_v25, %v2113_v7 }
 0xc04   :  { %v2115_v58 = vmul.f32 0.5, %v2114_v46  ;;  %v2052_v61 = vpop.xlane.xlu0 %2051 }
 0xc05   :  { %v2062_v0 = vmul.f32 %v2052_v61, %v5349_v19  ;;  %v4701_v61 = vld [vmem:[#allocation2 + $0x5c] sm:$0xff] }
 0xc06   :  { %v2116_v62 = vsub.f32 1.5, %v2115_v58 }
 0xc07   :  { %v4963_v8 = vpop.eup %4962  ;;  %v2070_v3 = vadd.f32 1e-05, %v2062_v0 }
 0xc08   :  { %v2117_v41 = vmul.f32 %v4961_v25, %v2116_v62  ;;  %v2123_v52 = vmul.f32 %v4963_v8, %v2069_v42  ;;  %vm2129_vm7 = vweird.f32 %v4963_v8  ;;  %v4703_v62 = vld [vmem:[#allocation2 + $0x6c] sm:$0xff] }
 0xc09   :  { %vm2130_vm9 = vmor %vm2128_vm8, %vm2129_vm7  ;;  %4964 = vrsqrt.f32 %v2070_v3  ;;  %vm2138_vm11 = vweird.f32 %v2070_v3  ;;  %2367 = vmatpush.bf16.msrb.mxu2 %v4703_v62 }
 0xc0a   :  { %v2124_v37 = vmul.f32 %v4963_v8, %v2123_v52  ;;  %v2121_v17 = vsel %vm2120_vm6, %v4961_v25, %v2117_v41 }
 0xc0b   :  { %v2156_v35 = vmul.f32 %v2121_v17, %v6373_v1  ;;  %v4700_v17 = vld [vmem:[#allocation2 + $0x54] sm:$0xff] }
 0xc0c   :  { %v2125_v11 = vmul.f32 0.5, %v2124_v37  ;;  %v4702_v37 = vld [vmem:[#allocation2 + $0x64] sm:$0xff] }
 0xc0d   :  { %v2166_v56 = vmul.f32 %v6404_v6, %v2156_v35  ;;  %2368 = vmatpush.bf16.msrb.mxu2 %v4702_v37 }
 0xc0e   :  { %v2126_v53 = vsub.f32 1.5, %v2125_v11 }
 0xc0f   :  { %v2176_v13 = vadd.f32 %v6410_v38, %v2166_v56  ;;  %v4965_v50 = vpop.eup %4964 }
 0xc10   :  { %v2127_v2 = vmul.f32 %v4963_v8, %v2126_v53  ;;  %v2133_v1 = vmul.f32 %v4965_v50, %v2070_v3  ;;  %vm2139_vm10 = vweird.f32 %v4965_v50 }
 0xc11   :  { %vm2140_vm12 = vmor %vm2138_vm11, %vm2139_vm10  ;;  %2369 = vmatpush.bf16.msrb.mxu2 %v4701_v61 }
 0xc12   :  { %v2131_v48 = vsel %vm2130_vm9, %v4963_v8, %v2127_v2  ;;  %v2134_v47 = vmul.f32 %v4965_v50, %v2133_v1 }
 0xc13   :  { %v2157_v14 = vmul.f32 %v2131_v48, %v6380_v57 }
 0xc14   :  { %v2135_v57 = vmul.f32 0.5, %v2134_v47 }
 0xc15   :  { %v2167_v49 = vmul.f32 %v6404_v6, %v2157_v14  ;;  %2370 = vmatpush.bf16.msrb.mxu2 %v4700_v17 }
 0xc16   :  { %v2136_v29 = vsub.f32 1.5, %v2135_v57 }
 0xc17   :  { %v2177_v44 = vadd.f32 %v6410_v38, %v2167_v49 }
 0xc18   :  { %v2137_v55 = vmul.f32 %v4965_v50, %v2136_v29 }
 0xc19   :  { %v2182_v63 = vpack.c.bf16 %v2177_v44, %v2176_v13 }
 0xc1a   :  { %v2141_v21 = vsel %vm2140_vm12, %v4965_v50, %v2137_v55 }
 0xc1b   :  { %4568 = vmatmul.msk.bf16.gmra.mxu1 %vm186_vm2, %v2182_v63  ;;  %v2158_v40 = vmul.f32 %v2141_v21, %v6387_v32  ;;  %v6447_v32 = vld [vmem:[%s7726_s2 + $0xb] ss:$0 sm:$0xff] }
 0xc1d   :  { %v2168_v46 = vmul.f32 %v6404_v6, %v2158_v40 }
 0xc1f   :  { %v2178_v8 = vadd.f32 %v6410_v38, %v2168_v46 }
 0xc22   :  { %v2055_v15 = vpop.xlane.xlu2 %2054 }
 0xc23   :  { %v2063_v23 = vmul.f32 %v2055_v15, %v5349_v19 }
 0xc25   :  { %v2071_v43 = vadd.f32 1e-05, %v2063_v23 }
 0xc27   :  { %4966 = vrsqrt.f32 %v2071_v43  ;;  %vm2148_vm14 = vweird.f32 %v2071_v43 }
 0xc2d   :  { %v4967_v18 = vpop.eup %4966 }
 0xc2e   :  { %v2143_v33 = vmul.f32 %v4967_v18, %v2071_v43  ;;  %vm2149_vm13 = vweird.f32 %v4967_v18 }
 0xc2f   :  { %vm2150_vm15 = vmor %vm2148_vm14, %vm2149_vm13 }
 0xc30   :  { %v2144_v10 = vmul.f32 %v4967_v18, %v2143_v33 }
 0xc32   :  { %v2145_v54 = vmul.f32 0.5, %v2144_v10 }
 0xc34   :  { %v2146_v26 = vsub.f32 1.5, %v2145_v54 }
 0xc36   :  { %v2147_v25 = vmul.f32 %v4967_v18, %v2146_v26 }
 0xc38   :  { %v2151_v42 = vsel %vm2150_vm15, %v4967_v18, %v2147_v25 }
 0xc39   :  { %v2159_v7 = vmul.f32 %v2151_v42, %v6396_v30 }
 0xc3b   :  { %v2169_v58 = vmul.f32 %v6404_v6, %v2159_v7 }
 0xc3d   :  { %v2179_v41 = vadd.f32 %v6410_v38, %v2169_v58 }
 0xc3f   :  { %v2183_v52 = vpack.c.bf16 %v2179_v41, %v2178_v8 }
 0xc41   :  { %4569 = vmatmul.msk.bf16.gmra.mxu1 %vm186_vm2, %v2183_v52 }
 0xc43   :  { %v2223_v30 = vpop.f32.mrf.mxu1 }
 0xc44   :  { %v2224_v6 = vadd.f32 %v6447_v32, %v2223_v30 }
 0xc46   :  { %v2243_v11 = vmul.f32 %v2224_v6, %v2224_v6 }
 0xc48   :  { %v2251_v0 = vmul.f32 %v2243_v11, %v2224_v6 }
 0xc4a   :  { %v2259_v38 = vmul.f32 0.044715, %v2251_v0 }
 0xc4b   :  { %v2225_v53 = vpop.f32.mrf.mxu1 }
 0xc4c   :  { %v2267_v35 = vadd.f32 %v2259_v38, %v2224_v6  ;;  %v2226_v2 = vadd.f32 %v6447_v32, %v2225_v53 }
 0xc4e   :  { %v2275_v3 = vmul.f32 0.7978846, %v2267_v35  ;;  %v2244_v48 = vmul.f32 %v2226_v2, %v2226_v2 }
 0xc50   :  { %v2252_v14 = vmul.f32 %v2244_v48, %v2226_v2  ;;  %4968 = vtanh.f32 %v2275_v3 }
 0xc52   :  { %v2260_v56 = vmul.f32 0.044715, %v2252_v14 }
 0xc54   :  { %v2268_v49 = vadd.f32 %v2260_v56, %v2226_v2 }
 0xc56   :  { %v2276_v13 = vmul.f32 0.7978846, %v2268_v49  ;;  %v4969_v44 = vpop.eup %4968 }
 0xc57   :  { %v2291_v63 = vadd.f32 1.0, %v4969_v44 }
 0xc58   :  { %4970 = vtanh.f32 %v2276_v13 }
 0xc59   :  { %v2299_v1 = vmul.f32 0.5, %v2291_v63 }
 0xc5b   :  { %v2307_v23 = vmul.f32 %v2299_v1, %v2224_v6 }
 0xc5e   :  { %v4971_v50 = vpop.eup %4970 }
 0xc5f   :  { %v2292_v47 = vadd.f32 1.0, %v4971_v50 }
 0xc61   :  { %v2300_v15 = vmul.f32 0.5, %v2292_v47 }
 0xc63   :  { %v2308_v43 = vmul.f32 %v2300_v15, %v2226_v2 }
 0xc65   :  { %v2315_v57 = vpack.c.bf16 %v2308_v43, %v2307_v23 }
 0xc67   :  { %4586 = vmatmul.msk.bf16.vlgmr.msrb.gmra.mxu2 %vm1025_vm1, %v2315_v57 }
 0xc79   :  { %v2228_v29 = vpop.f32.mrf.mxu1 }
 0xc7a   :  { %v2229_v18 = vadd.f32 %v6447_v32, %v2228_v29 }
 0xc7c   :  { %v2245_v55 = vmul.f32 %v2229_v18, %v2229_v18 }
 0xc7e   :  { %v2253_v33 = vmul.f32 %v2245_v55, %v2229_v18 }
 0xc80   :  { %v2261_v10 = vmul.f32 0.044715, %v2253_v33 }
 0xc81   :  { %v2230_v21 = vpop.f32.mrf.mxu1 }
 0xc82   :  { %v2269_v54 = vadd.f32 %v2261_v10, %v2229_v18  ;;  %v2231_v26 = vadd.f32 %v6447_v32, %v2230_v21 }
 0xc84   :  { %v2277_v40 = vmul.f32 0.7978846, %v2269_v54  ;;  %v2246_v25 = vmul.f32 %v2231_v26, %v2231_v26 }
 0xc86   :  { %v2254_v42 = vmul.f32 %v2246_v25, %v2231_v26  ;;  %4972 = vtanh.f32 %v2277_v40 }
 0xc88   :  { %v2262_v7 = vmul.f32 0.044715, %v2254_v42 }
 0xc8a   :  { %v2270_v46 = vadd.f32 %v2262_v7, %v2231_v26 }
 0xc8c   :  { %v2278_v58 = vmul.f32 0.7978846, %v2270_v46  ;;  %v4973_v62 = vpop.eup %4972 }
 0xc8d   :  { %v2293_v8 = vadd.f32 1.0, %v4973_v62 }
 0xc8e   :  { %4974 = vtanh.f32 %v2278_v58 }
 0xc8f   :  { %v2301_v52 = vmul.f32 0.5, %v2293_v8 }
 0xc91   :  { %v2309_v6 = vmul.f32 %v2301_v52, %v2229_v18 }
 0xc94   :  { %v4975_v41 = vpop.eup %4974 }
 0xc95   :  { %v2294_v37 = vadd.f32 1.0, %v4975_v41 }
 0xc97   :  { %v2302_v30 = vmul.f32 0.5, %v2294_v37 }
 0xc98   :  { %v2233_v61 = vpop.f32.mrf.mxu1 }
 0xc99   :  { %v2234_v17 = vadd.f32 %v6447_v32, %v2233_v61  ;;  %v2310_v11 = vmul.f32 %v2302_v30, %v2231_v26 }
 0xc9b   :  { %v2247_v0 = vmul.f32 %v2234_v17, %v2234_v17  ;;  %v2316_v38 = vpack.c.bf16 %v2310_v11, %v2309_v6 }
 0xc9d   :  { %v2255_v53 = vmul.f32 %v2247_v0, %v2234_v17  ;;  %4587 = vmatmul.msk.bf16.gmra.mxu2 %vm1025_vm1, %v2316_v38 }
 0xc9f   :  { %v2263_v35 = vmul.f32 0.044715, %v2255_v53 }
 0xca0   :  { %v2235_v2 = vpop.f32.mrf.mxu1 }
 0xca1   :  { %v2271_v3 = vadd.f32 %v2263_v35, %v2234_v17  ;;  %v2236_v48 = vadd.f32 %v6447_v32, %v2235_v2 }
 0xca3   :  { %v2279_v14 = vmul.f32 0.7978846, %v2271_v3  ;;  %v2248_v56 = vmul.f32 %v2236_v48, %v2236_v48 }
 0xca5   :  { %v2256_v49 = vmul.f32 %v2248_v56, %v2236_v48  ;;  %4976 = vtanh.f32 %v2279_v14 }
 0xca7   :  { %v2264_v13 = vmul.f32 0.044715, %v2256_v49 }
 0xca9   :  { %v2272_v44 = vadd.f32 %v2264_v13, %v2236_v48 }
 0xcab   :  { %v2280_v63 = vmul.f32 0.7978846, %v2272_v44  ;;  %v4977_v50 = vpop.eup %4976 }
 0xcac   :  { %v2295_v1 = vadd.f32 1.0, %v4977_v50 }
 0xcad   :  { %4978 = vtanh.f32 %v2280_v63 }
 0xcae   :  { %v2303_v15 = vmul.f32 0.5, %v2295_v1 }
 0xcb0   :  { %v2311_v57 = vmul.f32 %v2303_v15, %v2234_v17 }
 0xcb3   :  { %v4979_v47 = vpop.eup %4978 }
 0xcb4   :  { %v2296_v23 = vadd.f32 1.0, %v4979_v47 }
 0xcb6   :  { %v2304_v43 = vmul.f32 0.5, %v2296_v23 }
 0xcb8   :  { %v2312_v29 = vmul.f32 %v2304_v43, %v2236_v48 }
 0xcba   :  { %v2317_v18 = vpack.c.bf16 %v2312_v29, %v2311_v57 }
 0xcbc   :  { %4588 = vmatmul.msk.bf16.gmra.mxu2 %vm1025_vm1, %v2317_v18 }
 0xcbe   :  { %v2238_v55 = vpop.f32.mrf.mxu1 }
 0xcbf   :  { %v2239_v33 = vadd.f32 %v6447_v32, %v2238_v55 }
 0xcc1   :  { %v2249_v10 = vmul.f32 %v2239_v33, %v2239_v33 }
 0xcc3   :  { %v2257_v21 = vmul.f32 %v2249_v10, %v2239_v33 }
 0xcc5   :  { %v2265_v54 = vmul.f32 0.044715, %v2257_v21 }
 0xcc6   :  { %v2240_v26 = vpop.f32.mrf.mxu1 }
 0xcc7   :  { %v2273_v40 = vadd.f32 %v2265_v54, %v2239_v33  ;;  %v2241_v25 = vadd.f32 %v6447_v32, %v2240_v26  ;;  %v4746_v32 = vld [vmem:[%s7726_s2 + $0xc] ss:$0 sm:$0xff] }
 0xcc9   :  { %v2281_v42 = vmul.f32 0.7978846, %v2273_v40  ;;  %v2250_v7 = vmul.f32 %v2241_v25, %v2241_v25 }
 0xccb   :  { %v2258_v46 = vmul.f32 %v2250_v7, %v2241_v25  ;;  %4980 = vtanh.f32 %v2281_v42 }
 0xccd   :  { %v2266_v58 = vmul.f32 0.044715, %v2258_v46 }
 0xccf   :  { %v2274_v62 = vadd.f32 %v2266_v58, %v2241_v25 }
 0xcd1   :  { %v2282_v8 = vmul.f32 0.7978846, %v2274_v62  ;;  %v4981_v41 = vpop.eup %4980 }
 0xcd2   :  { %v2297_v52 = vadd.f32 1.0, %v4981_v41 }
 0xcd3   :  { %4982 = vtanh.f32 %v2282_v8 }
 0xcd4   :  { %v2305_v30 = vmul.f32 0.5, %v2297_v52 }
 0xcd6   :  { %v2313_v17 = vmul.f32 %v2305_v30, %v2239_v33 }
 0xcd9   :  { %v4983_v37 = vpop.eup %4982 }
 0xcda   :  { %v2298_v61 = vadd.f32 1.0, %v4983_v37 }
 0xcdc   :  { %v2306_v6 = vmul.f32 0.5, %v2298_v61 }
 0xcde   :  { %v2314_v11 = vmul.f32 %v2306_v6, %v2241_v25 }
 0xce0   :  { %v2318_v0 = vpack.c.bf16 %v2314_v11, %v2313_v17 }
 0xce2   :  { %4589 = vmatmul.msk.bf16.gmra.mxu2 %vm1025_vm1, %v2318_v0 }
 0xcea   :  { %v2372_v38 = vpop.f32.mrf.mxu2 }
 0xceb   :  { %v2392_v53 = vadd.f32 %v2372_v38, %v6304_v22 }
 0xced   :  { %v6466_v35 = vadd.f32 %v4746_v32, %v2392_v53 }
 0xcef   :  { %7742 = vst [vmem:[#allocation6_spill] sm:$0xff] %v6466_v35  ;;  %v2410_v2 = vsel %vm186_vm2, %v6466_v35, 0.0 }
 0xcf0   :  { %2411 = vadd.xlane.f32.xlu1 %v2410_v2 }
 0xcf2   :  { %v2374_v3 = vpop.f32.mrf.mxu2 }
 0xcf3   :  { %v2393_v48 = vadd.f32 %v2374_v3, %v6309_v51 }
 0xcf5   :  { %v6471_v14 = vadd.f32 %v4746_v32, %v2393_v48 }
 0xcf7   :  { %7743 = vst [vmem:[#allocation7_spill] sm:$0xff] %v6471_v14  ;;  %v2413_v56 = vsel %vm186_vm2, %v6471_v14, 0.0 }
 0xcf8   :  { %2414 = vadd.xlane.f32.xlu0 %v2413_v56 }
 0xd20   :  { %v2377_v49 = vpop.f32.mrf.mxu2 }
 0xd21   :  { %v2394_v13 = vadd.f32 %v2377_v49, %v6314_v24 }
 0xd23   :  { %v6476_v44 = vadd.f32 %v4746_v32, %v2394_v13 }
 0xd25   :  { %7744 = vst [vmem:[#allocation8_spill] sm:$0xff] %v6476_v44  ;;  %v2416_v22 = vsel %vm186_vm2, %v6476_v44, 0.0 }
 0xd26   :  { %2417 = vadd.xlane.f32.xlu2 %v2416_v22 }
 0xd28   :  { %v2379_v63 = vpop.f32.mrf.mxu2 }
 0xd29   :  { %v2395_v50 = vadd.f32 %v2379_v63, %v6319_v45 }
 0xd2b   :  { %v6481_v1 = vadd.f32 %v4746_v32, %v2395_v50 }
 0xd2d   :  { %7745 = vst [vmem:[#allocation9_spill] sm:$0xff] %v6481_v1  ;;  %v2419_v51 = vsel %vm186_vm2, %v6481_v1, 0.0 }
 0xd2e   :  { %2420 = vadd.xlane.f32.xlu1 %v2419_v51 }
 0xd3f   :  { %v2382_v47 = vpop.f32.mrf.mxu2 }
 0xd40   :  { %v2396_v15 = vadd.f32 %v2382_v47, %v6324_v27 }
 0xd42   :  { %v6486_v23 = vadd.f32 %v4746_v32, %v2396_v15 }
 0xd44   :  { %7746 = vst [vmem:[#allocation10_spill] sm:$0xff] %v6486_v23  ;;  %v2422_v24 = vsel %vm186_vm2, %v6486_v23, 0.0 }
 0xd45   :  { %2423 = vadd.xlane.f32.xlu0 %v2422_v24 }
 0xd47   :  { %v2384_v43 = vpop.f32.mrf.mxu2 }
 0xd48   :  { %v2397_v57 = vadd.f32 %v2384_v43, %v6329_v31  ;;  %v4705_v43 = vld [vmem:[#allocation2 + $0x7c] sm:$0xff] }
 0xd49   :  { %2646 = vmatpush.bf16.msrb.mxu3 %v4705_v43 }
 0xd4a   :  { %v6491_v29 = vadd.f32 %v4746_v32, %v2397_v57 }
 0xd4c   :  { %7747 = vst [vmem:[#allocation11_spill] sm:$0xff] %v6491_v29  ;;  %v2425_v45 = vsel %vm186_vm2, %v6491_v29, 0.0 }
 0xd4d   :  { %2426 = vadd.xlane.f32.xlu2 %v2425_v45  ;;  %v4704_v45 = vld [vmem:[#allocation2 + $0x74] sm:$0xff] }
 0xd4e   :  { %2647 = vmatpush.bf16.msrb.mxu3 %v4704_v45 }
 0xd63   :  { %v2412_v18 = vpop.xlane.xlu1 %2411 }
 0xd64   :  { %v2434_v55 = vmul.f32 %v2412_v18, %v5349_v19 }
 0xd65   :  { %v2387_v33 = vpop.f32.mrf.mxu2 }
 0xd66   :  { %v6497_v27 = vsub.f32 %v6466_v35, %v2434_v55  ;;  %v2398_v10 = vadd.f32 %v2387_v33, %v6334_v5 }
 0xd68   :  { %v6500_v21 = vadd.f32 %v4746_v32, %v2398_v10  ;;  %v2450_v31 = vmul.f32 %v6497_v27, %v6497_v27 }
 0xd6a   :  { %7748 = vst [vmem:[#allocation12_spill] sm:$0xff] %v6500_v21  ;;  %v2458_v54 = vsel %vm186_vm2, %v2450_v31, 0.0  ;;  %v2428_v26 = vsel %vm186_vm2, %v6500_v21, 0.0 }
 0xd6b   :  { %2459 = vadd.xlane.f32.xlu1 %v2458_v54  ;;  %2429 = vadd.xlane.f32.xlu2 %v2428_v26  ;;  %v2415_v40 = vpop.xlane.xlu0 %2414 }
 0xd6c   :  { %v2435_v25 = vmul.f32 %v2415_v40, %v5349_v19 }
 0xd6d   :  { %v2389_v42 = vpop.f32.mrf.mxu2 }
 0xd6e   :  { %v6509_v7 = vsub.f32 %v6471_v14, %v2435_v25  ;;  %v2399_v5 = vadd.f32 %v2389_v42, %v6347_v16 }
 0xd70   :  { %v6512_v46 = vadd.f32 %v4746_v32, %v2399_v5  ;;  %v2451_v58 = vmul.f32 %v6509_v7, %v6509_v7 }
 0xd72   :  { %7749 = vst [vmem:[#allocation13_spill] sm:$0xff] %v6512_v46  ;;  %v2431_v62 = vsel %vm186_vm2, %v6512_v46, 0.0  ;;  %v2461_v8 = vsel %vm186_vm2, %v2451_v58, 0.0 }
 0xd73   :  { %2432 = vadd.xlane.f32.xlu1 %v2431_v62  ;;  %2462 = vadd.xlane.f32.xlu0 %v2461_v8 }
 0xd99   :  { %v2418_v41 = vpop.xlane.xlu2 %2417 }
 0xd9a   :  { %v2436_v52 = vmul.f32 %v2418_v41, %v5349_v19 }
 0xd9c   :  { %v6521_v37 = vsub.f32 %v6476_v44, %v2436_v52 }
 0xd9e   :  { %v2452_v16 = vmul.f32 %v6521_v37, %v6521_v37 }
 0xda0   :  { %v2464_v30 = vsel %vm186_vm2, %v2452_v16, 0.0 }
 0xda1   :  { %v2421_v61 = vpop.xlane.xlu1 %2420  ;;  %2465 = vadd.xlane.f32.xlu0 %v2464_v30 }
 0xda2   :  { %v2437_v6 = vmul.f32 %v2421_v61, %v5349_v19 }
 0xda4   :  { %v6528_v17 = vsub.f32 %v6481_v1, %v2437_v6 }
 0xda6   :  { %v2453_v11 = vmul.f32 %v6528_v17, %v6528_v17 }
 0xda8   :  { %v2467_v0 = vsel %vm186_vm2, %v2453_v11, 0.0 }
 0xda9   :  { %2468 = vadd.xlane.f32.xlu2 %v2467_v0  ;;  %v6566_v0 = vld [vmem:[%s7726_s2 + $0xd] ss:$0 sm:$0xff] }
 0xdb8   :  { %v2424_v32 = vpop.xlane.xlu0 %2423 }
 0xdb9   :  { %v2438_v38 = vmul.f32 %v2424_v32, %v5349_v19 }
 0xdbb   :  { %v6535_v53 = vsub.f32 %v6486_v23, %v2438_v38 }
 0xdbd   :  { %v2454_v2 = vmul.f32 %v6535_v53, %v6535_v53 }
 0xdbf   :  { %v2470_v3 = vsel %vm186_vm2, %v2454_v2, 0.0 }
 0xdc0   :  { %v2427_v48 = vpop.xlane.xlu2 %2426  ;;  %2471 = vadd.xlane.f32.xlu1 %v2470_v3  ;;  %v6572_v3 = vld [vmem:[%s7726_s2 + $0xe] ss:$0 sm:$0xff] }
 0xdc1   :  { %v2439_v56 = vmul.f32 %v2427_v48, %v5349_v19 }
 0xdc3   :  { %v6542_v49 = vsub.f32 %v6491_v29, %v2439_v56 }
 0xdc5   :  { %v2455_v13 = vmul.f32 %v6542_v49, %v6542_v49 }
 0xdc7   :  { %v2473_v22 = vsel %vm186_vm2, %v2455_v13, 0.0 }
 0xdc8   :  { %2474 = vadd.xlane.f32.xlu0 %v2473_v22 }
 0xdde   :  { %v2460_v63 = vpop.xlane.xlu1 %2459  ;;  %v2430_v50 = vpop.xlane.xlu2 %2429 }
 0xddf   :  { %v2482_v51 = vmul.f32 %v2460_v63, %v5349_v19  ;;  %v2440_v47 = vmul.f32 %v2430_v50, %v5349_v19 }
 0xde1   :  { %v2490_v15 = vadd.f32 1e-05, %v2482_v51  ;;  %v6550_v24 = vsub.f32 %v6500_v21, %v2440_v47 }
 0xde3   :  { %4984 = vrsqrt.f32 %v2490_v15  ;;  %v2456_v57 = vmul.f32 %v6550_v24, %v6550_v24  ;;  %vm2504_vm3 = vweird.f32 %v2490_v15 }
 0xde5   :  { %v2476_v18 = vsel %vm186_vm2, %v2456_v57, 0.0 }
 0xde6   :  { %2477 = vadd.xlane.f32.xlu2 %v2476_v18  ;;  %v2433_v55 = vpop.xlane.xlu1 %2432  ;;  %v2463_v33 = vpop.xlane.xlu0 %2462 }
 0xde7   :  { %v2441_v10 = vmul.f32 %v2433_v55, %v5349_v19  ;;  %v2483_v31 = vmul.f32 %v2463_v33, %v5349_v19 }
 0xde9   :  { %v4985_v54 = vpop.eup %4984  ;;  %v6558_v26 = vsub.f32 %v6512_v46, %v2441_v10  ;;  %v2491_v40 = vadd.f32 1e-05, %v2483_v31 }
 0xdea   :  { %v2499_v25 = vmul.f32 %v4985_v54, %v2490_v15  ;;  %vm2505_vm0 = vweird.f32 %v4985_v54 }
 0xdeb   :  { %4986 = vrsqrt.f32 %v2491_v40  ;;  %v2457_v42 = vmul.f32 %v6558_v26, %v6558_v26  ;;  %vm2506_vm4 = vmor %vm2504_vm3, %vm2505_vm0  ;;  %vm2514_vm6 = vweird.f32 %v2491_v40 }
 0xdec   :  { %v2500_v5 = vmul.f32 %v4985_v54, %v2499_v25 }
 0xded   :  { %v2479_v58 = vsel %vm186_vm2, %v2457_v42, 0.0 }
 0xdee   :  { %v2501_v62 = vmul.f32 0.5, %v2500_v5  ;;  %2480 = vadd.xlane.f32.xlu1 %v2479_v58 }
 0xdf0   :  { %v2502_v8 = vsub.f32 1.5, %v2501_v62 }
 0xdf1   :  { %v4987_v41 = vpop.eup %4986 }
 0xdf2   :  { %v2503_v52 = vmul.f32 %v4985_v54, %v2502_v8  ;;  %v2509_v16 = vmul.f32 %v4987_v41, %v2491_v40  ;;  %vm2515_vm5 = vweird.f32 %v4987_v41 }
 0xdf3   :  { %vm2516_vm7 = vmor %vm2514_vm6, %vm2515_vm5 }
 0xdf4   :  { %v2510_v30 = vmul.f32 %v4987_v41, %v2509_v16  ;;  %v2507_v61 = vsel %vm2506_vm4, %v4985_v54, %v2503_v52 }
 0xdf5   :  { %v2578_v32 = vmul.f32 %v2507_v61, %v6497_v27 }
 0xdf6   :  { %v2511_v6 = vmul.f32 0.5, %v2510_v30 }
 0xdf7   :  { %v2588_v48 = vmul.f32 %v6566_v0, %v2578_v32 }
 0xdf8   :  { %v2512_v11 = vsub.f32 1.5, %v2511_v6 }
 0xdf9   :  { %v2598_v22 = vadd.f32 %v6572_v3, %v2588_v48 }
 0xdfa   :  { %v2513_v38 = vmul.f32 %v4987_v41, %v2512_v11 }
 0xdfc   :  { %v2517_v2 = vsel %vm2516_vm7, %v4987_v41, %v2513_v38 }
 0xdfd   :  { %v2579_v56 = vmul.f32 %v2517_v2, %v6509_v7 }
 0xdff   :  { %v2589_v13 = vmul.f32 %v6566_v0, %v2579_v56 }
 0xe01   :  { %v2599_v63 = vadd.f32 %v6572_v3, %v2589_v13 }
 0xe03   :  { %v2606_v27 = vpack.c.bf16 %v2599_v63, %v2598_v22 }
 0xe05   :  { %4598 = vmatmul.msk.bf16.vlgmr.msrb.gmra.mxu3 %vm186_vm2, %v2606_v27 }
 0xe14   :  { %v2466_v50 = vpop.xlane.xlu0 %2465 }
 0xe15   :  { %v2484_v51 = vmul.f32 %v2466_v50, %v5349_v19 }
 0xe17   :  { %v2492_v47 = vadd.f32 1e-05, %v2484_v51 }
 0xe19   :  { %4988 = vrsqrt.f32 %v2492_v47  ;;  %vm2524_vm9 = vweird.f32 %v2492_v47 }
 0xe1c   :  { %v2469_v15 = vpop.xlane.xlu2 %2468 }
 0xe1d   :  { %v2485_v43 = vmul.f32 %v2469_v15, %v5349_v19 }
 0xe1f   :  { %v4989_v57 = vpop.eup %4988  ;;  %v2493_v45 = vadd.f32 1e-05, %v2485_v43 }
 0xe20   :  { %v2519_v7 = vmul.f32 %v4989_v57, %v2492_v47  ;;  %vm2525_vm8 = vweird.f32 %v4989_v57 }
 0xe21   :  { %4990 = vrsqrt.f32 %v2493_v45  ;;  %vm2526_vm10 = vmor %vm2524_vm9, %vm2525_vm8  ;;  %vm2534_vm12 = vweird.f32 %v2493_v45 }
 0xe22   :  { %v2520_v18 = vmul.f32 %v4989_v57, %v2519_v7 }
 0xe24   :  { %v2521_v55 = vmul.f32 0.5, %v2520_v18 }
 0xe26   :  { %v2522_v33 = vsub.f32 1.5, %v2521_v55 }
 0xe27   :  { %v4991_v10 = vpop.eup %4990 }
 0xe28   :  { %v2523_v31 = vmul.f32 %v4989_v57, %v2522_v33  ;;  %v2529_v54 = vmul.f32 %v4991_v10, %v2493_v45  ;;  %vm2535_vm11 = vweird.f32 %v4991_v10 }
 0xe29   :  { %vm2536_vm13 = vmor %vm2534_vm12, %vm2535_vm11 }
 0xe2a   :  { %v2530_v40 = vmul.f32 %v4991_v10, %v2529_v54  ;;  %v2527_v25 = vsel %vm2526_vm10, %v4989_v57, %v2523_v31 }
 0xe2b   :  { %v2580_v58 = vmul.f32 %v2527_v25, %v6521_v37 }
 0xe2c   :  { %v2531_v42 = vmul.f32 0.5, %v2530_v40 }
 0xe2d   :  { %v2590_v16 = vmul.f32 %v6566_v0, %v2580_v58 }
 0xe2e   :  { %v2532_v5 = vsub.f32 1.5, %v2531_v42 }
 0xe2f   :  { %v2600_v11 = vadd.f32 %v6572_v3, %v2590_v16 }
 0xe30   :  { %v2533_v62 = vmul.f32 %v4991_v10, %v2532_v5 }
 0xe32   :  { %v2537_v8 = vsel %vm2536_vm13, %v4991_v10, %v2533_v62 }
 0xe33   :  { %v2581_v41 = vmul.f32 %v2537_v8, %v6528_v17  ;;  %v2472_v52 = vpop.xlane.xlu1 %2471 }
 0xe34   :  { %v2486_v30 = vmul.f32 %v2472_v52, %v5349_v19 }
 0xe35   :  { %v2591_v61 = vmul.f32 %v6566_v0, %v2581_v41 }
 0xe36   :  { %v2494_v6 = vadd.f32 1e-05, %v2486_v30 }
 0xe37   :  { %v2601_v32 = vadd.f32 %v6572_v3, %v2591_v61 }
 0xe38   :  { %4992 = vrsqrt.f32 %v2494_v6  ;;  %vm2544_vm15 = vweird.f32 %v2494_v6 }
 0xe39   :  { %v2607_v37 = vpack.c.bf16 %v2601_v32, %v2600_v11 }
 0xe3b   :  { %4599 = vmatmul.msk.bf16.gmra.mxu3 %vm186_vm2, %v2607_v37  ;;  %v2475_v38 = vpop.xlane.xlu0 %2474 }
 0xe3c   :  { %v2487_v2 = vmul.f32 %v2475_v38, %v5349_v19 }
 0xe3e   :  { %v4993_v17 = vpop.eup %4992  ;;  %v2495_v48 = vadd.f32 1e-05, %v2487_v2 }
 0xe3f   :  { %v2539_v56 = vmul.f32 %v4993_v17, %v2494_v6  ;;  %vm2545_vm14 = vweird.f32 %v4993_v17 }
 0xe40   :  { %4994 = vrsqrt.f32 %v2495_v48  ;;  %vm2546_vm0 = vmor %vm2544_vm15, %vm2545_vm14  ;;  %vm2554_vm4 = vweird.f32 %v2495_v48 }
 0xe41   :  { %v2540_v13 = vmul.f32 %v4993_v17, %v2539_v56 }
 0xe43   :  { %v2541_v22 = vmul.f32 0.5, %v2540_v13 }
 0xe45   :  { %v2542_v63 = vsub.f32 1.5, %v2541_v22 }
 0xe46   :  { %v4995_v27 = vpop.eup %4994 }
 0xe47   :  { %v2543_v50 = vmul.f32 %v4993_v17, %v2542_v63  ;;  %v2549_v51 = vmul.f32 %v4995_v27, %v2495_v48  ;;  %vm2555_vm3 = vweird.f32 %v4995_v27 }
 0xe48   :  { %vm2556_vm5 = vmor %vm2554_vm4, %vm2555_vm3 }
 0xe49   :  { %v2550_v47 = vmul.f32 %v4995_v27, %v2549_v51  ;;  %v2547_v15 = vsel %vm2546_vm0, %v4993_v17, %v2543_v50 }
 0xe4a   :  { %v2582_v45 = vmul.f32 %v2547_v15, %v6535_v53 }
 0xe4b   :  { %v2551_v43 = vmul.f32 0.5, %v2550_v47 }
 0xe4c   :  { %v2592_v33 = vmul.f32 %v6566_v0, %v2582_v45 }
 0xe4d   :  { %v2552_v57 = vsub.f32 1.5, %v2551_v43 }
 0xe4e   :  { %v2602_v31 = vadd.f32 %v6572_v3, %v2592_v33 }
 0xe4f   :  { %v2553_v7 = vmul.f32 %v4995_v27, %v2552_v57 }
 0xe51   :  { %v2557_v18 = vsel %vm2556_vm5, %v4995_v27, %v2553_v7 }
 0xe52   :  { %v2583_v55 = vmul.f32 %v2557_v18, %v6542_v49 }
 0xe54   :  { %v2593_v10 = vmul.f32 %v6566_v0, %v2583_v55 }
 0xe56   :  { %v2603_v54 = vadd.f32 %v6572_v3, %v2593_v10 }
 0xe58   :  { %v2608_v40 = vpack.c.bf16 %v2603_v54, %v2602_v31 }
 0xe59   :  { %v2478_v25 = vpop.xlane.xlu2 %2477 }
 0xe5a   :  { %v2488_v42 = vmul.f32 %v2478_v25, %v5349_v19  ;;  %4600 = vmatmul.msk.bf16.gmra.mxu3 %vm186_vm2, %v2608_v40 }
 0xe5c   :  { %v2496_v53 = vadd.f32 1e-05, %v2488_v42 }
 0xe5e   :  { %4996 = vrsqrt.f32 %v2496_v53  ;;  %vm2564_vm7 = vweird.f32 %v2496_v53 }
 0xe61   :  { %v2481_v5 = vpop.xlane.xlu1 %2480 }
 0xe62   :  { %v2489_v58 = vmul.f32 %v2481_v5, %v5349_v19 }
 0xe64   :  { %v4997_v49 = vpop.eup %4996  ;;  %v2497_v62 = vadd.f32 1e-05, %v2489_v58 }
 0xe65   :  { %v2559_v8 = vmul.f32 %v4997_v49, %v2496_v53  ;;  %vm2565_vm6 = vweird.f32 %v4997_v49 }
 0xe66   :  { %4998 = vrsqrt.f32 %v2497_v62  ;;  %vm2566_vm8 = vmor %vm2564_vm7, %vm2565_vm6  ;;  %vm2574_vm10 = vweird.f32 %v2497_v62 }
 0xe67   :  { %v2560_v41 = vmul.f32 %v4997_v49, %v2559_v8 }
 0xe69   :  { %v2561_v52 = vmul.f32 0.5, %v2560_v41 }
 0xe6b   :  { %v2562_v16 = vsub.f32 1.5, %v2561_v52 }
 0xe6c   :  { %v4999_v30 = vpop.eup %4998 }
 0xe6d   :  { %v2563_v61 = vmul.f32 %v4997_v49, %v2562_v16  ;;  %v2569_v6 = vmul.f32 %v4999_v30, %v2497_v62  ;;  %vm2575_vm9 = vweird.f32 %v4999_v30 }
 0xe6e   :  { %vm2576_vm11 = vmor %vm2574_vm10, %vm2575_vm9 }
 0xe6f   :  { %v2570_v11 = vmul.f32 %v4999_v30, %v2569_v6  ;;  %v2567_v32 = vsel %vm2566_vm8, %v4997_v49, %v2563_v61 }
 0xe70   :  { %v2584_v2 = vmul.f32 %v2567_v32, %v6550_v24  ;;  %v6610_v24 = vld [vmem:[%s7726_s2 + $0xf] ss:$0 sm:$0xff] }
 0xe71   :  { %v2571_v37 = vmul.f32 0.5, %v2570_v11 }
 0xe72   :  { %v2594_v13 = vmul.f32 %v6566_v0, %v2584_v2 }
 0xe73   :  { %v2572_v38 = vsub.f32 1.5, %v2571_v37 }
 0xe74   :  { %v2604_v63 = vadd.f32 %v6572_v3, %v2594_v13 }
 0xe75   :  { %v2573_v17 = vmul.f32 %v4999_v30, %v2572_v38 }
 0xe77   :  { %v2577_v48 = vsel %vm2576_vm11, %v4999_v30, %v2573_v17 }
 0xe78   :  { %v2585_v56 = vmul.f32 %v2577_v48, %v6558_v26 }
 0xe7a   :  { %v2595_v22 = vmul.f32 %v6566_v0, %v2585_v56 }
 0xe7c   :  { %v2605_v27 = vadd.f32 %v6572_v3, %v2595_v22 }
 0xe7e   :  { %v2609_v50 = vpack.c.bf16 %v2605_v27, %v2604_v63 }
 0xe80   :  { %4601 = vmatmul.msk.bf16.gmra.mxu3 %vm186_vm2, %v2609_v50 }
 0xe88   :  { %v2649_v51 = vpop.f32.mrf.mxu3 }
 0xe89   :  { %v6613_v47 = vadd.f32 %v6610_v24, %v2649_v51 }
 0xe8b   :  { %v6620_v0 = vmul.f32 %v5693_v20, %v6613_v47  ;;  %v6628_v43 = vmul.f32 %v5708_v28, %v6613_v47  ;;  %v6632_v57 = vmul.f32 %v5940_v9, %v6613_v47  ;;  %v6636_v45 = vmul.f32 %v6017_v4, %v6613_v47 }
 0xe8c   :  { %v6656_v10 = vmul.f32 %v6613_v47, %v6048_v36  ;;  %v3011_v29 = vmul.f32 %v6613_v47, %v5676_v60 }
 0xe8d   :  { %7750 = vst [vmem:[#allocation14_spill] sm:$0xff] %v6636_v45 }
 0xe8e   :  { %7751 = vst [vmem:[#allocation15_spill] sm:$0xff] %v6656_v10 }
 0xe90   :  { %v2651_v26 = vpop.f32.mrf.mxu3 }
 0xe91   :  { %v6616_v15 = vadd.f32 %v6610_v24, %v2651_v26 }
 0xe93   :  { %v6624_v3 = vpack.c.bf16 %v6616_v15, %v6613_v47  ;;  %v6640_v7 = vmul.f32 %v5693_v20, %v6616_v15  ;;  %v6644_v18 = vmul.f32 %v5708_v28, %v6616_v15  ;;  %v6648_v55 = vmul.f32 %v5940_v9, %v6616_v15 }
 0xe94   :  { %v6652_v33 = vmul.f32 %v6017_v4, %v6616_v15  ;;  %v6660_v31 = vmul.f32 %v6616_v15, %v6048_v36 }
 0xe96   :  { %7752 = vst [vmem:[#allocation16_spill] sm:$0xff] %v6660_v31 }
 0xebe   :  { %v2654_v5 = vpop.f32.mrf.mxu3 }
 0xebf   :  { %v2655_v58 = vadd.f32 %v6610_v24, %v2654_v5 }
 0xec1   :  { %v2856_v8 = vmul.f32 %v2655_v58, %v5606_v34  ;;  %v6676_v41 = vmul.f32 %v5693_v20, %v2655_v58  ;;  %v6679_v52 = vmul.f32 %v5708_v28, %v2655_v58  ;;  %v6685_v61 = vmul.f32 %v5940_v9, %v2655_v58 }
 0xec2   :  { %v6688_v6 = vmul.f32 %v6017_v4, %v2655_v58  ;;  %v6703_v17 = vmul.f32 %v2655_v58, %v6048_v36  ;;  %v2675_v21 = vmul.f32 %v2655_v58, %v5653_v12 }
 0xec6   :  { %v2656_v49 = vpop.f32.mrf.mxu3 }
 0xec7   :  { %v2657_v62 = vadd.f32 %v6610_v24, %v2656_v49 }
 0xec9   :  { %v2857_v16 = vmul.f32 %v2657_v62, %v5606_v34  ;;  %v6682_v30 = vpack.c.bf16 %v2657_v62, %v2655_v58  ;;  %v6691_v11 = vmul.f32 %v5693_v20, %v2657_v62  ;;  %v6694_v32 = vmul.f32 %v5708_v28, %v2657_v62 }
 0xeca   :  { %v6697_v37 = vmul.f32 %v5940_v9, %v2657_v62  ;;  %v6700_v38 = vmul.f32 %v6017_v4, %v2657_v62  ;;  %v6706_v48 = vmul.f32 %v2657_v62, %v6048_v36 }
 0xecb   :  { %v2863_v2 = vpack.c.bf16 %v2857_v16, %v2856_v8 }
 0xecd   :  { %2872 = vrot.lane.b32.xlu1 %v2863_v2, %s5240_s23 }
 0xedd   :  { %v2659_v50 = vpop.f32.mrf.mxu3 }
 0xede   :  { %v6720_v51 = vadd.f32 %v6610_v24, %v2659_v50 }
 0xee0   :  { %v3015_v49 = vmul.f32 %v6720_v51, %v5676_v60  ;;  %v2858_v8 = vmul.f32 %v6720_v51, %v5606_v34  ;;  %v6731_v16 = vmul.f32 %v5693_v20, %v6720_v51  ;;  %v6735_v2 = vmul.f32 %v5708_v28, %v6720_v51 }
 0xee1   :  { %v6739_v50 = vmul.f32 %v5940_v9, %v6720_v51  ;;  %v6751_v27 = vmul.f32 %v6017_v4, %v6720_v51  ;;  %v6771_v56 = vmul.f32 %v6720_v51, %v6048_v36 }
 0xee5   :  { %v2661_v26 = vpop.f32.mrf.mxu3 }
 0xee6   :  { %v6723_v5 = vadd.f32 %v6610_v24, %v2661_v26 }
 0xee8   :  { %v3016_v26 = vmul.f32 %v6723_v5, %v5676_v60  ;;  %v2859_v53 = vmul.f32 %v6723_v5, %v5606_v34  ;;  %v6747_v42 = vpack.c.bf16 %v6723_v5, %v6720_v51  ;;  %v6755_v63 = vmul.f32 %v5693_v20, %v6723_v5 }
 0xee9   :  { %v6759_v22 = vmul.f32 %v5708_v28, %v6723_v5  ;;  %v6763_v25 = vmul.f32 %v5940_v9, %v6723_v5  ;;  %v6767_v40 = vmul.f32 %v6017_v4, %v6723_v5  ;;  %v6775_v46 = vmul.f32 %v6723_v5, %v6048_v36 }
 0xeea   :  { %v3021_v54 = vpack.c.bf16 %v3016_v26, %v3015_v49  ;;  %v2864_v13 = vpack.c.bf16 %v2859_v53, %v2858_v8  ;;  %v2676_v8 = vmul.f32 %v2657_v62, %v5653_v12  ;;  %v3012_v26 = vmul.f32 %v6616_v15, %v5676_v60 }
 0xeec   :  { %3031 = vrot.lane.b32.xlu1 %v3021_v54, %s5235_s17  ;;  %2874 = vrot.lane.b32.xlu2 %v2864_v13, %s5240_s23  ;;  %v2682_v19 = vpack.c.bf16 %v2676_v8, %v2675_v21  ;;  %v3019_v23 = vpack.c.bf16 %v3012_v26, %v3011_v29  ;;  %v3014_v54 = vmul.f32 %v2657_v62, %v5676_v60 }
 0xeed   :  { %v3013_v13 = vmul.f32 %v2655_v58, %v5676_v60 }
 0xeef   :  { %v3020_v49 = vpack.c.bf16 %v3014_v54, %v3013_v13 }
 0xef4   :  { %2691 = vrot.lane.b32.xlu1 %v2682_v19, %s5240_s23  ;;  %3027 = vrot.lane.b32.xlu2 %v3019_v23, %s5235_s17 }
 0xefc   :  { %3029 = vrot.lane.b32.xlu1 %v3020_v49, %s5235_s17 }
 0xf03   :  { %v2664_v53 = vpop.f32.mrf.mxu3 }
 0xf04   :  { %v2665_v1 = vadd.f32 %v6610_v24, %v2664_v53 }
 0xf06   :  { %v2860_v21 = vmul.f32 %v2665_v1, %v5606_v34  ;;  %v3017_v29 = vmul.f32 %v2665_v1, %v5676_v60  ;;  %v2679_v19 = vmul.f32 %v2665_v1, %v5653_v12  ;;  %v6806_v23 = vmul.f32 %v5708_v28, %v2665_v1 }
 0xf07   :  { %v6809_v58 = vmul.f32 %v5940_v9, %v2665_v1 }
 0xf0b   :  { %v2666_v44 = vpop.f32.mrf.mxu3 }
 0xf0c   :  { %v2667_v14 = vadd.f32 %v6610_v24, %v2666_v44  ;;  %v6815_v44 = vmul.f32 %v6017_v4, %v2665_v1 }
 0xf0e   :  { %v2861_v62 = vmul.f32 %v2667_v14, %v5606_v34  ;;  %v3018_v49 = vmul.f32 %v2667_v14, %v5676_v60  ;;  %v2680_v53 = vmul.f32 %v2667_v14, %v5653_v12  ;;  %v6817_v24 = vpack.c.bf16 %v2667_v14, %v2665_v1 }
 0xf0f   :  { %v6820_v8 = vmul.f32 %v5708_v28, %v2667_v14  ;;  %v6823_v26 = vmul.f32 %v5940_v9, %v2667_v14  ;;  %v6826_v54 = vmul.f32 %v6017_v4, %v2667_v14  ;;  %v6829_v60 = vmul.f32 %v2665_v1, %v6048_v36 }
 0xf10   :  { %v2865_v13 = vpack.c.bf16 %v2861_v62, %v2860_v21  ;;  %v3022_v35 = vpack.c.bf16 %v3018_v49, %v3017_v29  ;;  %v2684_v10 = vpack.c.bf16 %v2680_v53, %v2679_v19  ;;  %v6838_v9 = vmul.f32 %v2667_v14, %v6048_v36 }
 0xf11   :  { %v3148_v31 = vpack.c.bf16 %v6820_v8, %v6806_v23  ;;  %v2853_v45 = vpack.c.bf16 %v6823_v26, %v6809_v58  ;;  %v3539_v28 = vpack.c.bf16 %v6826_v54, %v6815_v44  ;;  %v2855_v21 = vmul.f32 %v6616_v15, %v5606_v34 }
 0xf12   :  { %2876 = vrot.lane.b32.xlu0 %v2865_v13, %s5240_s23  ;;  %3033 = vrot.lane.b32.xlu1 %v3022_v35, %s5235_s17  ;;  %v3305_v4 = vpack.c.bf16 %v6838_v9, %v6829_v60  ;;  %v3378_v29 = vmul.f32 %v5693_v20, %v2667_v14  ;;  %v2854_v19 = vmul.f32 %v6613_v47, %v5606_v34 }
 0xf13   :  { %2695 = vrot.lane.b32.xlu2 %v2684_v10, %s5240_s23  ;;  %v3377_v36 = vmul.f32 %v5693_v20, %v2665_v1  ;;  %v2678_v35 = vmul.f32 %v6723_v5, %v5653_v12  ;;  %v2677_v10 = vmul.f32 %v6720_v51, %v5653_v12  ;;  %v2674_v34 = vmul.f32 %v6616_v15, %v5653_v12 }
 0xf14   :  { %v2862_v62 = vpack.c.bf16 %v2855_v21, %v2854_v19  ;;  %v2673_v20 = vmul.f32 %v6613_v47, %v5653_v12  ;;  %v7764_v60 = vpack.c.bf16 %v6700_v38, %v6688_v6 }
 0xf15   :  { %v3382_v49 = vpack.c.bf16 %v3378_v29, %v3377_v36  ;;  %v2683_v53 = vpack.c.bf16 %v2678_v35, %v2677_v10 }
 0xf16   :  { %v2681_v14 = vpack.c.bf16 %v2674_v34, %v2673_v20 }
 0xf1a   :  { %2870 = vrot.lane.b32.xlu0 %v2862_v62, %s5240_s23  ;;  %3393 = vrot.lane.b32.xlu1 %v3382_v49, %s5240_s23 }
 0xf22   :  { %2693 = vrot.lane.b32.xlu0 %v2683_v53, %s5240_s23 }
 0xf2a   :  { %2689 = vrot.lane.b32.xlu0 %v2681_v14, %s5240_s23 }
 0xf3f   :  { %v2873_v13 = vpop.permute.xlu1 %2872 }
 0xf40   :  { %v2882_v20 = vsel %vm186_vm2, %v2873_v13, 0 }
 0xf46   :  { %v2875_v1 = vpop.permute.xlu2 %2874 }
 0xf47   :  { %v2885_v47 = vsel %vm186_vm2, %v2875_v1, 0 }
 0xf4e   :  { %v3028_v21 = vpop.permute.xlu2 %3027 }
 0xf5e   :  { %v3032_v29 = vpop.permute.xlu1 %3031 }
 0xf66   :  { %v2692_v51 = vpop.permute.xlu1 %2691 }
 0xf6d   :  { %v2696_v5 = vpop.permute.xlu2 %2695 }
 0xf6e   :  { %v2719_v19 = vsel %vm186_vm2, %v2696_v5, 0  ;;  %v3030_v36 = vpop.permute.xlu1 %3029 }
 0xf6f   :  { %2725 = vmatpush.bf16.xpose.msra.mxu0 %v2719_v19 }
 0xf84   :  { %v2877_v62 = vpop.permute.xlu0 %2876  ;;  %v3034_v49 = vpop.permute.xlu1 %3033 }
 0xf85   :  { %v2888_v15 = vsel %vm186_vm2, %v2877_v62, 0  ;;  %3055 = vmatpush.bf16.msra.mxu2 %v3034_v49 }
 0xf86   :  { %2894 = vmatpush.bf16.xpose.msra.mxu1 %v2888_v15 }
 0xf89   :  { %3056 = vmatpush.bf16.msra.mxu2 %v3032_v29  ;;  %v2713_v29 = vsel %vm186_vm2, %v2692_v51, 0 }
 0xf8c   :  { %v2871_v12 = vpop.permute.xlu0 %2870  ;;  %v3394_v35 = vpop.permute.xlu1 %3393 }
 0xf8d   :  { %3057 = vmatpush.bf16.msra.mxu2 %v3030_v36  ;;  %v3405_v10 = vsel %vm186_vm2, %v3394_v35, 0  ;;  %v2879_v14 = vsel %vm186_vm2, %v2871_v12, 0 }
 0xf8e   :  { %2895 = vmatpush.bf16.xpose.msra.mxu1 %v2885_v47 }
 0xf91   :  { %3058 = vmatpush.bf16.msra.mxu2 %v3028_v21 }
 0xf94   :  { %v2694_v53 = vpop.permute.xlu0 %2693 }
 0xf95   :  { %3411 = vmatpush.bf16.xpose.msrb.mxu2 %v3405_v10  ;;  %v2716_v34 = vsel %vm186_vm2, %v2694_v53, 0 }
 0xf96   :  { %2726 = vmatpush.bf16.xpose.msra.mxu0 %v2716_v34  ;;  %2896 = vmatpush.bf16.xpose.msra.mxu1 %v2882_v20 }
 0xf9c   :  { %v2690_v1 = vpop.permute.xlu0 %2689 }
 0xf9d   :  { %v2710_v5 = vsel %vm186_vm2, %v2690_v1, 0 }
 0xf9e   :  { %2727 = vmatpush.bf16.xpose.msra.mxu0 %v2713_v29  ;;  %2897 = vmatpush.bf16.xpose.msra.mxu1 %v2879_v14 }
 0xfa5   :  { %4606 = vmatmul.msk.bf16.vlgmr.msra.gmra.mxu1 %vm186_vm2, %v6624_v3 }
 0xfa6   :  { %2728 = vmatpush.bf16.xpose.msra.mxu0 %v2710_v5 }
 0xfad   :  { %4602 = vmatmul.msk.bf16.vlgmr.msra.gmra.mxu0 %vm186_vm2, %v6624_v3 }
 0xfb5   :  { %4607 = vmatmul.msk.bf16.gmra.mxu1 %vm186_vm2, %v6682_v30 }
 0xfbd   :  { %4603 = vmatmul.msk.bf16.gmra.mxu0 %vm186_vm2, %v6682_v30 }
 0xfc5   :  { %4608 = vmatmul.msk.bf16.gmra.mxu1 %vm186_vm2, %v6747_v42 }
 0xfcd   :  { %4604 = vmatmul.msk.bf16.gmra.mxu0 %vm186_vm2, %v6747_v42 }
 0xfd5   :  { %4609 = vmatmul.msk.bf16.gmra.mxu1 %vm186_vm2, %v6817_v24 }
 0xfdd   :  { %4605 = vmatmul.msk.bf16.gmra.mxu0 %vm186_vm2, %v6817_v24 }
0x1022   :  { %v2899_v13 = vpop.f32.mrf.mxu1 }
0x1023   :  { %v2900_v21 = vadd.f32 %v2899_v13, %v5792_v59 }
0x1025   :  { %v2919_v19 = vsel %vm1025_vm1, %v2900_v21, -inf }
0x1026   :  { %2920 = vmax.xlane.f32.xlu2 %v2919_v19 }
0x102a   :  { %v2901_v51 = vpop.f32.mrf.mxu1 }
0x102b   :  { %v2902_v36 = vadd.f32 %v2901_v51, %v5792_v59 }
0x102d   :  { %v2922_v62 = vsel %vm1025_vm1, %v2902_v36, -inf }
0x102e   :  { %2923 = vmax.xlane.f32.xlu0 %v2922_v62  ;;  %v7753_v62 = vpack.c.bf16 %v6755_v63, %v6731_v16 }
0x1032   :  { %v2904_v49 = vpop.f32.mrf.mxu1 }
0x1033   :  { %v2905_v15 = vadd.f32 %v2904_v49, %v5792_v59 }
0x1035   :  { %v2925_v12 = vsel %vm1025_vm1, %v2905_v15, -inf }
0x1036   :  { %2926 = vmax.xlane.f32.xlu1 %v2925_v12 }
0x103a   :  { %v2906_v47 = vpop.f32.mrf.mxu1 }
0x103b   :  { %v2907_v35 = vadd.f32 %v2906_v47, %v5792_v59  ;;  %v7754_v47 = vpack.c.bf16 %v6691_v11, %v6676_v41 }
0x103d   :  { %v2928_v10 = vsel %vm1025_vm1, %v2907_v35, -inf }
0x103e   :  { %2929 = vmax.xlane.f32.xlu2 %v2928_v10  ;;  %v7755_v10 = vpack.c.bf16 %v6759_v22, %v6735_v2 }
0x1042   :  { %v2909_v53 = vpop.f32.mrf.mxu1 }
0x1043   :  { %v6897_v34 = vadd.f32 %v2909_v53, %v5804_v39 }
0x1045   :  { %v2931_v20 = vsel %vm1025_vm1, %v6897_v34, -inf }
0x1046   :  { %2932 = vmax.xlane.f32.xlu0 %v2931_v20 }
0x104a   :  { %v2911_v14 = vpop.f32.mrf.mxu1 }
0x104b   :  { %v2912_v29 = vadd.f32 %v2911_v14, %v5804_v39 }
0x104d   :  { %v2934_v1 = vsel %vm1025_vm1, %v2912_v29, -inf }
0x104e   :  { %2935 = vmax.xlane.f32.xlu1 %v2934_v1 }
0x1052   :  { %v2914_v5 = vpop.f32.mrf.mxu1 }
0x1053   :  { %v2915_v13 = vadd.f32 %v2914_v5, %v5804_v39 }
0x1055   :  { %v2937_v19 = vsel %vm1025_vm1, %v2915_v13, -inf }
0x1056   :  { %2938 = vmax.xlane.f32.xlu1 %v2937_v19 }
0x105a   :  { %v2916_v51 = vpop.f32.mrf.mxu1  ;;  %3391 = vrot.lane.b32.xlu0 %v7753_v62, %s5240_s23 }
0x105b   :  { %v2917_v49 = vadd.f32 %v2916_v51, %v5804_v39 }
0x105d   :  { %v2940_v12 = vsel %vm1025_vm1, %v2917_v49, -inf }
0x105e   :  { %2941 = vmax.xlane.f32.xlu1 %v2940_v12 }
0x1077   :  { %3389 = vrot.lane.b32.xlu1 %v7754_v47, %s5240_s23 }
0x107f   :  { %3157 = vrot.lane.b32.xlu1 %v7755_v10, %s5240_s23 }
0x1099   :  { %v2921_v53 = vpop.xlane.xlu2 %2920 }
0x109a   :  { %v2943_v20 = vsub.f32 %v2900_v21, %v2921_v53 }
0x109c   :  { %v2951_v14 = vmul.f32 1.442695, %v2943_v20 }
0x109e   :  { %5000 = vpow2.f32 %v2951_v14 }
0x10a1   :  { %v2924_v63 = vpop.xlane.xlu0 %2923 }
0x10a2   :  { %v2944_v16 = vsub.f32 %v2902_v36, %v2924_v63 }
0x10a4   :  { %v6919_v1 = vpop.eup %5000  ;;  %v2953_v5 = vmul.f32 1.442695, %v2944_v16 }
0x10a5   :  { %v2967_v19 = vsel %vm1025_vm1, %v6919_v1, 0.0 }
0x10a6   :  { %5002 = vpow2.f32 %v2953_v5  ;;  %2968 = vadd.xlane.f32.xlu0 %v2967_v19 }
0x10a9   :  { %v2927_v41 = vpop.xlane.xlu1 %2926 }
0x10aa   :  { %v2945_v11 = vsub.f32 %v2905_v15, %v2927_v41 }
0x10ac   :  { %v6923_v51 = vpop.eup %5002  ;;  %v2955_v22 = vmul.f32 1.442695, %v2945_v11 }
0x10ad   :  { %v2970_v2 = vsel %vm1025_vm1, %v6923_v51, 0.0 }
0x10ae   :  { %5004 = vpow2.f32 %v2955_v22  ;;  %2971 = vadd.xlane.f32.xlu2 %v2970_v2 }
0x10b1   :  { %v2930_v21 = vpop.xlane.xlu2 %2929 }
0x10b2   :  { %v2946_v36 = vsub.f32 %v2907_v35, %v2930_v21 }
0x10b4   :  { %v6927_v62 = vpop.eup %5004  ;;  %v2957_v12 = vmul.f32 1.442695, %v2946_v36 }
0x10b5   :  { %v2973_v47 = vsel %vm1025_vm1, %v6927_v62, 0.0 }
0x10b6   :  { %5006 = vpow2.f32 %v2957_v12  ;;  %2974 = vadd.xlane.f32.xlu1 %v2973_v47  ;;  %v7756_v47 = vpack.c.bf16 %v6694_v32, %v6679_v52 }
0x10b9   :  { %v2933_v14 = vpop.xlane.xlu0 %2932 }
0x10ba   :  { %v2947_v8 = vsub.f32 %v6897_v34, %v2933_v14 }
0x10bc   :  { %v6931_v10 = vpop.eup %5006 }
0x10bd   :  { %v2976_v15 = vsel %vm1025_vm1, %v6931_v10, 0.0 }
0x10be   :  { %2977 = vadd.xlane.f32.xlu0 %v2976_v15 }
0x10c1   :  { %v2936_v53 = vpop.xlane.xlu1 %2935 }
0x10c2   :  { %v2948_v20 = vsub.f32 %v2912_v29, %v2936_v53  ;;  %v2730_v29 = vpop.f32.mrf.mxu0 }
0x10c4   :  { %v2961_v63 = vmul.f32 1.442695, %v2948_v20 }
0x10c6   :  { %5008 = vpow2.f32 %v2961_v63  ;;  %3159 = vrot.lane.b32.xlu2 %v3148_v31, %s5240_s23  ;;  %v7757_v63 = vpack.c.bf16 %v6640_v7, %v6620_v0  ;;  %v6970_v7 = vadd.f32 %v2730_v29, %v5792_v59 }
0x10c9   :  { %v2939_v35 = vpop.xlane.xlu1 %2938 }
0x10ca   :  { %v2949_v16 = vsub.f32 %v2915_v13, %v2939_v35  ;;  %v2732_v23 = vpop.f32.mrf.mxu0  ;;  %v2959_v13 = vmul.f32 1.442695, %v2947_v8 }
0x10cb   :  { %v6967_v0 = vadd.f32 %v2732_v23, %v5792_v59 }
0x10cc   :  { %v6939_v5 = vpop.eup %5008  ;;  %v2963_v19 = vmul.f32 1.442695, %v2949_v16  ;;  %v3392_v41 = vpop.permute.xlu0 %3391 }
0x10cd   :  { %v3402_v11 = vsel %vm186_vm2, %v3392_v41, 0  ;;  %v2982_v22 = vsel %vm1025_vm1, %v6939_v5, 0.0  ;;  %v7758_v41 = vpack.c.bf16 %v6644_v18, %v6628_v43 }
0x10ce   :  { %5010 = vpow2.f32 %v2963_v19  ;;  %2983 = vadd.xlane.f32.xlu1 %v2982_v22  ;;  %3412 = vmatpush.bf16.xpose.msrb.mxu2 %v3402_v11  ;;  %v2753_v11 = vsel %vm1025_vm1, %v6967_v0, -inf  ;;  %v2750_v22 = vsel %vm1025_vm1, %v6970_v7, -inf }
0x10cf   :  { %5012 = vpow2.f32 %v2959_v13 }
0x10d1   :  { %v2942_v21 = vpop.xlane.xlu1 %2941 }
0x10d2   :  { %v2950_v36 = vsub.f32 %v2917_v49, %v2942_v21  ;;  %v2735_v12 = vpop.f32.mrf.mxu0 }
0x10d4   :  { %v6944_v2 = vpop.eup %5010  ;;  %v2965_v15 = vmul.f32 1.442695, %v2950_v36 }
0x10d5   :  { %v2985_v31 = vsel %vm1025_vm1, %v6944_v2, 0.0  ;;  %v6958_v34 = vpop.eup %5012 }
0x10d6   :  { %2986 = vadd.xlane.f32.xlu0 %v2985_v31  ;;  %5014 = vpow2.f32 %v2965_v15  ;;  %v2979_v49 = vsel %vm1025_vm1, %v6958_v34, 0.0 }
0x10da   :  { %v2737_v14 = vpop.f32.mrf.mxu0 }
0x10db   :  { %v6984_v29 = vadd.f32 %v2737_v14, %v5792_v59 }
0x10dc   :  { %v6962_v52 = vpop.eup %5014 }
0x10dd   :  { %v2988_v32 = vsel %vm1025_vm1, %v6962_v52, 0.0  ;;  %v2759_v43 = vsel %vm1025_vm1, %v6984_v29, -inf }
0x10e2   :  { %v2740_v35 = vpop.f32.mrf.mxu0 }
0x10e3   :  { %v6981_v31 = vadd.f32 %v2740_v35, %v5804_v39 }
0x10e5   :  { %v2762_v23 = vsel %vm1025_vm1, %v6981_v31, -inf }
0x10e7   :  { %3155 = vrot.lane.b32.xlu1 %v7756_v47, %s5240_s23 }
0x10e9   :  { %v3390_v53 = vpop.permute.xlu1 %3389 }
0x10ea   :  { %v3399_v20 = vsel %vm186_vm2, %v3390_v53, 0  ;;  %3387 = vrot.lane.b32.xlu0 %v7757_v63, %s5240_s23  ;;  %v2742_v16 = vpop.f32.mrf.mxu0 }
0x10eb   :  { %3413 = vmatpush.bf16.xpose.msrb.mxu2 %v3399_v20 }
0x10ef   :  { %2980 = vadd.xlane.f32.xlu2 %v2979_v49 }
0x10f1   :  { %v3158_v53 = vpop.permute.xlu1 %3157 }
0x10f2   :  { %v2745_v19 = vpop.f32.mrf.mxu0 }
0x10f3   :  { %v6994_v21 = vadd.f32 %v2745_v19, %v5804_v39 }
0x10f5   :  { %v2768_v15 = vsel %vm1025_vm1, %v6994_v21, -inf }
0x10f7   :  { %2989 = vadd.xlane.f32.xlu2 %v2988_v32 }
0x10fa   :  { %v2747_v8 = vpop.f32.mrf.mxu0 }
0x10fb   :  { %v6991_v18 = vadd.f32 %v2747_v8, %v5804_v39 }
0x10fd   :  { %v2771_v36 = vsel %vm1025_vm1, %v6991_v18, -inf }
0x110f   :  { %3153 = vrot.lane.b32.xlu2 %v7758_v41, %s5240_s23 }
0x1111   :  { %2754 = vmax.xlane.f32.xlu1 %v2753_v11 }
0x1114   :  { %2751 = vmax.xlane.f32.xlu0 %v2750_v22  ;;  %v3168_v22 = vsel %vm186_vm2, %v3158_v53, 0 }
0x1119   :  { %2763 = vmax.xlane.f32.xlu1 %v2762_v23  ;;  %v2969_v13 = vpop.xlane.xlu0 %2968  ;;  %v7006_v23 = vadd.f32 %v2735_v12, %v5792_v59 }
0x111a   :  { %5016 = vrcp.f32 %v2969_v13 }
0x111c   :  { %2760 = vmax.xlane.f32.xlu0 %v2759_v43 }
0x1120   :  { %v5017_v20 = vpop.eup %5016 }
0x1121   :  { %v2972_v47 = vpop.xlane.xlu2 %2971  ;;  %2772 = vmax.xlane.f32.xlu1 %v2771_v36  ;;  %v2999_v49 = vmul.f32 %v5017_v20, %v6919_v1  ;;  %v7013_v36 = vadd.f32 %v2742_v16, %v5804_v39 }
0x1122   :  { %5018 = vrcp.f32 %v2972_v47 }
0x1123   :  { %v2765_v12 = vsel %vm1025_vm1, %v7013_v36, -inf }
0x1124   :  { %2769 = vmax.xlane.f32.xlu0 %v2768_v15 }
0x1128   :  { %v5019_v63 = vpop.eup %5018 }
0x1129   :  { %v3000_v14 = vmul.f32 %v5019_v63, %v6923_v51  ;;  %v3160_v32 = vpop.permute.xlu2 %3159  ;;  %v2975_v41 = vpop.xlane.xlu1 %2974  ;;  %v2756_v51 = vsel %vm1025_vm1, %v7006_v23, -inf  ;;  %v7759_v63 = vpack.c.bf16 %v6648_v55, %v6632_v57 }
0x112a   :  { %v3171_v35 = vsel %vm186_vm2, %v3160_v32, 0  ;;  %5020 = vrcp.f32 %v2975_v41 }
0x112b   :  { %v3007_v19 = vpack.c.bf16 %v3000_v14, %v2999_v49  ;;  %3177 = vmatpush.bf16.xpose.msrb.mxu0 %v3171_v35 }
0x112d   :  { %4610 = vmatmul.msk.bf16.vlgmr.msra.gmra.mxu2 %vm1025_vm1, %v3007_v19 }
0x1130   :  { %v5021_v1 = vpop.eup %5020 }
0x1131   :  { %v2978_v11 = vpop.xlane.xlu0 %2977  ;;  %v3001_v43 = vmul.f32 %v5021_v1, %v6927_v62 }
0x1132   :  { %5022 = vrcp.f32 %v2978_v11 }
0x1133   :  { %3178 = vmatpush.bf16.xpose.msrb.mxu0 %v3168_v22 }
0x1138   :  { %v5023_v8 = vpop.eup %5022  ;;  %2757 = vmax.xlane.f32.xlu2 %v2756_v51 }
0x1139   :  { %v3002_v13 = vmul.f32 %v5023_v8, %v6931_v10 }
0x113b   :  { %v3008_v47 = vpack.c.bf16 %v3002_v13, %v3001_v43 }
0x113d   :  { %4611 = vmatmul.msk.bf16.gmra.mxu2 %vm1025_vm1, %v3008_v47  ;;  %v7761_v47 = vpack.c.bf16 %v6697_v37, %v6685_v61 }
0x1140   :  { %2766 = vmax.xlane.f32.xlu2 %v2765_v12 }
0x1141   :  { %v2984_v15 = vpop.xlane.xlu1 %2983 }
0x1142   :  { %5024 = vrcp.f32 %v2984_v15 }
0x1148   :  { %v5025_v14 = vpop.eup %5024 }
0x1149   :  { %v2987_v53 = vpop.xlane.xlu0 %2986 }
0x1158   :  { %3090 = vrot.lane.b32.xlu2 %v2853_v45, %s5235_s17  ;;  %v3004_v45 = vmul.f32 %v5025_v14, %v6939_v5 }
0x1159   :  { %v3156_v62 = vpop.permute.xlu1 %3155 }
0x115a   :  { %v3165_v10 = vsel %vm186_vm2, %v3156_v62, 0 }
0x115b   :  { %3179 = vmatpush.bf16.xpose.msrb.mxu0 %v3165_v10 }
0x115c   :  { %v3388_v16 = vpop.permute.xlu0 %3387 }
0x115d   :  { %v3396_v20 = vsel %vm186_vm2, %v3388_v16, 0 }
0x115e   :  { %3414 = vmatpush.bf16.xpose.msrb.mxu2 %v3396_v20 }
0x1160   :  { %3084 = vrot.lane.b32.xlu2 %v7759_v63, %s5235_s17 }
0x1162   :  { %v2981_v49 = vpop.xlane.xlu2 %2980 }
0x1163   :  { %5026 = vrcp.f32 %v2981_v49 }
0x1169   :  { %v5027_v32 = vpop.eup %5026 }
0x116a   :  { %v3003_v58 = vmul.f32 %v5027_v32, %v6958_v34  ;;  %v2990_v26 = vpop.xlane.xlu2 %2989 }
0x116b   :  { %5028 = vrcp.f32 %v2990_v26 }
0x116c   :  { %v3009_v35 = vpack.c.bf16 %v3004_v45, %v3003_v58  ;;  %5030 = vrcp.f32 %v2987_v53 }
0x116e   :  { %4612 = vmatmul.msk.bf16.gmra.mxu2 %vm1025_vm1, %v3009_v35 }
0x1171   :  { %v5029_v57 = vpop.eup %5028 }
0x1172   :  { %v3154_v19 = vpop.permute.xlu2 %3153  ;;  %v5031_v55 = vpop.eup %5030  ;;  %v3006_v11 = vmul.f32 %v5029_v57, %v6962_v52 }
0x1173   :  { %v3162_v41 = vsel %vm186_vm2, %v3154_v19, 0  ;;  %v3005_v22 = vmul.f32 %v5031_v55, %v6944_v2 }
0x1174   :  { %3180 = vmatpush.bf16.xpose.msrb.mxu0 %v3162_v41 }
0x1175   :  { %v3010_v5 = vpack.c.bf16 %v3006_v11, %v3005_v22 }
0x117b   :  { %4618 = vmatmul.msk.bf16.vlgmr.msrb.gmra.mxu0 %vm186_vm2, %v6624_v3 }
0x117e   :  { %4613 = vmatmul.msk.bf16.gmra.mxu2 %vm1025_vm1, %v3010_v5 }
0x1184   :  { %v2755_v34 = vpop.xlane.xlu1 %2754 }
0x1185   :  { %v2775_v1 = vsub.f32 %v6967_v0, %v2755_v34 }
0x1187   :  { %v2784_v51 = vmul.f32 1.442695, %v2775_v1  ;;  %v2752_v8 = vpop.xlane.xlu0 %2751 }
0x1188   :  { %v2774_v43 = vsub.f32 %v6970_v7, %v2752_v8 }
0x1189   :  { %5032 = vpow2.f32 %v2784_v51 }
0x118a   :  { %v2782_v13 = vmul.f32 1.442695, %v2774_v43 }
0x118b   :  { %4619 = vmatmul.msk.bf16.gmra.mxu0 %vm186_vm2, %v6682_v30 }
0x118c   :  { %5034 = vpow2.f32 %v2782_v13  ;;  %v2764_v20 = vpop.xlane.xlu1 %2763 }
0x118d   :  { %v2778_v26 = vsub.f32 %v6981_v31, %v2764_v20 }
0x118e   :  { %4626 = vmatmul.msk.bf16.vlgmr.msrb.gmra.mxu2 %vm186_vm2, %v6624_v3  ;;  %v7760_v3 = vpack.c.bf16 %v6763_v25, %v6739_v50 }
0x118f   :  { %v7043_v2 = vpop.eup %5032 }
0x1190   :  { %v2801_v52 = vsel %vm1025_vm1, %v7043_v2, 0.0 }
0x1191   :  { %2802 = vadd.xlane.f32.xlu1 %v2801_v52 }
0x1192   :  { %v7047_v0 = vpop.eup %5034 }
0x1193   :  { %v2798_v7 = vsel %vm1025_vm1, %v7047_v0, 0.0 }
0x1194   :  { %2799 = vadd.xlane.f32.xlu0 %v2798_v7  ;;  %v2773_v32 = vpop.xlane.xlu1 %2772 }
0x1195   :  { %v2781_v19 = vsub.f32 %v6991_v18, %v2773_v32 }
0x1197   :  { %v2796_v57 = vmul.f32 1.442695, %v2781_v19 }
0x119b   :  { %4620 = vmatmul.msk.bf16.gmra.mxu0 %vm186_vm2, %v6747_v42 }
0x119e   :  { %4627 = vmatmul.msk.bf16.gmra.mxu2 %vm186_vm2, %v6682_v30  ;;  %v2761_v30 = vpop.xlane.xlu0 %2760 }
0x119f   :  { %v2777_v25 = vsub.f32 %v6984_v29, %v2761_v30 }
0x11a1   :  { %v2788_v61 = vmul.f32 1.442695, %v2777_v25 }
0x11a3   :  { %5036 = vpow2.f32 %v2788_v61 }
0x11a6   :  { %v2770_v34 = vpop.xlane.xlu0 %2769 }
0x11a7   :  { %v2780_v13 = vsub.f32 %v6994_v21, %v2770_v34 }
0x11a8   :  { %3088 = vrot.lane.b32.xlu0 %v7760_v3, %s5235_s17 }
0x11a9   :  { %v7071_v62 = vpop.eup %5036 }
0x11aa   :  { %3086 = vrot.lane.b32.xlu1 %v7761_v47, %s5235_s17  ;;  %v2794_v47 = vmul.f32 1.442695, %v2780_v13 }
0x11ab   :  { %v2758_v12 = vpop.xlane.xlu2 %2757  ;;  %4621 = vmatmul.msk.bf16.gmra.mxu0 %vm186_vm2, %v6817_v24 }
0x11ac   :  { %v2776_v50 = vsub.f32 %v7006_v23, %v2758_v12 }
0x11ae   :  { %4628 = vmatmul.msk.bf16.gmra.mxu2 %vm186_vm2, %v6747_v42  ;;  %v2786_v37 = vmul.f32 1.442695, %v2776_v50  ;;  %v2807_v42 = vsel %vm1025_vm1, %v7071_v62, 0.0 }
0x11b0   :  { %5038 = vpow2.f32 %v2786_v37 }
0x11b3   :  { %v2767_v15 = vpop.xlane.xlu2 %2766 }
0x11b4   :  { %v2779_v63 = vsub.f32 %v7013_v36, %v2767_v15  ;;  %v2790_v36 = vmul.f32 1.442695, %v2778_v26 }
0x11b6   :  { %v7073_v10 = vpop.eup %5038  ;;  %v2792_v14 = vmul.f32 1.442695, %v2779_v63 }
0x11b7   :  { %v2804_v16 = vsel %vm1025_vm1, %v7073_v10, 0.0 }
0x11b8   :  { %5040 = vpow2.f32 %v2792_v14 }
0x11b9   :  { %5042 = vpow2.f32 %v2790_v36 }
0x11ba   :  { %5044 = vpow2.f32 %v2796_v57 }
0x11bb   :  { %v3091_v53 = vpop.permute.xlu2 %3090  ;;  %5046 = vpow2.f32 %v2794_v47 }
0x11bc   :  { %3112 = vmatpush.bf16.msra.mxu3 %v3091_v53 }
0x11be   :  { %4629 = vmatmul.msk.bf16.gmra.mxu2 %vm186_vm2, %v6817_v24  ;;  %v7079_v24 = vpop.f32.mrf.mxu2  ;;  %v7097_v55 = vpop.eup %5040 }
0x11bf   :  { %v2813_v18 = vsel %vm1025_vm1, %v7097_v55, 0.0  ;;  %v7108_v1 = vpop.eup %5042 }
0x11c0   :  { %v7110_v8 = vpop.eup %5044  ;;  %v2810_v7 = vsel %vm1025_vm1, %v7108_v1, 0.0 }
0x11c1   :  { %v2819_v3 = vsel %vm1025_vm1, %v7110_v8, 0.0  ;;  %v7129_v50 = vpop.eup %5046 }
0x11c2   :  { %v2816_v63 = vsel %vm1025_vm1, %v7129_v50, 0.0 }
0x11c3   :  { %v3085_v36 = vpop.permute.xlu2 %3084 }
0x11c6   :  { %v7081_v29 = vpop.f32.mrf.mxu2 }
0x11ce   :  { %v7083_v23 = vpop.f32.mrf.mxu2 }
0x11d2   :  { %2808 = vadd.xlane.f32.xlu0 %v2807_v42 }
0x11d4   :  { %2805 = vadd.xlane.f32.xlu1 %v2804_v16 }
0x11d6   :  { %v7086_v49 = vpop.f32.mrf.mxu2 }
0x11f1   :  { %v7092_v35 = vpop.f32.mrf.mxu2 }
0x11f8   :  { %v3182_v45 = vpop.f32.mrf.mxu0 }
0x11f9   :  { %v7089_v58 = vadd.f32 %v3182_v45, %v5792_v59  ;;  %v7106_v5 = vpop.f32.mrf.mxu2 }
0x11fb   :  { %v3202_v41 = vsel %vm1025_vm1, %v7089_v58, -inf }
0x11fc   :  { %3203 = vmax.xlane.f32.xlu2 %v3202_v41 }
0x1200   :  { %v3184_v11 = vpop.f32.mrf.mxu0 }
0x1201   :  { %v7100_v22 = vadd.f32 %v3184_v11, %v5792_v59  ;;  %v7122_v12 = vpop.f32.mrf.mxu2 }
0x1203   :  { %v3205_v31 = vsel %vm1025_vm1, %v7100_v22, -inf }
0x1204   :  { %3206 = vmax.xlane.f32.xlu0 %v3205_v31  ;;  %2814 = vadd.xlane.f32.xlu2 %v2813_v18  ;;  %v2803_v25 = vpop.xlane.xlu1 %2802 }
0x1207   :  { %v2800_v21 = vpop.xlane.xlu0 %2799 }
0x1208   :  { %v3187_v51 = vpop.f32.mrf.mxu0  ;;  %5048 = vrcp.f32 %v2800_v21 }
0x1209   :  { %v7113_v43 = vadd.f32 %v3187_v51, %v5792_v59  ;;  %v7131_v61 = vpop.f32.mrf.mxu2  ;;  %5050 = vrcp.f32 %v2803_v25 }
0x120b   :  { %v3208_v52 = vsel %vm1025_vm1, %v7113_v43, -inf }
0x120c   :  { %3209 = vmax.xlane.f32.xlu1 %v3208_v52  ;;  %2811 = vadd.xlane.f32.xlu0 %v2810_v7 }
0x120d   :  { %2820 = vadd.xlane.f32.xlu2 %v2819_v3 }
0x120e   :  { %v5049_v14 = vpop.eup %5048 }
0x120f   :  { %v5051_v45 = vpop.eup %5050  ;;  %v2830_v26 = vmul.f32 %v5049_v14, %v7047_v0 }
0x1210   :  { %v3189_v15 = vpop.f32.mrf.mxu0  ;;  %v2831_v57 = vmul.f32 %v5051_v45, %v7043_v2 }
0x1211   :  { %v7125_v53 = vadd.f32 %v3189_v15, %v5792_v59  ;;  %v3416_v11 = vpop.f32.mrf.mxu2 }
0x1212   :  { %v2838_v18 = vpack.c.bf16 %v2831_v57, %v2830_v26  ;;  %v7149_v34 = vadd.f32 %v3416_v11, %v5792_v59 }
0x1213   :  { %v3211_v30 = vsel %vm1025_vm1, %v7125_v53, -inf }
0x1214   :  { %3212 = vmax.xlane.f32.xlu0 %v3211_v30  ;;  %v3436_v13 = vsel %vm1025_vm1, %v7149_v34, -inf }
0x1218   :  { %v3192_v37 = vpop.f32.mrf.mxu0 }
0x1219   :  { %v7134_v42 = vadd.f32 %v3192_v37, %v5804_v39  ;;  %v3418_v52 = vpop.f32.mrf.mxu2 }
0x121a   :  { %v3089_v16 = vpop.permute.xlu0 %3088  ;;  %v7159_v7 = vadd.f32 %v3418_v52, %v5792_v59 }
0x121b   :  { %3113 = vmatpush.bf16.msra.mxu3 %v3089_v16  ;;  %v3214_v20 = vsel %vm1025_vm1, %v7134_v42, -inf  ;;  %v7762_v16 = vpack.c.bf16 %v6767_v40, %v6751_v27  ;;  %v7765_v27 = vpack.c.bf16 %v6706_v48, %v6703_v17 }
0x121c   :  { %3215 = vmax.xlane.f32.xlu1 %v3214_v20  ;;  %2817 = vadd.xlane.f32.xlu0 %v2816_v63  ;;  %v3087_v32 = vpop.permute.xlu1 %3086  ;;  %v3439_v21 = vsel %vm1025_vm1, %v7159_v7, -inf }
0x121f   :  { %3114 = vmatpush.bf16.msra.mxu3 %v3087_v32 }
0x1220   :  { %v3194_v19 = vpop.f32.mrf.mxu0 }
0x1221   :  { %v7142_v41 = vadd.f32 %v3194_v19, %v5804_v39  ;;  %v3421_v40 = vpop.f32.mrf.mxu2 }
0x1223   :  { %3115 = vmatpush.bf16.msra.mxu3 %v3085_v36  ;;  %v3217_v31 = vsel %vm1025_vm1, %v7142_v41, -inf }
0x1224   :  { %3218 = vmax.xlane.f32.xlu0 %v3217_v31 }
0x1226   :  { %4614 = vmatmul.msk.bf16.vlgmr.msra.gmra.mxu3 %vm1025_vm1, %v2838_v18 }
0x1228   :  { %v3197_v0 = vpop.f32.mrf.mxu0 }
0x1229   :  { %v7152_v51 = vadd.f32 %v3197_v0, %v5804_v39  ;;  %v3423_v9 = vpop.f32.mrf.mxu2 }
0x122b   :  { %v3220_v2 = vsel %vm1025_vm1, %v7152_v51, -inf }
0x122c   :  { %3437 = vmax.xlane.f32.xlu0 %v3436_v13  ;;  %3221 = vmax.xlane.f32.xlu2 %v3220_v2  ;;  %v7216_v2 = vadd.f32 %v3423_v9, %v5792_v59 }
0x1230   :  { %v3199_v3 = vpop.f32.mrf.mxu0 }
0x1231   :  { %v7162_v47 = vadd.f32 %v3199_v3, %v5804_v39  ;;  %v3426_v38 = vpop.f32.mrf.mxu2 }
0x1232   :  { %v7211_v11 = vadd.f32 %v3426_v38, %v5804_v39 }
0x1233   :  { %v3223_v15 = vsel %vm1025_vm1, %v7162_v47, -inf }
0x1234   :  { %3224 = vmax.xlane.f32.xlu1 %v3223_v15  ;;  %3440 = vmax.xlane.f32.xlu2 %v3439_v21  ;;  %v3448_v3 = vsel %vm1025_vm1, %v7211_v11, -inf  ;;  %v3445_v21 = vsel %vm1025_vm1, %v7216_v2, -inf }
0x1239   :  { %v3428_v19 = vpop.f32.mrf.mxu2 }
0x1240   :  { %3550 = vrot.lane.b32.xlu0 %v3539_v28, %s5235_s17  ;;  %v7763_v28 = vpack.c.bf16 %v6775_v46, %v6771_v56 }
0x1241   :  { %v3431_v15 = vpop.f32.mrf.mxu2 }
0x1245   :  { %v2809_v30 = vpop.xlane.xlu0 %2808 }
0x1246   :  { %5052 = vrcp.f32 %v2809_v30 }
0x1247   :  { %v2806_v25 = vpop.xlane.xlu1 %2805 }
0x1248   :  { %5054 = vrcp.f32 %v2806_v25  ;;  %v7231_v25 = vadd.f32 %v3428_v19, %v5804_v39 }
0x124c   :  { %v5053_v37 = vpop.eup %5052  ;;  %3316 = vrot.lane.b32.xlu2 %v3305_v4, %s5235_s17 }
0x124d   :  { %3548 = vrot.lane.b32.xlu1 %v7762_v16, %s5235_s17  ;;  %v2833_v63 = vmul.f32 %v5053_v37, %v7071_v62  ;;  %v7196_v62 = vadd.f32 %v3421_v40, %v5792_v59  ;;  %v7766_v59 = vld [vmem:[#allocation14_spill] sm:$0xff] }
0x124e   :  { %v5055_v20 = vpop.eup %5054  ;;  %v7767_v30 = vpack.c.bf16 %v6652_v33, %v7766_v59 }
0x124f   :  { %v2832_v44 = vmul.f32 %v5055_v20, %v7073_v10  ;;  %v3442_v56 = vsel %vm1025_vm1, %v7196_v62, -inf }
0x1251   :  { %v2839_v54 = vpack.c.bf16 %v2833_v63, %v2832_v44  ;;  %v3451_v63 = vsel %vm1025_vm1, %v7231_v25, -inf  ;;  %v3433_v44 = vpop.f32.mrf.mxu2 }
0x1252   :  { %v7240_v40 = vadd.f32 %v3433_v44, %v5804_v39 }
0x1253   :  { %4615 = vmatmul.msk.bf16.gmra.mxu3 %vm1025_vm1, %v2839_v54 }
0x1255   :  { %3314 = vrot.lane.b32.xlu1 %v7763_v28, %s5235_s17 }
0x125d   :  { %3546 = vrot.lane.b32.xlu1 %v7764_v60, %s5235_s17 }
0x1265   :  { %3312 = vrot.lane.b32.xlu1 %v7765_v27, %s5235_s17  ;;  %v3457_v27 = vsel %vm1025_vm1, %v7240_v40, -inf }
0x126f   :  { %v3204_v4 = vpop.xlane.xlu2 %3203 }
0x1270   :  { %v3226_v10 = vsub.f32 %v7089_v58, %v3204_v4 }
0x1272   :  { %v3234_v46 = vmul.f32 1.442695, %v3226_v10 }
0x1274   :  { %5056 = vpow2.f32 %v3234_v46 }
0x1275   :  { %3443 = vmax.xlane.f32.xlu2 %v3442_v56 }
0x1277   :  { %v3207_v6 = vpop.xlane.xlu0 %3206  ;;  %v2815_v48 = vpop.xlane.xlu2 %2814 }
0x1278   :  { %v3227_v14 = vsub.f32 %v7100_v22, %v3207_v6 }
0x127a   :  { %v7202_v32 = vpop.eup %5056  ;;  %v3236_v17 = vmul.f32 1.442695, %v3227_v14 }
0x127b   :  { %v3250_v45 = vsel %vm1025_vm1, %v7202_v32, 0.0 }
0x127c   :  { %5058 = vpow2.f32 %v3236_v17  ;;  %3251 = vadd.xlane.f32.xlu0 %v3250_v45 }
0x127d   :  { %5060 = vrcp.f32 %v2815_v48 }
0x127f   :  { %v2812_v58 = vpop.xlane.xlu0 %2811 }
0x1280   :  { %5062 = vrcp.f32 %v2812_v58  ;;  %v2821_v52 = vpop.xlane.xlu2 %2820 }
0x1281   :  { %5064 = vrcp.f32 %v2821_v52  ;;  %v7769_v52 = vld [vmem:[#allocation15_spill] sm:$0xff] }
0x1282   :  { %v7206_v26 = vpop.eup %5058 }
0x1283   :  { %v3253_v36 = vsel %vm1025_vm1, %v7206_v26, 0.0  ;;  %v5061_v57 = vpop.eup %5060 }
0x1284   :  { %3254 = vadd.xlane.f32.xlu2 %v3253_v36  ;;  %v2835_v31 = vmul.f32 %v5061_v57, %v7097_v55  ;;  %v7224_v55 = vadd.f32 %v3431_v15, %v5804_v39 }
0x1286   :  { %v5063_v22 = vpop.eup %5062  ;;  %v3454_v37 = vsel %vm1025_vm1, %v7224_v55, -inf }
0x1287   :  { %v2834_v18 = vmul.f32 %v5063_v22, %v7108_v1  ;;  %v3213_v0 = vpop.xlane.xlu0 %3212  ;;  %v5065_v16 = vpop.eup %5064 }
0x1288   :  { %v2837_v54 = vmul.f32 %v5065_v16, %v7110_v8  ;;  %v3229_v8 = vsub.f32 %v7125_v53, %v3213_v0 }
0x1289   :  { %v2840_v13 = vpack.c.bf16 %v2835_v31, %v2834_v18 }
0x128a   :  { %v3240_v56 = vmul.f32 1.442695, %v3229_v8 }
0x128b   :  { %4616 = vmatmul.msk.bf16.gmra.mxu3 %vm1025_vm1, %v2840_v13  ;;  %v7768_v13 = vld [vmem:[#allocation16_spill] sm:$0xff] }
0x128c   :  { %3449 = vmax.xlane.f32.xlu2 %v3448_v3  ;;  %v7770_v3 = vpack.c.bf16 %v7768_v13, %v7769_v52 }
0x128f   :  { %3446 = vmax.xlane.f32.xlu1 %v3445_v21  ;;  %v2818_v1 = vpop.xlane.xlu0 %2817 }
0x1290   :  { %5066 = vrcp.f32 %v2818_v1  ;;  %3544 = vrot.lane.b32.xlu0 %v7767_v30, %s5235_s17 }
0x1294   :  { %3455 = vmax.xlane.f32.xlu2 %v3454_v37 }
0x1296   :  { %v5067_v20 = vpop.eup %5066 }
0x1297   :  { %v2836_v28 = vmul.f32 %v5067_v20, %v7129_v50  ;;  %3452 = vmax.xlane.f32.xlu1 %v3451_v63  ;;  %v3219_v33 = vpop.xlane.xlu0 %3218  ;;  %v3210_v50 = vpop.xlane.xlu1 %3209 }
0x1298   :  { %v3228_v39 = vsub.f32 %v7113_v43, %v3210_v50  ;;  %v3231_v37 = vsub.f32 %v7142_v41, %v3219_v33 }
0x1299   :  { %v2841_v60 = vpack.c.bf16 %v2837_v54, %v2836_v28 }
0x129a   :  { %v3238_v45 = vmul.f32 1.442695, %v3228_v39  ;;  %v3244_v16 = vmul.f32 1.442695, %v3231_v37 }
0x129b   :  { %4617 = vmatmul.msk.bf16.gmra.mxu3 %vm1025_vm1, %v2841_v60 }
0x129f   :  { %3458 = vmax.xlane.f32.xlu1 %v3457_v27  ;;  %v3438_v9 = vpop.xlane.xlu0 %3437  ;;  %v3222_v4 = vpop.xlane.xlu2 %3221 }
0x12a0   :  { %v3460_v10 = vsub.f32 %v7149_v34, %v3438_v9  ;;  %v7253_v53 = vpop.xlane.xlu1 %3215  ;;  %v3232_v63 = vsub.f32 %v7152_v51, %v3222_v4 }
0x12a2   :  { %v3468_v46 = vmul.f32 1.442695, %v3460_v10  ;;  %v3246_v28 = vmul.f32 1.442695, %v3232_v63 }
0x12a4   :  { %5068 = vpow2.f32 %v3468_v46 }
0x12a5   :  { %5070 = vpow2.f32 %v3240_v56 }
0x12a7   :  { %v3441_v6 = vpop.xlane.xlu2 %3440 }
0x12a8   :  { %v3461_v38 = vsub.f32 %v7159_v7, %v3441_v6  ;;  %v7265_v22 = vpop.xlane.xlu1 %3224 }
0x12a9   :  { %v3233_v52 = vsub.f32 %v7162_v47, %v7265_v22 }
0x12aa   :  { %v7249_v14 = vpop.eup %5068  ;;  %v3470_v17 = vmul.f32 1.442695, %v3461_v38 }
0x12ab   :  { %v3484_v48 = vsel %vm1025_vm1, %v7249_v14, 0.0  ;;  %v7255_v58 = vpop.eup %5070 }
0x12ac   :  { %5072 = vpow2.f32 %v3470_v17  ;;  %3485 = vadd.xlane.f32.xlu2 %v3484_v48  ;;  %v3259_v19 = vsel %vm1025_vm1, %v7255_v58, 0.0 }
0x12ad   :  { %5074 = vpow2.f32 %v3238_v45  ;;  %v3230_v45 = vsub.f32 %v7134_v42, %v7253_v53 }
0x12af   :  { %v3317_v34 = vpop.permute.xlu2 %3316 }
0x12b0   :  { %3338 = vmatpush.bf16.msrb.mxu1 %v3317_v34 }
0x12b2   :  { %v7257_v43 = vpop.eup %5072  ;;  %v3551_v7 = vpop.permute.xlu0 %3550 }
0x12b3   :  { %3572 = vmatpush.bf16.msrb.mxu3 %v3551_v7  ;;  %v3487_v36 = vsel %vm1025_vm1, %v7257_v43, 0.0  ;;  %v7263_v57 = vpop.eup %5074 }
0x12b4   :  { %3260 = vadd.xlane.f32.xlu2 %v3259_v19  ;;  %3488 = vadd.xlane.f32.xlu1 %v3487_v36  ;;  %v3256_v31 = vsel %vm1025_vm1, %v7263_v57, 0.0 }
0x12ba   :  { %3257 = vadd.xlane.f32.xlu0 %v3256_v31 }
0x12bf   :  { %v3549_v18 = vpop.permute.xlu1 %3548 }
0x12c0   :  { %3573 = vmatpush.bf16.msrb.mxu3 %v3549_v18 }
0x12c7   :  { %v3315_v0 = vpop.permute.xlu1 %3314 }
0x12c8   :  { %3339 = vmatpush.bf16.msrb.mxu1 %v3315_v0 }
0x12cd   :  { %3310 = vrot.lane.b32.xlu1 %v7770_v3, %s5235_s17 }
0x12cf   :  { %v3547_v15 = vpop.permute.xlu1 %3546 }
0x12d0   :  { %3574 = vmatpush.bf16.msrb.mxu3 %v3547_v15  ;;  %v3248_v15 = vmul.f32 1.442695, %v3233_v52 }
0x12d7   :  { %v3313_v21 = vpop.permute.xlu1 %3312 }
0x12d8   :  { %3340 = vmatpush.bf16.msrb.mxu1 %v3313_v21 }
0x12e8   :  { %v3444_v1 = vpop.xlane.xlu2 %3443 }
0x12e9   :  { %v3462_v59 = vsub.f32 %v7196_v62, %v3444_v1 }
0x12eb   :  { %v3472_v30 = vmul.f32 1.442695, %v3462_v59 }
0x12ed   :  { %5076 = vpow2.f32 %v3472_v30 }
0x12ee   :  { %5078 = vpow2.f32 %v3244_v16 }
0x12ef   :  { %v7282_v60 = vpop.xlane.xlu0 %3251  ;;  %5080 = vpow2.f32 %v3246_v28 }
0x12f3   :  { %v7275_v20 = vpop.eup %5076 }
0x12f4   :  { %v3490_v44 = vsel %vm1025_vm1, %v7275_v20, 0.0  ;;  %v7284_v62 = vpop.eup %5078 }
0x12f5   :  { %v3265_v41 = vsel %vm1025_vm1, %v7284_v62, 0.0  ;;  %v7288_v51 = vpop.eup %5080 }
0x12f6   :  { %v3268_v46 = vsel %vm1025_vm1, %v7288_v51, 0.0 }
0x12f7   :  { %3491 = vadd.xlane.f32.xlu1 %v3490_v44  ;;  %v7280_v54 = vpop.xlane.xlu2 %3254 }
0x12ff   :  { %3266 = vadd.xlane.f32.xlu1 %v3265_v41  ;;  %v3450_v33 = vpop.xlane.xlu2 %3449 }
0x1300   :  { %v3464_v10 = vsub.f32 %v7211_v11, %v3450_v33 }
0x1302   :  { %v3545_v27 = vpop.permute.xlu0 %3544  ;;  %v3447_v9 = vpop.xlane.xlu1 %3446  ;;  %v3476_v50 = vmul.f32 1.442695, %v3464_v10 }
0x1303   :  { %v3463_v4 = vsub.f32 %v7216_v2, %v3447_v9  ;;  %3575 = vmatpush.bf16.msrb.mxu3 %v3545_v27 }
0x1305   :  { %v3474_v8 = vmul.f32 1.442695, %v3463_v4 }
0x1307   :  { %5082 = vpow2.f32 %v3474_v8  ;;  %3269 = vadd.xlane.f32.xlu1 %v3268_v46  ;;  %v3456_v19 = vpop.xlane.xlu2 %3455 }
0x1308   :  { %5084 = vpow2.f32 %v3476_v50  ;;  %v3466_v18 = vsub.f32 %v7224_v55, %v3456_v19 }
0x130a   :  { %v3453_v56 = vpop.xlane.xlu1 %3452  ;;  %v3480_v53 = vmul.f32 1.442695, %v3466_v18 }
0x130b   :  { %v3465_v39 = vsub.f32 %v7231_v25, %v3453_v56  ;;  %v3242_v25 = vmul.f32 1.442695, %v3230_v45 }
0x130d   :  { %v7294_v6 = vpop.eup %5082  ;;  %v3478_v2 = vmul.f32 1.442695, %v3465_v39 }
0x130e   :  { %v3493_v38 = vsel %vm1025_vm1, %v7294_v6, 0.0  ;;  %v7299_v11 = vpop.eup %5084 }
0x130f   :  { %3494 = vadd.xlane.f32.xlu2 %v3493_v38  ;;  %5086 = vpow2.f32 %v3478_v2  ;;  %v3496_v7 = vsel %vm1025_vm1, %v7299_v11, 0.0 }
0x1312   :  { %v3459_v17 = vpop.xlane.xlu1 %3458 }
0x1313   :  { %v3467_v48 = vsub.f32 %v7240_v40, %v3459_v17 }
0x1315   :  { %v3482_v34 = vmul.f32 1.442695, %v3467_v48  ;;  %v7306_v36 = vpop.eup %5086 }
0x1316   :  { %v3499_v40 = vsel %vm1025_vm1, %v7306_v36, 0.0 }
0x1317   :  { %5088 = vpow2.f32 %v3482_v34  ;;  %3497 = vadd.xlane.f32.xlu2 %v3496_v7  ;;  %v4707_v34 = vld [vmem:[#allocation2 + $0x8c] sm:$0xff] }
0x1318   :  { %5090 = vpow2.f32 %v3242_v25  ;;  %3643 = vmatpush.bf16.msra.mxu0 %v4707_v34 }
0x1319   :  { %5092 = vpow2.f32 %v3480_v53 }
0x131d   :  { %v7308_v31 = vpop.eup %5088 }
0x131e   :  { %v3505_v42 = vsel %vm1025_vm1, %v7308_v31, 0.0  ;;  %v7315_v0 = vpop.eup %5090 }
0x131f   :  { %3500 = vadd.xlane.f32.xlu2 %v3499_v40  ;;  %3506 = vadd.xlane.f32.xlu0 %v3505_v42  ;;  %v3486_v13 = vpop.xlane.xlu2 %3485  ;;  %v3262_v3 = vsel %vm1025_vm1, %v7315_v0, 0.0  ;;  %v7321_v21 = vpop.eup %5092 }
0x1320   :  { %5094 = vrcp.f32 %v3486_v13  ;;  %v3502_v59 = vsel %vm1025_vm1, %v7321_v21, 0.0 }
0x1326   :  { %v5095_v1 = vpop.eup %5094 }
0x1327   :  { %3263 = vadd.xlane.f32.xlu2 %v3262_v3  ;;  %v3489_v55 = vpop.xlane.xlu1 %3488  ;;  %v3516_v47 = vmul.f32 %v5095_v1, %v7249_v14  ;;  %v3261_v9 = vpop.xlane.xlu2 %3260 }
0x1328   :  { %5096 = vrcp.f32 %v3489_v55 }
0x1329   :  { %5098 = vpow2.f32 %v3248_v15 }
0x132a   :  { %5100 = vrcp.f32 %v7280_v54 }
0x132b   :  { %5102 = vrcp.f32 %v7282_v60 }
0x132d   :  { %v3258_v27 = vpop.xlane.xlu0 %3257 }
0x132e   :  { %v5097_v30 = vpop.eup %5096  ;;  %5104 = vrcp.f32 %v3258_v27 }
0x132f   :  { %3503 = vadd.xlane.f32.xlu2 %v3502_v59  ;;  %v3517_v22 = vmul.f32 %v5097_v30, %v7257_v43  ;;  %v7327_v16 = vpop.eup %5098  ;;  %5106 = vrcp.f32 %v3261_v9 }
0x1330   :  { %v3271_v63 = vsel %vm1025_vm1, %v7327_v16, 0.0  ;;  %v5101_v44 = vpop.eup %5100 }
0x1331   :  { %v3524_v37 = vpack.c.bf16 %v3517_v22, %v3516_v47  ;;  %v5103_v28 = vpop.eup %5102  ;;  %v3283_v41 = vmul.f32 %v5101_v44, %v7206_v26  ;;  %v7340_v26 = vpop.f32.mrf.mxu3 }
0x1332   :  { %v3282_v14 = vmul.f32 %v5103_v28, %v7202_v32  ;;  %v3118_v27 = vadd.f32 %v7340_v26, %v7079_v24 }
0x1333   :  { %4630 = vmatmul.msk.bf16.vlgmr.msrb.gmra.mxu3 %vm1025_vm1, %v3524_v37 }
0x1334   :  { %v3290_v33 = vpack.c.bf16 %v3283_v41, %v3282_v14  ;;  %v5105_v54 = vpop.eup %5104 }
0x1335   :  { %v5107_v60 = vpop.eup %5106  ;;  %v3284_v4 = vmul.f32 %v5105_v54, %v7263_v57 }
0x1336   :  { %v3285_v10 = vmul.f32 %v5107_v60, %v7255_v58 }
0x1337   :  { %3272 = vadd.xlane.f32.xlu2 %v3271_v63 }
0x1338   :  { %v3291_v8 = vpack.c.bf16 %v3285_v10, %v3284_v4 }
0x1339   :  { %v7342_v46 = vpop.f32.mrf.mxu3 }
0x133a   :  { %v3120_v9 = vadd.f32 %v7342_v46, %v7081_v29 }
0x133f   :  { %v3311_v43 = vpop.permute.xlu1 %3310 }
0x1340   :  { %3341 = vmatpush.bf16.msrb.mxu1 %v3311_v43 }
0x1341   :  { %v7344_v39 = vpop.f32.mrf.mxu3 }
0x1343   :  { %4622 = vmatmul.msk.bf16.vlgmr.msrb.gmra.mxu1 %vm1025_vm1, %v3290_v33 }
0x1349   :  { %v7349_v48 = vpop.f32.mrf.mxu3 }
0x134a   :  { %v3125_v24 = vadd.f32 %v7349_v48, %v7086_v49 }
0x1351   :  { %v7351_v18 = vpop.f32.mrf.mxu3 }
0x1352   :  { %v3128_v34 = vadd.f32 %v7351_v18, %v7092_v35 }
0x1353   :  { %4623 = vmatmul.msk.bf16.gmra.mxu1 %vm1025_vm1, %v3291_v8 }
0x1359   :  { %v3129_v1 = vpop.f32.mrf.mxu3 }
0x1361   :  { %v3132_v44 = vpop.f32.mrf.mxu3 }
0x136a   :  { %v3492_v32 = vpop.xlane.xlu1 %3491 }
0x136b   :  { %5108 = vrcp.f32 %v3492_v32 }
0x1371   :  { %v5109_v56 = vpop.eup %5108 }
0x1372   :  { %v3518_v2 = vmul.f32 %v5109_v56, %v7275_v20  ;;  %v3267_v7 = vpop.xlane.xlu1 %3266 }
0x1382   :  { %v3495_v50 = vpop.xlane.xlu2 %3494 }
0x1383   :  { %5110 = vrcp.f32 %v3495_v50 }
0x1389   :  { %v5111_v38 = vpop.eup %5110 }
0x138a   :  { %v3519_v57 = vmul.f32 %v5111_v38, %v7294_v6  ;;  %v3498_v58 = vpop.xlane.xlu2 %3497  ;;  %v3123_v38 = vadd.f32 %v7344_v39, %v7083_v23 }
0x138b   :  { %5112 = vrcp.f32 %v3498_v58 }
0x138c   :  { %v3525_v17 = vpack.c.bf16 %v3519_v57, %v3518_v2 }
0x138e   :  { %4631 = vmatmul.msk.bf16.gmra.mxu3 %vm1025_vm1, %v3525_v17 }
0x1391   :  { %v5113_v25 = vpop.eup %5112 }
0x1392   :  { %v3501_v45 = vpop.xlane.xlu2 %3500  ;;  %v3520_v20 = vmul.f32 %v5113_v25, %v7299_v11  ;;  %v3507_v53 = vpop.xlane.xlu0 %3506  ;;  %v3130_v25 = vadd.f32 %v3129_v1, %v7106_v5 }
0x1393   :  { %5114 = vrcp.f32 %v3501_v45  ;;  %v3270_v11 = vpop.xlane.xlu1 %3269 }
0x1394   :  { %5116 = vrcp.f32 %v3267_v7 }
0x1399   :  { %v5115_v19 = vpop.eup %5114 }
0x139a   :  { %v3521_v6 = vmul.f32 %v5115_v19, %v7306_v36  ;;  %v3264_v40 = vpop.xlane.xlu2 %3263  ;;  %v5117_v13 = vpop.eup %5116 }
0x139b   :  { %5118 = vrcp.f32 %v3264_v40  ;;  %v3287_v3 = vmul.f32 %v5117_v13, %v7284_v62  ;;  %v4706_v62 = vld [vmem:[#allocation2 + $0x84] sm:$0xff] }
0x139c   :  { %v3526_v42 = vpack.c.bf16 %v3521_v6, %v3520_v20  ;;  %5120 = vrcp.f32 %v3507_v53  ;;  %3644 = vmatpush.bf16.msra.mxu0 %v4706_v62  ;;  %v7773_v62 = vld [vmem:[#allocation8_spill] sm:$0xff] }
0x139e   :  { %4632 = vmatmul.msk.bf16.gmra.mxu3 %vm1025_vm1, %v3526_v42  ;;  %v3133_v42 = vadd.f32 %v3132_v44, %v7122_v12 }
0x13a1   :  { %v5119_v52 = vpop.eup %5118 }
0x13a2   :  { %v3286_v55 = vmul.f32 %v5119_v52, %v7315_v0  ;;  %v3504_v15 = vpop.xlane.xlu2 %3503  ;;  %v5121_v36 = vpop.eup %5120 }
0x13a3   :  { %5122 = vrcp.f32 %v3504_v15  ;;  %v3523_v47 = vmul.f32 %v5121_v36, %v7308_v31  ;;  %v3134_v31 = vpop.f32.mrf.mxu3  ;;  %v4750_v15 = vld [vmem:[%s7726_s2 + $0x10] ss:$0 sm:$0xff] }
0x13a4   :  { %v3292_v59 = vpack.c.bf16 %v3287_v3, %v3286_v55  ;;  %5124 = vrcp.f32 %v3270_v11  ;;  %v3135_v53 = vadd.f32 %v3134_v31, %v7131_v61 }
0x13a6   :  { %4624 = vmatmul.msk.bf16.gmra.mxu1 %vm1025_vm1, %v3292_v59  ;;  %v7771_v59 = vld [vmem:[#allocation6_spill] sm:$0xff] }
0x13a9   :  { %v5123_v30 = vpop.eup %5122 }
0x13aa   :  { %v3522_v22 = vmul.f32 %v5123_v30, %v7321_v21  ;;  %v3273_v37 = vpop.xlane.xlu2 %3272  ;;  %v5125_v0 = vpop.eup %5124  ;;  %v7772_v30 = vld [vmem:[#allocation7_spill] sm:$0xff] }
0x13ab   :  { %5126 = vrcp.f32 %v3273_v37  ;;  %v3288_v41 = vmul.f32 %v5125_v0, %v7288_v51 }
0x13ac   :  { %v3527_v63 = vpack.c.bf16 %v3523_v47, %v3522_v22 }
0x13ae   :  { %4633 = vmatmul.msk.bf16.gmra.mxu3 %vm1025_vm1, %v3527_v63 }
0x13b1   :  { %v5127_v28 = vpop.eup %5126 }
0x13b2   :  { %v3289_v14 = vmul.f32 %v5127_v28, %v7327_v16 }
0x13b4   :  { %v3293_v43 = vpack.c.bf16 %v3289_v14, %v3288_v41  ;;  %v7774_v14 = vld [vmem:[#allocation9_spill] sm:$0xff] }
0x13b6   :  { %4625 = vmatmul.msk.bf16.gmra.mxu1 %vm1025_vm1, %v3293_v43  ;;  %v3577_v33 = vpop.f32.mrf.mxu3 }
0x13be   :  { %v3579_v10 = vpop.f32.mrf.mxu3 }
0x13c0   :  { %v3343_v21 = vpop.f32.mrf.mxu1 }
0x13c1   :  { %v3363_v54 = vadd.f32 %v3343_v21, %v3118_v27  ;;  %v7775_v27 = vld [vmem:[#allocation10_spill] sm:$0xff] }
0x13c3   :  { %v3597_v8 = vadd.f32 %v3577_v33, %v3363_v54 }
0x13c8   :  { %v3345_v60 = vpop.f32.mrf.mxu1 }
0x13c9   :  { %v3364_v4 = vadd.f32 %v3345_v60, %v3120_v9 }
0x13cb   :  { %v3598_v51 = vadd.f32 %v3579_v10, %v3364_v4  ;;  %v7776_v10 = vld [vmem:[#allocation11_spill] sm:$0xff] }
0x13cd   :  { %v3605_v32 = vpack.c.bf16 %v3598_v51, %v3597_v8 }
0x13cf   :  { %4642 = vmatmul.msk.bf16.vlgmr.msra.gmra.mxu0 %vm186_vm2, %v3605_v32 }
0x13d0   :  { %v3348_v16 = vpop.f32.mrf.mxu1 }
0x13d1   :  { %v3365_v26 = vadd.f32 %v3348_v16, %v3123_v38 }
0x13d8   :  { %v3350_v56 = vpop.f32.mrf.mxu1 }
0x13d9   :  { %v3366_v29 = vadd.f32 %v3350_v56, %v3125_v24 }
0x1411   :  { %v3582_v50 = vpop.f32.mrf.mxu3 }
0x1412   :  { %v3599_v2 = vadd.f32 %v3582_v50, %v3365_v26  ;;  %v7777_v50 = vld [vmem:[#allocation12_spill] sm:$0xff] }
0x1419   :  { %v3584_v46 = vpop.f32.mrf.mxu3 }
0x141a   :  { %v3600_v57 = vadd.f32 %v3584_v46, %v3366_v29  ;;  %v7778_v29 = vld [vmem:[#allocation5_spill] sm:$0xff] }
0x141c   :  { %v3606_v58 = vpack.c.bf16 %v3600_v57, %v3599_v2 }
0x141e   :  { %4643 = vmatmul.msk.bf16.gmra.mxu0 %vm186_vm2, %v3606_v58 }
0x1421   :  { %v3587_v17 = vpop.f32.mrf.mxu3 }
0x1423   :  { %v3353_v45 = vpop.f32.mrf.mxu1 }
0x1424   :  { %v3367_v23 = vadd.f32 %v3353_v45, %v3128_v34 }
0x1426   :  { %v3601_v49 = vadd.f32 %v3587_v17, %v3367_v23  ;;  %v7779_v17 = vld [vmem:[#allocation13_spill] sm:$0xff] }
0x1429   :  { %v3589_v7 = vpop.f32.mrf.mxu3 }
0x142b   :  { %v3355_v39 = vpop.f32.mrf.mxu1 }
0x142c   :  { %v3368_v19 = vadd.f32 %v3355_v39, %v3130_v25 }
0x142e   :  { %v3602_v48 = vadd.f32 %v3589_v7, %v3368_v19 }
0x1430   :  { %v3607_v20 = vpack.c.bf16 %v3602_v48, %v3601_v49 }
0x1431   :  { %v3592_v6 = vpop.f32.mrf.mxu3 }
0x1432   :  { %4644 = vmatmul.msk.bf16.gmra.mxu0 %vm186_vm2, %v3607_v20 }
0x1433   :  { %v3358_v40 = vpop.f32.mrf.mxu1 }
0x1434   :  { %v3369_v13 = vadd.f32 %v3358_v40, %v3133_v42 }
0x1436   :  { %v3603_v3 = vadd.f32 %v3592_v6, %v3369_v13 }
0x1439   :  { %v3594_v18 = vpop.f32.mrf.mxu3 }
0x143b   :  { %v3360_v52 = vpop.f32.mrf.mxu1 }
0x143c   :  { %v3370_v35 = vadd.f32 %v3360_v52, %v3135_v53 }
0x143e   :  { %v3604_v5 = vadd.f32 %v3594_v18, %v3370_v35 }
0x1440   :  { %v3608_v55 = vpack.c.bf16 %v3604_v5, %v3603_v3 }
0x1442   :  { %4645 = vmatmul.msk.bf16.gmra.mxu0 %vm186_vm2, %v3608_v55 }
0x144c   :  { %v3646_v1 = vpop.f32.mrf.mxu0 }
0x144d   :  { %v3666_v11 = vadd.f32 %v3646_v1, %v7771_v59 }
0x144f   :  { %v7386_v36 = vadd.f32 %v4750_v15, %v3666_v11 }
0x1451   :  { %v3684_v12 = vsel %vm186_vm2, %v7386_v36, 0.0 }
0x1452   :  { %3685 = vadd.xlane.f32.xlu0 %v3684_v12 }
0x1454   :  { %v3648_v61 = vpop.f32.mrf.mxu0 }
0x1455   :  { %v3667_v47 = vadd.f32 %v3648_v61, %v7772_v30 }
0x1457   :  { %v7391_v22 = vadd.f32 %v4750_v15, %v3667_v47 }
0x1459   :  { %v3687_v37 = vsel %vm186_vm2, %v7391_v22, 0.0 }
0x145a   :  { %3688 = vadd.xlane.f32.xlu1 %v3687_v37 }
0x149b   :  { %v3651_v63 = vpop.f32.mrf.mxu0 }
0x149c   :  { %v3668_v44 = vadd.f32 %v3651_v63, %v7773_v62 }
0x149e   :  { %v7396_v0 = vadd.f32 %v4750_v15, %v3668_v44  ;;  %v4709_v44 = vld [vmem:[#allocation2 + $0x9c] sm:$0xff] }
0x149f   :  { %3920 = vmatpush.bf16.msra.mxu1 %v4709_v44 }
0x14a0   :  { %v3690_v28 = vsel %vm186_vm2, %v7396_v0, 0.0 }
0x14a1   :  { %3691 = vadd.xlane.f32.xlu2 %v3690_v28 }
0x14a3   :  { %v3653_v41 = vpop.f32.mrf.mxu0 }
0x14a4   :  { %v3669_v43 = vadd.f32 %v3653_v41, %v7774_v14 }
0x14a6   :  { %v7401_v31 = vadd.f32 %v4750_v15, %v3669_v43 }
0x14a8   :  { %v3693_v33 = vsel %vm186_vm2, %v7401_v31, 0.0 }
0x14a9   :  { %3694 = vadd.xlane.f32.xlu0 %v3693_v33 }
0x14af   :  { %v3656_v21 = vpop.f32.mrf.mxu0 }
0x14b0   :  { %v3670_v9 = vadd.f32 %v3656_v21, %v7775_v27  ;;  %v4708_v21 = vld [vmem:[#allocation2 + $0x94] sm:$0xff] }
0x14b1   :  { %3921 = vmatpush.bf16.msra.mxu1 %v4708_v21 }
0x14b2   :  { %v7406_v54 = vadd.f32 %v4750_v15, %v3670_v9 }
0x14b4   :  { %v3696_v60 = vsel %vm186_vm2, %v7406_v54, 0.0 }
0x14b5   :  { %3697 = vadd.xlane.f32.xlu1 %v3696_v60 }
0x14b7   :  { %v3658_v4 = vpop.f32.mrf.mxu0 }
0x14b8   :  { %v3671_v8 = vadd.f32 %v3658_v4, %v7776_v10 }
0x14ba   :  { %v7411_v51 = vadd.f32 %v4750_v15, %v3671_v8 }
0x14bc   :  { %v3699_v32 = vsel %vm186_vm2, %v7411_v51, 0.0 }
0x14bd   :  { %3700 = vadd.xlane.f32.xlu2 %v3699_v32 }
0x14bf   :  { %v3661_v16 = vpop.f32.mrf.mxu0 }
0x14c0   :  { %v3672_v56 = vadd.f32 %v3661_v16, %v7777_v50 }
0x14c2   :  { %v7416_v38 = vadd.f32 %v4750_v15, %v3672_v56 }
0x14c4   :  { %v3702_v24 = vsel %vm186_vm2, %v7416_v38, 0.0 }
0x14c5   :  { %v3686_v26 = vpop.xlane.xlu0 %3685  ;;  %3703 = vadd.xlane.f32.xlu2 %v3702_v24 }
0x14c6   :  { %v3708_v46 = vmul.f32 %v3686_v26, %v7778_v29 }
0x14c7   :  { %v3663_v57 = vpop.f32.mrf.mxu0 }
0x14c8   :  { %v7422_v2 = vsub.f32 %v7386_v36, %v3708_v46  ;;  %v3673_v45 = vadd.f32 %v3663_v57, %v7779_v17 }
0x14ca   :  { %v3724_v58 = vmul.f32 %v7422_v2, %v7422_v2  ;;  %v7429_v23 = vadd.f32 %v4750_v15, %v3673_v45 }
0x14cc   :  { %v3732_v34 = vsel %vm186_vm2, %v3724_v58, 0.0  ;;  %v3705_v49 = vsel %vm186_vm2, %v7429_v23, 0.0 }
0x14cd   :  { %3733 = vadd.xlane.f32.xlu0 %v3732_v34  ;;  %v3689_v7 = vpop.xlane.xlu1 %3688 }
0x14ce   :  { %v3709_v25 = vmul.f32 %v3689_v7, %v7778_v29 }
0x14d0   :  { %v7432_v39 = vsub.f32 %v7391_v22, %v3709_v25 }
0x14d2   :  { %v3725_v19 = vmul.f32 %v7432_v39, %v7432_v39 }
0x14d4   :  { %v3735_v48 = vsel %vm186_vm2, %v3725_v19, 0.0  ;;  %v7486_v19 = vld [vmem:[%s7726_s2 + $0x11] ss:$0 sm:$0xff] }
0x14d5   :  { %3706 = vadd.xlane.f32.xlu0 %v3705_v49  ;;  %3736 = vadd.xlane.f32.xlu1 %v3735_v48 }
0x1514   :  { %v3692_v20 = vpop.xlane.xlu2 %3691 }
0x1515   :  { %v3710_v6 = vmul.f32 %v3692_v20, %v7778_v29 }
0x1517   :  { %v7441_v40 = vsub.f32 %v7396_v0, %v3710_v6  ;;  %v7492_v6 = vld [vmem:[%s7726_s2 + $0x12] ss:$0 sm:$0xff] }
0x1519   :  { %v3726_v42 = vmul.f32 %v7441_v40, %v7441_v40 }
0x151b   :  { %v3738_v53 = vsel %vm186_vm2, %v3726_v42, 0.0 }
0x151c   :  { %v3695_v13 = vpop.xlane.xlu0 %3694  ;;  %3739 = vadd.xlane.f32.xlu1 %v3738_v53 }
0x151d   :  { %v3711_v52 = vmul.f32 %v3695_v13, %v7778_v29 }
0x151f   :  { %v7448_v35 = vsub.f32 %v7401_v31, %v3711_v52 }
0x1521   :  { %v3727_v18 = vmul.f32 %v7448_v35, %v7448_v35 }
0x1523   :  { %v3741_v3 = vsel %vm186_vm2, %v3727_v18, 0.0 }
0x1524   :  { %3742 = vadd.xlane.f32.xlu2 %v3741_v3 }
0x1528   :  { %v3698_v5 = vpop.xlane.xlu1 %3697 }
0x1529   :  { %v3712_v55 = vmul.f32 %v3698_v5, %v7778_v29 }
0x152b   :  { %v7455_v15 = vsub.f32 %v7406_v54, %v3712_v55 }
0x152d   :  { %v3728_v1 = vmul.f32 %v7455_v15, %v7455_v15 }
0x152f   :  { %v3744_v59 = vsel %vm186_vm2, %v3728_v1, 0.0 }
0x1530   :  { %v3701_v11 = vpop.xlane.xlu2 %3700  ;;  %3745 = vadd.xlane.f32.xlu0 %v3744_v59 }
0x1531   :  { %v3713_v12 = vmul.f32 %v3701_v11, %v7778_v29 }
0x1533   :  { %v7462_v61 = vsub.f32 %v7411_v51, %v3713_v12 }
0x1535   :  { %v3729_v30 = vmul.f32 %v7462_v61, %v7462_v61 }
0x1537   :  { %v3747_v47 = vsel %vm186_vm2, %v3729_v30, 0.0 }
0x1538   :  { %v3704_v37 = vpop.xlane.xlu2 %3703  ;;  %3748 = vadd.xlane.f32.xlu1 %v3747_v47 }
0x1539   :  { %v3714_v63 = vmul.f32 %v3704_v37, %v7778_v29 }
0x153b   :  { %v7469_v62 = vsub.f32 %v7416_v38, %v3714_v63 }
0x153d   :  { %v3730_v28 = vmul.f32 %v7469_v62, %v7469_v62 }
0x153f   :  { %v3750_v41 = vsel %vm186_vm2, %v3730_v28, 0.0 }
0x1540   :  { %v3734_v14 = vpop.xlane.xlu0 %3733  ;;  %3751 = vadd.xlane.f32.xlu2 %v3750_v41 }
0x1541   :  { %v3756_v43 = vmul.f32 %v3734_v14, %v7778_v29 }
0x1543   :  { %v3764_v33 = vadd.f32 1e-05, %v3756_v43 }
0x1545   :  { %5128 = vrsqrt.f32 %v3764_v33  ;;  %vm3778_vm13 = vweird.f32 %v3764_v33 }
0x1548   :  { %v3707_v27 = vpop.xlane.xlu0 %3706  ;;  %v3737_v9 = vpop.xlane.xlu1 %3736 }
0x1549   :  { %v3715_v60 = vmul.f32 %v3707_v27, %v7778_v29  ;;  %v3757_v4 = vmul.f32 %v3737_v9, %v7778_v29 }
0x154b   :  { %v5129_v10 = vpop.eup %5128  ;;  %v7478_v8 = vsub.f32 %v7429_v23, %v3715_v60  ;;  %v3765_v32 = vadd.f32 1e-05, %v3757_v4 }
0x154c   :  { %v3773_v16 = vmul.f32 %v5129_v10, %v3764_v33  ;;  %vm3779_vm12 = vweird.f32 %v5129_v10 }
0x154d   :  { %5130 = vrsqrt.f32 %v3765_v32  ;;  %v3731_v50 = vmul.f32 %v7478_v8, %v7478_v8  ;;  %vm3780_vm14 = vmor %vm3778_vm13, %vm3779_vm12  ;;  %vm3788_vm0 = vweird.f32 %v3765_v32 }
0x154e   :  { %v3774_v56 = vmul.f32 %v5129_v10, %v3773_v16 }
0x154f   :  { %v3753_v24 = vsel %vm186_vm2, %v3731_v50, 0.0 }
0x1550   :  { %v3775_v26 = vmul.f32 0.5, %v3774_v56  ;;  %3754 = vadd.xlane.f32.xlu0 %v3753_v24 }
0x1552   :  { %v3776_v46 = vsub.f32 1.5, %v3775_v26 }
0x1553   :  { %v5131_v57 = vpop.eup %5130 }
0x1554   :  { %v3777_v58 = vmul.f32 %v5129_v10, %v3776_v46  ;;  %v3783_v17 = vmul.f32 %v5131_v57, %v3765_v32  ;;  %vm3789_vm15 = vweird.f32 %v5131_v57 }
0x1555   :  { %vm3790_vm3 = vmor %vm3788_vm0, %vm3789_vm15 }
0x1556   :  { %v3784_v45 = vmul.f32 %v5131_v57, %v3783_v17  ;;  %v3781_v34 = vsel %vm3780_vm14, %v5129_v10, %v3777_v58 }
0x1557   :  { %v3852_v49 = vmul.f32 %v3781_v34, %v7422_v2 }
0x1558   :  { %v3785_v7 = vmul.f32 0.5, %v3784_v45 }
0x1559   :  { %v3862_v42 = vmul.f32 %v7486_v19, %v3852_v49 }
0x155a   :  { %v3786_v25 = vsub.f32 1.5, %v3785_v7 }
0x155b   :  { %v3872_v52 = vadd.f32 %v7492_v6, %v3862_v42 }
0x155c   :  { %v3787_v48 = vmul.f32 %v5131_v57, %v3786_v25 }
0x155e   :  { %v3791_v20 = vsel %vm3790_vm3, %v5131_v57, %v3787_v48 }
0x155f   :  { %v3853_v53 = vmul.f32 %v3791_v20, %v7432_v39 }
0x1561   :  { %v3863_v13 = vmul.f32 %v7486_v19, %v3853_v53 }
0x1563   :  { %v3873_v18 = vadd.f32 %v7492_v6, %v3863_v13 }
0x1565   :  { %v3880_v2 = vpack.c.bf16 %v3873_v18, %v3872_v52 }
0x1567   :  { %4654 = vmatmul.msk.bf16.vlgmr.msra.gmra.mxu1 %vm186_vm2, %v3880_v2 }
0x158f   :  { %v3740_v3 = vpop.xlane.xlu1 %3739 }
0x1590   :  { %v3758_v5 = vmul.f32 %v3740_v3, %v7778_v29 }
0x1592   :  { %v3766_v55 = vadd.f32 1e-05, %v3758_v5 }
0x1594   :  { %5132 = vrsqrt.f32 %v3766_v55  ;;  %vm3798_vm5 = vweird.f32 %v3766_v55 }
0x1597   :  { %v3743_v1 = vpop.xlane.xlu2 %3742 }
0x1598   :  { %v3759_v59 = vmul.f32 %v3743_v1, %v7778_v29 }
0x159a   :  { %v5133_v11 = vpop.eup %5132  ;;  %v3767_v12 = vadd.f32 1e-05, %v3759_v59 }
0x159b   :  { %v3793_v39 = vmul.f32 %v5133_v11, %v3766_v55  ;;  %vm3799_vm4 = vweird.f32 %v5133_v11 }
0x159c   :  { %5134 = vrsqrt.f32 %v3767_v12  ;;  %vm3800_vm6 = vmor %vm3798_vm5, %vm3799_vm4  ;;  %vm3808_vm8 = vweird.f32 %v3767_v12 }
0x159d   :  { %v3794_v30 = vmul.f32 %v5133_v11, %v3793_v39 }
0x159f   :  { %v3795_v47 = vmul.f32 0.5, %v3794_v30 }
0x15a1   :  { %v3796_v37 = vsub.f32 1.5, %v3795_v47 }
0x15a2   :  { %v5135_v63 = vpop.eup %5134 }
0x15a3   :  { %v3797_v44 = vmul.f32 %v5133_v11, %v3796_v37  ;;  %v3803_v28 = vmul.f32 %v5135_v63, %v3767_v12  ;;  %v3746_v41 = vpop.xlane.xlu0 %3745  ;;  %vm3809_vm7 = vweird.f32 %v5135_v63 }
0x15a4   :  { %v3760_v14 = vmul.f32 %v3746_v41, %v7778_v29  ;;  %vm3810_vm9 = vmor %vm3808_vm8, %vm3809_vm7 }
0x15a5   :  { %v3804_v43 = vmul.f32 %v5135_v63, %v3803_v28  ;;  %v3801_v21 = vsel %vm3800_vm6, %v5133_v11, %v3797_v44 }
0x15a6   :  { %v3768_v33 = vadd.f32 1e-05, %v3760_v14  ;;  %v3854_v60 = vmul.f32 %v3801_v21, %v7441_v40 }
0x15a7   :  { %v3805_v27 = vmul.f32 0.5, %v3804_v43 }
0x15a8   :  { %5136 = vrsqrt.f32 %v3768_v33  ;;  %v3864_v26 = vmul.f32 %v7486_v19, %v3854_v60  ;;  %vm3818_vm11 = vweird.f32 %v3768_v33 }
0x15a9   :  { %v3806_v9 = vsub.f32 1.5, %v3805_v27 }
0x15aa   :  { %v3874_v40 = vadd.f32 %v7492_v6, %v3864_v26 }
0x15ab   :  { %v3807_v4 = vmul.f32 %v5135_v63, %v3806_v9  ;;  %v3749_v10 = vpop.xlane.xlu1 %3748 }
0x15ac   :  { %v3761_v32 = vmul.f32 %v3749_v10, %v7778_v29 }
0x15ad   :  { %v3811_v16 = vsel %vm3810_vm9, %v5135_v63, %v3807_v4 }
0x15ae   :  { %v5137_v50 = vpop.eup %5136  ;;  %v3855_v56 = vmul.f32 %v3811_v16, %v7448_v35  ;;  %v3769_v24 = vadd.f32 1e-05, %v3761_v32 }
0x15af   :  { %v3813_v46 = vmul.f32 %v5137_v50, %v3768_v33  ;;  %vm3819_vm10 = vweird.f32 %v5137_v50 }
0x15b0   :  { %5138 = vrsqrt.f32 %v3769_v24  ;;  %v3865_v57 = vmul.f32 %v7486_v19, %v3855_v56  ;;  %vm3820_vm12 = vmor %vm3818_vm11, %vm3819_vm10  ;;  %vm3828_vm14 = vweird.f32 %v3769_v24  ;;  %v4713_v56 = vld [vmem:[#allocation2 + $0xbc] sm:$0xff] }
0x15b1   :  { %v3814_v58 = vmul.f32 %v5137_v50, %v3813_v46  ;;  %4067 = vmatpush.bf16.msra.mxu2 %v4713_v56 }
0x15b2   :  { %v3875_v17 = vadd.f32 %v7492_v6, %v3865_v57  ;;  %v4712_v57 = vld [vmem:[#allocation2 + $0xb4] sm:$0xff] }
0x15b3   :  { %v3815_v45 = vmul.f32 0.5, %v3814_v58  ;;  %v3752_v34 = vpop.xlane.xlu2 %3751  ;;  %v4711_v58 = vld [vmem:[#allocation2 + $0xac] sm:$0xff] }
0x15b4   :  { %v3762_v7 = vmul.f32 %v3752_v34, %v7778_v29  ;;  %v3881_v25 = vpack.c.bf16 %v3875_v17, %v3874_v40  ;;  %v4710_v40 = vld [vmem:[#allocation2 + $0xa4] sm:$0xff] }
0x15b5   :  { %v3816_v49 = vsub.f32 1.5, %v3815_v45  ;;  %4068 = vmatpush.bf16.msra.mxu2 %v4712_v57 }
0x15b6   :  { %v5139_v48 = vpop.eup %5138  ;;  %v3770_v35 = vadd.f32 1e-05, %v3762_v7  ;;  %4655 = vmatmul.msk.bf16.gmra.mxu1 %vm186_vm2, %v3881_v25 }
0x15b7   :  { %v3817_v20 = vmul.f32 %v5137_v50, %v3816_v49  ;;  %v3823_v42 = vmul.f32 %v5139_v48, %v3769_v24  ;;  %vm3829_vm13 = vweird.f32 %v5139_v48 }
0x15b8   :  { %5140 = vrsqrt.f32 %v3770_v35  ;;  %vm3830_vm15 = vmor %vm3828_vm14, %vm3829_vm13  ;;  %vm3838_vm3 = vweird.f32 %v3770_v35 }
0x15b9   :  { %v3824_v53 = vmul.f32 %v5139_v48, %v3823_v42  ;;  %v3821_v13 = vsel %vm3820_vm12, %v5137_v50, %v3817_v20  ;;  %4069 = vmatpush.bf16.msra.mxu2 %v4711_v58 }
0x15ba   :  { %v3856_v3 = vmul.f32 %v3821_v13, %v7455_v15 }
0x15bb   :  { %v3825_v52 = vmul.f32 0.5, %v3824_v53 }
0x15bc   :  { %v3866_v11 = vmul.f32 %v7486_v19, %v3856_v3 }
0x15bd   :  { %v3826_v18 = vsub.f32 1.5, %v3825_v52  ;;  %4070 = vmatpush.bf16.msra.mxu2 %v4710_v40 }
0x15be   :  { %v5141_v2 = vpop.eup %5140  ;;  %v3876_v63 = vadd.f32 %v7492_v6, %v3866_v11 }
0x15bf   :  { %v3827_v5 = vmul.f32 %v5139_v48, %v3826_v18  ;;  %v3833_v55 = vmul.f32 %v5141_v2, %v3770_v35  ;;  %vm3839_vm0 = vweird.f32 %v5141_v2 }
0x15c0   :  { %vm3840_vm4 = vmor %vm3838_vm3, %vm3839_vm0 }
0x15c1   :  { %v3831_v1 = vsel %vm3830_vm15, %v5139_v48, %v3827_v5  ;;  %v3834_v12 = vmul.f32 %v5141_v2, %v3833_v55 }
0x15c2   :  { %v3857_v59 = vmul.f32 %v3831_v1, %v7462_v61 }
0x15c3   :  { %v3755_v39 = vpop.xlane.xlu0 %3754  ;;  %v3835_v44 = vmul.f32 0.5, %v3834_v12 }
0x15c4   :  { %v3763_v30 = vmul.f32 %v3755_v39, %v7778_v29  ;;  %v3867_v47 = vmul.f32 %v7486_v19, %v3857_v59 }
0x15c5   :  { %v3836_v41 = vsub.f32 1.5, %v3835_v44 }
0x15c6   :  { %v3771_v37 = vadd.f32 1e-05, %v3763_v30  ;;  %v3877_v15 = vadd.f32 %v7492_v6, %v3867_v47 }
0x15c7   :  { %v3837_v14 = vmul.f32 %v5141_v2, %v3836_v41 }
0x15c8   :  { %5142 = vrsqrt.f32 %v3771_v37  ;;  %v3882_v28 = vpack.c.bf16 %v3877_v15, %v3876_v63  ;;  %vm3848_vm6 = vweird.f32 %v3771_v37 }
0x15c9   :  { %v3841_v21 = vsel %vm3840_vm4, %v5141_v2, %v3837_v14 }
0x15ca   :  { %4656 = vmatmul.msk.bf16.gmra.mxu1 %vm186_vm2, %v3882_v28  ;;  %v3858_v60 = vmul.f32 %v3841_v21, %v7469_v62  ;;  %v7529_v62 = vld [vmem:[%s7726_s2 + $0x13] ss:$0 sm:$0xff] }
0x15cc   :  { %v3868_v16 = vmul.f32 %v7486_v19, %v3858_v60 }
0x15ce   :  { %v5143_v61 = vpop.eup %5142  ;;  %v3878_v24 = vadd.f32 %v7492_v6, %v3868_v16 }
0x15cf   :  { %v3843_v43 = vmul.f32 %v5143_v61, %v3771_v37  ;;  %vm3849_vm5 = vweird.f32 %v5143_v61 }
0x15d0   :  { %vm3850_vm7 = vmor %vm3848_vm6, %vm3849_vm5 }
0x15d1   :  { %v3844_v33 = vmul.f32 %v5143_v61, %v3843_v43 }
0x15d3   :  { %v3845_v27 = vmul.f32 0.5, %v3844_v33 }
0x15d5   :  { %v3846_v9 = vsub.f32 1.5, %v3845_v27 }
0x15d7   :  { %v3847_v4 = vmul.f32 %v5143_v61, %v3846_v9 }
0x15d9   :  { %v3851_v10 = vsel %vm3850_vm7, %v5143_v61, %v3847_v4 }
0x15da   :  { %v3859_v32 = vmul.f32 %v3851_v10, %v7478_v8 }
0x15dc   :  { %v3869_v50 = vmul.f32 %v7486_v19, %v3859_v32 }
0x15de   :  { %v3879_v26 = vadd.f32 %v7492_v6, %v3869_v50 }
0x15e0   :  { %v3883_v46 = vpack.c.bf16 %v3879_v26, %v3878_v24 }
0x15e2   :  { %4657 = vmatmul.msk.bf16.gmra.mxu1 %vm186_vm2, %v3883_v46 }
0x15e4   :  { %v3923_v8 = vpop.f32.mrf.mxu1 }
0x15e5   :  { %v3924_v19 = vadd.f32 %v7529_v62, %v3923_v8 }
0x15e7   :  { %v3943_v17 = vmul.f32 %v3924_v19, %v3924_v19 }
0x15e9   :  { %v3951_v45 = vmul.f32 %v3943_v17, %v3924_v19 }
0x15eb   :  { %v3959_v6 = vmul.f32 0.044715, %v3951_v45 }
0x15ec   :  { %v3925_v34 = vpop.f32.mrf.mxu1 }
0x15ed   :  { %v3967_v7 = vadd.f32 %v3959_v6, %v3924_v19  ;;  %v3926_v25 = vadd.f32 %v7529_v62, %v3925_v34 }
0x15ef   :  { %v3975_v49 = vmul.f32 0.7978846, %v3967_v7  ;;  %v3944_v48 = vmul.f32 %v3926_v25, %v3926_v25 }
0x15f1   :  { %v3952_v35 = vmul.f32 %v3944_v48, %v3926_v25  ;;  %5144 = vtanh.f32 %v3975_v49 }
0x15f3   :  { %v3960_v20 = vmul.f32 0.044715, %v3952_v35 }
0x15f5   :  { %v3968_v42 = vadd.f32 %v3960_v20, %v3926_v25 }
0x15f7   :  { %v3976_v53 = vmul.f32 0.7978846, %v3968_v42  ;;  %v5145_v13 = vpop.eup %5144 }
0x15f8   :  { %v3991_v52 = vadd.f32 1.0, %v5145_v13 }
0x15f9   :  { %5146 = vtanh.f32 %v3976_v53 }
0x15fa   :  { %v3999_v2 = vmul.f32 0.5, %v3991_v52 }
0x15fc   :  { %v4007_v55 = vmul.f32 %v3999_v2, %v3924_v19 }
0x15ff   :  { %v5147_v18 = vpop.eup %5146 }
0x1600   :  { %v3992_v3 = vadd.f32 1.0, %v5147_v18 }
0x1602   :  { %v4000_v5 = vmul.f32 0.5, %v3992_v3 }
0x1604   :  { %v4008_v1 = vmul.f32 %v4000_v5, %v3926_v25 }
0x1606   :  { %v4015_v59 = vpack.c.bf16 %v4008_v1, %v4007_v55 }
0x1608   :  { %4674 = vmatmul.msk.bf16.vlgmr.msra.gmra.mxu2 %vm1025_vm1, %v4015_v59 }
0x1633   :  { %v3928_v11 = vpop.f32.mrf.mxu1 }
0x1634   :  { %v3929_v12 = vadd.f32 %v7529_v62, %v3928_v11 }
0x1636   :  { %v3945_v39 = vmul.f32 %v3929_v12, %v3929_v12 }
0x1638   :  { %v3953_v30 = vmul.f32 %v3945_v39, %v3929_v12 }
0x163a   :  { %v3961_v47 = vmul.f32 0.044715, %v3953_v30 }
0x163b   :  { %v3930_v37 = vpop.f32.mrf.mxu1 }
0x163c   :  { %v3969_v63 = vadd.f32 %v3961_v47, %v3929_v12  ;;  %v3931_v15 = vadd.f32 %v7529_v62, %v3930_v37 }
0x163e   :  { %v3977_v44 = vmul.f32 0.7978846, %v3969_v63  ;;  %v3946_v28 = vmul.f32 %v3931_v15, %v3931_v15 }
0x1640   :  { %v3954_v41 = vmul.f32 %v3946_v28, %v3931_v15  ;;  %5148 = vtanh.f32 %v3977_v44 }
0x1642   :  { %v3962_v61 = vmul.f32 0.044715, %v3954_v41 }
0x1644   :  { %v3970_v14 = vadd.f32 %v3962_v61, %v3931_v15 }
0x1646   :  { %v3978_v43 = vmul.f32 0.7978846, %v3970_v14  ;;  %v5149_v21 = vpop.eup %5148 }
0x1647   :  { %v3933_v33 = vpop.f32.mrf.mxu1  ;;  %v3993_v60 = vadd.f32 1.0, %v5149_v21 }
0x1648   :  { %5150 = vtanh.f32 %v3978_v43  ;;  %v3934_v27 = vadd.f32 %v7529_v62, %v3933_v33  ;;  %v4754_v33 = vld [vmem:[%s7726_s2 + $0x14] ss:$0 sm:$0xff] }
0x1649   :  { %v4001_v16 = vmul.f32 0.5, %v3993_v60 }
0x164a   :  { %v3947_v9 = vmul.f32 %v3934_v27, %v3934_v27 }
0x164b   :  { %v4009_v58 = vmul.f32 %v4001_v16, %v3929_v12 }
0x164c   :  { %v3955_v4 = vmul.f32 %v3947_v9, %v3934_v27 }
0x164e   :  { %v5151_v10 = vpop.eup %5150  ;;  %v3963_v32 = vmul.f32 0.044715, %v3955_v4 }
0x164f   :  { %v3994_v50 = vadd.f32 1.0, %v5151_v10  ;;  %v3935_v56 = vpop.f32.mrf.mxu1 }
0x1650   :  { %v3971_v24 = vadd.f32 %v3963_v32, %v3934_v27  ;;  %v3936_v26 = vadd.f32 %v7529_v62, %v3935_v56 }
0x1651   :  { %v4002_v46 = vmul.f32 0.5, %v3994_v50 }
0x1652   :  { %v3979_v57 = vmul.f32 0.7978846, %v3971_v24  ;;  %v3948_v8 = vmul.f32 %v3936_v26, %v3936_v26 }
0x1653   :  { %v4010_v19 = vmul.f32 %v4002_v46, %v3931_v15 }
0x1654   :  { %v3956_v40 = vmul.f32 %v3948_v8, %v3936_v26  ;;  %5152 = vtanh.f32 %v3979_v57 }
0x1655   :  { %v4016_v17 = vpack.c.bf16 %v4010_v19, %v4009_v58 }
0x1656   :  { %v3964_v45 = vmul.f32 0.044715, %v3956_v40 }
0x1657   :  { %4675 = vmatmul.msk.bf16.gmra.mxu2 %vm1025_vm1, %v4016_v17 }
0x1658   :  { %v3972_v6 = vadd.f32 %v3964_v45, %v3936_v26 }
0x165a   :  { %v3980_v34 = vmul.f32 0.7978846, %v3972_v6  ;;  %v5153_v7 = vpop.eup %5152 }
0x165b   :  { %v3995_v25 = vadd.f32 1.0, %v5153_v7 }
0x165c   :  { %5154 = vtanh.f32 %v3980_v34 }
0x165d   :  { %v4003_v42 = vmul.f32 0.5, %v3995_v25 }
0x165f   :  { %v3938_v49 = vpop.f32.mrf.mxu1  ;;  %v4011_v2 = vmul.f32 %v4003_v42, %v3934_v27 }
0x1660   :  { %v3939_v48 = vadd.f32 %v7529_v62, %v3938_v49 }
0x1662   :  { %v5155_v35 = vpop.eup %5154  ;;  %v3949_v20 = vmul.f32 %v3939_v48, %v3939_v48 }
0x1663   :  { %v3996_v53 = vadd.f32 1.0, %v5155_v35 }
0x1664   :  { %v3957_v13 = vmul.f32 %v3949_v20, %v3939_v48 }
0x1665   :  { %v4004_v52 = vmul.f32 0.5, %v3996_v53 }
0x1666   :  { %v3965_v18 = vmul.f32 0.044715, %v3957_v13 }
0x1667   :  { %v4012_v3 = vmul.f32 %v4004_v52, %v3936_v26  ;;  %v3940_v5 = vpop.f32.mrf.mxu1 }
0x1668   :  { %v3973_v55 = vadd.f32 %v3965_v18, %v3939_v48  ;;  %v3941_v1 = vadd.f32 %v7529_v62, %v3940_v5 }
0x1669   :  { %v4017_v59 = vpack.c.bf16 %v4012_v3, %v4011_v2 }
0x166a   :  { %v3981_v11 = vmul.f32 0.7978846, %v3973_v55  ;;  %v3950_v12 = vmul.f32 %v3941_v1, %v3941_v1 }
0x166b   :  { %4676 = vmatmul.msk.bf16.gmra.mxu2 %vm1025_vm1, %v4017_v59 }
0x166c   :  { %v3958_v39 = vmul.f32 %v3950_v12, %v3941_v1  ;;  %5156 = vtanh.f32 %v3981_v11 }
0x166e   :  { %v3966_v30 = vmul.f32 0.044715, %v3958_v39 }
0x1670   :  { %v3974_v47 = vadd.f32 %v3966_v30, %v3941_v1 }
0x1672   :  { %v3982_v37 = vmul.f32 0.7978846, %v3974_v47  ;;  %v5157_v63 = vpop.eup %5156 }
0x1673   :  { %v3997_v15 = vadd.f32 1.0, %v5157_v63 }
0x1674   :  { %5158 = vtanh.f32 %v3982_v37 }
0x1675   :  { %v4005_v28 = vmul.f32 0.5, %v3997_v15 }
0x1677   :  { %v4013_v14 = vmul.f32 %v4005_v28, %v3939_v48 }
0x167a   :  { %v5159_v44 = vpop.eup %5158 }
0x167b   :  { %v3998_v41 = vadd.f32 1.0, %v5159_v44 }
0x167d   :  { %v4006_v61 = vmul.f32 0.5, %v3998_v41 }
0x167f   :  { %v4014_v43 = vmul.f32 %v4006_v61, %v3941_v1 }
0x1681   :  { %v4018_v62 = vpack.c.bf16 %v4014_v43, %v4013_v14 }
0x1683   :  { %4677 = vmatmul.msk.bf16.gmra.mxu2 %vm1025_vm1, %v4018_v62 }
0x168b   :  { %v4072_v21 = vpop.f32.mrf.mxu2 }
0x168c   :  { %v4092_v27 = vadd.f32 %v4072_v21, %v7386_v36 }
0x168e   :  { %v4102_v9 = vadd.f32 %v4754_v33, %v4092_v27 }
0x1690   :  { %v4110_v60 = vsel %vm186_vm2, %v4102_v9, 0.0 }
0x1691   :  { %4111 = vadd.xlane.f32.xlu1 %v4110_v60 }
0x1693   :  { %v4074_v4 = vpop.f32.mrf.mxu2 }
0x1694   :  { %v4093_v10 = vadd.f32 %v4074_v4, %v7391_v22 }
0x1696   :  { %v4103_v32 = vadd.f32 %v4754_v33, %v4093_v10  ;;  %v4715_v10 = vld [vmem:[#allocation2 + $0xcc] sm:$0xff] }
0x1697   :  { %4346 = vmatpush.bf16.msra.mxu3 %v4715_v10 }
0x1698   :  { %v4113_v16 = vsel %vm186_vm2, %v4103_v32, 0.0 }
0x1699   :  { %4114 = vadd.xlane.f32.xlu2 %v4113_v16  ;;  %v4714_v16 = vld [vmem:[#allocation2 + $0xc4] sm:$0xff] }
0x169b   :  { %4347 = vmatpush.bf16.msra.mxu3 %v4714_v16 }
0x16da   :  { %v4077_v50 = vpop.f32.mrf.mxu2 }
0x16db   :  { %v4094_v56 = vadd.f32 %v4077_v50, %v7396_v0 }
0x16dd   :  { %v4104_v24 = vadd.f32 %v4754_v33, %v4094_v56 }
0x16df   :  { %v4116_v26 = vsel %vm186_vm2, %v4104_v24, 0.0 }
0x16e0   :  { %4117 = vadd.xlane.f32.xlu0 %v4116_v26 }
0x16e2   :  { %v4079_v46 = vpop.f32.mrf.mxu2 }
0x16e3   :  { %v4095_v36 = vadd.f32 %v4079_v46, %v7401_v31 }
0x16e5   :  { %v4105_v57 = vadd.f32 %v4754_v33, %v4095_v36 }
0x16e7   :  { %v4119_v8 = vsel %vm186_vm2, %v4105_v57, 0.0 }
0x16e8   :  { %4120 = vadd.xlane.f32.xlu1 %v4119_v8 }
0x16ee   :  { %v4082_v58 = vpop.f32.mrf.mxu2 }
0x16ef   :  { %v4096_v22 = vadd.f32 %v4082_v58, %v7406_v54 }
0x16f1   :  { %v4106_v19 = vadd.f32 %v4754_v33, %v4096_v22 }
0x16f3   :  { %v4122_v40 = vsel %vm186_vm2, %v4106_v19, 0.0 }
0x16f4   :  { %4123 = vadd.xlane.f32.xlu2 %v4122_v40 }
0x16f6   :  { %v4084_v17 = vpop.f32.mrf.mxu2 }
0x16f7   :  { %v4097_v0 = vadd.f32 %v4084_v17, %v7411_v51 }
0x16f9   :  { %v4107_v45 = vadd.f32 %v4754_v33, %v4097_v0 }
0x16fb   :  { %v4125_v6 = vsel %vm186_vm2, %v4107_v45, 0.0 }
0x16fc   :  { %4126 = vadd.xlane.f32.xlu0 %v4125_v6 }
0x1704   :  { %v4112_v34 = vpop.xlane.xlu1 %4111 }
0x1705   :  { %v4134_v31 = vmul.f32 %v4112_v34, %v7778_v29 }
0x1706   :  { %v4087_v7 = vpop.f32.mrf.mxu2 }
0x1707   :  { %v7560_v25 = vsub.f32 %v4102_v9, %v4134_v31  ;;  %v4098_v49 = vadd.f32 %v4087_v7, %v7416_v38 }
0x1709   :  { %v4108_v54 = vadd.f32 %v4754_v33, %v4098_v49  ;;  %v4150_v48 = vmul.f32 %v7560_v25, %v7560_v25 }
0x170b   :  { %v4128_v35 = vsel %vm186_vm2, %v4108_v54, 0.0  ;;  %v4158_v51 = vsel %vm186_vm2, %v4150_v48, 0.0  ;;  %v7616_v48 = vld [vmem:[%s7726_s2 + $0x15] ss:$0 sm:$0xff] }
0x170c   :  { %v4115_v20 = vpop.xlane.xlu2 %4114  ;;  %4129 = vadd.xlane.f32.xlu0 %v4128_v35  ;;  %4159 = vadd.xlane.f32.xlu1 %v4158_v51 }
0x170d   :  { %v4135_v42 = vmul.f32 %v4115_v20, %v7778_v29 }
0x170e   :  { %v4089_v53 = vpop.f32.mrf.mxu2 }
0x170f   :  { %v7568_v13 = vsub.f32 %v4103_v32, %v4135_v42  ;;  %v4099_v52 = vadd.f32 %v4089_v53, %v7429_v23  ;;  %v7622_v42 = vld [vmem:[%s7726_s2 + $0x16] ss:$0 sm:$0xff] }
0x1711   :  { %v4109_v18 = vadd.f32 %v4754_v33, %v4099_v52  ;;  %v4151_v38 = vmul.f32 %v7568_v13, %v7568_v13 }
0x1713   :  { %v4161_v2 = vsel %vm186_vm2, %v4151_v38, 0.0  ;;  %v4131_v3 = vsel %vm186_vm2, %v4109_v18, 0.0 }
0x1714   :  { %4162 = vadd.xlane.f32.xlu2 %v4161_v2  ;;  %4132 = vadd.xlane.f32.xlu1 %v4131_v3 }
0x1753   :  { %v4118_v5 = vpop.xlane.xlu0 %4117 }
0x1754   :  { %v4136_v55 = vmul.f32 %v4118_v5, %v7778_v29 }
0x1756   :  { %v7576_v1 = vsub.f32 %v4104_v24, %v4136_v55 }
0x1758   :  { %v4152_v59 = vmul.f32 %v7576_v1, %v7576_v1 }
0x175a   :  { %v4164_v23 = vsel %vm186_vm2, %v4152_v59, 0.0 }
0x175b   :  { %4165 = vadd.xlane.f32.xlu2 %v4164_v23  ;;  %v4121_v11 = vpop.xlane.xlu1 %4120 }
0x175c   :  { %v4137_v12 = vmul.f32 %v4121_v11, %v7778_v29 }
0x175e   :  { %v7582_v39 = vsub.f32 %v4105_v57, %v4137_v12 }
0x1760   :  { %v4153_v30 = vmul.f32 %v7582_v39, %v7582_v39 }
0x1762   :  { %v4167_v47 = vsel %vm186_vm2, %v4153_v30, 0.0 }
0x1763   :  { %4168 = vadd.xlane.f32.xlu0 %v4167_v47 }
0x1767   :  { %v4124_v37 = vpop.xlane.xlu2 %4123 }
0x1768   :  { %v4138_v63 = vmul.f32 %v4124_v37, %v7778_v29 }
0x176a   :  { %v7588_v15 = vsub.f32 %v4106_v19, %v4138_v63 }
0x176c   :  { %v4154_v44 = vmul.f32 %v7588_v15, %v7588_v15 }
0x176e   :  { %v4170_v28 = vsel %vm186_vm2, %v4154_v44, 0.0 }
0x176f   :  { %v4127_v41 = vpop.xlane.xlu0 %4126  ;;  %4171 = vadd.xlane.f32.xlu1 %v4170_v28 }
0x1770   :  { %v4139_v61 = vmul.f32 %v4127_v41, %v7778_v29 }
0x1772   :  { %v7594_v14 = vsub.f32 %v4107_v45, %v4139_v61 }
0x1774   :  { %v4155_v43 = vmul.f32 %v7594_v14, %v7594_v14 }
0x1776   :  { %v4173_v62 = vsel %vm186_vm2, %v4155_v43, 0.0 }
0x1777   :  { %4174 = vadd.xlane.f32.xlu2 %v4173_v62 }
0x177f   :  { %v4130_v33 = vpop.xlane.xlu0 %4129  ;;  %v4160_v21 = vpop.xlane.xlu1 %4159 }
0x1780   :  { %v4140_v27 = vmul.f32 %v4130_v33, %v7778_v29  ;;  %v4182_v9 = vmul.f32 %v4160_v21, %v7778_v29 }
0x1782   :  { %v7601_v60 = vsub.f32 %v4108_v54, %v4140_v27  ;;  %v4190_v4 = vadd.f32 1e-05, %v4182_v9 }
0x1784   :  { %5160 = vrsqrt.f32 %v4190_v4  ;;  %v4156_v32 = vmul.f32 %v7601_v60, %v7601_v60  ;;  %vm4204_vm8 = vweird.f32 %v4190_v4 }
0x1786   :  { %v4176_v50 = vsel %vm186_vm2, %v4156_v32, 0.0 }
0x1787   :  { %v4163_v56 = vpop.xlane.xlu2 %4162  ;;  %4177 = vadd.xlane.f32.xlu0 %v4176_v50  ;;  %v4133_v24 = vpop.xlane.xlu1 %4132 }
0x1788   :  { %v4183_v26 = vmul.f32 %v4163_v56, %v7778_v29  ;;  %v4141_v46 = vmul.f32 %v4133_v24, %v7778_v29 }
0x178a   :  { %v5161_v36 = vpop.eup %5160  ;;  %v4191_v57 = vadd.f32 1e-05, %v4183_v26  ;;  %v7608_v8 = vsub.f32 %v4109_v18, %v4141_v46 }
0x178b   :  { %v4199_v58 = vmul.f32 %v5161_v36, %v4190_v4  ;;  %vm4205_vm1 = vweird.f32 %v5161_v36 }
0x178c   :  { %5162 = vrsqrt.f32 %v4191_v57  ;;  %v4157_v22 = vmul.f32 %v7608_v8, %v7608_v8  ;;  %vm4206_vm9 = vmor %vm4204_vm8, %vm4205_vm1  ;;  %vm4214_vm11 = vweird.f32 %v4191_v57 }
0x178d   :  { %v4200_v19 = vmul.f32 %v5161_v36, %v4199_v58 }
0x178e   :  { %v4179_v40 = vsel %vm186_vm2, %v4157_v22, 0.0 }
0x178f   :  { %v4201_v17 = vmul.f32 0.5, %v4200_v19  ;;  %4180 = vadd.xlane.f32.xlu1 %v4179_v40 }
0x1791   :  { %v4202_v0 = vsub.f32 1.5, %v4201_v17 }
0x1792   :  { %v5163_v45 = vpop.eup %5162 }
0x1793   :  { %v4203_v6 = vmul.f32 %v5161_v36, %v4202_v0  ;;  %v4209_v34 = vmul.f32 %v5163_v45, %v4191_v57  ;;  %vm4215_vm10 = vweird.f32 %v5163_v45 }
0x1794   :  { %vm4216_vm12 = vmor %vm4214_vm11, %vm4215_vm10 }
0x1795   :  { %v4210_v31 = vmul.f32 %v5163_v45, %v4209_v34  ;;  %v4207_v7 = vsel %vm4206_vm9, %v5161_v36, %v4203_v6 }
0x1796   :  { %v4278_v35 = vmul.f32 %v4207_v7, %v7560_v25 }
0x1797   :  { %v4211_v49 = vmul.f32 0.5, %v4210_v31 }
0x1798   :  { %v4288_v53 = vmul.f32 %v7616_v48, %v4278_v35 }
0x1799   :  { %v4212_v54 = vsub.f32 1.5, %v4211_v49 }
0x179a   :  { %v4298_v38 = vadd.f32 %v7622_v42, %v4288_v53 }
0x179b   :  { %v4213_v51 = vmul.f32 %v5163_v45, %v4212_v54 }
0x179d   :  { %v4217_v20 = vsel %vm4216_vm12, %v5163_v45, %v4213_v51 }
0x179e   :  { %v4279_v52 = vmul.f32 %v4217_v20, %v7568_v13 }
0x17a0   :  { %v4289_v18 = vmul.f32 %v7616_v48, %v4279_v52 }
0x17a2   :  { %v4299_v2 = vadd.f32 %v7622_v42, %v4289_v18 }
0x17a4   :  { %v4306_v25 = vpack.c.bf16 %v4299_v2, %v4298_v38 }
0x17a6   :  { %4686 = vmatmul.msk.bf16.vlgmr.msra.gmra.mxu3 %vm186_vm2, %v4306_v25 }
0x17ce   :  { %v4166_v3 = vpop.xlane.xlu2 %4165 }
0x17cf   :  { %v4184_v5 = vmul.f32 %v4166_v3, %v7778_v29 }
0x17d1   :  { %v4192_v55 = vadd.f32 1e-05, %v4184_v5 }
0x17d3   :  { %5164 = vrsqrt.f32 %v4192_v55  ;;  %vm4224_vm14 = vweird.f32 %v4192_v55 }
0x17d6   :  { %v4169_v59 = vpop.xlane.xlu0 %4168 }
0x17d7   :  { %v4185_v23 = vmul.f32 %v4169_v59, %v7778_v29 }
0x17d9   :  { %v5165_v11 = vpop.eup %5164  ;;  %v4193_v12 = vadd.f32 1e-05, %v4185_v23 }
0x17da   :  { %v4219_v13 = vmul.f32 %v5165_v11, %v4192_v55  ;;  %vm4225_vm13 = vweird.f32 %v5165_v11 }
0x17db   :  { %5166 = vrsqrt.f32 %v4193_v12  ;;  %vm4226_vm15 = vmor %vm4224_vm14, %vm4225_vm13  ;;  %vm4234_vm3 = vweird.f32 %v4193_v12 }
0x17dc   :  { %v4220_v30 = vmul.f32 %v5165_v11, %v4219_v13 }
0x17de   :  { %v4221_v47 = vmul.f32 0.5, %v4220_v30 }
0x17e0   :  { %v4222_v37 = vsub.f32 1.5, %v4221_v47 }
0x17e1   :  { %v5167_v63 = vpop.eup %5166 }
0x17e2   :  { %v4223_v44 = vmul.f32 %v5165_v11, %v4222_v37  ;;  %v4229_v28 = vmul.f32 %v5167_v63, %v4193_v12  ;;  %v4172_v41 = vpop.xlane.xlu1 %4171  ;;  %vm4235_vm0 = vweird.f32 %v5167_v63 }
0x17e3   :  { %v4186_v61 = vmul.f32 %v4172_v41, %v7778_v29  ;;  %vm4236_vm4 = vmor %vm4234_vm3, %vm4235_vm0 }
0x17e4   :  { %v4230_v43 = vmul.f32 %v5167_v63, %v4229_v28  ;;  %v4227_v33 = vsel %vm4226_vm15, %v5165_v11, %v4223_v44 }
0x17e5   :  { %v4194_v62 = vadd.f32 1e-05, %v4186_v61  ;;  %v4280_v9 = vmul.f32 %v4227_v33, %v7576_v1 }
0x17e6   :  { %v4231_v21 = vmul.f32 0.5, %v4230_v43 }
0x17e7   :  { %5168 = vrsqrt.f32 %v4194_v62  ;;  %v4290_v26 = vmul.f32 %v7616_v48, %v4280_v9  ;;  %vm4244_vm6 = vweird.f32 %v4194_v62 }
0x17e8   :  { %v4232_v27 = vsub.f32 1.5, %v4231_v21 }
0x17e9   :  { %v4300_v1 = vadd.f32 %v7622_v42, %v4290_v26 }
0x17ea   :  { %v4233_v4 = vmul.f32 %v5167_v63, %v4232_v27  ;;  %v4175_v10 = vpop.xlane.xlu2 %4174 }
0x17eb   :  { %v4187_v32 = vmul.f32 %v4175_v10, %v7778_v29 }
0x17ec   :  { %v4237_v16 = vsel %vm4236_vm4, %v5167_v63, %v4233_v4 }
0x17ed   :  { %v5169_v50 = vpop.eup %5168  ;;  %v4281_v56 = vmul.f32 %v4237_v16, %v7582_v39  ;;  %v4195_v24 = vadd.f32 1e-05, %v4187_v32 }
0x17ee   :  { %v4239_v46 = vmul.f32 %v5169_v50, %v4194_v62  ;;  %vm4245_vm5 = vweird.f32 %v5169_v50 }
0x17ef   :  { %5170 = vrsqrt.f32 %v4195_v24  ;;  %v4291_v36 = vmul.f32 %v7616_v48, %v4281_v56  ;;  %vm4246_vm7 = vmor %vm4244_vm6, %vm4245_vm5  ;;  %vm4254_vm8 = vweird.f32 %v4195_v24 }
0x17f0   :  { %v4240_v57 = vmul.f32 %v5169_v50, %v4239_v46 }
0x17f1   :  { %v4301_v58 = vadd.f32 %v7622_v42, %v4291_v36 }
0x17f2   :  { %v4241_v22 = vmul.f32 0.5, %v4240_v57 }
0x17f3   :  { %v4307_v19 = vpack.c.bf16 %v4301_v58, %v4300_v1 }
0x17f4   :  { %v4242_v40 = vsub.f32 1.5, %v4241_v22 }
0x17f5   :  { %v5171_v17 = vpop.eup %5170  ;;  %4687 = vmatmul.msk.bf16.gmra.mxu3 %vm186_vm2, %v4307_v19 }
0x17f6   :  { %v4243_v0 = vmul.f32 %v5169_v50, %v4242_v40  ;;  %v4249_v39 = vmul.f32 %v5171_v17, %v4195_v24  ;;  %vm4255_vm1 = vweird.f32 %v5171_v17 }
0x17f7   :  { %vm4256_vm9 = vmor %vm4254_vm8, %vm4255_vm1 }
0x17f8   :  { %v4250_v45 = vmul.f32 %v5171_v17, %v4249_v39  ;;  %v4247_v6 = vsel %vm4246_vm7, %v5169_v50, %v4243_v0 }
0x17f9   :  { %v4282_v54 = vmul.f32 %v4247_v6, %v7588_v15 }
0x17fa   :  { %v4251_v34 = vmul.f32 0.5, %v4250_v45  ;;  %v4178_v31 = vpop.xlane.xlu0 %4177 }
0x17fb   :  { %v4188_v7 = vmul.f32 %v4178_v31, %v7778_v29  ;;  %v4292_v52 = vmul.f32 %v7616_v48, %v4282_v54 }
0x17fc   :  { %v4252_v49 = vsub.f32 1.5, %v4251_v34 }
0x17fd   :  { %v4196_v35 = vadd.f32 1e-05, %v4188_v7  ;;  %v4302_v5 = vadd.f32 %v7622_v42, %v4292_v52 }
0x17fe   :  { %v4253_v51 = vmul.f32 %v5171_v17, %v4252_v49 }
0x17ff   :  { %5172 = vrsqrt.f32 %v4196_v35  ;;  %vm4264_vm11 = vweird.f32 %v4196_v35 }
0x1800   :  { %v4257_v20 = vsel %vm4256_vm9, %v5171_v17, %v4253_v51 }
0x1801   :  { %v4283_v53 = vmul.f32 %v4257_v20, %v7594_v14 }
0x1802   :  { %v4181_v18 = vpop.xlane.xlu1 %4180 }
0x1803   :  { %v4189_v38 = vmul.f32 %v4181_v18, %v7778_v29  ;;  %v4293_v2 = vmul.f32 %v7616_v48, %v4283_v53 }
0x1805   :  { %v5173_v25 = vpop.eup %5172  ;;  %v4197_v3 = vadd.f32 1e-05, %v4189_v38  ;;  %v4303_v15 = vadd.f32 %v7622_v42, %v4293_v2 }
0x1806   :  { %v4259_v55 = vmul.f32 %v5173_v25, %v4196_v35  ;;  %vm4265_vm10 = vweird.f32 %v5173_v25 }
0x1807   :  { %5174 = vrsqrt.f32 %v4197_v3  ;;  %v4308_v59 = vpack.c.bf16 %v4303_v15, %v4302_v5  ;;  %vm4266_vm12 = vmor %vm4264_vm11, %vm4265_vm10  ;;  %vm4274_vm14 = vweird.f32 %v4197_v3 }
0x1808   :  { %v4260_v23 = vmul.f32 %v5173_v25, %v4259_v55 }
0x1809   :  { %4688 = vmatmul.msk.bf16.gmra.mxu3 %vm186_vm2, %v4308_v59 }
0x180a   :  { %v4261_v14 = vmul.f32 0.5, %v4260_v23 }
0x180c   :  { %v4262_v11 = vsub.f32 1.5, %v4261_v14 }
0x180d   :  { %v5175_v12 = vpop.eup %5174 }
0x180e   :  { %v4263_v13 = vmul.f32 %v5173_v25, %v4262_v11  ;;  %v4269_v29 = vmul.f32 %v5175_v12, %v4197_v3  ;;  %vm4275_vm13 = vweird.f32 %v5175_v12 }
0x180f   :  { %vm4276_vm15 = vmor %vm4274_vm14, %vm4275_vm13 }
0x1810   :  { %v4270_v30 = vmul.f32 %v5175_v12, %v4269_v29  ;;  %v4267_v47 = vsel %vm4266_vm12, %v5173_v25, %v4263_v13 }
0x1811   :  { %v4284_v44 = vmul.f32 %v4267_v47, %v7601_v60  ;;  %v4757_v60 = vld [vmem:[%s7726_s2 + $0x17] ss:$0 sm:$0xff] }
0x1812   :  { %v4271_v37 = vmul.f32 0.5, %v4270_v30 }
0x1813   :  { %v4294_v43 = vmul.f32 %v7616_v48, %v4284_v44 }
0x1814   :  { %v4272_v63 = vsub.f32 1.5, %v4271_v37 }
0x1815   :  { %v4304_v33 = vadd.f32 %v7622_v42, %v4294_v43 }
0x1816   :  { %v4273_v28 = vmul.f32 %v5175_v12, %v4272_v63 }
0x1818   :  { %v4277_v41 = vsel %vm4276_vm15, %v5175_v12, %v4273_v28 }
0x1819   :  { %v4285_v61 = vmul.f32 %v4277_v41, %v7608_v8 }
0x181b   :  { %v4295_v62 = vmul.f32 %v7616_v48, %v4285_v61 }
0x181d   :  { %v4305_v21 = vadd.f32 %v7622_v42, %v4295_v62 }
0x181f   :  { %v4309_v27 = vpack.c.bf16 %v4305_v21, %v4304_v33 }
0x1821   :  { %4689 = vmatmul.msk.bf16.gmra.mxu3 %vm186_vm2, %v4309_v27 }
0x1829   :  { %v4349_v9 = vpop.f32.mrf.mxu3 }
0x182a   :  { %v7660_v4 = vadd.f32 %v4757_v60, %v4349_v9 }
0x182c   :  { %4369 = vmax.xlane.f32.xlu2 %v7660_v4 }
0x1831   :  { %v4351_v8 = vpop.f32.mrf.mxu3 }
0x1832   :  { %v7663_v10 = vadd.f32 %v4757_v60, %v4351_v8 }
0x1834   :  { %4371 = vmax.xlane.f32.xlu0 %v7663_v10 }
0x1878   :  { %v4354_v48 = vpop.f32.mrf.mxu3 }
0x1879   :  { %v7666_v32 = vadd.f32 %v4757_v60, %v4354_v48 }
0x187b   :  { %4373 = vmax.xlane.f32.xlu1 %v7666_v32 }
0x1880   :  { %v4356_v42 = vpop.f32.mrf.mxu3 }
0x1881   :  { %v7669_v16 = vadd.f32 %v4757_v60, %v4356_v42 }
0x1883   :  { %4375 = vmax.xlane.f32.xlu2 %v7669_v16 }
0x188c   :  { %v4359_v50 = vpop.f32.mrf.mxu3 }
0x188d   :  { %v7672_v56 = vadd.f32 %v4757_v60, %v4359_v50 }
0x188f   :  { %4377 = vmax.xlane.f32.xlu0 %v7672_v56 }
0x1894   :  { %v4361_v24 = vpop.f32.mrf.mxu3 }
0x1895   :  { %v7675_v26 = vadd.f32 %v4757_v60, %v4361_v24 }
0x1897   :  { %4379 = vmax.xlane.f32.xlu1 %v7675_v26 }
0x189f   :  { %v4370_v46 = vpop.xlane.xlu2 %4369 }
0x18a0   :  { %v4385_v36 = vsub.f32 %v7660_v4, %v4370_v46 }
0x18a2   :  { %v4393_v57 = vmul.f32 1.442695, %v4385_v36 }
0x18a4   :  { %5176 = vpow2.f32 %v4393_v57  ;;  %v4364_v1 = vpop.f32.mrf.mxu3 }
0x18a5   :  { %v7679_v58 = vadd.f32 %v4757_v60, %v4364_v1 }
0x18a7   :  { %v4372_v22 = vpop.xlane.xlu0 %4371  ;;  %4381 = vmax.xlane.f32.xlu2 %v7679_v58 }
0x18a8   :  { %v4386_v19 = vsub.f32 %v7663_v10, %v4372_v22 }
0x18aa   :  { %v5177_v40 = vpop.eup %5176  ;;  %v4395_v17 = vmul.f32 1.442695, %v4386_v19 }
0x18ab   :  { %4409 = vadd.xlane.f32.xlu1 %v5177_v40 }
0x18ac   :  { %5178 = vpow2.f32 %v4395_v17  ;;  %v4366_v0 = vpop.f32.mrf.mxu3 }
0x18ad   :  { %v7683_v39 = vadd.f32 %v4757_v60, %v4366_v0 }
0x18af   :  { %4383 = vmax.xlane.f32.xlu0 %v7683_v39 }
0x18b2   :  { %v5179_v45 = vpop.eup %5178 }
0x18b3   :  { %4411 = vadd.xlane.f32.xlu2 %v5179_v45 }
0x18ee   :  { %v4374_v6 = vpop.xlane.xlu1 %4373 }
0x18ef   :  { %v4387_v34 = vsub.f32 %v7666_v32, %v4374_v6 }
0x18f1   :  { %v4397_v31 = vmul.f32 1.442695, %v4387_v34 }
0x18f3   :  { %5180 = vpow2.f32 %v4397_v31 }
0x18f6   :  { %v4376_v7 = vpop.xlane.xlu2 %4375 }
0x18f7   :  { %v4388_v49 = vsub.f32 %v7669_v16, %v4376_v7 }
0x18f9   :  { %v5181_v54 = vpop.eup %5180  ;;  %v4399_v35 = vmul.f32 1.442695, %v4388_v49 }
0x18fa   :  { %4413 = vadd.xlane.f32.xlu0 %v5181_v54 }
0x18fb   :  { %5182 = vpow2.f32 %v4399_v35 }
0x1901   :  { %v5183_v51 = vpop.eup %5182 }
0x1902   :  { %4415 = vadd.xlane.f32.xlu1 %v5183_v51  ;;  %v4378_v20 = vpop.xlane.xlu0 %4377 }
0x1903   :  { %v4389_v53 = vsub.f32 %v7672_v56, %v4378_v20 }
0x1905   :  { %v4401_v52 = vmul.f32 1.442695, %v4389_v53 }
0x1907   :  { %5184 = vpow2.f32 %v4401_v52 }
0x190a   :  { %v4380_v18 = vpop.xlane.xlu1 %4379 }
0x190b   :  { %v4390_v38 = vsub.f32 %v7675_v26, %v4380_v18 }
0x190d   :  { %v5185_v2 = vpop.eup %5184  ;;  %v4403_v25 = vmul.f32 1.442695, %v4390_v38 }
0x190e   :  { %4417 = vadd.xlane.f32.xlu2 %v5185_v2 }
0x190f   :  { %5186 = vpow2.f32 %v4403_v25 }
0x1915   :  { %v5187_v3 = vpop.eup %5186 }
0x1916   :  { %4419 = vadd.xlane.f32.xlu0 %v5187_v3 }
0x191a   :  { %v4382_v5 = vpop.xlane.xlu2 %4381 }
0x191b   :  { %v4391_v15 = vsub.f32 %v7679_v58, %v4382_v5 }
0x191d   :  { %v4405_v55 = vmul.f32 1.442695, %v4391_v15 }
0x191e   :  { %v4410_v59 = vpop.xlane.xlu1 %4409 }
0x191f   :  { %5188 = vpow2.f32 %v4405_v55 }
0x1920   :  { %5190 = vlog2.f32 %v4410_v59 }
0x1922   :  { %v4384_v23 = vpop.xlane.xlu0 %4383 }
0x1923   :  { %v4392_v14 = vsub.f32 %v7683_v39, %v4384_v23 }
0x1925   :  { %v5189_v11 = vpop.eup %5188  ;;  %v4407_v12 = vmul.f32 1.442695, %v4392_v14 }
0x1926   :  { %v5191_v13 = vpop.eup %5190  ;;  %4421 = vadd.xlane.f32.xlu1 %v5189_v11  ;;  %v4412_v29 = vpop.xlane.xlu2 %4411 }
0x1927   :  { %v4426_v30 = vmul.f32 0.6931472, %v5191_v13  ;;  %5192 = vpow2.f32 %v4407_v12 }
0x1928   :  { %5194 = vlog2.f32 %v4412_v29 }
0x1929   :  { %v4441_v47 = vadd.f32 %v4426_v30, %v4370_v46 }
0x192b   :  { %v4449_v37 = vsub.f32 %v7660_v4, %v4441_v47 }
0x192d   :  { %v5193_v63 = vpop.eup %5192  ;;  %4457 = vst [vmem:[%s7727_s3] sm:$0xff] %v4449_v37 }
0x192e   :  { %v5195_v44 = vpop.eup %5194  ;;  %4423 = vadd.xlane.f32.xlu2 %v5193_v63 }
0x192f   :  { %v4428_v28 = vmul.f32 0.6931472, %v5195_v44 }
0x1931   :  { %v4442_v41 = vadd.f32 %v4428_v28, %v4372_v22 }
0x1933   :  { %v4450_v61 = vsub.f32 %v7663_v10, %v4442_v41 }
0x1935   :  { %4458 = vst [vmem:[%s7727_s3 + $0x8] sm:$0xff] %v4450_v61 }
0x196d   :  { %v4414_v43 = vpop.xlane.xlu0 %4413 }
0x196e   :  { %5196 = vlog2.f32 %v4414_v43 }
0x1974   :  { %v5197_v62 = vpop.eup %5196 }
0x1975   :  { %v4430_v33 = vmul.f32 0.6931472, %v5197_v62  ;;  %v4416_v21 = vpop.xlane.xlu1 %4415 }
0x1976   :  { %5198 = vlog2.f32 %v4416_v21 }
0x1977   :  { %v4443_v27 = vadd.f32 %v4430_v33, %v4374_v6 }
0x1979   :  { %v4451_v60 = vsub.f32 %v7666_v32, %v4443_v27 }
0x197b   :  { %4459 = vst [vmem:[%s7727_s3 + $0x10] sm:$0xff] %v4451_v60 }
0x197c   :  { %v5199_v9 = vpop.eup %5198 }
0x197d   :  { %v4432_v4 = vmul.f32 0.6931472, %v5199_v9 }
0x197f   :  { %v4444_v8 = vadd.f32 %v4432_v4, %v4376_v7 }
0x1981   :  { %v4452_v10 = vsub.f32 %v7669_v16, %v4444_v8  ;;  %v4418_v48 = vpop.xlane.xlu2 %4417 }
0x1982   :  { %5200 = vlog2.f32 %v4418_v48 }
0x1983   :  { %4460 = vst [vmem:[%s7727_s3 + $0x18] sm:$0xff] %v4452_v10 }
0x1988   :  { %v5201_v42 = vpop.eup %5200 }
0x1989   :  { %v4434_v50 = vmul.f32 0.6931472, %v5201_v42  ;;  %v4420_v24 = vpop.xlane.xlu0 %4419 }
0x198a   :  { %5202 = vlog2.f32 %v4420_v24 }
0x198b   :  { %v4445_v32 = vadd.f32 %v4434_v50, %v4378_v20 }
0x198d   :  { %v4453_v46 = vsub.f32 %v7672_v56, %v4445_v32 }
0x198f   :  { %4461 = vst [vmem:[%s7727_s3 + $0x20] sm:$0xff] %v4453_v46 }
0x1990   :  { %v5203_v36 = vpop.eup %5202 }
0x1991   :  { %v4436_v57 = vmul.f32 0.6931472, %v5203_v36 }
0x1993   :  { %v4446_v16 = vadd.f32 %v4436_v57, %v4380_v18 }
0x1995   :  { %v4454_v1 = vsub.f32 %v7675_v26, %v4446_v16 }
0x1997   :  { %4462 = vst [vmem:[%s7727_s3 + $0x28] sm:$0xff] %v4454_v1 }
0x1999   :  { %v4422_v22 = vpop.xlane.xlu1 %4421 }
0x199a   :  { %5204 = vlog2.f32 %v4422_v22 }
0x19a0   :  { %v5205_v19 = vpop.eup %5204 }
0x19a1   :  { %v4438_v40 = vmul.f32 0.6931472, %v5205_v19  ;;  %v4424_v17 = vpop.xlane.xlu2 %4423 }
0x19a2   :  { %5206 = vlog2.f32 %v4424_v17 }
0x19a3   :  { %v4447_v56 = vadd.f32 %v4438_v40, %v4382_v5 }
0x19a5   :  { %v4455_v0 = vsub.f32 %v7679_v58, %v4447_v56 }
0x19a7   :  { %4463 = vst [vmem:[%s7727_s3 + $0x30] sm:$0xff] %v4455_v0 }
0x19a8   :  { %v5207_v45 = vpop.eup %5206 }
0x19a9   :  { %v4440_v6 = vmul.f32 0.6931472, %v5207_v45 }
0x19ab   :  { %v4448_v26 = vadd.f32 %v4440_v6, %v4384_v23 }
0x19ad   :  { %v4456_v34 = vsub.f32 %v7683_v39, %v4448_v26 }
0x19af   :  { %4464 = vst [vmem:[%s7727_s3 + $0x38] sm:$0xff] %v4456_v34 }
0x19b0   :  { %4469 = vsyncpa [#allocation3], 1 }

</bundles_post_ra>
